<compile_context>
chip_gen: v5e
topology: v5e:2x2
jax: 0.10.0
libtpu: 0.0.40
codegen_flags: <defaults>
</compile_context>

<pallas_src>
import functools
import numpy as np
import jax
import jax.numpy as jnp
from jax import lax
from jax.experimental import pallas as pl
from jax.experimental.pallas import tpu as pltpu

EPS = 1e-6            # SigLIPConfig.layer_norm_eps
BF16 = jnp.bfloat16
F32 = jnp.float32


# ---------------------------------------------------------------------------
# In-kernel math helpers
# ---------------------------------------------------------------------------
def _erf_approx(x):
    # Abramowitz & Stegun 7.1.26 rational approximation (max abs err ~1.5e-7).
    # TODO(synk): Mosaic has no guaranteed native erf lowering; exact-GELU is
    # reproduced with this f32-accurate approximation instead of lax.erf.
    a1, a2, a3, a4, a5 = 0.254829592, -0.284496736, 1.421413741, -1.453152027, 1.061405429
    p = 0.3275911
    sgn = jnp.where(x >= 0.0, 1.0, -1.0)
    ax = jnp.abs(x)
    t = 1.0 / (1.0 + p * ax)
    poly = ((((a5 * t + a4) * t + a3) * t + a2) * t + a1) * t
    return sgn * (1.0 - poly * jnp.exp(-ax * ax))


def _gelu_exact(x):
    # PyTorch nn.functional.gelu default (approximate='none'): x * Phi(x)
    return 0.5 * x * (1.0 + _erf_approx(x * 0.7071067811865476))


def _layernorm(x, gamma, beta):
    mean = jnp.mean(x, axis=-1, keepdims=True)
    var = jnp.mean((x - mean) ** 2, axis=-1, keepdims=True)
    return (x - mean) * lax.rsqrt(var + EPS) * gamma + beta


# ---------------------------------------------------------------------------
# Kernel A: LayerNorm1 + Q/K/V projections (row-parallel over B*S rows)
# ---------------------------------------------------------------------------
def _ln_qkv_kernel(scale,
                   x_ref, g_ref, b_ref,
                   wq_ref, bq_ref, wk_ref, bk_ref, wv_ref, bv_ref,
                   q_ref, k_ref, v_ref):
    xn = _layernorm(x_ref[...], g_ref[...], b_ref[...]).astype(BF16)
    q = jnp.dot(xn, wq_ref[...], preferred_element_type=F32) + bq_ref[...]
    q_ref[...] = (q * scale).astype(q_ref.dtype)        # scale folded into Q once
    k = jnp.dot(xn, wk_ref[...], preferred_element_type=F32) + bk_ref[...]
    k_ref[...] = k.astype(k_ref.dtype)
    v = jnp.dot(xn, wv_ref[...], preferred_element_type=F32) + bv_ref[...]
    v_ref[...] = v.astype(v_ref.dtype)


# ---------------------------------------------------------------------------
# Kernel B: attention core for one batch element, all heads batched into one
# dot_general (no per-head loop / concatenate).  q is pre-scaled.
# ---------------------------------------------------------------------------
def _attention_kernel(q_ref, k_ref, v_ref, o_ref):
    q = q_ref[0]                                         # (H, S, hd) bf16
    k = k_ref[0]
    s = jnp.einsum("hqd,hkd->hqk", q, k, preferred_element_type=F32)
    s = s - jnp.max(s, axis=-1, keepdims=True)           # softmax in f32
    p = jnp.exp(s)
    p = p * pl.reciprocal(jnp.sum(p, axis=-1, keepdims=True), approx=True)
    o = jnp.einsum("hqk,hkd->hqd", p.astype(BF16), v_ref[0],
                   preferred_element_type=F32)
    o_ref[0] = o.astype(o_ref.dtype)


# ---------------------------------------------------------------------------
# Kernel C: out_proj + residual + LayerNorm2 + MLP + residual (row-parallel)
# ---------------------------------------------------------------------------
def _out_mlp_kernel(x_ref, a_ref,
                    wo_ref, bo_ref, g_ref, be_ref,
                    w1_ref, b1_ref, w2_ref, b2_ref,
                    o_ref):
    attn = jnp.dot(a_ref[...], wo_ref[...], preferred_element_type=F32) + bo_ref[...]
    x = x_ref[...] + attn                                 # residual 1
    xn = _layernorm(x, g_ref[...], be_ref[...]).astype(BF16)
    h = jnp.dot(xn, w1_ref[...], preferred_element_type=F32) + b1_ref[...]
    h = _gelu_exact(h).astype(BF16)
    m = jnp.dot(h, w2_ref[...], preferred_element_type=F32) + b2_ref[...]
    o_ref[...] = x + m                                    # residual 2


# ---------------------------------------------------------------------------
# Wrapper helpers
# ---------------------------------------------------------------------------
def _row_tile(rows):
    for t in (512, 256, 128, 64, 32, 16, 8):
        if rows % t == 0:
            return t
    return rows


def _nbytes(shape, itemsize, bufs=1):
    n = 1
    for d in shape:
        n *= int(d)
    return n * itemsize * bufs


def _vmem_limit(need_bytes):
    # Explicit scoped VMEM limit sized from the real footprint, capped with
    # headroom against the chip's physical VMEM (64 MiB on v7x, 128 MiB on
    # v5e/v6e).
    try:
        cap = int(pltpu.get_tpu_info().vmem_capacity_bytes)
    except Exception:
        cap = 128 << 20
    head = int(cap * 0.75)
    return int(min(max(need_bytes * 3 // 2 + (4 << 20), 16 << 20), head))


# ---------------------------------------------------------------------------
# One SigLIP encoder layer = 3 pallas_calls
# x2d: (B*S, D) f32.  Weights are bf16, pre-transposed to (in, out).
# ---------------------------------------------------------------------------
def siglip_encoder_layer(x2d, p, B, S, num_heads, single_buffer_weights=True):
    R, D = x2d.shape
    I = p["w1"].shape[1]
    hd = D // num_heads
    TR = _row_tile(R)
    scale = hd ** -0.5

    wbuf = 1 if single_buffer_weights else 2

    def wspec(shape):
        # Grid-constant weight/bias blocks: single-buffered to halve their
        # resident VMEM footprint (their index_map never changes).
        idx = lambda r, n=len(shape): (0,) * n
        if single_buffer_weights:
            return pl.BlockSpec(shape, idx, pipeline_mode=pl.Buffered(1))
        return pl.BlockSpec(shape, idx)

    row_spec = pl.BlockSpec((TR, D), lambda r: (r, 0))

    # ---- call A: LN1 + QKV projections -------------------------------------
    need_a = (_nbytes((TR, D), 4, 2)
              + 3 * _nbytes((TR, D), 2, 2)
              + 3 * _nbytes((D, D), 2, wbuf)
              + 5 * _nbytes((1, D), 4, wbuf))
    q, k, v = pl.pallas_call(
        functools.partial(_ln_qkv_kernel, scale),
        grid=(R // TR,),
        in_specs=[row_spec,
                  wspec((1, D)), wspec((1, D)),
                  wspec((D, D)), wspec((1, D)),
                  wspec((D, D)), wspec((1, D)),
                  wspec((D, D)), wspec((1, D))],
        out_specs=[pl.BlockSpec((TR, D), lambda r: (r, 0)) for _ in range(3)],
        out_shape=[jax.ShapeDtypeStruct((R, D), BF16) for _ in range(3)],
        compiler_params=pltpu.CompilerParams(
            dimension_semantics=("parallel",),
            vmem_limit_bytes=_vmem_limit(need_a)),
    )(x2d, p["ln1_g"], p["ln1_b"],
      p["wq"], p["bq"], p["wk"], p["bk"], p["wv"], p["bv"])

    # Head split / merge happens in XLA-land (cheap relayouts that fuse under
    # the outer jit, kept out of the kernels to avoid lane-axis reshapes).
    def to_heads(t):
        return t.reshape(B, S, num_heads, hd).transpose(0, 2, 1, 3)   # (B,H,S,hd)

    qh, kh, vh = to_heads(q), to_heads(k), to_heads(v)

    # ---- call B: head-batched attention ------------------------------------
    head_block = pl.BlockSpec((1, num_heads, S, hd), lambda b: (b, 0, 0, 0))
    need_b = (4 * _nbytes((1, num_heads, S, hd), 2, 2)
              + 2 * _nbytes((num_heads, S, S), 4, 1))
    attn = pl.pallas_call(
        _attention_kernel,
        grid=(B,),
        in_specs=[head_block, head_block, head_block],
        out_specs=head_block,
        out_shape=jax.ShapeDtypeStruct((B, num_heads, S, hd), BF16),
        compiler_params=pltpu.CompilerParams(
            dimension_semantics=("parallel",),
            vmem_limit_bytes=_vmem_limit(need_b)),
    )(qh, kh, vh)

    attn2d = attn.transpose(0, 2, 1, 3).reshape(R, D)                # (B*S, D)

    # ---- call C: out_proj + residual + LN2 + MLP + residual ----------------
    need_c = (_nbytes((TR, D), 4, 2) + _nbytes((TR, D), 2, 2)
              + _nbytes((TR, D), 4, 2) + _nbytes((TR, I), 4, 2)
              + _nbytes((D, D), 2, wbuf) + 2 * _nbytes((D, I), 2, wbuf)
              + (4 * D + I) * 4 * wbuf)
    out = pl.pallas_call(
        _out_mlp_kernel,
        grid=(R // TR,),
        in_specs=[row_spec, row_spec,
                  wspec((D, D)), wspec((1, D)),
                  wspec((1, D)), wspec((1, D)),
                  wspec((D, I)), wspec((1, I)),
                  wspec((I, D)), wspec((1, D))],
        out_specs=pl.BlockSpec((TR, D), lambda r: (r, 0)),
        out_shape=jax.ShapeDtypeStruct((R, D), F32),
        compiler_params=pltpu.CompilerParams(
            dimension_semantics=("parallel",),
            vmem_limit_bytes=_vmem_limit(need_c)),
    )(x2d, attn2d, p["wo"], p["bo"], p["ln2_g"], p["ln2_b"],
      p["w1"], p["b1"], p["w2"], p["b2"])
    return out


def siglip_encoder(x, layer_params, num_heads, single_buffer_weights=True):
    B, S, D = x.shape
    h = x.reshape(B * S, D)
    for p in layer_params:
        h = siglip_encoder_layer(h, p, B, S, num_heads, single_buffer_weights)
    return h.reshape(B, S, D)


# ---------------------------------------------------------------------------
# Deterministic parameter init (shapes match SigLIPEncoderLayer; weights are
# stored pre-transposed as (in, out) and cast to bf16, biases/LN params f32)
# ---------------------------------------------------------------------------
def init_params(key, num_layers, D, I):
    def lin_w(k, fan_in, shape):
        lim = 1.0 / np.sqrt(fan_in)
        return jax.random.uniform(k, shape, F32, -lim, lim).astype(BF16)

    def lin_b(k, fan_in, shape):
        lim = 1.0 / np.sqrt(fan_in)
        return jax.random.uniform(k, shape, F32, -lim, lim)

    layers = []
    for _ in range(num_layers):
        key, *ks = jax.random.split(key, 13)
        layers.append(dict(
            ln1_g=jnp.ones((1, D), F32), ln1_b=jnp.zeros((1, D), F32),
            wq=lin_w(ks[0], D, (D, D)), bq=lin_b(ks[1], D, (1, D)),
            wk=lin_w(ks[2], D, (D, D)), bk=lin_b(ks[3], D, (1, D)),
            wv=lin_w(ks[4], D, (D, D)), bv=lin_b(ks[5], D, (1, D)),
            wo=lin_w(ks[6], D, (D, D)), bo=lin_b(ks[7], D, (1, D)),
            ln2_g=jnp.ones((1, D), F32), ln2_b=jnp.zeros((1, D), F32),
            w1=lin_w(ks[8], D, (D, I)), b1=lin_b(ks[9], D, (1, I)),
            w2=lin_w(ks[10], I, (I, D)), b2=lin_b(ks[11], I, (1, D)),
        ))
    return layers


# ---------------------------------------------------------------------------
# Pure-JAX reference with the SAME mixed precision (bf16 matmul operands,
# f32 accumulation) so the tolerance can stay tight.  Structure mirrors the
# PyTorch forward exactly (dropout is identity at p=0.0).
# ---------------------------------------------------------------------------
def _ref_layer(x, p, num_heads):
    B, S, D = x.shape
    hd = D // num_heads
    scale = hd ** -0.5

    def ln(z, g, b):
        m = jnp.mean(z, -1, keepdims=True)
        v = jnp.mean((z - m) ** 2, -1, keepdims=True)
        return (z - m) * lax.rsqrt(v + EPS) * g + b

    xn = ln(x, p["ln1_g"], p["ln1_b"]).astype(BF16)
    q = (jnp.einsum("bsd,de->bse", xn, p["wq"], preferred_element_type=F32) + p["bq"]) * scale
    k = jnp.einsum("bsd,de->bse", xn, p["wk"], preferred_element_type=F32) + p["bk"]
    v = jnp.einsum("bsd,de->bse", xn, p["wv"], preferred_element_type=F32) + p["bv"]
    q = q.astype(BF16).reshape(B, S, num_heads, hd).transpose(0, 2, 1, 3)
    k = k.astype(BF16).reshape(B, S, num_heads, hd).transpose(0, 2, 1, 3)
    v = v.astype(BF16).reshape(B, S, num_heads, hd).transpose(0, 2, 1, 3)
    s = jnp.einsum("bhqd,bhkd->bhqk", q, k, preferred_element_type=F32)
    a = jax.nn.softmax(s, axis=-1)
    o = jnp.einsum("bhqk,bhkd->bhqd", a.astype(BF16), v, preferred_element_type=F32)
    o = o.astype(BF16).transpose(0, 2, 1, 3).reshape(B, S, D)
    o = jnp.einsum("bsd,de->bse", o, p["wo"], preferred_element_type=F32) + p["bo"]
    x = x + o
    xn2 = ln(x, p["ln2_g"], p["ln2_b"]).astype(BF16)
    h = jnp.einsum("bsd,di->bsi", xn2, p["w1"], preferred_element_type=F32) + p["b1"]
    h = 0.5 * h * (1.0 + jax.scipy.special.erf(h * (2.0 ** -0.5)))
    h = jnp.einsum("bsi,id->bsd", h.astype(BF16), p["w2"], preferred_element_type=F32) + p["b2"]
    return x + h


def reference_encoder(x, layer_params, num_heads):
    for p in layer_params:
        x = _ref_layer(x, p, num_heads)
    return x


if __name__ == "__main__":
    # Small SigLIPConfig-consistent shapes:
    # hidden_size=128, intermediate_size=256, num_attention_heads=4,
    # num_hidden_layers=2, seq (num_image_tokens)=16, batch=2.
    B, S, D, I_DIM, H, L = 2, 16, 128, 256, 4, 2

    key = jax.random.PRNGKey(0)
    key, xk = jax.random.split(key)
    inputs_embeds = jax.random.normal(xk, (B, S, D), F32)
    params = init_params(key, L, D, I_DIM)

    try:
        enc = jax.jit(functools.partial(siglip_encoder, num_heads=H,
                                        single_buffer_weights=True))
        out = jax.block_until_ready(enc(inputs_embeds, params))
    except Exception:
        # TODO(synk): this jax build rejected pl.Buffered(1) single-buffered
        # weight BlockSpecs; fall back to default double-buffering.
        enc = jax.jit(functools.partial(siglip_encoder, num_heads=H,
                                        single_buffer_weights=False))
        out = jax.block_until_ready(enc(inputs_embeds, params))

    ref = reference_encoder(inputs_embeds, params, H)
    # bf16-operand matmuls + approx softmax reciprocal + erf approximation
    # => validate against the matching mixed-precision reference at 5e-3.
    np.testing.assert_allclose(np.asarray(out), np.asarray(ref), rtol=5e-3, atol=5e-3)

    print("KERNEL_OK")
</pallas_src>

<mosaic_0001>
module attributes {stable_mosaic.version = 11 : i64} {
  func.func @_attention_kernel(%arg0: i32, %arg1: memref<1x4x16x32xbf16, #tpu.memory_space<vmem>>, %arg2: memref<1x4x16x32xbf16, #tpu.memory_space<vmem>>, %arg3: memref<1x4x16x32xbf16, #tpu.memory_space<vmem>>, %arg4: memref<1x4x16x32xbf16, #tpu.memory_space<vmem>>) attributes {dimension_semantics = [#tpu.dimension_semantics<parallel>], iteration_bounds = array<i64: 2>, scalar_prefetch = 0 : i64, scratch_operands = 0 : i64, tpu.core_type = #tpu.core_type<tc>, window_params = [{transform_indices = @transform_0, window_bounds = array<i64: 1, 4, 16, 32>}, {transform_indices = @transform_1, window_bounds = array<i64: 1, 4, 16, 32>}, {transform_indices = @transform_2, window_bounds = array<i64: 1, 4, 16, 32>}, {transform_indices = @transform_3, window_bounds = array<i64: 1, 4, 16, 32>}]} {
    %c0 = arith.constant 0 : index
    %c0_0 = arith.constant 0 : index
    %c0_1 = arith.constant 0 : index
    %c0_2 = arith.constant 0 : index
    %0 = vector.load %arg1[%c0, %c0_0, %c0_1, %c0_2] : memref<1x4x16x32xbf16, #tpu.memory_space<vmem>>, vector<1x4x16x32xbf16>
    %1 = vector.shape_cast %0 : vector<1x4x16x32xbf16> to vector<4x16x32xbf16>
    %c0_3 = arith.constant 0 : index
    %c0_4 = arith.constant 0 : index
    %c0_5 = arith.constant 0 : index
    %c0_6 = arith.constant 0 : index
    %2 = vector.load %arg2[%c0_3, %c0_4, %c0_5, %c0_6] : memref<1x4x16x32xbf16, #tpu.memory_space<vmem>>, vector<1x4x16x32xbf16>
    %3 = vector.shape_cast %2 : vector<1x4x16x32xbf16> to vector<4x16x32xbf16>
    "tpu.trace_start"() <{level = 10 : i32, message = "hqd,hkd->hqk"}> : () -> ()
    %cst = arith.constant dense<0.000000e+00> : vector<4x16x16xf32>
    %4 = tpu.matmul %1, %3, %cst {dimension_numbers = #tpu.dot_dimension_numbers<[2], [2], [1], [1], [0, 0, 0, 1, 1, 1], [0], [0]>} : vector<4x16x32xbf16>, vector<4x16x32xbf16>, vector<4x16x16xf32> -> vector<4x16x16xf32>
    "tpu.trace_stop"() : () -> ()
    %cst_7 = arith.constant dense<0xFF800000> : vector<4x16xf32>
    %5 = vector.multi_reduction <maximumf>, %4, %cst_7 [2] : vector<4x16x16xf32> to vector<4x16xf32>
    %6 = vector.shape_cast %5 : vector<4x16xf32> to vector<4x16x1xf32>
    %7 = vector.broadcast %6 : vector<4x16x1xf32> to vector<4x16x16xf32>
    %8 = arith.subf %4, %7 : vector<4x16x16xf32>
    %9 = math.exp %8 : vector<4x16x16xf32>
    %cst_8 = arith.constant dense<0.000000e+00> : vector<4x16xf32>
    %10 = vector.multi_reduction <add>, %9, %cst_8 [2] : vector<4x16x16xf32> to vector<4x16xf32>
    %11 = vector.shape_cast %10 : vector<4x16xf32> to vector<4x16x1xf32>
    %12 = tpu.reciprocal %11 {approx = true} : vector<4x16x1xf32> -> vector<4x16x1xf32>
    %13 = vector.broadcast %12 : vector<4x16x1xf32> to vector<4x16x16xf32>
    %14 = arith.mulf %9, %13 : vector<4x16x16xf32>
    %15 = arith.truncf %14 : vector<4x16x16xf32> to vector<4x16x16xbf16>
    %c0_9 = arith.constant 0 : index
    %c0_10 = arith.constant 0 : index
    %c0_11 = arith.constant 0 : index
    %c0_12 = arith.constant 0 : index
    %16 = vector.load %arg3[%c0_9, %c0_10, %c0_11, %c0_12] : memref<1x4x16x32xbf16, #tpu.memory_space<vmem>>, vector<1x4x16x32xbf16>
    %17 = vector.shape_cast %16 : vector<1x4x16x32xbf16> to vector<4x16x32xbf16>
    "tpu.trace_start"() <{level = 10 : i32, message = "hqk,hkd->hqd"}> : () -> ()
    %cst_13 = arith.constant dense<0.000000e+00> : vector<4x16x32xf32>
    %18 = tpu.matmul %15, %17, %cst_13 {dimension_numbers = #tpu.dot_dimension_numbers<[2], [1], [1], [2], [0, 0, 0, 1, 1, 2], [0], [0]>} : vector<4x16x16xbf16>, vector<4x16x32xbf16>, vector<4x16x32xf32> -> vector<4x16x32xf32>
    "tpu.trace_stop"() : () -> ()
    %19 = arith.truncf %18 : vector<4x16x32xf32> to vector<4x16x32xbf16>
    %c0_14 = arith.constant 0 : index
    %c0_15 = arith.constant 0 : index
    %c0_16 = arith.constant 0 : index
    %c0_17 = arith.constant 0 : index
    %20 = vector.load %arg4[%c0_14, %c0_15, %c0_16, %c0_17] : memref<1x4x16x32xbf16, #tpu.memory_space<vmem>>, vector<1x4x16x32xbf16>
    %21 = vector.shape_cast %20 : vector<1x4x16x32xbf16> to vector<4x16x32xbf16>
    %22 = vector.shape_cast %19 : vector<4x16x32xbf16> to vector<1x4x16x32xbf16>
    tpu.vector_store %arg4[%c0_14, %c0_15, %c0_16, %c0_17], %22 {strides = array<i32>} : memref<1x4x16x32xbf16, #tpu.memory_space<vmem>>, vector<1x4x16x32xbf16>,
    return
  }
  func.func @transform_0(%arg0: i32) -> (i32, i32, i32, i32) {
    %c0_i32 = arith.constant 0 : i32
    %c0_i32_0 = arith.constant 0 : i32
    %c0_i32_1 = arith.constant 0 : i32
    %c0_i32_2 = arith.constant 0 : i32
    return %arg0, %c0_i32, %c0_i32_0, %c0_i32_1 : i32, i32, i32, i32
  }
  func.func @transform_1(%arg0: i32) -> (i32, i32, i32, i32) {
    %c0_i32 = arith.constant 0 : i32
    %c0_i32_0 = arith.constant 0 : i32
    %c0_i32_1 = arith.constant 0 : i32
    %c0_i32_2 = arith.constant 0 : i32
    return %arg0, %c0_i32, %c0_i32_0, %c0_i32_1 : i32, i32, i32, i32
  }
  func.func @transform_2(%arg0: i32) -> (i32, i32, i32, i32) {
    %c0_i32 = arith.constant 0 : i32
    %c0_i32_0 = arith.constant 0 : i32
    %c0_i32_1 = arith.constant 0 : i32
    %c0_i32_2 = arith.constant 0 : i32
    return %arg0, %c0_i32, %c0_i32_0, %c0_i32_1 : i32, i32, i32, i32
  }
  func.func @transform_3(%arg0: i32) -> (i32, i32, i32, i32) {
    %c0_i32 = arith.constant 0 : i32
    %c0_i32_0 = arith.constant 0 : i32
    %c0_i32_1 = arith.constant 0 : i32
    %c0_i32_2 = arith.constant 0 : i32
    return %arg0, %c0_i32, %c0_i32_0, %c0_i32_1 : i32, i32, i32, i32
  }
}

module attributes {stable_mosaic.version = 11 : i64} {
  func.func @_ln_qkv_kernel(%arg0: i32, %arg1: memref<32x128xf32, #tpu.memory_space<vmem>>, %arg2: memref<1x128xf32, #tpu.memory_space<vmem>>, %arg3: memref<1x128xf32, #tpu.memory_space<vmem>>, %arg4: memref<128x128xbf16, #tpu.memory_space<vmem>>, %arg5: memref<1x128xf32, #tpu.memory_space<vmem>>, %arg6: memref<128x128xbf16, #tpu.memory_space<vmem>>, %arg7: memref<1x128xf32, #tpu.memory_space<vmem>>, %arg8: memref<128x128xbf16, #tpu.memory_space<vmem>>, %arg9: memref<1x128xf32, #tpu.memory_space<vmem>>, %arg10: memref<32x128xbf16, #tpu.memory_space<vmem>>, %arg11: memref<32x128xbf16, #tpu.memory_space<vmem>>, %arg12: memref<32x128xbf16, #tpu.memory_space<vmem>>) attributes {dimension_semantics = [#tpu.dimension_semantics<parallel>], iteration_bounds = array<i64: 1>, scalar_prefetch = 0 : i64, scratch_operands = 0 : i64, tpu.core_type = #tpu.core_type<tc>, window_params = [{transform_indices = @transform_0, window_bounds = array<i64: 32, 128>}, {pipeline_mode = #tpu.pipeline_mode<synchronous>, transform_indices = @transform_1, window_bounds = array<i64: 1, 128>}, {pipeline_mode = #tpu.pipeline_mode<synchronous>, transform_indices = @transform_2, window_bounds = array<i64: 1, 128>}, {pipeline_mode = #tpu.pipeline_mode<synchronous>, transform_indices = @transform_3, window_bounds = array<i64: 128, 128>}, {pipeline_mode = #tpu.pipeline_mode<synchronous>, transform_indices = @transform_4, window_bounds = array<i64: 1, 128>}, {pipeline_mode = #tpu.pipeline_mode<synchronous>, transform_indices = @transform_5, window_bounds = array<i64: 128, 128>}, {pipeline_mode = #tpu.pipeline_mode<synchronous>, transform_indices = @transform_6, window_bounds = array<i64: 1, 128>}, {pipeline_mode = #tpu.pipeline_mode<synchronous>, transform_indices = @transform_7, window_bounds = array<i64: 128, 128>}, {pipeline_mode = #tpu.pipeline_mode<synchronous>, transform_indices = @transform_8, window_bounds = array<i64: 1, 128>}, {transform_indices = @transform_9, window_bounds = array<i64: 32, 128>}, {transform_indices = @transform_10, window_bounds = array<i64: 32, 128>}, {transform_indices = @transform_11, window_bounds = array<i64: 32, 128>}]} {
    %c0 = arith.constant 0 : index
    %c0_0 = arith.constant 0 : index
    %0 = vector.load %arg1[%c0, %c0_0] : memref<32x128xf32, #tpu.memory_space<vmem>>, vector<32x128xf32>
    %c0_1 = arith.constant 0 : index
    %c0_2 = arith.constant 0 : index
    %1 = vector.load %arg2[%c0_1, %c0_2] : memref<1x128xf32, #tpu.memory_space<vmem>>, vector<1x128xf32>
    %c0_3 = arith.constant 0 : index
    %c0_4 = arith.constant 0 : index
    %2 = vector.load %arg3[%c0_3, %c0_4] : memref<1x128xf32, #tpu.memory_space<vmem>>, vector<1x128xf32>
    %cst = arith.constant dense<0.000000e+00> : vector<32xf32>
    %3 = vector.multi_reduction <add>, %0, %cst [1] : vector<32x128xf32> to vector<32xf32>
    %4 = vector.shape_cast %3 : vector<32xf32> to vector<32x1xf32>
    %cst_5 = arith.constant 1.280000e+02 : f32
    %5 = vector.broadcast %cst_5 : f32 to vector<32x1xf32>
    %6 = arith.divf %4, %5 : vector<32x1xf32>
    %7 = vector.broadcast %6 : vector<32x1xf32> to vector<32x128xf32>
    %8 = arith.subf %0, %7 : vector<32x128xf32>
    %9 = arith.mulf %8, %8 : vector<32x128xf32>
    %cst_6 = arith.constant dense<0.000000e+00> : vector<32xf32>
    %10 = vector.multi_reduction <add>, %9, %cst_6 [1] : vector<32x128xf32> to vector<32xf32>
    %11 = vector.shape_cast %10 : vector<32xf32> to vector<32x1xf32>
    %cst_7 = arith.constant 1.280000e+02 : f32
    %12 = vector.broadcast %cst_7 : f32 to vector<32x1xf32>
    %13 = arith.divf %11, %12 : vector<32x1xf32>
    %14 = vector.broadcast %6 : vector<32x1xf32> to vector<32x128xf32>
    %15 = arith.subf %0, %14 : vector<32x128xf32>
    %cst_8 = arith.constant 9.99999997E-7 : f32
    %16 = vector.broadcast %cst_8 : f32 to vector<32x1xf32>
    %17 = arith.addf %13, %16 : vector<32x1xf32>
    %18 = math.rsqrt %17 : vector<32x1xf32>
    %19 = vector.broadcast %18 : vector<32x1xf32> to vector<32x128xf32>
    %20 = arith.mulf %15, %19 : vector<32x128xf32>
    %21 = vector.broadcast %1 : vector<1x128xf32> to vector<32x128xf32>
    %22 = arith.mulf %20, %21 : vector<32x128xf32>
    %23 = vector.broadcast %2 : vector<1x128xf32> to vector<32x128xf32>
    %24 = arith.addf %22, %23 : vector<32x128xf32>
    %25 = arith.truncf %24 : vector<32x128xf32> to vector<32x128xbf16>
    %c0_9 = arith.constant 0 : index
    %c0_10 = arith.constant 0 : index
    %26 = vector.load %arg4[%c0_9, %c0_10] : memref<128x128xbf16, #tpu.memory_space<vmem>>, vector<128x128xbf16>
    %cst_11 = arith.constant dense<0.000000e+00> : vector<32x128xf32>
    %27 = tpu.matmul %25, %26, %cst_11 {dimension_numbers = #tpu.dot_dimension_numbers<[1], [0], [0], [1], [0, 0, 1, 1], [], []>} : vector<32x128xbf16>, vector<128x128xbf16>, vector<32x128xf32> -> vector<32x128xf32>
    %c0_12 = arith.constant 0 : index
    %c0_13 = arith.constant 0 : index
    %28 = vector.load %arg5[%c0_12, %c0_13] : memref<1x128xf32, #tpu.memory_space<vmem>>, vector<1x128xf32>
    %29 = vector.broadcast %28 : vector<1x128xf32> to vector<32x128xf32>
    %30 = arith.addf %27, %29 : vector<32x128xf32>
    %cst_14 = arith.constant 0.176776692 : f32
    %31 = vector.broadcast %cst_14 : f32 to vector<32x128xf32>
    %32 = arith.mulf %30, %31 : vector<32x128xf32>
    %33 = arith.truncf %32 : vector<32x128xf32> to vector<32x128xbf16>
    %c0_15 = arith.constant 0 : index
    %c0_16 = arith.constant 0 : index
    %34 = vector.load %arg10[%c0_15, %c0_16] : memref<32x128xbf16, #tpu.memory_space<vmem>>, vector<32x128xbf16>
    tpu.vector_store %arg10[%c0_15, %c0_16], %33 {strides = array<i32>} : memref<32x128xbf16, #tpu.memory_space<vmem>>, vector<32x128xbf16>,
    %c0_17 = arith.constant 0 : index
    %c0_18 = arith.constant 0 : index
    %35 = vector.load %arg6[%c0_17, %c0_18] : memref<128x128xbf16, #tpu.memory_space<vmem>>, vector<128x128xbf16>
    %cst_19 = arith.constant dense<0.000000e+00> : vector<32x128xf32>
    %36 = tpu.matmul %25, %35, %cst_19 {dimension_numbers = #tpu.dot_dimension_numbers<[1], [0], [0], [1], [0, 0, 1, 1], [], []>} : vector<32x128xbf16>, vector<128x128xbf16>, vector<32x128xf32> -> vector<32x128xf32>
    %c0_20 = arith.constant 0 : index
    %c0_21 = arith.constant 0 : index
    %37 = vector.load %arg7[%c0_20, %c0_21] : memref<1x128xf32, #tpu.memory_space<vmem>>, vector<1x128xf32>
    %38 = vector.broadcast %37 : vector<1x128xf32> to vector<32x128xf32>
    %39 = arith.addf %36, %38 : vector<32x128xf32>
    %40 = arith.truncf %39 : vector<32x128xf32> to vector<32x128xbf16>
    %c0_22 = arith.constant 0 : index
    %c0_23 = arith.constant 0 : index
    %41 = vector.load %arg11[%c0_22, %c0_23] : memref<32x128xbf16, #tpu.memory_space<vmem>>, vector<32x128xbf16>
    tpu.vector_store %arg11[%c0_22, %c0_23], %40 {strides = array<i32>} : memref<32x128xbf16, #tpu.memory_space<vmem>>, vector<32x128xbf16>,
    %c0_24 = arith.constant 0 : index
    %c0_25 = arith.constant 0 : index
    %42 = vector.load %arg8[%c0_24, %c0_25] : memref<128x128xbf16, #tpu.memory_space<vmem>>, vector<128x128xbf16>
    %cst_26 = arith.constant dense<0.000000e+00> : vector<32x128xf32>
    %43 = tpu.matmul %25, %42, %cst_26 {dimension_numbers = #tpu.dot_dimension_numbers<[1], [0], [0], [1], [0, 0, 1, 1], [], []>} : vector<32x128xbf16>, vector<128x128xbf16>, vector<32x128xf32> -> vector<32x128xf32>
    %c0_27 = arith.constant 0 : index
    %c0_28 = arith.constant 0 : index
    %44 = vector.load %arg9[%c0_27, %c0_28] : memref<1x128xf32, #tpu.memory_space<vmem>>, vector<1x128xf32>
    %45 = vector.broadcast %44 : vector<1x128xf32> to vector<32x128xf32>
    %46 = arith.addf %43, %45 : vector<32x128xf32>
    %47 = arith.truncf %46 : vector<32x128xf32> to vector<32x128xbf16>
    %c0_29 = arith.constant 0 : index
    %c0_30 = arith.constant 0 : index
    %48 = vector.load %arg12[%c0_29, %c0_30] : memref<32x128xbf16, #tpu.memory_space<vmem>>, vector<32x128xbf16>
    tpu.vector_store %arg12[%c0_29, %c0_30], %47 {strides = array<i32>} : memref<32x128xbf16, #tpu.memory_space<vmem>>, vector<32x128xbf16>,
    return
  }
  func.func @transform_0(%arg0: i32) -> (i32, i32) {
    %c0_i32 = arith.constant 0 : i32
    %c0_i32_0 = arith.constant 0 : i32
    return %arg0, %c0_i32 : i32, i32
  }
  func.func @transform_1(%arg0: i32) -> (i32, i32) {
    %c0_i32 = arith.constant 0 : i32
    %c0_i32_0 = arith.constant 0 : i32
    %c0_i32_1 = arith.constant 0 : i32
    return %c0_i32, %c0_i32_0 : i32, i32
  }
  func.func @transform_2(%arg0: i32) -> (i32, i32) {
    %c0_i32 = arith.constant 0 : i32
    %c0_i32_0 = arith.constant 0 : i32
    %c0_i32_1 = arith.constant 0 : i32
    return %c0_i32, %c0_i32_0 : i32, i32
  }
  func.func @transform_3(%arg0: i32) -> (i32, i32) {
    %c0_i32 = arith.constant 0 : i32
    %c0_i32_0 = arith.constant 0 : i32
    %c0_i32_1 = arith.constant 0 : i32
    return %c0_i32, %c0_i32_0 : i32, i32
  }
  func.func @transform_4(%arg0: i32) -> (i32, i32) {
    %c0_i32 = arith.constant 0 : i32
    %c0_i32_0 = arith.constant 0 : i32
    %c0_i32_1 = arith.constant 0 : i32
    return %c0_i32, %c0_i32_0 : i32, i32
  }
  func.func @transform_5(%arg0: i32) -> (i32, i32) {
    %c0_i32 = arith.constant 0 : i32
    %c0_i32_0 = arith.constant 0 : i32
    %c0_i32_1 = arith.constant 0 : i32
    return %c0_i32, %c0_i32_0 : i32, i32
  }
  func.func @transform_6(%arg0: i32) -> (i32, i32) {
    %c0_i32 = arith.constant 0 : i32
    %c0_i32_0 = arith.constant 0 : i32
    %c0_i32_1 = arith.constant 0 : i32
    return %c0_i32, %c0_i32_0 : i32, i32
  }
  func.func @transform_7(%arg0: i32) -> (i32, i32) {
    %c0_i32 = arith.constant 0 : i32
    %c0_i32_0 = arith.constant 0 : i32
    %c0_i32_1 = arith.constant 0 : i32
    return %c0_i32, %c0_i32_0 : i32, i32
  }
  func.func @transform_8(%arg0: i32) -> (i32, i32) {
    %c0_i32 = arith.constant 0 : i32
    %c0_i32_0 = arith.constant 0 : i32
    %c0_i32_1 = arith.constant 0 : i32
    return %c0_i32, %c0_i32_0 : i32, i32
  }
  func.func @transform_9(%arg0: i32) -> (i32, i32) {
    %c0_i32 = arith.constant 0 : i32
    %c0_i32_0 = arith.constant 0 : i32
    return %arg0, %c0_i32 : i32, i32
  }
  func.func @transform_10(%arg0: i32) -> (i32, i32) {
    %c0_i32 = arith.constant 0 : i32
    %c0_i32_0 = arith.constant 0 : i32
    return %arg0, %c0_i32 : i32, i32
  }
  func.func @transform_11(%arg0: i32) -> (i32, i32) {
    %c0_i32 = arith.constant 0 : i32
    %c0_i32_0 = arith.constant 0 : i32
    return %arg0, %c0_i32 : i32, i32
  }
}

module attributes {stable_mosaic.version = 11 : i64} {
  func.func @_ln_qkv_kernel(%arg0: i32, %arg1: memref<32x128xf32, #tpu.memory_space<vmem>>, %arg2: memref<1x128xf32, #tpu.memory_space<vmem>>, %arg3: memref<1x128xf32, #tpu.memory_space<vmem>>, %arg4: memref<128x128xbf16, #tpu.memory_space<vmem>>, %arg5: memref<1x128xf32, #tpu.memory_space<vmem>>, %arg6: memref<128x128xbf16, #tpu.memory_space<vmem>>, %arg7: memref<1x128xf32, #tpu.memory_space<vmem>>, %arg8: memref<128x128xbf16, #tpu.memory_space<vmem>>, %arg9: memref<1x128xf32, #tpu.memory_space<vmem>>, %arg10: memref<32x128xbf16, #tpu.memory_space<vmem>>, %arg11: memref<32x128xbf16, #tpu.memory_space<vmem>>, %arg12: memref<32x128xbf16, #tpu.memory_space<vmem>>) attributes {dimension_semantics = [#tpu.dimension_semantics<parallel>], iteration_bounds = array<i64: 1>, scalar_prefetch = 0 : i64, scratch_operands = 0 : i64, tpu.core_type = #tpu.core_type<tc>, window_params = [{transform_indices = @transform_0, window_bounds = array<i64: 32, 128>}, {pipeline_mode = #tpu.pipeline_mode<synchronous>, transform_indices = @transform_1, window_bounds = array<i64: 1, 128>}, {pipeline_mode = #tpu.pipeline_mode<synchronous>, transform_indices = @transform_2, window_bounds = array<i64: 1, 128>}, {pipeline_mode = #tpu.pipeline_mode<synchronous>, transform_indices = @transform_3, window_bounds = array<i64: 128, 128>}, {pipeline_mode = #tpu.pipeline_mode<synchronous>, transform_indices = @transform_4, window_bounds = array<i64: 1, 128>}, {pipeline_mode = #tpu.pipeline_mode<synchronous>, transform_indices = @transform_5, window_bounds = array<i64: 128, 128>}, {pipeline_mode = #tpu.pipeline_mode<synchronous>, transform_indices = @transform_6, window_bounds = array<i64: 1, 128>}, {pipeline_mode = #tpu.pipeline_mode<synchronous>, transform_indices = @transform_7, window_bounds = array<i64: 128, 128>}, {pipeline_mode = #tpu.pipeline_mode<synchronous>, transform_indices = @transform_8, window_bounds = array<i64: 1, 128>}, {transform_indices = @transform_9, window_bounds = array<i64: 32, 128>}, {transform_indices = @transform_10, window_bounds = array<i64: 32, 128>}, {transform_indices = @transform_11, window_bounds = array<i64: 32, 128>}]} {
    %c0 = arith.constant 0 : index
    %c0_0 = arith.constant 0 : index
    %0 = vector.load %arg1[%c0, %c0_0] : memref<32x128xf32, #tpu.memory_space<vmem>>, vector<32x128xf32>
    %c0_1 = arith.constant 0 : index
    %c0_2 = arith.constant 0 : index
    %1 = vector.load %arg2[%c0_1, %c0_2] : memref<1x128xf32, #tpu.memory_space<vmem>>, vector<1x128xf32>
    %c0_3 = arith.constant 0 : index
    %c0_4 = arith.constant 0 : index
    %2 = vector.load %arg3[%c0_3, %c0_4] : memref<1x128xf32, #tpu.memory_space<vmem>>, vector<1x128xf32>
    %cst = arith.constant dense<0.000000e+00> : vector<32xf32>
    %3 = vector.multi_reduction <add>, %0, %cst [1] : vector<32x128xf32> to vector<32xf32>
    %4 = vector.shape_cast %3 : vector<32xf32> to vector<32x1xf32>
    %cst_5 = arith.constant 1.280000e+02 : f32
    %5 = vector.broadcast %cst_5 : f32 to vector<32x1xf32>
    %6 = arith.divf %4, %5 : vector<32x1xf32>
    %7 = vector.broadcast %6 : vector<32x1xf32> to vector<32x128xf32>
    %8 = arith.subf %0, %7 : vector<32x128xf32>
    %9 = arith.mulf %8, %8 : vector<32x128xf32>
    %cst_6 = arith.constant dense<0.000000e+00> : vector<32xf32>
    %10 = vector.multi_reduction <add>, %9, %cst_6 [1] : vector<32x128xf32> to vector<32xf32>
    %11 = vector.shape_cast %10 : vector<32xf32> to vector<32x1xf32>
    %cst_7 = arith.constant 1.280000e+02 : f32
    %12 = vector.broadcast %cst_7 : f32 to vector<32x1xf32>
    %13 = arith.divf %11, %12 : vector<32x1xf32>
    %14 = vector.broadcast %6 : vector<32x1xf32> to vector<32x128xf32>
    %15 = arith.subf %0, %14 : vector<32x128xf32>
    %cst_8 = arith.constant 9.99999997E-7 : f32
    %16 = vector.broadcast %cst_8 : f32 to vector<32x1xf32>
    %17 = arith.addf %13, %16 : vector<32x1xf32>
    %18 = math.rsqrt %17 : vector<32x1xf32>
    %19 = vector.broadcast %18 : vector<32x1xf32> to vector<32x128xf32>
    %20 = arith.mulf %15, %19 : vector<32x128xf32>
    %21 = vector.broadcast %1 : vector<1x128xf32> to vector<32x128xf32>
    %22 = arith.mulf %20, %21 : vector<32x128xf32>
    %23 = vector.broadcast %2 : vector<1x128xf32> to vector<32x128xf32>
    %24 = arith.addf %22, %23 : vector<32x128xf32>
    %25 = arith.truncf %24 : vector<32x128xf32> to vector<32x128xbf16>
    %c0_9 = arith.constant 0 : index
    %c0_10 = arith.constant 0 : index
    %26 = vector.load %arg4[%c0_9, %c0_10] : memref<128x128xbf16, #tpu.memory_space<vmem>>, vector<128x128xbf16>
    %cst_11 = arith.constant dense<0.000000e+00> : vector<32x128xf32>
    %27 = tpu.matmul %25, %26, %cst_11 {dimension_numbers = #tpu.dot_dimension_numbers<[1], [0], [0], [1], [0, 0, 1, 1], [], []>} : vector<32x128xbf16>, vector<128x128xbf16>, vector<32x128xf32> -> vector<32x128xf32>
    %c0_12 = arith.constant 0 : index
    %c0_13 = arith.constant 0 : index
    %28 = vector.load %arg5[%c0_12, %c0_13] : memref<1x128xf32, #tpu.memory_space<vmem>>, vector<1x128xf32>
    %29 = vector.broadcast %28 : vector<1x128xf32> to vector<32x128xf32>
    %30 = arith.addf %27, %29 : vector<32x128xf32>
    %cst_14 = arith.constant 0.176776692 : f32
    %31 = vector.broadcast %cst_14 : f32 to vector<32x128xf32>
    %32 = arith.mulf %30, %31 : vector<32x128xf32>
    %33 = arith.truncf %32 : vector<32x128xf32> to vector<32x128xbf16>
    %c0_15 = arith.constant 0 : index
    %c0_16 = arith.constant 0 : index
    %34 = vector.load %arg10[%c0_15, %c0_16] : memref<32x128xbf16, #tpu.memory_space<vmem>>, vector<32x128xbf16>
    tpu.vector_store %arg10[%c0_15, %c0_16], %33 {strides = array<i32>} : memref<32x128xbf16, #tpu.memory_space<vmem>>, vector<32x128xbf16>,
    %c0_17 = arith.constant 0 : index
    %c0_18 = arith.constant 0 : index
    %35 = vector.load %arg6[%c0_17, %c0_18] : memref<128x128xbf16, #tpu.memory_space<vmem>>, vector<128x128xbf16>
    %cst_19 = arith.constant dense<0.000000e+00> : vector<32x128xf32>
    %36 = tpu.matmul %25, %35, %cst_19 {dimension_numbers = #tpu.dot_dimension_numbers<[1], [0], [0], [1], [0, 0, 1, 1], [], []>} : vector<32x128xbf16>, vector<128x128xbf16>, vector<32x128xf32> -> vector<32x128xf32>
    %c0_20 = arith.constant 0 : index
    %c0_21 = arith.constant 0 : index
    %37 = vector.load %arg7[%c0_20, %c0_21] : memref<1x128xf32, #tpu.memory_space<vmem>>, vector<1x128xf32>
    %38 = vector.broadcast %37 : vector<1x128xf32> to vector<32x128xf32>
    %39 = arith.addf %36, %38 : vector<32x128xf32>
    %40 = arith.truncf %39 : vector<32x128xf32> to vector<32x128xbf16>
    %c0_22 = arith.constant 0 : index
    %c0_23 = arith.constant 0 : index
    %41 = vector.load %arg11[%c0_22, %c0_23] : memref<32x128xbf16, #tpu.memory_space<vmem>>, vector<32x128xbf16>
    tpu.vector_store %arg11[%c0_22, %c0_23], %40 {strides = array<i32>} : memref<32x128xbf16, #tpu.memory_space<vmem>>, vector<32x128xbf16>,
    %c0_24 = arith.constant 0 : index
    %c0_25 = arith.constant 0 : index
    %42 = vector.load %arg8[%c0_24, %c0_25] : memref<128x128xbf16, #tpu.memory_space<vmem>>, vector<128x128xbf16>
    %cst_26 = arith.constant dense<0.000000e+00> : vector<32x128xf32>
    %43 = tpu.matmul %25, %42, %cst_26 {dimension_numbers = #tpu.dot_dimension_numbers<[1], [0], [0], [1], [0, 0, 1, 1], [], []>} : vector<32x128xbf16>, vector<128x128xbf16>, vector<32x128xf32> -> vector<32x128xf32>
    %c0_27 = arith.constant 0 : index
    %c0_28 = arith.constant 0 : index
    %44 = vector.load %arg9[%c0_27, %c0_28] : memref<1x128xf32, #tpu.memory_space<vmem>>, vector<1x128xf32>
    %45 = vector.broadcast %44 : vector<1x128xf32> to vector<32x128xf32>
    %46 = arith.addf %43, %45 : vector<32x128xf32>
    %47 = arith.truncf %46 : vector<32x128xf32> to vector<32x128xbf16>
    %c0_29 = arith.constant 0 : index
    %c0_30 = arith.constant 0 : index
    %48 = vector.load %arg12[%c0_29, %c0_30] : memref<32x128xbf16, #tpu.memory_space<vmem>>, vector<32x128xbf16>
    tpu.vector_store %arg12[%c0_29, %c0_30], %47 {strides = array<i32>} : memref<32x128xbf16, #tpu.memory_space<vmem>>, vector<32x128xbf16>,
    return
  }
  func.func @transform_0(%arg0: i32) -> (i32, i32) {
    %c0_i32 = arith.constant 0 : i32
    %c0_i32_0 = arith.constant 0 : i32
    return %arg0, %c0_i32 : i32, i32
  }
  func.func @transform_1(%arg0: i32) -> (i32, i32) {
    %c0_i32 = arith.constant 0 : i32
    %c0_i32_0 = arith.constant 0 : i32
    %c0_i32_1 = arith.constant 0 : i32
    return %c0_i32, %c0_i32_0 : i32, i32
  }
  func.func @transform_2(%arg0: i32) -> (i32, i32) {
    %c0_i32 = arith.constant 0 : i32
    %c0_i32_0 = arith.constant 0 : i32
    %c0_i32_1 = arith.constant 0 : i32
    return %c0_i32, %c0_i32_0 : i32, i32
  }
  func.func @transform_3(%arg0: i32) -> (i32, i32) {
    %c0_i32 = arith.constant 0 : i32
    %c0_i32_0 = arith.constant 0 : i32
    %c0_i32_1 = arith.constant 0 : i32
    return %c0_i32, %c0_i32_0 : i32, i32
  }
  func.func @transform_4(%arg0: i32) -> (i32, i32) {
    %c0_i32 = arith.constant 0 : i32
    %c0_i32_0 = arith.constant 0 : i32
    %c0_i32_1 = arith.constant 0 : i32
    return %c0_i32, %c0_i32_0 : i32, i32
  }
  func.func @transform_5(%arg0: i32) -> (i32, i32) {
    %c0_i32 = arith.constant 0 : i32
    %c0_i32_0 = arith.constant 0 : i32
    %c0_i32_1 = arith.constant 0 : i32
    return %c0_i32, %c0_i32_0 : i32, i32
  }
  func.func @transform_6(%arg0: i32) -> (i32, i32) {
    %c0_i32 = arith.constant 0 : i32
    %c0_i32_0 = arith.constant 0 : i32
    %c0_i32_1 = arith.constant 0 : i32
    return %c0_i32, %c0_i32_0 : i32, i32
  }
  func.func @transform_7(%arg0: i32) -> (i32, i32) {
    %c0_i32 = arith.constant 0 : i32
    %c0_i32_0 = arith.constant 0 : i32
    %c0_i32_1 = arith.constant 0 : i32
    return %c0_i32, %c0_i32_0 : i32, i32
  }
  func.func @transform_8(%arg0: i32) -> (i32, i32) {
    %c0_i32 = arith.constant 0 : i32
    %c0_i32_0 = arith.constant 0 : i32
    %c0_i32_1 = arith.constant 0 : i32
    return %c0_i32, %c0_i32_0 : i32, i32
  }
  func.func @transform_9(%arg0: i32) -> (i32, i32) {
    %c0_i32 = arith.constant 0 : i32
    %c0_i32_0 = arith.constant 0 : i32
    return %arg0, %c0_i32 : i32, i32
  }
  func.func @transform_10(%arg0: i32) -> (i32, i32) {
    %c0_i32 = arith.constant 0 : i32
    %c0_i32_0 = arith.constant 0 : i32
    return %arg0, %c0_i32 : i32, i32
  }
  func.func @transform_11(%arg0: i32) -> (i32, i32) {
    %c0_i32 = arith.constant 0 : i32
    %c0_i32_0 = arith.constant 0 : i32
    return %arg0, %c0_i32 : i32, i32
  }
}

module attributes {stable_mosaic.version = 11 : i64} {
  func.func @_out_mlp_kernel(%arg0: i32, %arg1: memref<32x128xf32, #tpu.memory_space<vmem>>, %arg2: memref<32x128xbf16, #tpu.memory_space<vmem>>, %arg3: memref<128x128xbf16, #tpu.memory_space<vmem>>, %arg4: memref<1x128xf32, #tpu.memory_space<vmem>>, %arg5: memref<1x128xf32, #tpu.memory_space<vmem>>, %arg6: memref<1x128xf32, #tpu.memory_space<vmem>>, %arg7: memref<128x256xbf16, #tpu.memory_space<vmem>>, %arg8: memref<1x256xf32, #tpu.memory_space<vmem>>, %arg9: memref<256x128xbf16, #tpu.memory_space<vmem>>, %arg10: memref<1x128xf32, #tpu.memory_space<vmem>>, %arg11: memref<32x128xf32, #tpu.memory_space<vmem>>) attributes {dimension_semantics = [#tpu.dimension_semantics<parallel>], iteration_bounds = array<i64: 1>, scalar_prefetch = 0 : i64, scratch_operands = 0 : i64, tpu.core_type = #tpu.core_type<tc>, window_params = [{transform_indices = @transform_0, window_bounds = array<i64: 32, 128>}, {transform_indices = @transform_1, window_bounds = array<i64: 32, 128>}, {pipeline_mode = #tpu.pipeline_mode<synchronous>, transform_indices = @transform_2, window_bounds = array<i64: 128, 128>}, {pipeline_mode = #tpu.pipeline_mode<synchronous>, transform_indices = @transform_3, window_bounds = array<i64: 1, 128>}, {pipeline_mode = #tpu.pipeline_mode<synchronous>, transform_indices = @transform_4, window_bounds = array<i64: 1, 128>}, {pipeline_mode = #tpu.pipeline_mode<synchronous>, transform_indices = @transform_5, window_bounds = array<i64: 1, 128>}, {pipeline_mode = #tpu.pipeline_mode<synchronous>, transform_indices = @transform_6, window_bounds = array<i64: 128, 256>}, {pipeline_mode = #tpu.pipeline_mode<synchronous>, transform_indices = @transform_7, window_bounds = array<i64: 1, 256>}, {pipeline_mode = #tpu.pipeline_mode<synchronous>, transform_indices = @transform_8, window_bounds = array<i64: 256, 128>}, {pipeline_mode = #tpu.pipeline_mode<synchronous>, transform_indices = @transform_9, window_bounds = array<i64: 1, 128>}, {transform_indices = @transform_10, window_bounds = array<i64: 32, 128>}]} {
    %c0 = arith.constant 0 : index
    %c0_0 = arith.constant 0 : index
    %0 = vector.load %arg2[%c0, %c0_0] : memref<32x128xbf16, #tpu.memory_space<vmem>>, vector<32x128xbf16>
    %c0_1 = arith.constant 0 : index
    %c0_2 = arith.constant 0 : index
    %1 = vector.load %arg3[%c0_1, %c0_2] : memref<128x128xbf16, #tpu.memory_space<vmem>>, vector<128x128xbf16>
    %cst = arith.constant dense<0.000000e+00> : vector<32x128xf32>
    %2 = tpu.matmul %0, %1, %cst {dimension_numbers = #tpu.dot_dimension_numbers<[1], [0], [0], [1], [0, 0, 1, 1], [], []>} : vector<32x128xbf16>, vector<128x128xbf16>, vector<32x128xf32> -> vector<32x128xf32>
    %c0_3 = arith.constant 0 : index
    %c0_4 = arith.constant 0 : index
    %3 = vector.load %arg4[%c0_3, %c0_4] : memref<1x128xf32, #tpu.memory_space<vmem>>, vector<1x128xf32>
    %4 = vector.broadcast %3 : vector<1x128xf32> to vector<32x128xf32>
    %5 = arith.addf %2, %4 : vector<32x128xf32>
    %c0_5 = arith.constant 0 : index
    %c0_6 = arith.constant 0 : index
    %6 = vector.load %arg1[%c0_5, %c0_6] : memref<32x128xf32, #tpu.memory_space<vmem>>, vector<32x128xf32>
    %7 = arith.addf %6, %5 : vector<32x128xf32>
    %c0_7 = arith.constant 0 : index
    %c0_8 = arith.constant 0 : index
    %8 = vector.load %arg5[%c0_7, %c0_8] : memref<1x128xf32, #tpu.memory_space<vmem>>, vector<1x128xf32>
    %c0_9 = arith.constant 0 : index
    %c0_10 = arith.constant 0 : index
    %9 = vector.load %arg6[%c0_9, %c0_10] : memref<1x128xf32, #tpu.memory_space<vmem>>, vector<1x128xf32>
    %cst_11 = arith.constant dense<0.000000e+00> : vector<32xf32>
    %10 = vector.multi_reduction <add>, %7, %cst_11 [1] : vector<32x128xf32> to vector<32xf32>
    %11 = vector.shape_cast %10 : vector<32xf32> to vector<32x1xf32>
    %cst_12 = arith.constant 1.280000e+02 : f32
    %12 = vector.broadcast %cst_12 : f32 to vector<32x1xf32>
    %13 = arith.divf %11, %12 : vector<32x1xf32>
    %14 = vector.broadcast %13 : vector<32x1xf32> to vector<32x128xf32>
    %15 = arith.subf %7, %14 : vector<32x128xf32>
    %16 = arith.mulf %15, %15 : vector<32x128xf32>
    %cst_13 = arith.constant dense<0.000000e+00> : vector<32xf32>
    %17 = vector.multi_reduction <add>, %16, %cst_13 [1] : vector<32x128xf32> to vector<32xf32>
    %18 = vector.shape_cast %17 : vector<32xf32> to vector<32x1xf32>
    %cst_14 = arith.constant 1.280000e+02 : f32
    %19 = vector.broadcast %cst_14 : f32 to vector<32x1xf32>
    %20 = arith.divf %18, %19 : vector<32x1xf32>
    %21 = vector.broadcast %13 : vector<32x1xf32> to vector<32x128xf32>
    %22 = arith.subf %7, %21 : vector<32x128xf32>
    %cst_15 = arith.constant 9.99999997E-7 : f32
    %23 = vector.broadcast %cst_15 : f32 to vector<32x1xf32>
    %24 = arith.addf %20, %23 : vector<32x1xf32>
    %25 = math.rsqrt %24 : vector<32x1xf32>
    %26 = vector.broadcast %25 : vector<32x1xf32> to vector<32x128xf32>
    %27 = arith.mulf %22, %26 : vector<32x128xf32>
    %28 = vector.broadcast %8 : vector<1x128xf32> to vector<32x128xf32>
    %29 = arith.mulf %27, %28 : vector<32x128xf32>
    %30 = vector.broadcast %9 : vector<1x128xf32> to vector<32x128xf32>
    %31 = arith.addf %29, %30 : vector<32x128xf32>
    %32 = arith.truncf %31 : vector<32x128xf32> to vector<32x128xbf16>
    %c0_16 = arith.constant 0 : index
    %c0_17 = arith.constant 0 : index
    %33 = vector.load %arg7[%c0_16, %c0_17] : memref<128x256xbf16, #tpu.memory_space<vmem>>, vector<128x256xbf16>
    %cst_18 = arith.constant dense<0.000000e+00> : vector<32x256xf32>
    %34 = tpu.matmul %32, %33, %cst_18 {dimension_numbers = #tpu.dot_dimension_numbers<[1], [0], [0], [1], [0, 0, 1, 1], [], []>} : vector<32x128xbf16>, vector<128x256xbf16>, vector<32x256xf32> -> vector<32x256xf32>
    %c0_19 = arith.constant 0 : index
    %c0_20 = arith.constant 0 : index
    %35 = vector.load %arg8[%c0_19, %c0_20] : memref<1x256xf32, #tpu.memory_space<vmem>>, vector<1x256xf32>
    %36 = vector.broadcast %35 : vector<1x256xf32> to vector<32x256xf32>
    %37 = arith.addf %34, %36 : vector<32x256xf32>
    %cst_21 = arith.constant 5.000000e-01 : f32
    %38 = vector.broadcast %cst_21 : f32 to vector<32x256xf32>
    %39 = arith.mulf %38, %37 : vector<32x256xf32>
    %cst_22 = arith.constant 0.707106769 : f32
    %40 = vector.broadcast %cst_22 : f32 to vector<32x256xf32>
    %41 = arith.mulf %37, %40 : vector<32x256xf32>
    %cst_23 = arith.constant 0.000000e+00 : f32
    %42 = vector.broadcast %cst_23 : f32 to vector<32x256xf32>
    %43 = arith.cmpf oge, %41, %42 : vector<32x256xf32>
    %cst_24 = arith.constant 1.000000e+00 : f32
    %cst_25 = arith.constant -1.000000e+00 : f32
    %44 = vector.broadcast %cst_24 : f32 to vector<32x256xf32>
    %45 = vector.broadcast %cst_25 : f32 to vector<32x256xf32>
    %46 = arith.select %43, %44, %45 : vector<32x256xi1>, vector<32x256xf32>
    %47 = math.absf %41 : vector<32x256xf32>
    %cst_26 = arith.constant 0.327591091 : f32
    %48 = vector.broadcast %cst_26 : f32 to vector<32x256xf32>
    %49 = arith.mulf %48, %47 : vector<32x256xf32>
    %cst_27 = arith.constant 1.000000e+00 : f32
    %50 = vector.broadcast %cst_27 : f32 to vector<32x256xf32>
    %51 = arith.addf %50, %49 : vector<32x256xf32>
    %cst_28 = arith.constant 1.000000e+00 : f32
    %52 = vector.broadcast %cst_28 : f32 to vector<32x256xf32>
    %53 = arith.divf %52, %51 : vector<32x256xf32>
    %cst_29 = arith.constant 1.06140542 : f32
    %54 = vector.broadcast %cst_29 : f32 to vector<32x256xf32>
    %55 = arith.mulf %54, %53 : vector<32x256xf32>
    %cst_30 = arith.constant -1.45315206 : f32
    %56 = vector.broadcast %cst_30 : f32 to vector<32x256xf32>
    %57 = arith.addf %55, %56 : vector<32x256xf32>
    %58 = arith.mulf %57, %53 : vector<32x256xf32>
    %cst_31 = arith.constant 1.42141378 : f32
    %59 = vector.broadcast %cst_31 : f32 to vector<32x256xf32>
    %60 = arith.addf %58, %59 : vector<32x256xf32>
    %61 = arith.mulf %60, %53 : vector<32x256xf32>
    %cst_32 = arith.constant -0.284496725 : f32
    %62 = vector.broadcast %cst_32 : f32 to vector<32x256xf32>
    %63 = arith.addf %61, %62 : vector<32x256xf32>
    %64 = arith.mulf %63, %53 : vector<32x256xf32>
    %cst_33 = arith.constant 0.254829586 : f32
    %65 = vector.broadcast %cst_33 : f32 to vector<32x256xf32>
    %66 = arith.addf %64, %65 : vector<32x256xf32>
    %67 = arith.mulf %66, %53 : vector<32x256xf32>
    %cst_34 = arith.constant 0.000000e+00 : f32
    %68 = vector.broadcast %cst_34 : f32 to vector<32x256xf32>
    %69 = arith.subf %68, %47 : vector<32x256xf32>
    %70 = arith.mulf %69, %47 : vector<32x256xf32>
    %71 = math.exp %70 : vector<32x256xf32>
    %72 = arith.mulf %67, %71 : vector<32x256xf32>
    %cst_35 = arith.constant 1.000000e+00 : f32
    %73 = vector.broadcast %cst_35 : f32 to vector<32x256xf32>
    %74 = arith.subf %73, %72 : vector<32x256xf32>
    %75 = arith.mulf %46, %74 : vector<32x256xf32>
    %cst_36 = arith.constant 1.000000e+00 : f32
    %76 = vector.broadcast %cst_36 : f32 to vector<32x256xf32>
    %77 = arith.addf %76, %75 : vector<32x256xf32>
    %78 = arith.mulf %39, %77 : vector<32x256xf32>
    %79 = arith.truncf %78 : vector<32x256xf32> to vector<32x256xbf16>
    %c0_37 = arith.constant 0 : index
    %c0_38 = arith.constant 0 : index
    %80 = vector.load %arg9[%c0_37, %c0_38] : memref<256x128xbf16, #tpu.memory_space<vmem>>, vector<256x128xbf16>
    %cst_39 = arith.constant dense<0.000000e+00> : vector<32x128xf32>
    %81 = tpu.matmul %79, %80, %cst_39 {dimension_numbers = #tpu.dot_dimension_numbers<[1], [0], [0], [1], [0, 0, 1, 1], [], []>} : vector<32x256xbf16>, vector<256x128xbf16>, vector<32x128xf32> -> vector<32x128xf32>
    %c0_40 = arith.constant 0 : index
    %c0_41 = arith.constant 0 : index
    %82 = vector.load %arg10[%c0_40, %c0_41] : memref<1x128xf32, #tpu.memory_space<vmem>>, vector<1x128xf32>
    %83 = vector.broadcast %82 : vector<1x128xf32> to vector<32x128xf32>
    %84 = arith.addf %81, %83 : vector<32x128xf32>
    %85 = arith.addf %7, %84 : vector<32x128xf32>
    %c0_42 = arith.constant 0 : index
    %c0_43 = arith.constant 0 : index
    %86 = vector.load %arg11[%c0_42, %c0_43] : memref<32x128xf32, #tpu.memory_space<vmem>>, vector<32x128xf32>
    tpu.vector_store %arg11[%c0_42, %c0_43], %85 {strides = array<i32>} : memref<32x128xf32, #tpu.memory_space<vmem>>, vector<32x128xf32>,
    return
  }
  func.func @transform_0(%arg0: i32) -> (i32, i32) {
    %c0_i32 = arith.constant 0 : i32
    %c0_i32_0 = arith.constant 0 : i32
    return %arg0, %c0_i32 : i32, i32
  }
  func.func @transform_1(%arg0: i32) -> (i32, i32) {
    %c0_i32 = arith.constant 0 : i32
    %c0_i32_0 = arith.constant 0 : i32
    return %arg0, %c0_i32 : i32, i32
  }
  func.func @transform_2(%arg0: i32) -> (i32, i32) {
    %c0_i32 = arith.constant 0 : i32
    %c0_i32_0 = arith.constant 0 : i32
    %c0_i32_1 = arith.constant 0 : i32
    return %c0_i32, %c0_i32_0 : i32, i32
  }
  func.func @transform_3(%arg0: i32) -> (i32, i32) {
    %c0_i32 = arith.constant 0 : i32
    %c0_i32_0 = arith.constant 0 : i32
    %c0_i32_1 = arith.constant 0 : i32
    return %c0_i32, %c0_i32_0 : i32, i32
  }
  func.func @transform_4(%arg0: i32) -> (i32, i32) {
    %c0_i32 = arith.constant 0 : i32
    %c0_i32_0 = arith.constant 0 : i32
    %c0_i32_1 = arith.constant 0 : i32
    return %c0_i32, %c0_i32_0 : i32, i32
  }
  func.func @transform_5(%arg0: i32) -> (i32, i32) {
    %c0_i32 = arith.constant 0 : i32
    %c0_i32_0 = arith.constant 0 : i32
    %c0_i32_1 = arith.constant 0 : i32
    return %c0_i32, %c0_i32_0 : i32, i32
  }
  func.func @transform_6(%arg0: i32) -> (i32, i32) {
    %c0_i32 = arith.constant 0 : i32
    %c0_i32_0 = arith.constant 0 : i32
    %c0_i32_1 = arith.constant 0 : i32
    return %c0_i32, %c0_i32_0 : i32, i32
  }
  func.func @transform_7(%arg0: i32) -> (i32, i32) {
    %c0_i32 = arith.constant 0 : i32
    %c0_i32_0 = arith.constant 0 : i32
    %c0_i32_1 = arith.constant 0 : i32
    return %c0_i32, %c0_i32_0 : i32, i32
  }
  func.func @transform_8(%arg0: i32) -> (i32, i32) {
    %c0_i32 = arith.constant 0 : i32
    %c0_i32_0 = arith.constant 0 : i32
    %c0_i32_1 = arith.constant 0 : i32
    return %c0_i32, %c0_i32_0 : i32, i32
  }
  func.func @transform_9(%arg0: i32) -> (i32, i32) {
    %c0_i32 = arith.constant 0 : i32
    %c0_i32_0 = arith.constant 0 : i32
    %c0_i32_1 = arith.constant 0 : i32
    return %c0_i32, %c0_i32_0 : i32, i32
  }
  func.func @transform_10(%arg0: i32) -> (i32, i32) {
    %c0_i32 = arith.constant 0 : i32
    %c0_i32_0 = arith.constant 0 : i32
    return %arg0, %c0_i32 : i32, i32
  }
}

module attributes {stable_mosaic.version = 11 : i64} {
  func.func @_out_mlp_kernel(%arg0: i32, %arg1: memref<32x128xf32, #tpu.memory_space<vmem>>, %arg2: memref<32x128xbf16, #tpu.memory_space<vmem>>, %arg3: memref<128x128xbf16, #tpu.memory_space<vmem>>, %arg4: memref<1x128xf32, #tpu.memory_space<vmem>>, %arg5: memref<1x128xf32, #tpu.memory_space<vmem>>, %arg6: memref<1x128xf32, #tpu.memory_space<vmem>>, %arg7: memref<128x256xbf16, #tpu.memory_space<vmem>>, %arg8: memref<1x256xf32, #tpu.memory_space<vmem>>, %arg9: memref<256x128xbf16, #tpu.memory_space<vmem>>, %arg10: memref<1x128xf32, #tpu.memory_space<vmem>>, %arg11: memref<32x128xf32, #tpu.memory_space<vmem>>) attributes {dimension_semantics = [#tpu.dimension_semantics<parallel>], iteration_bounds = array<i64: 1>, scalar_prefetch = 0 : i64, scratch_operands = 0 : i64, tpu.core_type = #tpu.core_type<tc>, window_params = [{transform_indices = @transform_0, window_bounds = array<i64: 32, 128>}, {transform_indices = @transform_1, window_bounds = array<i64: 32, 128>}, {pipeline_mode = #tpu.pipeline_mode<synchronous>, transform_indices = @transform_2, window_bounds = array<i64: 128, 128>}, {pipeline_mode = #tpu.pipeline_mode<synchronous>, transform_indices = @transform_3, window_bounds = array<i64: 1, 128>}, {pipeline_mode = #tpu.pipeline_mode<synchronous>, transform_indices = @transform_4, window_bounds = array<i64: 1, 128>}, {pipeline_mode = #tpu.pipeline_mode<synchronous>, transform_indices = @transform_5, window_bounds = array<i64: 1, 128>}, {pipeline_mode = #tpu.pipeline_mode<synchronous>, transform_indices = @transform_6, window_bounds = array<i64: 128, 256>}, {pipeline_mode = #tpu.pipeline_mode<synchronous>, transform_indices = @transform_7, window_bounds = array<i64: 1, 256>}, {pipeline_mode = #tpu.pipeline_mode<synchronous>, transform_indices = @transform_8, window_bounds = array<i64: 256, 128>}, {pipeline_mode = #tpu.pipeline_mode<synchronous>, transform_indices = @transform_9, window_bounds = array<i64: 1, 128>}, {transform_indices = @transform_10, window_bounds = array<i64: 32, 128>}]} {
    %c0 = arith.constant 0 : index
    %c0_0 = arith.constant 0 : index
    %0 = vector.load %arg2[%c0, %c0_0] : memref<32x128xbf16, #tpu.memory_space<vmem>>, vector<32x128xbf16>
    %c0_1 = arith.constant 0 : index
    %c0_2 = arith.constant 0 : index
    %1 = vector.load %arg3[%c0_1, %c0_2] : memref<128x128xbf16, #tpu.memory_space<vmem>>, vector<128x128xbf16>
    %cst = arith.constant dense<0.000000e+00> : vector<32x128xf32>
    %2 = tpu.matmul %0, %1, %cst {dimension_numbers = #tpu.dot_dimension_numbers<[1], [0], [0], [1], [0, 0, 1, 1], [], []>} : vector<32x128xbf16>, vector<128x128xbf16>, vector<32x128xf32> -> vector<32x128xf32>
    %c0_3 = arith.constant 0 : index
    %c0_4 = arith.constant 0 : index
    %3 = vector.load %arg4[%c0_3, %c0_4] : memref<1x128xf32, #tpu.memory_space<vmem>>, vector<1x128xf32>
    %4 = vector.broadcast %3 : vector<1x128xf32> to vector<32x128xf32>
    %5 = arith.addf %2, %4 : vector<32x128xf32>
    %c0_5 = arith.constant 0 : index
    %c0_6 = arith.constant 0 : index
    %6 = vector.load %arg1[%c0_5, %c0_6] : memref<32x128xf32, #tpu.memory_space<vmem>>, vector<32x128xf32>
    %7 = arith.addf %6, %5 : vector<32x128xf32>
    %c0_7 = arith.constant 0 : index
    %c0_8 = arith.constant 0 : index
    %8 = vector.load %arg5[%c0_7, %c0_8] : memref<1x128xf32, #tpu.memory_space<vmem>>, vector<1x128xf32>
    %c0_9 = arith.constant 0 : index
    %c0_10 = arith.constant 0 : index
    %9 = vector.load %arg6[%c0_9, %c0_10] : memref<1x128xf32, #tpu.memory_space<vmem>>, vector<1x128xf32>
    %cst_11 = arith.constant dense<0.000000e+00> : vector<32xf32>
    %10 = vector.multi_reduction <add>, %7, %cst_11 [1] : vector<32x128xf32> to vector<32xf32>
    %11 = vector.shape_cast %10 : vector<32xf32> to vector<32x1xf32>
    %cst_12 = arith.constant 1.280000e+02 : f32
    %12 = vector.broadcast %cst_12 : f32 to vector<32x1xf32>
    %13 = arith.divf %11, %12 : vector<32x1xf32>
    %14 = vector.broadcast %13 : vector<32x1xf32> to vector<32x128xf32>
    %15 = arith.subf %7, %14 : vector<32x128xf32>
    %16 = arith.mulf %15, %15 : vector<32x128xf32>
    %cst_13 = arith.constant dense<0.000000e+00> : vector<32xf32>
    %17 = vector.multi_reduction <add>, %16, %cst_13 [1] : vector<32x128xf32> to vector<32xf32>
    %18 = vector.shape_cast %17 : vector<32xf32> to vector<32x1xf32>
    %cst_14 = arith.constant 1.280000e+02 : f32
    %19 = vector.broadcast %cst_14 : f32 to vector<32x1xf32>
    %20 = arith.divf %18, %19 : vector<32x1xf32>
    %21 = vector.broadcast %13 : vector<32x1xf32> to vector<32x128xf32>
    %22 = arith.subf %7, %21 : vector<32x128xf32>
    %cst_15 = arith.constant 9.99999997E-7 : f32
    %23 = vector.broadcast %cst_15 : f32 to vector<32x1xf32>
    %24 = arith.addf %20, %23 : vector<32x1xf32>
    %25 = math.rsqrt %24 : vector<32x1xf32>
    %26 = vector.broadcast %25 : vector<32x1xf32> to vector<32x128xf32>
    %27 = arith.mulf %22, %26 : vector<32x128xf32>
    %28 = vector.broadcast %8 : vector<1x128xf32> to vector<32x128xf32>
    %29 = arith.mulf %27, %28 : vector<32x128xf32>
    %30 = vector.broadcast %9 : vector<1x128xf32> to vector<32x128xf32>
    %31 = arith.addf %29, %30 : vector<32x128xf32>
    %32 = arith.truncf %31 : vector<32x128xf32> to vector<32x128xbf16>
    %c0_16 = arith.constant 0 : index
    %c0_17 = arith.constant 0 : index
    %33 = vector.load %arg7[%c0_16, %c0_17] : memref<128x256xbf16, #tpu.memory_space<vmem>>, vector<128x256xbf16>
    %cst_18 = arith.constant dense<0.000000e+00> : vector<32x256xf32>
    %34 = tpu.matmul %32, %33, %cst_18 {dimension_numbers = #tpu.dot_dimension_numbers<[1], [0], [0], [1], [0, 0, 1, 1], [], []>} : vector<32x128xbf16>, vector<128x256xbf16>, vector<32x256xf32> -> vector<32x256xf32>
    %c0_19 = arith.constant 0 : index
    %c0_20 = arith.constant 0 : index
    %35 = vector.load %arg8[%c0_19, %c0_20] : memref<1x256xf32, #tpu.memory_space<vmem>>, vector<1x256xf32>
    %36 = vector.broadcast %35 : vector<1x256xf32> to vector<32x256xf32>
    %37 = arith.addf %34, %36 : vector<32x256xf32>
    %cst_21 = arith.constant 5.000000e-01 : f32
    %38 = vector.broadcast %cst_21 : f32 to vector<32x256xf32>
    %39 = arith.mulf %38, %37 : vector<32x256xf32>
    %cst_22 = arith.constant 0.707106769 : f32
    %40 = vector.broadcast %cst_22 : f32 to vector<32x256xf32>
    %41 = arith.mulf %37, %40 : vector<32x256xf32>
    %cst_23 = arith.constant 0.000000e+00 : f32
    %42 = vector.broadcast %cst_23 : f32 to vector<32x256xf32>
    %43 = arith.cmpf oge, %41, %42 : vector<32x256xf32>
    %cst_24 = arith.constant 1.000000e+00 : f32
    %cst_25 = arith.constant -1.000000e+00 : f32
    %44 = vector.broadcast %cst_24 : f32 to vector<32x256xf32>
    %45 = vector.broadcast %cst_25 : f32 to vector<32x256xf32>
    %46 = arith.select %43, %44, %45 : vector<32x256xi1>, vector<32x256xf32>
    %47 = math.absf %41 : vector<32x256xf32>
    %cst_26 = arith.constant 0.327591091 : f32
    %48 = vector.broadcast %cst_26 : f32 to vector<32x256xf32>
    %49 = arith.mulf %48, %47 : vector<32x256xf32>
    %cst_27 = arith.constant 1.000000e+00 : f32
    %50 = vector.broadcast %cst_27 : f32 to vector<32x256xf32>
    %51 = arith.addf %50, %49 : vector<32x256xf32>
    %cst_28 = arith.constant 1.000000e+00 : f32
    %52 = vector.broadcast %cst_28 : f32 to vector<32x256xf32>
    %53 = arith.divf %52, %51 : vector<32x256xf32>
    %cst_29 = arith.constant 1.06140542 : f32
    %54 = vector.broadcast %cst_29 : f32 to vector<32x256xf32>
    %55 = arith.mulf %54, %53 : vector<32x256xf32>
    %cst_30 = arith.constant -1.45315206 : f32
    %56 = vector.broadcast %cst_30 : f32 to vector<32x256xf32>
    %57 = arith.addf %55, %56 : vector<32x256xf32>
    %58 = arith.mulf %57, %53 : vector<32x256xf32>
    %cst_31 = arith.constant 1.42141378 : f32
    %59 = vector.broadcast %cst_31 : f32 to vector<32x256xf32>
    %60 = arith.addf %58, %59 : vector<32x256xf32>
    %61 = arith.mulf %60, %53 : vector<32x256xf32>
    %cst_32 = arith.constant -0.284496725 : f32
    %62 = vector.broadcast %cst_32 : f32 to vector<32x256xf32>
    %63 = arith.addf %61, %62 : vector<32x256xf32>
    %64 = arith.mulf %63, %53 : vector<32x256xf32>
    %cst_33 = arith.constant 0.254829586 : f32
    %65 = vector.broadcast %cst_33 : f32 to vector<32x256xf32>
    %66 = arith.addf %64, %65 : vector<32x256xf32>
    %67 = arith.mulf %66, %53 : vector<32x256xf32>
    %cst_34 = arith.constant 0.000000e+00 : f32
    %68 = vector.broadcast %cst_34 : f32 to vector<32x256xf32>
    %69 = arith.subf %68, %47 : vector<32x256xf32>
    %70 = arith.mulf %69, %47 : vector<32x256xf32>
    %71 = math.exp %70 : vector<32x256xf32>
    %72 = arith.mulf %67, %71 : vector<32x256xf32>
    %cst_35 = arith.constant 1.000000e+00 : f32
    %73 = vector.broadcast %cst_35 : f32 to vector<32x256xf32>
    %74 = arith.subf %73, %72 : vector<32x256xf32>
    %75 = arith.mulf %46, %74 : vector<32x256xf32>
    %cst_36 = arith.constant 1.000000e+00 : f32
    %76 = vector.broadcast %cst_36 : f32 to vector<32x256xf32>
    %77 = arith.addf %76, %75 : vector<32x256xf32>
    %78 = arith.mulf %39, %77 : vector<32x256xf32>
    %79 = arith.truncf %78 : vector<32x256xf32> to vector<32x256xbf16>
    %c0_37 = arith.constant 0 : index
    %c0_38 = arith.constant 0 : index
    %80 = vector.load %arg9[%c0_37, %c0_38] : memref<256x128xbf16, #tpu.memory_space<vmem>>, vector<256x128xbf16>
    %cst_39 = arith.constant dense<0.000000e+00> : vector<32x128xf32>
    %81 = tpu.matmul %79, %80, %cst_39 {dimension_numbers = #tpu.dot_dimension_numbers<[1], [0], [0], [1], [0, 0, 1, 1], [], []>} : vector<32x256xbf16>, vector<256x128xbf16>, vector<32x128xf32> -> vector<32x128xf32>
    %c0_40 = arith.constant 0 : index
    %c0_41 = arith.constant 0 : index
    %82 = vector.load %arg10[%c0_40, %c0_41] : memref<1x128xf32, #tpu.memory_space<vmem>>, vector<1x128xf32>
    %83 = vector.broadcast %82 : vector<1x128xf32> to vector<32x128xf32>
    %84 = arith.addf %81, %83 : vector<32x128xf32>
    %85 = arith.addf %7, %84 : vector<32x128xf32>
    %c0_42 = arith.constant 0 : index
    %c0_43 = arith.constant 0 : index
    %86 = vector.load %arg11[%c0_42, %c0_43] : memref<32x128xf32, #tpu.memory_space<vmem>>, vector<32x128xf32>
    tpu.vector_store %arg11[%c0_42, %c0_43], %85 {strides = array<i32>} : memref<32x128xf32, #tpu.memory_space<vmem>>, vector<32x128xf32>,
    return
  }
  func.func @transform_0(%arg0: i32) -> (i32, i32) {
    %c0_i32 = arith.constant 0 : i32
    %c0_i32_0 = arith.constant 0 : i32
    return %arg0, %c0_i32 : i32, i32
  }
  func.func @transform_1(%arg0: i32) -> (i32, i32) {
    %c0_i32 = arith.constant 0 : i32
    %c0_i32_0 = arith.constant 0 : i32
    return %arg0, %c0_i32 : i32, i32
  }
  func.func @transform_2(%arg0: i32) -> (i32, i32) {
    %c0_i32 = arith.constant 0 : i32
    %c0_i32_0 = arith.constant 0 : i32
    %c0_i32_1 = arith.constant 0 : i32
    return %c0_i32, %c0_i32_0 : i32, i32
  }
  func.func @transform_3(%arg0: i32) -> (i32, i32) {
    %c0_i32 = arith.constant 0 : i32
    %c0_i32_0 = arith.constant 0 : i32
    %c0_i32_1 = arith.constant 0 : i32
    return %c0_i32, %c0_i32_0 : i32, i32
  }
  func.func @transform_4(%arg0: i32) -> (i32, i32) {
    %c0_i32 = arith.constant 0 : i32
    %c0_i32_0 = arith.constant 0 : i32
    %c0_i32_1 = arith.constant 0 : i32
    return %c0_i32, %c0_i32_0 : i32, i32
  }
  func.func @transform_5(%arg0: i32) -> (i32, i32) {
    %c0_i32 = arith.constant 0 : i32
    %c0_i32_0 = arith.constant 0 : i32
    %c0_i32_1 = arith.constant 0 : i32
    return %c0_i32, %c0_i32_0 : i32, i32
  }
  func.func @transform_6(%arg0: i32) -> (i32, i32) {
    %c0_i32 = arith.constant 0 : i32
    %c0_i32_0 = arith.constant 0 : i32
    %c0_i32_1 = arith.constant 0 : i32
    return %c0_i32, %c0_i32_0 : i32, i32
  }
  func.func @transform_7(%arg0: i32) -> (i32, i32) {
    %c0_i32 = arith.constant 0 : i32
    %c0_i32_0 = arith.constant 0 : i32
    %c0_i32_1 = arith.constant 0 : i32
    return %c0_i32, %c0_i32_0 : i32, i32
  }
  func.func @transform_8(%arg0: i32) -> (i32, i32) {
    %c0_i32 = arith.constant 0 : i32
    %c0_i32_0 = arith.constant 0 : i32
    %c0_i32_1 = arith.constant 0 : i32
    return %c0_i32, %c0_i32_0 : i32, i32
  }
  func.func @transform_9(%arg0: i32) -> (i32, i32) {
    %c0_i32 = arith.constant 0 : i32
    %c0_i32_0 = arith.constant 0 : i32
    %c0_i32_1 = arith.constant 0 : i32
    return %c0_i32, %c0_i32_0 : i32, i32
  }
  func.func @transform_10(%arg0: i32) -> (i32, i32) {
    %c0_i32 = arith.constant 0 : i32
    %c0_i32_0 = arith.constant 0 : i32
    return %arg0, %c0_i32 : i32, i32
  }
}

module attributes {stable_mosaic.version = 11 : i64} {
  func.func @_ln_qkv_kernel(%arg0: i32, %arg1: memref<32x128xf32, #tpu.memory_space<vmem>>, %arg2: memref<1x128xf32, #tpu.memory_space<vmem>>, %arg3: memref<1x128xf32, #tpu.memory_space<vmem>>, %arg4: memref<128x128xbf16, #tpu.memory_space<vmem>>, %arg5: memref<1x128xf32, #tpu.memory_space<vmem>>, %arg6: memref<128x128xbf16, #tpu.memory_space<vmem>>, %arg7: memref<1x128xf32, #tpu.memory_space<vmem>>, %arg8: memref<128x128xbf16, #tpu.memory_space<vmem>>, %arg9: memref<1x128xf32, #tpu.memory_space<vmem>>, %arg10: memref<32x128xbf16, #tpu.memory_space<vmem>>, %arg11: memref<32x128xbf16, #tpu.memory_space<vmem>>, %arg12: memref<32x128xbf16, #tpu.memory_space<vmem>>) attributes {dimension_semantics = [#tpu.dimension_semantics<parallel>], iteration_bounds = array<i64: 1>, scalar_prefetch = 0 : i64, scratch_operands = 0 : i64, tpu.core_type = #tpu.core_type<tc>, window_params = [{transform_indices = @transform_0, window_bounds = array<i64: 32, 128>}, {pipeline_mode = #tpu.pipeline_mode<synchronous>, transform_indices = @transform_1, window_bounds = array<i64: 1, 128>}, {pipeline_mode = #tpu.pipeline_mode<synchronous>, transform_indices = @transform_2, window_bounds = array<i64: 1, 128>}, {pipeline_mode = #tpu.pipeline_mode<synchronous>, transform_indices = @transform_3, window_bounds = array<i64: 128, 128>}, {pipeline_mode = #tpu.pipeline_mode<synchronous>, transform_indices = @transform_4, window_bounds = array<i64: 1, 128>}, {pipeline_mode = #tpu.pipeline_mode<synchronous>, transform_indices = @transform_5, window_bounds = array<i64: 128, 128>}, {pipeline_mode = #tpu.pipeline_mode<synchronous>, transform_indices = @transform_6, window_bounds = array<i64: 1, 128>}, {pipeline_mode = #tpu.pipeline_mode<synchronous>, transform_indices = @transform_7, window_bounds = array<i64: 128, 128>}, {pipeline_mode = #tpu.pipeline_mode<synchronous>, transform_indices = @transform_8, window_bounds = array<i64: 1, 128>}, {transform_indices = @transform_9, window_bounds = array<i64: 32, 128>}, {transform_indices = @transform_10, window_bounds = array<i64: 32, 128>}, {transform_indices = @transform_11, window_bounds = array<i64: 32, 128>}]} {
    %c0 = arith.constant 0 : index
    %c0_0 = arith.constant 0 : index
    %0 = vector.load %arg1[%c0, %c0_0] : memref<32x128xf32, #tpu.memory_space<vmem>>, vector<32x128xf32>
    %c0_1 = arith.constant 0 : index
    %c0_2 = arith.constant 0 : index
    %1 = vector.load %arg2[%c0_1, %c0_2] : memref<1x128xf32, #tpu.memory_space<vmem>>, vector<1x128xf32>
    %c0_3 = arith.constant 0 : index
    %c0_4 = arith.constant 0 : index
    %2 = vector.load %arg3[%c0_3, %c0_4] : memref<1x128xf32, #tpu.memory_space<vmem>>, vector<1x128xf32>
    %cst = arith.constant dense<0.000000e+00> : vector<32xf32>
    %3 = vector.multi_reduction <add>, %0, %cst [1] : vector<32x128xf32> to vector<32xf32>
    %4 = vector.shape_cast %3 : vector<32xf32> to vector<32x1xf32>
    %cst_5 = arith.constant 1.280000e+02 : f32
    %5 = vector.broadcast %cst_5 : f32 to vector<32x1xf32>
    %6 = arith.divf %4, %5 : vector<32x1xf32>
    %7 = vector.broadcast %6 : vector<32x1xf32> to vector<32x128xf32>
    %8 = arith.subf %0, %7 : vector<32x128xf32>
    %9 = arith.mulf %8, %8 : vector<32x128xf32>
    %cst_6 = arith.constant dense<0.000000e+00> : vector<32xf32>
    %10 = vector.multi_reduction <add>, %9, %cst_6 [1] : vector<32x128xf32> to vector<32xf32>
    %11 = vector.shape_cast %10 : vector<32xf32> to vector<32x1xf32>
    %cst_7 = arith.constant 1.280000e+02 : f32
    %12 = vector.broadcast %cst_7 : f32 to vector<32x1xf32>
    %13 = arith.divf %11, %12 : vector<32x1xf32>
    %14 = vector.broadcast %6 : vector<32x1xf32> to vector<32x128xf32>
    %15 = arith.subf %0, %14 : vector<32x128xf32>
    %cst_8 = arith.constant 9.99999997E-7 : f32
    %16 = vector.broadcast %cst_8 : f32 to vector<32x1xf32>
    %17 = arith.addf %13, %16 : vector<32x1xf32>
    %18 = math.rsqrt %17 : vector<32x1xf32>
    %19 = vector.broadcast %18 : vector<32x1xf32> to vector<32x128xf32>
    %20 = arith.mulf %15, %19 : vector<32x128xf32>
    %21 = vector.broadcast %1 : vector<1x128xf32> to vector<32x128xf32>
    %22 = arith.mulf %20, %21 : vector<32x128xf32>
    %23 = vector.broadcast %2 : vector<1x128xf32> to vector<32x128xf32>
    %24 = arith.addf %22, %23 : vector<32x128xf32>
    %25 = arith.truncf %24 : vector<32x128xf32> to vector<32x128xbf16>
    %c0_9 = arith.constant 0 : index
    %c0_10 = arith.constant 0 : index
    %26 = vector.load %arg4[%c0_9, %c0_10] : memref<128x128xbf16, #tpu.memory_space<vmem>>, vector<128x128xbf16>
    %cst_11 = arith.constant dense<0.000000e+00> : vector<32x128xf32>
    %27 = tpu.matmul %25, %26, %cst_11 {dimension_numbers = #tpu.dot_dimension_numbers<[1], [0], [0], [1], [0, 0, 1, 1], [], []>} : vector<32x128xbf16>, vector<128x128xbf16>, vector<32x128xf32> -> vector<32x128xf32>
    %c0_12 = arith.constant 0 : index
    %c0_13 = arith.constant 0 : index
    %28 = vector.load %arg5[%c0_12, %c0_13] : memref<1x128xf32, #tpu.memory_space<vmem>>, vector<1x128xf32>
    %29 = vector.broadcast %28 : vector<1x128xf32> to vector<32x128xf32>
    %30 = arith.addf %27, %29 : vector<32x128xf32>
    %cst_14 = arith.constant 0.176776692 : f32
    %31 = vector.broadcast %cst_14 : f32 to vector<32x128xf32>
    %32 = arith.mulf %30, %31 : vector<32x128xf32>
    %33 = arith.truncf %32 : vector<32x128xf32> to vector<32x128xbf16>
    %c0_15 = arith.constant 0 : index
    %c0_16 = arith.constant 0 : index
    %34 = vector.load %arg10[%c0_15, %c0_16] : memref<32x128xbf16, #tpu.memory_space<vmem>>, vector<32x128xbf16>
    tpu.vector_store %arg10[%c0_15, %c0_16], %33 {strides = array<i32>} : memref<32x128xbf16, #tpu.memory_space<vmem>>, vector<32x128xbf16>,
    %c0_17 = arith.constant 0 : index
    %c0_18 = arith.constant 0 : index
    %35 = vector.load %arg6[%c0_17, %c0_18] : memref<128x128xbf16, #tpu.memory_space<vmem>>, vector<128x128xbf16>
    %cst_19 = arith.constant dense<0.000000e+00> : vector<32x128xf32>
    %36 = tpu.matmul %25, %35, %cst_19 {dimension_numbers = #tpu.dot_dimension_numbers<[1], [0], [0], [1], [0, 0, 1, 1], [], []>} : vector<32x128xbf16>, vector<128x128xbf16>, vector<32x128xf32> -> vector<32x128xf32>
    %c0_20 = arith.constant 0 : index
    %c0_21 = arith.constant 0 : index
    %37 = vector.load %arg7[%c0_20, %c0_21] : memref<1x128xf32, #tpu.memory_space<vmem>>, vector<1x128xf32>
    %38 = vector.broadcast %37 : vector<1x128xf32> to vector<32x128xf32>
    %39 = arith.addf %36, %38 : vector<32x128xf32>
    %40 = arith.truncf %39 : vector<32x128xf32> to vector<32x128xbf16>
    %c0_22 = arith.constant 0 : index
    %c0_23 = arith.constant 0 : index
    %41 = vector.load %arg11[%c0_22, %c0_23] : memref<32x128xbf16, #tpu.memory_space<vmem>>, vector<32x128xbf16>
    tpu.vector_store %arg11[%c0_22, %c0_23], %40 {strides = array<i32>} : memref<32x128xbf16, #tpu.memory_space<vmem>>, vector<32x128xbf16>,
    %c0_24 = arith.constant 0 : index
    %c0_25 = arith.constant 0 : index
    %42 = vector.load %arg8[%c0_24, %c0_25] : memref<128x128xbf16, #tpu.memory_space<vmem>>, vector<128x128xbf16>
    %cst_26 = arith.constant dense<0.000000e+00> : vector<32x128xf32>
    %43 = tpu.matmul %25, %42, %cst_26 {dimension_numbers = #tpu.dot_dimension_numbers<[1], [0], [0], [1], [0, 0, 1, 1], [], []>} : vector<32x128xbf16>, vector<128x128xbf16>, vector<32x128xf32> -> vector<32x128xf32>
    %c0_27 = arith.constant 0 : index
    %c0_28 = arith.constant 0 : index
    %44 = vector.load %arg9[%c0_27, %c0_28] : memref<1x128xf32, #tpu.memory_space<vmem>>, vector<1x128xf32>
    %45 = vector.broadcast %44 : vector<1x128xf32> to vector<32x128xf32>
    %46 = arith.addf %43, %45 : vector<32x128xf32>
    %47 = arith.truncf %46 : vector<32x128xf32> to vector<32x128xbf16>
    %c0_29 = arith.constant 0 : index
    %c0_30 = arith.constant 0 : index
    %48 = vector.load %arg12[%c0_29, %c0_30] : memref<32x128xbf16, #tpu.memory_space<vmem>>, vector<32x128xbf16>
    tpu.vector_store %arg12[%c0_29, %c0_30], %47 {strides = array<i32>} : memref<32x128xbf16, #tpu.memory_space<vmem>>, vector<32x128xbf16>,
    return
  }
  func.func @transform_0(%arg0: i32) -> (i32, i32) {
    %c0_i32 = arith.constant 0 : i32
    %c0_i32_0 = arith.constant 0 : i32
    return %arg0, %c0_i32 : i32, i32
  }
  func.func @transform_1(%arg0: i32) -> (i32, i32) {
    %c0_i32 = arith.constant 0 : i32
    %c0_i32_0 = arith.constant 0 : i32
    %c0_i32_1 = arith.constant 0 : i32
    return %c0_i32, %c0_i32_0 : i32, i32
  }
  func.func @transform_2(%arg0: i32) -> (i32, i32) {
    %c0_i32 = arith.constant 0 : i32
    %c0_i32_0 = arith.constant 0 : i32
    %c0_i32_1 = arith.constant 0 : i32
    return %c0_i32, %c0_i32_0 : i32, i32
  }
  func.func @transform_3(%arg0: i32) -> (i32, i32) {
    %c0_i32 = arith.constant 0 : i32
    %c0_i32_0 = arith.constant 0 : i32
    %c0_i32_1 = arith.constant 0 : i32
    return %c0_i32, %c0_i32_0 : i32, i32
  }
  func.func @transform_4(%arg0: i32) -> (i32, i32) {
    %c0_i32 = arith.constant 0 : i32
    %c0_i32_0 = arith.constant 0 : i32
    %c0_i32_1 = arith.constant 0 : i32
    return %c0_i32, %c0_i32_0 : i32, i32
  }
  func.func @transform_5(%arg0: i32) -> (i32, i32) {
    %c0_i32 = arith.constant 0 : i32
    %c0_i32_0 = arith.constant 0 : i32
    %c0_i32_1 = arith.constant 0 : i32
    return %c0_i32, %c0_i32_0 : i32, i32
  }
  func.func @transform_6(%arg0: i32) -> (i32, i32) {
    %c0_i32 = arith.constant 0 : i32
    %c0_i32_0 = arith.constant 0 : i32
    %c0_i32_1 = arith.constant 0 : i32
    return %c0_i32, %c0_i32_0 : i32, i32
  }
  func.func @transform_7(%arg0: i32) -> (i32, i32) {
    %c0_i32 = arith.constant 0 : i32
    %c0_i32_0 = arith.constant 0 : i32
    %c0_i32_1 = arith.constant 0 : i32
    return %c0_i32, %c0_i32_0 : i32, i32
  }
  func.func @transform_8(%arg0: i32) -> (i32, i32) {
    %c0_i32 = arith.constant 0 : i32
    %c0_i32_0 = arith.constant 0 : i32
    %c0_i32_1 = arith.constant 0 : i32
    return %c0_i32, %c0_i32_0 : i32, i32
  }
  func.func @transform_9(%arg0: i32) -> (i32, i32) {
    %c0_i32 = arith.constant 0 : i32
    %c0_i32_0 = arith.constant 0 : i32
    return %arg0, %c0_i32 : i32, i32
  }
  func.func @transform_10(%arg0: i32) -> (i32, i32) {
    %c0_i32 = arith.constant 0 : i32
    %c0_i32_0 = arith.constant 0 : i32
    return %arg0, %c0_i32 : i32, i32
  }
  func.func @transform_11(%arg0: i32) -> (i32, i32) {
    %c0_i32 = arith.constant 0 : i32
    %c0_i32_0 = arith.constant 0 : i32
    return %arg0, %c0_i32 : i32, i32
  }
}

module attributes {stable_mosaic.version = 11 : i64} {
  func.func @_attention_kernel(%arg0: i32, %arg1: memref<1x4x16x32xbf16, #tpu.memory_space<vmem>>, %arg2: memref<1x4x16x32xbf16, #tpu.memory_space<vmem>>, %arg3: memref<1x4x16x32xbf16, #tpu.memory_space<vmem>>, %arg4: memref<1x4x16x32xbf16, #tpu.memory_space<vmem>>) attributes {dimension_semantics = [#tpu.dimension_semantics<parallel>], iteration_bounds = array<i64: 2>, scalar_prefetch = 0 : i64, scratch_operands = 0 : i64, tpu.core_type = #tpu.core_type<tc>, window_params = [{transform_indices = @transform_0, window_bounds = array<i64: 1, 4, 16, 32>}, {transform_indices = @transform_1, window_bounds = array<i64: 1, 4, 16, 32>}, {transform_indices = @transform_2, window_bounds = array<i64: 1, 4, 16, 32>}, {transform_indices = @transform_3, window_bounds = array<i64: 1, 4, 16, 32>}]} {
    %c0 = arith.constant 0 : index
    %c0_0 = arith.constant 0 : index
    %c0_1 = arith.constant 0 : index
    %c0_2 = arith.constant 0 : index
    %0 = vector.load %arg1[%c0, %c0_0, %c0_1, %c0_2] : memref<1x4x16x32xbf16, #tpu.memory_space<vmem>>, vector<1x4x16x32xbf16>
    %1 = vector.shape_cast %0 : vector<1x4x16x32xbf16> to vector<4x16x32xbf16>
    %c0_3 = arith.constant 0 : index
    %c0_4 = arith.constant 0 : index
    %c0_5 = arith.constant 0 : index
    %c0_6 = arith.constant 0 : index
    %2 = vector.load %arg2[%c0_3, %c0_4, %c0_5, %c0_6] : memref<1x4x16x32xbf16, #tpu.memory_space<vmem>>, vector<1x4x16x32xbf16>
    %3 = vector.shape_cast %2 : vector<1x4x16x32xbf16> to vector<4x16x32xbf16>
    "tpu.trace_start"() <{level = 10 : i32, message = "hqd,hkd->hqk"}> : () -> ()
    %cst = arith.constant dense<0.000000e+00> : vector<4x16x16xf32>
    %4 = tpu.matmul %1, %3, %cst {dimension_numbers = #tpu.dot_dimension_numbers<[2], [2], [1], [1], [0, 0, 0, 1, 1, 1], [0], [0]>} : vector<4x16x32xbf16>, vector<4x16x32xbf16>, vector<4x16x16xf32> -> vector<4x16x16xf32>
    "tpu.trace_stop"() : () -> ()
    %cst_7 = arith.constant dense<0xFF800000> : vector<4x16xf32>
    %5 = vector.multi_reduction <maximumf>, %4, %cst_7 [2] : vector<4x16x16xf32> to vector<4x16xf32>
    %6 = vector.shape_cast %5 : vector<4x16xf32> to vector<4x16x1xf32>
    %7 = vector.broadcast %6 : vector<4x16x1xf32> to vector<4x16x16xf32>
    %8 = arith.subf %4, %7 : vector<4x16x16xf32>
    %9 = math.exp %8 : vector<4x16x16xf32>
    %cst_8 = arith.constant dense<0.000000e+00> : vector<4x16xf32>
    %10 = vector.multi_reduction <add>, %9, %cst_8 [2] : vector<4x16x16xf32> to vector<4x16xf32>
    %11 = vector.shape_cast %10 : vector<4x16xf32> to vector<4x16x1xf32>
    %12 = tpu.reciprocal %11 {approx = true} : vector<4x16x1xf32> -> vector<4x16x1xf32>
    %13 = vector.broadcast %12 : vector<4x16x1xf32> to vector<4x16x16xf32>
    %14 = arith.mulf %9, %13 : vector<4x16x16xf32>
    %15 = arith.truncf %14 : vector<4x16x16xf32> to vector<4x16x16xbf16>
    %c0_9 = arith.constant 0 : index
    %c0_10 = arith.constant 0 : index
    %c0_11 = arith.constant 0 : index
    %c0_12 = arith.constant 0 : index
    %16 = vector.load %arg3[%c0_9, %c0_10, %c0_11, %c0_12] : memref<1x4x16x32xbf16, #tpu.memory_space<vmem>>, vector<1x4x16x32xbf16>
    %17 = vector.shape_cast %16 : vector<1x4x16x32xbf16> to vector<4x16x32xbf16>
    "tpu.trace_start"() <{level = 10 : i32, message = "hqk,hkd->hqd"}> : () -> ()
    %cst_13 = arith.constant dense<0.000000e+00> : vector<4x16x32xf32>
    %18 = tpu.matmul %15, %17, %cst_13 {dimension_numbers = #tpu.dot_dimension_numbers<[2], [1], [1], [2], [0, 0, 0, 1, 1, 2], [0], [0]>} : vector<4x16x16xbf16>, vector<4x16x32xbf16>, vector<4x16x32xf32> -> vector<4x16x32xf32>
    "tpu.trace_stop"() : () -> ()
    %19 = arith.truncf %18 : vector<4x16x32xf32> to vector<4x16x32xbf16>
    %c0_14 = arith.constant 0 : index
    %c0_15 = arith.constant 0 : index
    %c0_16 = arith.constant 0 : index
    %c0_17 = arith.constant 0 : index
    %20 = vector.load %arg4[%c0_14, %c0_15, %c0_16, %c0_17] : memref<1x4x16x32xbf16, #tpu.memory_space<vmem>>, vector<1x4x16x32xbf16>
    %21 = vector.shape_cast %20 : vector<1x4x16x32xbf16> to vector<4x16x32xbf16>
    %22 = vector.shape_cast %19 : vector<4x16x32xbf16> to vector<1x4x16x32xbf16>
    tpu.vector_store %arg4[%c0_14, %c0_15, %c0_16, %c0_17], %22 {strides = array<i32>} : memref<1x4x16x32xbf16, #tpu.memory_space<vmem>>, vector<1x4x16x32xbf16>,
    return
  }
  func.func @transform_0(%arg0: i32) -> (i32, i32, i32, i32) {
    %c0_i32 = arith.constant 0 : i32
    %c0_i32_0 = arith.constant 0 : i32
    %c0_i32_1 = arith.constant 0 : i32
    %c0_i32_2 = arith.constant 0 : i32
    return %arg0, %c0_i32, %c0_i32_0, %c0_i32_1 : i32, i32, i32, i32
  }
  func.func @transform_1(%arg0: i32) -> (i32, i32, i32, i32) {
    %c0_i32 = arith.constant 0 : i32
    %c0_i32_0 = arith.constant 0 : i32
    %c0_i32_1 = arith.constant 0 : i32
    %c0_i32_2 = arith.constant 0 : i32
    return %arg0, %c0_i32, %c0_i32_0, %c0_i32_1 : i32, i32, i32, i32
  }
  func.func @transform_2(%arg0: i32) -> (i32, i32, i32, i32) {
    %c0_i32 = arith.constant 0 : i32
    %c0_i32_0 = arith.constant 0 : i32
    %c0_i32_1 = arith.constant 0 : i32
    %c0_i32_2 = arith.constant 0 : i32
    return %arg0, %c0_i32, %c0_i32_0, %c0_i32_1 : i32, i32, i32, i32
  }
  func.func @transform_3(%arg0: i32) -> (i32, i32, i32, i32) {
    %c0_i32 = arith.constant 0 : i32
    %c0_i32_0 = arith.constant 0 : i32
    %c0_i32_1 = arith.constant 0 : i32
    %c0_i32_2 = arith.constant 0 : i32
    return %arg0, %c0_i32, %c0_i32_0, %c0_i32_1 : i32, i32, i32, i32
  }
}

module attributes {stable_mosaic.version = 11 : i64} {
  func.func @_out_mlp_kernel(%arg0: i32, %arg1: memref<32x128xf32, #tpu.memory_space<vmem>>, %arg2: memref<32x128xbf16, #tpu.memory_space<vmem>>, %arg3: memref<128x128xbf16, #tpu.memory_space<vmem>>, %arg4: memref<1x128xf32, #tpu.memory_space<vmem>>, %arg5: memref<1x128xf32, #tpu.memory_space<vmem>>, %arg6: memref<1x128xf32, #tpu.memory_space<vmem>>, %arg7: memref<128x256xbf16, #tpu.memory_space<vmem>>, %arg8: memref<1x256xf32, #tpu.memory_space<vmem>>, %arg9: memref<256x128xbf16, #tpu.memory_space<vmem>>, %arg10: memref<1x128xf32, #tpu.memory_space<vmem>>, %arg11: memref<32x128xf32, #tpu.memory_space<vmem>>) attributes {dimension_semantics = [#tpu.dimension_semantics<parallel>], iteration_bounds = array<i64: 1>, scalar_prefetch = 0 : i64, scratch_operands = 0 : i64, tpu.core_type = #tpu.core_type<tc>, window_params = [{transform_indices = @transform_0, window_bounds = array<i64: 32, 128>}, {transform_indices = @transform_1, window_bounds = array<i64: 32, 128>}, {pipeline_mode = #tpu.pipeline_mode<synchronous>, transform_indices = @transform_2, window_bounds = array<i64: 128, 128>}, {pipeline_mode = #tpu.pipeline_mode<synchronous>, transform_indices = @transform_3, window_bounds = array<i64: 1, 128>}, {pipeline_mode = #tpu.pipeline_mode<synchronous>, transform_indices = @transform_4, window_bounds = array<i64: 1, 128>}, {pipeline_mode = #tpu.pipeline_mode<synchronous>, transform_indices = @transform_5, window_bounds = array<i64: 1, 128>}, {pipeline_mode = #tpu.pipeline_mode<synchronous>, transform_indices = @transform_6, window_bounds = array<i64: 128, 256>}, {pipeline_mode = #tpu.pipeline_mode<synchronous>, transform_indices = @transform_7, window_bounds = array<i64: 1, 256>}, {pipeline_mode = #tpu.pipeline_mode<synchronous>, transform_indices = @transform_8, window_bounds = array<i64: 256, 128>}, {pipeline_mode = #tpu.pipeline_mode<synchronous>, transform_indices = @transform_9, window_bounds = array<i64: 1, 128>}, {transform_indices = @transform_10, window_bounds = array<i64: 32, 128>}]} {
    %c0 = arith.constant 0 : index
    %c0_0 = arith.constant 0 : index
    %0 = vector.load %arg2[%c0, %c0_0] : memref<32x128xbf16, #tpu.memory_space<vmem>>, vector<32x128xbf16>
    %c0_1 = arith.constant 0 : index
    %c0_2 = arith.constant 0 : index
    %1 = vector.load %arg3[%c0_1, %c0_2] : memref<128x128xbf16, #tpu.memory_space<vmem>>, vector<128x128xbf16>
    %cst = arith.constant dense<0.000000e+00> : vector<32x128xf32>
    %2 = tpu.matmul %0, %1, %cst {dimension_numbers = #tpu.dot_dimension_numbers<[1], [0], [0], [1], [0, 0, 1, 1], [], []>} : vector<32x128xbf16>, vector<128x128xbf16>, vector<32x128xf32> -> vector<32x128xf32>
    %c0_3 = arith.constant 0 : index
    %c0_4 = arith.constant 0 : index
    %3 = vector.load %arg4[%c0_3, %c0_4] : memref<1x128xf32, #tpu.memory_space<vmem>>, vector<1x128xf32>
    %4 = vector.broadcast %3 : vector<1x128xf32> to vector<32x128xf32>
    %5 = arith.addf %2, %4 : vector<32x128xf32>
    %c0_5 = arith.constant 0 : index
    %c0_6 = arith.constant 0 : index
    %6 = vector.load %arg1[%c0_5, %c0_6] : memref<32x128xf32, #tpu.memory_space<vmem>>, vector<32x128xf32>
    %7 = arith.addf %6, %5 : vector<32x128xf32>
    %c0_7 = arith.constant 0 : index
    %c0_8 = arith.constant 0 : index
    %8 = vector.load %arg5[%c0_7, %c0_8] : memref<1x128xf32, #tpu.memory_space<vmem>>, vector<1x128xf32>
    %c0_9 = arith.constant 0 : index
    %c0_10 = arith.constant 0 : index
    %9 = vector.load %arg6[%c0_9, %c0_10] : memref<1x128xf32, #tpu.memory_space<vmem>>, vector<1x128xf32>
    %cst_11 = arith.constant dense<0.000000e+00> : vector<32xf32>
    %10 = vector.multi_reduction <add>, %7, %cst_11 [1] : vector<32x128xf32> to vector<32xf32>
    %11 = vector.shape_cast %10 : vector<32xf32> to vector<32x1xf32>
    %cst_12 = arith.constant 1.280000e+02 : f32
    %12 = vector.broadcast %cst_12 : f32 to vector<32x1xf32>
    %13 = arith.divf %11, %12 : vector<32x1xf32>
    %14 = vector.broadcast %13 : vector<32x1xf32> to vector<32x128xf32>
    %15 = arith.subf %7, %14 : vector<32x128xf32>
    %16 = arith.mulf %15, %15 : vector<32x128xf32>
    %cst_13 = arith.constant dense<0.000000e+00> : vector<32xf32>
    %17 = vector.multi_reduction <add>, %16, %cst_13 [1] : vector<32x128xf32> to vector<32xf32>
    %18 = vector.shape_cast %17 : vector<32xf32> to vector<32x1xf32>
    %cst_14 = arith.constant 1.280000e+02 : f32
    %19 = vector.broadcast %cst_14 : f32 to vector<32x1xf32>
    %20 = arith.divf %18, %19 : vector<32x1xf32>
    %21 = vector.broadcast %13 : vector<32x1xf32> to vector<32x128xf32>
    %22 = arith.subf %7, %21 : vector<32x128xf32>
    %cst_15 = arith.constant 9.99999997E-7 : f32
    %23 = vector.broadcast %cst_15 : f32 to vector<32x1xf32>
    %24 = arith.addf %20, %23 : vector<32x1xf32>
    %25 = math.rsqrt %24 : vector<32x1xf32>
    %26 = vector.broadcast %25 : vector<32x1xf32> to vector<32x128xf32>
    %27 = arith.mulf %22, %26 : vector<32x128xf32>
    %28 = vector.broadcast %8 : vector<1x128xf32> to vector<32x128xf32>
    %29 = arith.mulf %27, %28 : vector<32x128xf32>
    %30 = vector.broadcast %9 : vector<1x128xf32> to vector<32x128xf32>
    %31 = arith.addf %29, %30 : vector<32x128xf32>
    %32 = arith.truncf %31 : vector<32x128xf32> to vector<32x128xbf16>
    %c0_16 = arith.constant 0 : index
    %c0_17 = arith.constant 0 : index
    %33 = vector.load %arg7[%c0_16, %c0_17] : memref<128x256xbf16, #tpu.memory_space<vmem>>, vector<128x256xbf16>
    %cst_18 = arith.constant dense<0.000000e+00> : vector<32x256xf32>
    %34 = tpu.matmul %32, %33, %cst_18 {dimension_numbers = #tpu.dot_dimension_numbers<[1], [0], [0], [1], [0, 0, 1, 1], [], []>} : vector<32x128xbf16>, vector<128x256xbf16>, vector<32x256xf32> -> vector<32x256xf32>
    %c0_19 = arith.constant 0 : index
    %c0_20 = arith.constant 0 : index
    %35 = vector.load %arg8[%c0_19, %c0_20] : memref<1x256xf32, #tpu.memory_space<vmem>>, vector<1x256xf32>
    %36 = vector.broadcast %35 : vector<1x256xf32> to vector<32x256xf32>
    %37 = arith.addf %34, %36 : vector<32x256xf32>
    %cst_21 = arith.constant 5.000000e-01 : f32
    %38 = vector.broadcast %cst_21 : f32 to vector<32x256xf32>
    %39 = arith.mulf %38, %37 : vector<32x256xf32>
    %cst_22 = arith.constant 0.707106769 : f32
    %40 = vector.broadcast %cst_22 : f32 to vector<32x256xf32>
    %41 = arith.mulf %37, %40 : vector<32x256xf32>
    %cst_23 = arith.constant 0.000000e+00 : f32
    %42 = vector.broadcast %cst_23 : f32 to vector<32x256xf32>
    %43 = arith.cmpf oge, %41, %42 : vector<32x256xf32>
    %cst_24 = arith.constant 1.000000e+00 : f32
    %cst_25 = arith.constant -1.000000e+00 : f32
    %44 = vector.broadcast %cst_24 : f32 to vector<32x256xf32>
    %45 = vector.broadcast %cst_25 : f32 to vector<32x256xf32>
    %46 = arith.select %43, %44, %45 : vector<32x256xi1>, vector<32x256xf32>
    %47 = math.absf %41 : vector<32x256xf32>
    %cst_26 = arith.constant 0.327591091 : f32
    %48 = vector.broadcast %cst_26 : f32 to vector<32x256xf32>
    %49 = arith.mulf %48, %47 : vector<32x256xf32>
    %cst_27 = arith.constant 1.000000e+00 : f32
    %50 = vector.broadcast %cst_27 : f32 to vector<32x256xf32>
    %51 = arith.addf %50, %49 : vector<32x256xf32>
    %cst_28 = arith.constant 1.000000e+00 : f32
    %52 = vector.broadcast %cst_28 : f32 to vector<32x256xf32>
    %53 = arith.divf %52, %51 : vector<32x256xf32>
    %cst_29 = arith.constant 1.06140542 : f32
    %54 = vector.broadcast %cst_29 : f32 to vector<32x256xf32>
    %55 = arith.mulf %54, %53 : vector<32x256xf32>
    %cst_30 = arith.constant -1.45315206 : f32
    %56 = vector.broadcast %cst_30 : f32 to vector<32x256xf32>
    %57 = arith.addf %55, %56 : vector<32x256xf32>
    %58 = arith.mulf %57, %53 : vector<32x256xf32>
    %cst_31 = arith.constant 1.42141378 : f32
    %59 = vector.broadcast %cst_31 : f32 to vector<32x256xf32>
    %60 = arith.addf %58, %59 : vector<32x256xf32>
    %61 = arith.mulf %60, %53 : vector<32x256xf32>
    %cst_32 = arith.constant -0.284496725 : f32
    %62 = vector.broadcast %cst_32 : f32 to vector<32x256xf32>
    %63 = arith.addf %61, %62 : vector<32x256xf32>
    %64 = arith.mulf %63, %53 : vector<32x256xf32>
    %cst_33 = arith.constant 0.254829586 : f32
    %65 = vector.broadcast %cst_33 : f32 to vector<32x256xf32>
    %66 = arith.addf %64, %65 : vector<32x256xf32>
    %67 = arith.mulf %66, %53 : vector<32x256xf32>
    %cst_34 = arith.constant 0.000000e+00 : f32
    %68 = vector.broadcast %cst_34 : f32 to vector<32x256xf32>
    %69 = arith.subf %68, %47 : vector<32x256xf32>
    %70 = arith.mulf %69, %47 : vector<32x256xf32>
    %71 = math.exp %70 : vector<32x256xf32>
    %72 = arith.mulf %67, %71 : vector<32x256xf32>
    %cst_35 = arith.constant 1.000000e+00 : f32
    %73 = vector.broadcast %cst_35 : f32 to vector<32x256xf32>
    %74 = arith.subf %73, %72 : vector<32x256xf32>
    %75 = arith.mulf %46, %74 : vector<32x256xf32>
    %cst_36 = arith.constant 1.000000e+00 : f32
    %76 = vector.broadcast %cst_36 : f32 to vector<32x256xf32>
    %77 = arith.addf %76, %75 : vector<32x256xf32>
    %78 = arith.mulf %39, %77 : vector<32x256xf32>
    %79 = arith.truncf %78 : vector<32x256xf32> to vector<32x256xbf16>
    %c0_37 = arith.constant 0 : index
    %c0_38 = arith.constant 0 : index
    %80 = vector.load %arg9[%c0_37, %c0_38] : memref<256x128xbf16, #tpu.memory_space<vmem>>, vector<256x128xbf16>
    %cst_39 = arith.constant dense<0.000000e+00> : vector<32x128xf32>
    %81 = tpu.matmul %79, %80, %cst_39 {dimension_numbers = #tpu.dot_dimension_numbers<[1], [0], [0], [1], [0, 0, 1, 1], [], []>} : vector<32x256xbf16>, vector<256x128xbf16>, vector<32x128xf32> -> vector<32x128xf32>
    %c0_40 = arith.constant 0 : index
    %c0_41 = arith.constant 0 : index
    %82 = vector.load %arg10[%c0_40, %c0_41] : memref<1x128xf32, #tpu.memory_space<vmem>>, vector<1x128xf32>
    %83 = vector.broadcast %82 : vector<1x128xf32> to vector<32x128xf32>
    %84 = arith.addf %81, %83 : vector<32x128xf32>
    %85 = arith.addf %7, %84 : vector<32x128xf32>
    %c0_42 = arith.constant 0 : index
    %c0_43 = arith.constant 0 : index
    %86 = vector.load %arg11[%c0_42, %c0_43] : memref<32x128xf32, #tpu.memory_space<vmem>>, vector<32x128xf32>
    tpu.vector_store %arg11[%c0_42, %c0_43], %85 {strides = array<i32>} : memref<32x128xf32, #tpu.memory_space<vmem>>, vector<32x128xf32>,
    return
  }
  func.func @transform_0(%arg0: i32) -> (i32, i32) {
    %c0_i32 = arith.constant 0 : i32
    %c0_i32_0 = arith.constant 0 : i32
    return %arg0, %c0_i32 : i32, i32
  }
  func.func @transform_1(%arg0: i32) -> (i32, i32) {
    %c0_i32 = arith.constant 0 : i32
    %c0_i32_0 = arith.constant 0 : i32
    return %arg0, %c0_i32 : i32, i32
  }
  func.func @transform_2(%arg0: i32) -> (i32, i32) {
    %c0_i32 = arith.constant 0 : i32
    %c0_i32_0 = arith.constant 0 : i32
    %c0_i32_1 = arith.constant 0 : i32
    return %c0_i32, %c0_i32_0 : i32, i32
  }
  func.func @transform_3(%arg0: i32) -> (i32, i32) {
    %c0_i32 = arith.constant 0 : i32
    %c0_i32_0 = arith.constant 0 : i32
    %c0_i32_1 = arith.constant 0 : i32
    return %c0_i32, %c0_i32_0 : i32, i32
  }
  func.func @transform_4(%arg0: i32) -> (i32, i32) {
    %c0_i32 = arith.constant 0 : i32
    %c0_i32_0 = arith.constant 0 : i32
    %c0_i32_1 = arith.constant 0 : i32
    return %c0_i32, %c0_i32_0 : i32, i32
  }
  func.func @transform_5(%arg0: i32) -> (i32, i32) {
    %c0_i32 = arith.constant 0 : i32
    %c0_i32_0 = arith.constant 0 : i32
    %c0_i32_1 = arith.constant 0 : i32
    return %c0_i32, %c0_i32_0 : i32, i32
  }
  func.func @transform_6(%arg0: i32) -> (i32, i32) {
    %c0_i32 = arith.constant 0 : i32
    %c0_i32_0 = arith.constant 0 : i32
    %c0_i32_1 = arith.constant 0 : i32
    return %c0_i32, %c0_i32_0 : i32, i32
  }
  func.func @transform_7(%arg0: i32) -> (i32, i32) {
    %c0_i32 = arith.constant 0 : i32
    %c0_i32_0 = arith.constant 0 : i32
    %c0_i32_1 = arith.constant 0 : i32
    return %c0_i32, %c0_i32_0 : i32, i32
  }
  func.func @transform_8(%arg0: i32) -> (i32, i32) {
    %c0_i32 = arith.constant 0 : i32
    %c0_i32_0 = arith.constant 0 : i32
    %c0_i32_1 = arith.constant 0 : i32
    return %c0_i32, %c0_i32_0 : i32, i32
  }
  func.func @transform_9(%arg0: i32) -> (i32, i32) {
    %c0_i32 = arith.constant 0 : i32
    %c0_i32_0 = arith.constant 0 : i32
    %c0_i32_1 = arith.constant 0 : i32
    return %c0_i32, %c0_i32_0 : i32, i32
  }
  func.func @transform_10(%arg0: i32) -> (i32, i32) {
    %c0_i32 = arith.constant 0 : i32
    %c0_i32_0 = arith.constant 0 : i32
    return %arg0, %c0_i32 : i32, i32
  }
}

module attributes {stable_mosaic.version = 11 : i64} {
  func.func @_ln_qkv_kernel(%arg0: i32, %arg1: memref<32x128xf32, #tpu.memory_space<vmem>>, %arg2: memref<1x128xf32, #tpu.memory_space<vmem>>, %arg3: memref<1x128xf32, #tpu.memory_space<vmem>>, %arg4: memref<128x128xbf16, #tpu.memory_space<vmem>>, %arg5: memref<1x128xf32, #tpu.memory_space<vmem>>, %arg6: memref<128x128xbf16, #tpu.memory_space<vmem>>, %arg7: memref<1x128xf32, #tpu.memory_space<vmem>>, %arg8: memref<128x128xbf16, #tpu.memory_space<vmem>>, %arg9: memref<1x128xf32, #tpu.memory_space<vmem>>, %arg10: memref<32x128xbf16, #tpu.memory_space<vmem>>, %arg11: memref<32x128xbf16, #tpu.memory_space<vmem>>, %arg12: memref<32x128xbf16, #tpu.memory_space<vmem>>) attributes {dimension_semantics = [#tpu.dimension_semantics<parallel>], iteration_bounds = array<i64: 1>, scalar_prefetch = 0 : i64, scratch_operands = 0 : i64, tpu.core_type = #tpu.core_type<tc>, window_params = [{transform_indices = @transform_0, window_bounds = array<i64: 32, 128>}, {pipeline_mode = #tpu.pipeline_mode<synchronous>, transform_indices = @transform_1, window_bounds = array<i64: 1, 128>}, {pipeline_mode = #tpu.pipeline_mode<synchronous>, transform_indices = @transform_2, window_bounds = array<i64: 1, 128>}, {pipeline_mode = #tpu.pipeline_mode<synchronous>, transform_indices = @transform_3, window_bounds = array<i64: 128, 128>}, {pipeline_mode = #tpu.pipeline_mode<synchronous>, transform_indices = @transform_4, window_bounds = array<i64: 1, 128>}, {pipeline_mode = #tpu.pipeline_mode<synchronous>, transform_indices = @transform_5, window_bounds = array<i64: 128, 128>}, {pipeline_mode = #tpu.pipeline_mode<synchronous>, transform_indices = @transform_6, window_bounds = array<i64: 1, 128>}, {pipeline_mode = #tpu.pipeline_mode<synchronous>, transform_indices = @transform_7, window_bounds = array<i64: 128, 128>}, {pipeline_mode = #tpu.pipeline_mode<synchronous>, transform_indices = @transform_8, window_bounds = array<i64: 1, 128>}, {transform_indices = @transform_9, window_bounds = array<i64: 32, 128>}, {transform_indices = @transform_10, window_bounds = array<i64: 32, 128>}, {transform_indices = @transform_11, window_bounds = array<i64: 32, 128>}]} {
    %c0 = arith.constant 0 : index
    %c0_0 = arith.constant 0 : index
    %0 = vector.load %arg1[%c0, %c0_0] : memref<32x128xf32, #tpu.memory_space<vmem>>, vector<32x128xf32>
    %c0_1 = arith.constant 0 : index
    %c0_2 = arith.constant 0 : index
    %1 = vector.load %arg2[%c0_1, %c0_2] : memref<1x128xf32, #tpu.memory_space<vmem>>, vector<1x128xf32>
    %c0_3 = arith.constant 0 : index
    %c0_4 = arith.constant 0 : index
    %2 = vector.load %arg3[%c0_3, %c0_4] : memref<1x128xf32, #tpu.memory_space<vmem>>, vector<1x128xf32>
    %cst = arith.constant dense<0.000000e+00> : vector<32xf32>
    %3 = vector.multi_reduction <add>, %0, %cst [1] : vector<32x128xf32> to vector<32xf32>
    %4 = vector.shape_cast %3 : vector<32xf32> to vector<32x1xf32>
    %cst_5 = arith.constant 1.280000e+02 : f32
    %5 = vector.broadcast %cst_5 : f32 to vector<32x1xf32>
    %6 = arith.divf %4, %5 : vector<32x1xf32>
    %7 = vector.broadcast %6 : vector<32x1xf32> to vector<32x128xf32>
    %8 = arith.subf %0, %7 : vector<32x128xf32>
    %9 = arith.mulf %8, %8 : vector<32x128xf32>
    %cst_6 = arith.constant dense<0.000000e+00> : vector<32xf32>
    %10 = vector.multi_reduction <add>, %9, %cst_6 [1] : vector<32x128xf32> to vector<32xf32>
    %11 = vector.shape_cast %10 : vector<32xf32> to vector<32x1xf32>
    %cst_7 = arith.constant 1.280000e+02 : f32
    %12 = vector.broadcast %cst_7 : f32 to vector<32x1xf32>
    %13 = arith.divf %11, %12 : vector<32x1xf32>
    %14 = vector.broadcast %6 : vector<32x1xf32> to vector<32x128xf32>
    %15 = arith.subf %0, %14 : vector<32x128xf32>
    %cst_8 = arith.constant 9.99999997E-7 : f32
    %16 = vector.broadcast %cst_8 : f32 to vector<32x1xf32>
    %17 = arith.addf %13, %16 : vector<32x1xf32>
    %18 = math.rsqrt %17 : vector<32x1xf32>
    %19 = vector.broadcast %18 : vector<32x1xf32> to vector<32x128xf32>
    %20 = arith.mulf %15, %19 : vector<32x128xf32>
    %21 = vector.broadcast %1 : vector<1x128xf32> to vector<32x128xf32>
    %22 = arith.mulf %20, %21 : vector<32x128xf32>
    %23 = vector.broadcast %2 : vector<1x128xf32> to vector<32x128xf32>
    %24 = arith.addf %22, %23 : vector<32x128xf32>
    %25 = arith.truncf %24 : vector<32x128xf32> to vector<32x128xbf16>
    %c0_9 = arith.constant 0 : index
    %c0_10 = arith.constant 0 : index
    %26 = vector.load %arg4[%c0_9, %c0_10] : memref<128x128xbf16, #tpu.memory_space<vmem>>, vector<128x128xbf16>
    %cst_11 = arith.constant dense<0.000000e+00> : vector<32x128xf32>
    %27 = tpu.matmul %25, %26, %cst_11 {dimension_numbers = #tpu.dot_dimension_numbers<[1], [0], [0], [1], [0, 0, 1, 1], [], []>} : vector<32x128xbf16>, vector<128x128xbf16>, vector<32x128xf32> -> vector<32x128xf32>
    %c0_12 = arith.constant 0 : index
    %c0_13 = arith.constant 0 : index
    %28 = vector.load %arg5[%c0_12, %c0_13] : memref<1x128xf32, #tpu.memory_space<vmem>>, vector<1x128xf32>
    %29 = vector.broadcast %28 : vector<1x128xf32> to vector<32x128xf32>
    %30 = arith.addf %27, %29 : vector<32x128xf32>
    %cst_14 = arith.constant 0.176776692 : f32
    %31 = vector.broadcast %cst_14 : f32 to vector<32x128xf32>
    %32 = arith.mulf %30, %31 : vector<32x128xf32>
    %33 = arith.truncf %32 : vector<32x128xf32> to vector<32x128xbf16>
    %c0_15 = arith.constant 0 : index
    %c0_16 = arith.constant 0 : index
    %34 = vector.load %arg10[%c0_15, %c0_16] : memref<32x128xbf16, #tpu.memory_space<vmem>>, vector<32x128xbf16>
    tpu.vector_store %arg10[%c0_15, %c0_16], %33 {strides = array<i32>} : memref<32x128xbf16, #tpu.memory_space<vmem>>, vector<32x128xbf16>,
    %c0_17 = arith.constant 0 : index
    %c0_18 = arith.constant 0 : index
    %35 = vector.load %arg6[%c0_17, %c0_18] : memref<128x128xbf16, #tpu.memory_space<vmem>>, vector<128x128xbf16>
    %cst_19 = arith.constant dense<0.000000e+00> : vector<32x128xf32>
    %36 = tpu.matmul %25, %35, %cst_19 {dimension_numbers = #tpu.dot_dimension_numbers<[1], [0], [0], [1], [0, 0, 1, 1], [], []>} : vector<32x128xbf16>, vector<128x128xbf16>, vector<32x128xf32> -> vector<32x128xf32>
    %c0_20 = arith.constant 0 : index
    %c0_21 = arith.constant 0 : index
    %37 = vector.load %arg7[%c0_20, %c0_21] : memref<1x128xf32, #tpu.memory_space<vmem>>, vector<1x128xf32>
    %38 = vector.broadcast %37 : vector<1x128xf32> to vector<32x128xf32>
    %39 = arith.addf %36, %38 : vector<32x128xf32>
    %40 = arith.truncf %39 : vector<32x128xf32> to vector<32x128xbf16>
    %c0_22 = arith.constant 0 : index
    %c0_23 = arith.constant 0 : index
    %41 = vector.load %arg11[%c0_22, %c0_23] : memref<32x128xbf16, #tpu.memory_space<vmem>>, vector<32x128xbf16>
    tpu.vector_store %arg11[%c0_22, %c0_23], %40 {strides = array<i32>} : memref<32x128xbf16, #tpu.memory_space<vmem>>, vector<32x128xbf16>,
    %c0_24 = arith.constant 0 : index
    %c0_25 = arith.constant 0 : index
    %42 = vector.load %arg8[%c0_24, %c0_25] : memref<128x128xbf16, #tpu.memory_space<vmem>>, vector<128x128xbf16>
    %cst_26 = arith.constant dense<0.000000e+00> : vector<32x128xf32>
    %43 = tpu.matmul %25, %42, %cst_26 {dimension_numbers = #tpu.dot_dimension_numbers<[1], [0], [0], [1], [0, 0, 1, 1], [], []>} : vector<32x128xbf16>, vector<128x128xbf16>, vector<32x128xf32> -> vector<32x128xf32>
    %c0_27 = arith.constant 0 : index
    %c0_28 = arith.constant 0 : index
    %44 = vector.load %arg9[%c0_27, %c0_28] : memref<1x128xf32, #tpu.memory_space<vmem>>, vector<1x128xf32>
    %45 = vector.broadcast %44 : vector<1x128xf32> to vector<32x128xf32>
    %46 = arith.addf %43, %45 : vector<32x128xf32>
    %47 = arith.truncf %46 : vector<32x128xf32> to vector<32x128xbf16>
    %c0_29 = arith.constant 0 : index
    %c0_30 = arith.constant 0 : index
    %48 = vector.load %arg12[%c0_29, %c0_30] : memref<32x128xbf16, #tpu.memory_space<vmem>>, vector<32x128xbf16>
    tpu.vector_store %arg12[%c0_29, %c0_30], %47 {strides = array<i32>} : memref<32x128xbf16, #tpu.memory_space<vmem>>, vector<32x128xbf16>,
    return
  }
  func.func @transform_0(%arg0: i32) -> (i32, i32) {
    %c0_i32 = arith.constant 0 : i32
    %c0_i32_0 = arith.constant 0 : i32
    return %arg0, %c0_i32 : i32, i32
  }
  func.func @transform_1(%arg0: i32) -> (i32, i32) {
    %c0_i32 = arith.constant 0 : i32
    %c0_i32_0 = arith.constant 0 : i32
    %c0_i32_1 = arith.constant 0 : i32
    return %c0_i32, %c0_i32_0 : i32, i32
  }
  func.func @transform_2(%arg0: i32) -> (i32, i32) {
    %c0_i32 = arith.constant 0 : i32
    %c0_i32_0 = arith.constant 0 : i32
    %c0_i32_1 = arith.constant 0 : i32
    return %c0_i32, %c0_i32_0 : i32, i32
  }
  func.func @transform_3(%arg0: i32) -> (i32, i32) {
    %c0_i32 = arith.constant 0 : i32
    %c0_i32_0 = arith.constant 0 : i32
    %c0_i32_1 = arith.constant 0 : i32
    return %c0_i32, %c0_i32_0 : i32, i32
  }
  func.func @transform_4(%arg0: i32) -> (i32, i32) {
    %c0_i32 = arith.constant 0 : i32
    %c0_i32_0 = arith.constant 0 : i32
    %c0_i32_1 = arith.constant 0 : i32
    return %c0_i32, %c0_i32_0 : i32, i32
  }
  func.func @transform_5(%arg0: i32) -> (i32, i32) {
    %c0_i32 = arith.constant 0 : i32
    %c0_i32_0 = arith.constant 0 : i32
    %c0_i32_1 = arith.constant 0 : i32
    return %c0_i32, %c0_i32_0 : i32, i32
  }
  func.func @transform_6(%arg0: i32) -> (i32, i32) {
    %c0_i32 = arith.constant 0 : i32
    %c0_i32_0 = arith.constant 0 : i32
    %c0_i32_1 = arith.constant 0 : i32
    return %c0_i32, %c0_i32_0 : i32, i32
  }
  func.func @transform_7(%arg0: i32) -> (i32, i32) {
    %c0_i32 = arith.constant 0 : i32
    %c0_i32_0 = arith.constant 0 : i32
    %c0_i32_1 = arith.constant 0 : i32
    return %c0_i32, %c0_i32_0 : i32, i32
  }
  func.func @transform_8(%arg0: i32) -> (i32, i32) {
    %c0_i32 = arith.constant 0 : i32
    %c0_i32_0 = arith.constant 0 : i32
    %c0_i32_1 = arith.constant 0 : i32
    return %c0_i32, %c0_i32_0 : i32, i32
  }
  func.func @transform_9(%arg0: i32) -> (i32, i32) {
    %c0_i32 = arith.constant 0 : i32
    %c0_i32_0 = arith.constant 0 : i32
    return %arg0, %c0_i32 : i32, i32
  }
  func.func @transform_10(%arg0: i32) -> (i32, i32) {
    %c0_i32 = arith.constant 0 : i32
    %c0_i32_0 = arith.constant 0 : i32
    return %arg0, %c0_i32 : i32, i32
  }
  func.func @transform_11(%arg0: i32) -> (i32, i32) {
    %c0_i32 = arith.constant 0 : i32
    %c0_i32_0 = arith.constant 0 : i32
    return %arg0, %c0_i32 : i32, i32
  }
}

module attributes {stable_mosaic.version = 11 : i64} {
  func.func @_out_mlp_kernel(%arg0: i32, %arg1: memref<32x128xf32, #tpu.memory_space<vmem>>, %arg2: memref<32x128xbf16, #tpu.memory_space<vmem>>, %arg3: memref<128x128xbf16, #tpu.memory_space<vmem>>, %arg4: memref<1x128xf32, #tpu.memory_space<vmem>>, %arg5: memref<1x128xf32, #tpu.memory_space<vmem>>, %arg6: memref<1x128xf32, #tpu.memory_space<vmem>>, %arg7: memref<128x256xbf16, #tpu.memory_space<vmem>>, %arg8: memref<1x256xf32, #tpu.memory_space<vmem>>, %arg9: memref<256x128xbf16, #tpu.memory_space<vmem>>, %arg10: memref<1x128xf32, #tpu.memory_space<vmem>>, %arg11: memref<32x128xf32, #tpu.memory_space<vmem>>) attributes {dimension_semantics = [#tpu.dimension_semantics<parallel>], iteration_bounds = array<i64: 1>, scalar_prefetch = 0 : i64, scratch_operands = 0 : i64, tpu.core_type = #tpu.core_type<tc>, window_params = [{transform_indices = @transform_0, window_bounds = array<i64: 32, 128>}, {transform_indices = @transform_1, window_bounds = array<i64: 32, 128>}, {pipeline_mode = #tpu.pipeline_mode<synchronous>, transform_indices = @transform_2, window_bounds = array<i64: 128, 128>}, {pipeline_mode = #tpu.pipeline_mode<synchronous>, transform_indices = @transform_3, window_bounds = array<i64: 1, 128>}, {pipeline_mode = #tpu.pipeline_mode<synchronous>, transform_indices = @transform_4, window_bounds = array<i64: 1, 128>}, {pipeline_mode = #tpu.pipeline_mode<synchronous>, transform_indices = @transform_5, window_bounds = array<i64: 1, 128>}, {pipeline_mode = #tpu.pipeline_mode<synchronous>, transform_indices = @transform_6, window_bounds = array<i64: 128, 256>}, {pipeline_mode = #tpu.pipeline_mode<synchronous>, transform_indices = @transform_7, window_bounds = array<i64: 1, 256>}, {pipeline_mode = #tpu.pipeline_mode<synchronous>, transform_indices = @transform_8, window_bounds = array<i64: 256, 128>}, {pipeline_mode = #tpu.pipeline_mode<synchronous>, transform_indices = @transform_9, window_bounds = array<i64: 1, 128>}, {transform_indices = @transform_10, window_bounds = array<i64: 32, 128>}]} {
    %c0 = arith.constant 0 : index
    %c0_0 = arith.constant 0 : index
    %0 = vector.load %arg2[%c0, %c0_0] : memref<32x128xbf16, #tpu.memory_space<vmem>>, vector<32x128xbf16>
    %c0_1 = arith.constant 0 : index
    %c0_2 = arith.constant 0 : index
    %1 = vector.load %arg3[%c0_1, %c0_2] : memref<128x128xbf16, #tpu.memory_space<vmem>>, vector<128x128xbf16>
    %cst = arith.constant dense<0.000000e+00> : vector<32x128xf32>
    %2 = tpu.matmul %0, %1, %cst {dimension_numbers = #tpu.dot_dimension_numbers<[1], [0], [0], [1], [0, 0, 1, 1], [], []>} : vector<32x128xbf16>, vector<128x128xbf16>, vector<32x128xf32> -> vector<32x128xf32>
    %c0_3 = arith.constant 0 : index
    %c0_4 = arith.constant 0 : index
    %3 = vector.load %arg4[%c0_3, %c0_4] : memref<1x128xf32, #tpu.memory_space<vmem>>, vector<1x128xf32>
    %4 = vector.broadcast %3 : vector<1x128xf32> to vector<32x128xf32>
    %5 = arith.addf %2, %4 : vector<32x128xf32>
    %c0_5 = arith.constant 0 : index
    %c0_6 = arith.constant 0 : index
    %6 = vector.load %arg1[%c0_5, %c0_6] : memref<32x128xf32, #tpu.memory_space<vmem>>, vector<32x128xf32>
    %7 = arith.addf %6, %5 : vector<32x128xf32>
    %c0_7 = arith.constant 0 : index
    %c0_8 = arith.constant 0 : index
    %8 = vector.load %arg5[%c0_7, %c0_8] : memref<1x128xf32, #tpu.memory_space<vmem>>, vector<1x128xf32>
    %c0_9 = arith.constant 0 : index
    %c0_10 = arith.constant 0 : index
    %9 = vector.load %arg6[%c0_9, %c0_10] : memref<1x128xf32, #tpu.memory_space<vmem>>, vector<1x128xf32>
    %cst_11 = arith.constant dense<0.000000e+00> : vector<32xf32>
    %10 = vector.multi_reduction <add>, %7, %cst_11 [1] : vector<32x128xf32> to vector<32xf32>
    %11 = vector.shape_cast %10 : vector<32xf32> to vector<32x1xf32>
    %cst_12 = arith.constant 1.280000e+02 : f32
    %12 = vector.broadcast %cst_12 : f32 to vector<32x1xf32>
    %13 = arith.divf %11, %12 : vector<32x1xf32>
    %14 = vector.broadcast %13 : vector<32x1xf32> to vector<32x128xf32>
    %15 = arith.subf %7, %14 : vector<32x128xf32>
    %16 = arith.mulf %15, %15 : vector<32x128xf32>
    %cst_13 = arith.constant dense<0.000000e+00> : vector<32xf32>
    %17 = vector.multi_reduction <add>, %16, %cst_13 [1] : vector<32x128xf32> to vector<32xf32>
    %18 = vector.shape_cast %17 : vector<32xf32> to vector<32x1xf32>
    %cst_14 = arith.constant 1.280000e+02 : f32
    %19 = vector.broadcast %cst_14 : f32 to vector<32x1xf32>
    %20 = arith.divf %18, %19 : vector<32x1xf32>
    %21 = vector.broadcast %13 : vector<32x1xf32> to vector<32x128xf32>
    %22 = arith.subf %7, %21 : vector<32x128xf32>
    %cst_15 = arith.constant 9.99999997E-7 : f32
    %23 = vector.broadcast %cst_15 : f32 to vector<32x1xf32>
    %24 = arith.addf %20, %23 : vector<32x1xf32>
    %25 = math.rsqrt %24 : vector<32x1xf32>
    %26 = vector.broadcast %25 : vector<32x1xf32> to vector<32x128xf32>
    %27 = arith.mulf %22, %26 : vector<32x128xf32>
    %28 = vector.broadcast %8 : vector<1x128xf32> to vector<32x128xf32>
    %29 = arith.mulf %27, %28 : vector<32x128xf32>
    %30 = vector.broadcast %9 : vector<1x128xf32> to vector<32x128xf32>
    %31 = arith.addf %29, %30 : vector<32x128xf32>
    %32 = arith.truncf %31 : vector<32x128xf32> to vector<32x128xbf16>
    %c0_16 = arith.constant 0 : index
    %c0_17 = arith.constant 0 : index
    %33 = vector.load %arg7[%c0_16, %c0_17] : memref<128x256xbf16, #tpu.memory_space<vmem>>, vector<128x256xbf16>
    %cst_18 = arith.constant dense<0.000000e+00> : vector<32x256xf32>
    %34 = tpu.matmul %32, %33, %cst_18 {dimension_numbers = #tpu.dot_dimension_numbers<[1], [0], [0], [1], [0, 0, 1, 1], [], []>} : vector<32x128xbf16>, vector<128x256xbf16>, vector<32x256xf32> -> vector<32x256xf32>
    %c0_19 = arith.constant 0 : index
    %c0_20 = arith.constant 0 : index
    %35 = vector.load %arg8[%c0_19, %c0_20] : memref<1x256xf32, #tpu.memory_space<vmem>>, vector<1x256xf32>
    %36 = vector.broadcast %35 : vector<1x256xf32> to vector<32x256xf32>
    %37 = arith.addf %34, %36 : vector<32x256xf32>
    %cst_21 = arith.constant 5.000000e-01 : f32
    %38 = vector.broadcast %cst_21 : f32 to vector<32x256xf32>
    %39 = arith.mulf %38, %37 : vector<32x256xf32>
    %cst_22 = arith.constant 0.707106769 : f32
    %40 = vector.broadcast %cst_22 : f32 to vector<32x256xf32>
    %41 = arith.mulf %37, %40 : vector<32x256xf32>
    %cst_23 = arith.constant 0.000000e+00 : f32
    %42 = vector.broadcast %cst_23 : f32 to vector<32x256xf32>
    %43 = arith.cmpf oge, %41, %42 : vector<32x256xf32>
    %cst_24 = arith.constant 1.000000e+00 : f32
    %cst_25 = arith.constant -1.000000e+00 : f32
    %44 = vector.broadcast %cst_24 : f32 to vector<32x256xf32>
    %45 = vector.broadcast %cst_25 : f32 to vector<32x256xf32>
    %46 = arith.select %43, %44, %45 : vector<32x256xi1>, vector<32x256xf32>
    %47 = math.absf %41 : vector<32x256xf32>
    %cst_26 = arith.constant 0.327591091 : f32
    %48 = vector.broadcast %cst_26 : f32 to vector<32x256xf32>
    %49 = arith.mulf %48, %47 : vector<32x256xf32>
    %cst_27 = arith.constant 1.000000e+00 : f32
    %50 = vector.broadcast %cst_27 : f32 to vector<32x256xf32>
    %51 = arith.addf %50, %49 : vector<32x256xf32>
    %cst_28 = arith.constant 1.000000e+00 : f32
    %52 = vector.broadcast %cst_28 : f32 to vector<32x256xf32>
    %53 = arith.divf %52, %51 : vector<32x256xf32>
    %cst_29 = arith.constant 1.06140542 : f32
    %54 = vector.broadcast %cst_29 : f32 to vector<32x256xf32>
    %55 = arith.mulf %54, %53 : vector<32x256xf32>
    %cst_30 = arith.constant -1.45315206 : f32
    %56 = vector.broadcast %cst_30 : f32 to vector<32x256xf32>
    %57 = arith.addf %55, %56 : vector<32x256xf32>
    %58 = arith.mulf %57, %53 : vector<32x256xf32>
    %cst_31 = arith.constant 1.42141378 : f32
    %59 = vector.broadcast %cst_31 : f32 to vector<32x256xf32>
    %60 = arith.addf %58, %59 : vector<32x256xf32>
    %61 = arith.mulf %60, %53 : vector<32x256xf32>
    %cst_32 = arith.constant -0.284496725 : f32
    %62 = vector.broadcast %cst_32 : f32 to vector<32x256xf32>
    %63 = arith.addf %61, %62 : vector<32x256xf32>
    %64 = arith.mulf %63, %53 : vector<32x256xf32>
    %cst_33 = arith.constant 0.254829586 : f32
    %65 = vector.broadcast %cst_33 : f32 to vector<32x256xf32>
    %66 = arith.addf %64, %65 : vector<32x256xf32>
    %67 = arith.mulf %66, %53 : vector<32x256xf32>
    %cst_34 = arith.constant 0.000000e+00 : f32
    %68 = vector.broadcast %cst_34 : f32 to vector<32x256xf32>
    %69 = arith.subf %68, %47 : vector<32x256xf32>
    %70 = arith.mulf %69, %47 : vector<32x256xf32>
    %71 = math.exp %70 : vector<32x256xf32>
    %72 = arith.mulf %67, %71 : vector<32x256xf32>
    %cst_35 = arith.constant 1.000000e+00 : f32
    %73 = vector.broadcast %cst_35 : f32 to vector<32x256xf32>
    %74 = arith.subf %73, %72 : vector<32x256xf32>
    %75 = arith.mulf %46, %74 : vector<32x256xf32>
    %cst_36 = arith.constant 1.000000e+00 : f32
    %76 = vector.broadcast %cst_36 : f32 to vector<32x256xf32>
    %77 = arith.addf %76, %75 : vector<32x256xf32>
    %78 = arith.mulf %39, %77 : vector<32x256xf32>
    %79 = arith.truncf %78 : vector<32x256xf32> to vector<32x256xbf16>
    %c0_37 = arith.constant 0 : index
    %c0_38 = arith.constant 0 : index
    %80 = vector.load %arg9[%c0_37, %c0_38] : memref<256x128xbf16, #tpu.memory_space<vmem>>, vector<256x128xbf16>
    %cst_39 = arith.constant dense<0.000000e+00> : vector<32x128xf32>
    %81 = tpu.matmul %79, %80, %cst_39 {dimension_numbers = #tpu.dot_dimension_numbers<[1], [0], [0], [1], [0, 0, 1, 1], [], []>} : vector<32x256xbf16>, vector<256x128xbf16>, vector<32x128xf32> -> vector<32x128xf32>
    %c0_40 = arith.constant 0 : index
    %c0_41 = arith.constant 0 : index
    %82 = vector.load %arg10[%c0_40, %c0_41] : memref<1x128xf32, #tpu.memory_space<vmem>>, vector<1x128xf32>
    %83 = vector.broadcast %82 : vector<1x128xf32> to vector<32x128xf32>
    %84 = arith.addf %81, %83 : vector<32x128xf32>
    %85 = arith.addf %7, %84 : vector<32x128xf32>
    %c0_42 = arith.constant 0 : index
    %c0_43 = arith.constant 0 : index
    %86 = vector.load %arg11[%c0_42, %c0_43] : memref<32x128xf32, #tpu.memory_space<vmem>>, vector<32x128xf32>
    tpu.vector_store %arg11[%c0_42, %c0_43], %85 {strides = array<i32>} : memref<32x128xf32, #tpu.memory_space<vmem>>, vector<32x128xf32>,
    return
  }
  func.func @transform_0(%arg0: i32) -> (i32, i32) {
    %c0_i32 = arith.constant 0 : i32
    %c0_i32_0 = arith.constant 0 : i32
    return %arg0, %c0_i32 : i32, i32
  }
  func.func @transform_1(%arg0: i32) -> (i32, i32) {
    %c0_i32 = arith.constant 0 : i32
    %c0_i32_0 = arith.constant 0 : i32
    return %arg0, %c0_i32 : i32, i32
  }
  func.func @transform_2(%arg0: i32) -> (i32, i32) {
    %c0_i32 = arith.constant 0 : i32
    %c0_i32_0 = arith.constant 0 : i32
    %c0_i32_1 = arith.constant 0 : i32
    return %c0_i32, %c0_i32_0 : i32, i32
  }
  func.func @transform_3(%arg0: i32) -> (i32, i32) {
    %c0_i32 = arith.constant 0 : i32
    %c0_i32_0 = arith.constant 0 : i32
    %c0_i32_1 = arith.constant 0 : i32
    return %c0_i32, %c0_i32_0 : i32, i32
  }
  func.func @transform_4(%arg0: i32) -> (i32, i32) {
    %c0_i32 = arith.constant 0 : i32
    %c0_i32_0 = arith.constant 0 : i32
    %c0_i32_1 = arith.constant 0 : i32
    return %c0_i32, %c0_i32_0 : i32, i32
  }
  func.func @transform_5(%arg0: i32) -> (i32, i32) {
    %c0_i32 = arith.constant 0 : i32
    %c0_i32_0 = arith.constant 0 : i32
    %c0_i32_1 = arith.constant 0 : i32
    return %c0_i32, %c0_i32_0 : i32, i32
  }
  func.func @transform_6(%arg0: i32) -> (i32, i32) {
    %c0_i32 = arith.constant 0 : i32
    %c0_i32_0 = arith.constant 0 : i32
    %c0_i32_1 = arith.constant 0 : i32
    return %c0_i32, %c0_i32_0 : i32, i32
  }
  func.func @transform_7(%arg0: i32) -> (i32, i32) {
    %c0_i32 = arith.constant 0 : i32
    %c0_i32_0 = arith.constant 0 : i32
    %c0_i32_1 = arith.constant 0 : i32
    return %c0_i32, %c0_i32_0 : i32, i32
  }
  func.func @transform_8(%arg0: i32) -> (i32, i32) {
    %c0_i32 = arith.constant 0 : i32
    %c0_i32_0 = arith.constant 0 : i32
    %c0_i32_1 = arith.constant 0 : i32
    return %c0_i32, %c0_i32_0 : i32, i32
  }
  func.func @transform_9(%arg0: i32) -> (i32, i32) {
    %c0_i32 = arith.constant 0 : i32
    %c0_i32_0 = arith.constant 0 : i32
    %c0_i32_1 = arith.constant 0 : i32
    return %c0_i32, %c0_i32_0 : i32, i32
  }
  func.func @transform_10(%arg0: i32) -> (i32, i32) {
    %c0_i32 = arith.constant 0 : i32
    %c0_i32_0 = arith.constant 0 : i32
    return %arg0, %c0_i32 : i32, i32
  }
}

</mosaic_0001>

<bundles_post_ra>
// kernel: siglip_encoder.7
= control target key start
LH: loop header
LB: loop body
LE: loop exit
PB: predicated region body
PF: predicated region fallthrough
CT: control target
= control target key end

     0   :  { %s817_s12 = smov 0   ;;  %s890_s0 = inlined_call_operand.vmem [shape: bf16[2,4,16,32], index: 0, kind: input, shape index: {}]   ;;  %s891_s1 = inlined_call_operand.vmem [shape: bf16[2,4,16,32], index: 1, kind: input, shape index: {}]   ;;  %s892_s2 = inlined_call_operand.vmem [shape: bf16[2,4,16,32], index: 2, kind: input, shape index: {}]   ;;  %s893_s3 = inlined_call_operand.vmem [shape: bf16[2,4,16,32], index: 3, kind: output, shape index: {}]  }
   0x1 LB: > { %s662_s13 = sadd.s32 4294967295, %s795_s12   ;;  %p666_p0 = scmp.ge.s32.totalorder %s795_s12, 1  ;;  %s795_s12 = sphi %s817_s12, %s13_s12  }
   0x2   : > { %p157_p1 = scmp.lt.s32.totalorder %s795_s12, 3 }
   0x4   : > { %p158_p2 = pnand %p666_p0, %p157_p1 }
   0x5   : > { %p191_p3 = scmp.lt.s32.totalorder (!%p158_p2), %s662_s13, 1 }
   0x6   : > { %161 = sbr.rel (%p158_p2) target bundleno = 570 (0x23a), region = 32 }
   0xb   : > { %s895_s13 = smov (!%p191_p3, %s662_s13), 1  ;;  %vm238_vm0 = vcmask 261120   ;;  %vm349_vm1 = vcmask 130048   ;;  %vm574_vm2 = vcmask 257024  }
   0xc   : > { %s825_s14 = sshll.u32 %s895_s13, 5 }
   0xd   : > { %s200_s17 = scalar_lea.vmem %s891_s1, %s825_s14  ;;  %s195_s20 = scalar_lea.vmem %s890_s0, %s825_s14 }
   0xe   : > { %v741_v0 = vld [vmem:[%s200_s17] sm:$0xff]  ;;  %v743_v1 = vld [vmem:[%s200_s17 + $0x10] sm:$0xff]  ;;  %v744_v2 = vld [vmem:[%s200_s17 + $0x18] sm:$0xff]  ;;  %s205_s23 = scalar_lea.vmem %s892_s2, %s825_s14  ;;  %s210_s26 = scalar_lea.vmem %s893_s3, %s825_s14 }
   0xf   : > { %v742_v3 = vld [vmem:[%s200_s17 + $0x8] sm:$0xff]  ;;  %v243_v4 = vsel %vm238_vm0, %v741_v0, 0  ;;  %v303_v5 = vsel %vm238_vm0, %v743_v1, 0  ;;  %v333_v6 = vsel %vm238_vm0, %v744_v2, 0  ;;  %v737_v8 = vld [vmem:[%s195_s20] sm:$0xff]  ;;  %v739_v9 = vld [vmem:[%s195_s20 + $0x10] sm:$0xff] }
  0x10   : > { %252 = vmatpush.bf16.xpose.msra.mxu0 %v243_v4  ;;  %312 = vmatpush.bf16.xpose.msra.mxu2 %v303_v5  ;;  %v273_v7 = vsel %vm238_vm0, %v742_v3, 0  ;;  %v740_v10 = vld [vmem:[%s195_s20 + $0x18] sm:$0xff]  ;;  %v738_v11 = vld [vmem:[%s195_s20 + $0x8] sm:$0xff]  ;;  %v747_v4 = vld [vmem:[%s205_s23 + $0x10] sm:$0xff] }
  0x11   : > { %342 = vmatpush.bf16.xpose.msra.mxu3 %v333_v6  ;;  %282 = vmatpush.bf16.xpose.msra.mxu1 %v273_v7  ;;  %v748_v5 = vld [vmem:[%s205_s23 + $0x18] sm:$0xff]  ;;  %v745_v6 = vld [vmem:[%s205_s23] sm:$0xff]  ;;  %v746_v7 = vld [vmem:[%s205_s23 + $0x8] sm:$0xff] }
  0x17   : > { %683 = vmatmul.msk.bf16.vlgmr.msra.gmra.mxu0 %vm238_vm0, %v737_v8  ;;  %701 = vmatmul.msk.bf16.vlgmr.msra.gmra.mxu2 %vm238_vm0, %v739_v9 }
  0x18   : > { %710 = vmatmul.msk.bf16.vlgmr.msra.gmra.mxu3 %vm238_vm0, %v740_v10  ;;  %692 = vmatmul.msk.bf16.vlgmr.msra.gmra.mxu1 %vm238_vm0, %v738_v11 }
  0x19   : > { %531 = vmatpush.bf16.msrb.mxu2 %v747_v4  ;;  %559 = vmatpush.bf16.msrb.mxu3 %v748_v5 }
  0x1a   : > { %475 = vmatpush.bf16.msrb.mxu0 %v745_v6  ;;  %503 = vmatpush.bf16.msrb.mxu1 %v746_v7 }
  0x94   : > { %v254_v12 = vpop.f32.mrf.mxu0 }
  0x95   : > { %v350_v13 = vsel %vm349_vm1, %v254_v12, -inf  ;;  %v284_v20 = vpop.f32.mrf.mxu1 }
  0x96   : > { %351 = vmax.xlane.f32.xlu2 %v350_v13  ;;  %v356_v26 = vsel %vm349_vm1, %v284_v20, -inf }
  0x9a   : > { %v314_v14 = vpop.f32.mrf.mxu2 }
  0x9b   : > { %v344_v15 = vpop.f32.mrf.mxu3  ;;  %v362_v16 = vsel %vm349_vm1, %v314_v14, -inf }
  0x9c   : > { %v368_v17 = vsel %vm349_vm1, %v344_v15, -inf  ;;  %363 = vmax.xlane.f32.xlu0 %v362_v16  ;;  %v256_v18 = vpop.f32.mrf.mxu0 }
  0x9d   : > { %369 = vmax.xlane.f32.xlu1 %v368_v17  ;;  %v353_v19 = vsel %vm349_vm1, %v256_v18, -inf  ;;  %v286_v25 = vpop.f32.mrf.mxu1 }
  0x9e   : > { %354 = vmax.xlane.f32.xlu2 %v353_v19  ;;  %v359_v27 = vsel %vm349_vm1, %v286_v25, -inf }
  0xa2   : > { %v316_v21 = vpop.f32.mrf.mxu2 }
  0xa3   : > { %v346_v22 = vpop.f32.mrf.mxu3  ;;  %v365_v23 = vsel %vm349_vm1, %v316_v21, -inf }
  0xa4   : > { %v371_v24 = vsel %vm349_vm1, %v346_v22, -inf  ;;  %366 = vmax.xlane.f32.xlu0 %v365_v23 }
  0xa5   : > { %372 = vmax.xlane.f32.xlu1 %v371_v24 }
  0xac   : > { %357 = vmax.xlane.f32.xlu0 %v356_v26 }
  0xad   : > { %360 = vmax.xlane.f32.xlu1 %v359_v27 }
 0x109   : > { %v352_v28 = vpop.xlane.xlu2 %351 }
 0x10a   : > { %v374_v29 = vsub.f32 %v254_v12, %v352_v28 }
 0x10c   : > { %v382_v30 = vmul.f32 1.442695, %v374_v29 }
 0x10e   : > { %757 = vpow2.f32 %v382_v30 }
 0x10f   : > { %v364_v31 = vpop.xlane.xlu0 %363 }
 0x110   : > { %v370_v32 = vpop.xlane.xlu1 %369  ;;  %v378_v33 = vsub.f32 %v314_v14, %v364_v31 }
 0x111   : > { %v380_v34 = vsub.f32 %v344_v15, %v370_v32  ;;  %v355_v35 = vpop.xlane.xlu2 %354 }
 0x112   : > { %v390_v36 = vmul.f32 1.442695, %v378_v33  ;;  %v375_v38 = vsub.f32 %v256_v18, %v355_v35 }
 0x113   : > { %v394_v37 = vmul.f32 1.442695, %v380_v34 }
 0x114   : > { %v851_v39 = vpop.eup %757  ;;  %759 = vpow2.f32 %v390_v36  ;;  %v384_v41 = vmul.f32 1.442695, %v375_v38 }
 0x115   : > { %761 = vpow2.f32 %v394_v37  ;;  %v398_v40 = vsel %vm349_vm1, %v851_v39, 0.0 }
 0x116   : > { %399 = vadd.xlane.f32.xlu0 %v398_v40  ;;  %763 = vpow2.f32 %v384_v41 }
 0x117   : > { %v367_v42 = vpop.xlane.xlu0 %366 }
 0x118   : > { %v373_v43 = vpop.xlane.xlu1 %372  ;;  %v379_v44 = vsub.f32 %v316_v21, %v367_v42 }
 0x119   : > { %v381_v45 = vsub.f32 %v346_v22, %v373_v43 }
 0x11a   : > { %v760_v46 = vpop.eup %759  ;;  %v392_v47 = vmul.f32 1.442695, %v379_v44 }
 0x11b   : > { %v762_v48 = vpop.eup %761  ;;  %v396_v49 = vmul.f32 1.442695, %v381_v45  ;;  %v410_v50 = vsel %vm349_vm1, %v760_v46, 0.0 }
 0x11c   : > { %765 = vpow2.f32 %v392_v47  ;;  %v416_v51 = vsel %vm349_vm1, %v762_v48, 0.0  ;;  %411 = vadd.xlane.f32.xlu2 %v410_v50  ;;  %v764_v55 = vpop.eup %763 }
 0x11d   : > { %767 = vpow2.f32 %v396_v49  ;;  %417 = vadd.xlane.f32.xlu1 %v416_v51  ;;  %v401_v63 = vsel %vm349_vm1, %v764_v55, 0.0 }
 0x11f   : > { %v358_v52 = vpop.xlane.xlu0 %357 }
 0x120   : > { %v376_v53 = vsub.f32 %v284_v20, %v358_v52  ;;  %v361_v54 = vpop.xlane.xlu1 %360 }
 0x121   : > { %v377_v56 = vsub.f32 %v286_v25, %v361_v54 }
 0x122   : > { %v766_v57 = vpop.eup %765  ;;  %v386_v58 = vmul.f32 1.442695, %v376_v53 }
 0x123   : > { %v768_v59 = vpop.eup %767  ;;  %v388_v60 = vmul.f32 1.442695, %v377_v56  ;;  %v413_v61 = vsel %vm349_vm1, %v766_v57, 0.0 }
 0x124   : > { %769 = vpow2.f32 %v386_v58  ;;  %414 = vadd.xlane.f32.xlu0 %v413_v61  ;;  %v419_v62 = vsel %vm349_vm1, %v768_v59, 0.0 }
 0x125   : > { %771 = vpow2.f32 %v388_v60  ;;  %420 = vadd.xlane.f32.xlu2 %v419_v62  ;;  %402 = vadd.xlane.f32.xlu1 %v401_v63 }
 0x12a   : > { %v860_v0 = vpop.eup %769 }
 0x12b   : > { %v772_v1 = vpop.eup %771  ;;  %v404_v2 = vsel %vm349_vm1, %v860_v0, 0.0 }
 0x12c   : > { %v407_v3 = vsel %vm349_vm1, %v772_v1, 0.0 }
 0x12d   : > { %408 = vadd.xlane.f32.xlu0 %v407_v3  ;;  %405 = vadd.xlane.f32.xlu2 %v404_v2 }
 0x189   : > { %v400_v8 = vpop.xlane.xlu0 %399 }
 0x18f   : > { %v412_v9 = vpop.xlane.xlu2 %411 }
 0x190   : > { %v418_v10 = vpop.xlane.xlu1 %417  ;;  %773 = vrcp.f32 %v412_v9 }
 0x191   : > { %775 = vrcp.f32 %v400_v8 }
 0x192   : > { %777 = vrcp.f32 %v418_v10 }
 0x196   : > { %v774_v12 = vpop.eup %773 }
 0x197   : > { %v415_v11 = vpop.xlane.xlu0 %414  ;;  %v776_v15 = vpop.eup %775  ;;  %v434_v17 = vmul.f32 %v774_v12, %v760_v46 }
 0x198   : > { %779 = vrcp.f32 %v415_v11  ;;  %v403_v13 = vpop.xlane.xlu1 %402  ;;  %v421_v14 = vpop.xlane.xlu2 %420  ;;  %v430_v18 = vmul.f32 %v776_v15, %v851_v39 }
 0x199   : > { %781 = vrcp.f32 %v403_v13  ;;  %v778_v16 = vpop.eup %777  ;;  %v442_v22 = vpack.c.bf16 %v434_v17, %v434_v17 }
 0x19a   : > { %783 = vrcp.f32 %v421_v14  ;;  %v436_v19 = vmul.f32 %v778_v16, %v762_v48  ;;  %v438_v25 = vpack.c.bf16 %v430_v18, %v430_v18 }
 0x19b   : > { %v512_v33 = vunpack.c.l.b16 %v442_v22 }
 0x19c   : > { %v444_v29 = vpack.c.bf16 %v436_v19, %v436_v19  ;;  %v456_v36 = vunpack.c.l.b16 %v438_v25 }
 0x19e   : > { %v780_v20 = vpop.eup %779  ;;  %v540_v38 = vunpack.c.l.b16 %v444_v29 }
 0x19f   : > { %v782_v21 = vpop.eup %781  ;;  %v435_v23 = vmul.f32 %v780_v20, %v766_v57 }
 0x1a0   : > { %v784_v24 = vpop.eup %783  ;;  %v431_v26 = vmul.f32 %v782_v21, %v764_v55  ;;  %v409_v27 = vpop.xlane.xlu0 %408 }
 0x1a1   : > { %v406_v28 = vpop.xlane.xlu2 %405  ;;  %v443_v30 = vpack.c.bf16 %v435_v23, %v435_v23  ;;  %v437_v31 = vmul.f32 %v784_v24, %v768_v59  ;;  %785 = vrcp.f32 %v409_v27 }
 0x1a2   : > { %v439_v32 = vpack.c.bf16 %v431_v26, %v431_v26  ;;  %787 = vrcp.f32 %v406_v28 }
 0x1a3   : > { %v513_v34 = vunpack.c.l.b16 %v443_v30  ;;  %v445_v35 = vpack.c.bf16 %v437_v31, %v437_v31 }
 0x1a4   : > { %v457_v37 = vunpack.c.l.b16 %v439_v32 }
 0x1a5   : > { %v541_v39 = vunpack.c.l.b16 %v445_v35  ;;  %v514_v40 = vpack.c.b16 %v513_v34, %v512_v33 }
 0x1a6   : > { %v458_v41 = vpack.c.b16 %v457_v37, %v456_v36 }
 0x1a7   : > { %v786_v42 = vpop.eup %785  ;;  %725 = vmatmul.msk.bf16.vlgmr.msrb.gmra.mxu2 %vm349_vm1, %v514_v40  ;;  %v542_v43 = vpack.c.b16 %v541_v39, %v540_v38 }
 0x1a8   : > { %v788_v44 = vpop.eup %787  ;;  %v433_v45 = vmul.f32 %v786_v42, %v772_v1  ;;  %715 = vmatmul.msk.bf16.vlgmr.msrb.gmra.mxu0 %vm349_vm1, %v458_v41 }
 0x1a9   : > { %v432_v46 = vmul.f32 %v788_v44, %v860_v0  ;;  %730 = vmatmul.msk.bf16.vlgmr.msrb.gmra.mxu3 %vm349_vm1, %v542_v43 }
 0x1aa   : > { %v441_v47 = vpack.c.bf16 %v433_v45, %v433_v45 }
 0x1ab   : > { %v440_v48 = vpack.c.bf16 %v432_v46, %v432_v46 }
 0x1ac   : > { %v485_v49 = vunpack.c.l.b16 %v441_v47 }
 0x1ad   : > { %v484_v50 = vunpack.c.l.b16 %v440_v48 }
 0x1af   : > { %v486_v51 = vpack.c.b16 %v485_v49, %v484_v50 }
 0x1b1   : > { %720 = vmatmul.msk.bf16.vlgmr.msrb.gmra.mxu1 %vm349_vm1, %v486_v51 }
 0x225   : > { %v477_v52 = vpop.f32.mrf.mxu0 }
 0x226   : > { %v566_v53 = vpack.c.bf16 %v477_v52, %v477_v52 }
 0x228   : > { %575 = vst.msk [vmem:[%s210_s26] sm:$0xf] %vm574_vm2, %v566_v53 }
 0x22a   : > { %v533_v54 = vpop.f32.mrf.mxu2 }
 0x22b   : > { %v570_v55 = vpack.c.bf16 %v533_v54, %v533_v54 }
 0x22c   : > { %v561_v56 = vpop.f32.mrf.mxu3 }
 0x22d   : > { %579 = vst.msk [vmem:[%s210_s26 + $0x10] sm:$0xf] %vm574_vm2, %v570_v55  ;;  %v572_v57 = vpack.c.bf16 %v561_v56, %v561_v56  ;;  %v479_v58 = vpop.f32.mrf.mxu0 }
 0x22e   : > { %v567_v59 = vpack.c.bf16 %v479_v58, %v479_v58  ;;  %v505_v60 = vpop.f32.mrf.mxu1 }
 0x22f   : > { %581 = vst.msk [vmem:[%s210_s26 + $0x18] sm:$0xf] %vm574_vm2, %v572_v57  ;;  %v568_v61 = vpack.c.bf16 %v505_v60, %v505_v60 }
 0x230   : > { %576 = vst.msk [vmem:[%s210_s26 + $0x4] sm:$0xf] %vm574_vm2, %v567_v59 }
 0x231   : > { %577 = vst.msk [vmem:[%s210_s26 + $0x8] sm:$0xf] %vm574_vm2, %v568_v61 }
 0x232   : > { %v535_v62 = vpop.f32.mrf.mxu2 }
 0x233   : > { %v571_v63 = vpack.c.bf16 %v535_v62, %v535_v62 }
 0x234   : > { %v563_v0 = vpop.f32.mrf.mxu3 }
 0x235   : > { %580 = vst.msk [vmem:[%s210_s26 + $0x14] sm:$0xf] %vm574_vm2, %v571_v63  ;;  %v573_v1 = vpack.c.bf16 %v563_v0, %v563_v0 }
 0x236   : > { %v507_v2 = vpop.f32.mrf.mxu1 }
 0x237   : > { %582 = vst.msk [vmem:[%s210_s26 + $0x1c] sm:$0xf] %vm574_vm2, %v573_v1  ;;  %v569_v3 = vpack.c.bf16 %v507_v2, %v507_v2 }
 0x239   : > { %578 = vst.msk [vmem:[%s210_s26 + $0xc] sm:$0xf] %vm574_vm2, %v569_v3 }
 0x23a PF: > { %s13_s12 = sadd.s32 1, %s795_s12  }
 0x23b   : > { %p10_p4 = scmp.ge.s32.totalorder %s13_s12, 4  }
 0x23d   :  { %12 = sbr.rel (!%p10_p4) target bundleno = 1 (0x1), region = 68 }

// kernel: siglip_encoder.6
= control target key start
LH: loop header
LB: loop body
LE: loop exit
PB: predicated region body
PF: predicated region fallthrough
CT: control target
= control target key end

     0   :  { %17 = vsyncpa [#allocation3], 0  ;;  %s990_s0 = inlined_call_operand.hbm [shape: f32[32,128], index: 0, kind: input, shape index: {}]   ;;  %s991_s1 = inlined_call_operand.vmem [shape: f32[1,128], index: 1, kind: input, shape index: {}]   ;;  %s992_s2 = inlined_call_operand.vmem [shape: f32[1,128], index: 2, kind: input, shape index: {}]   ;;  %s993_s3 = inlined_call_operand.hbm [shape: bf16[128,128], index: 3, kind: input, shape index: {}]   ;;  %s994_s4 = inlined_call_operand.vmem [shape: f32[1,128], index: 4, kind: input, shape index: {}]   ;;  %s995_s5 = inlined_call_operand.hbm [shape: bf16[128,128], index: 5, kind: input, shape index: {}]   ;;  %s996_s6 = inlined_call_operand.hbm [shape: f32[1,128], index: 6, kind: input, shape index: {}]   ;;  %s997_s7 = inlined_call_operand.hbm [shape: bf16[128,128], index: 7, kind: input, shape index: {}]   ;;  %s998_s8 = inlined_call_operand.vmem [shape: f32[1,128], index: 8, kind: input, shape index: {}]   ;;  %s999_s9 = inlined_call_operand.vmem [shape: bf16[32,128], index: 9, kind: output, shape index: {0}]   ;;  %s1000_s10 = inlined_call_operand.vmem [shape: bf16[32,128], index: 10, kind: output, shape index: {1}]   ;;  %s1001_s11 = inlined_call_operand.vmem [shape: bf16[32,128], index: 11, kind: output, shape index: {2}]  }
   0x1   :  { %18 = vsyncpa [#allocation5], 0  ;;  %s41_s19 = sshll.u32 %s993_s3, 4  ;;  %s42_s19 = int_to_ptr.hbm [resolvable:$true] %s41_s19 }
   0x2   :  { %19 = vsyncpa [#allocation8], 0  ;;  %s836_s20 = smov [#allocation4]   ;;  %s70_s24 = sshll.u32 %s996_s6, 4  ;;  %s71_s24 = int_to_ptr.hbm [resolvable:$true] %s70_s24 }
   0x3   :  { %s43_s21 = sshll.u32 %s836_s20, 4  ;;  %s837_s25 = smov 64   ;;  %s44_s21 = int_to_ptr.vmem [resolvable:$true] %s43_s21 }
   0x4   :  { %s838_s26 = smov 4   ;;  %s839_s27 = smov [#allocation7]  }
   0x5   :  { %49 = dma.hbm_to_vmem [thread:$0]  %s42_s19, 1024, %s44_s21, [#allocation5], %s837_s25, %s837_s25, %s838_s26  }
   0x6   :  { %s72_s28 = sshll.u32 %s839_s27, 4  ;;  %s24_s30 = sshll.u32 %s990_s0, 4  ;;  %s73_s28 = int_to_ptr.vmem [resolvable:$true] %s72_s28  ;;  %s25_s30 = int_to_ptr.hbm [resolvable:$true] %s24_s30 }
   0x7   :  { %75 = dma.hbm_to_vmem [thread:$0]  %s71_s24, 16, %s73_s28, [#allocation8]  }
   0x8   :  { %s840_s12 = smov [#allocation2]   ;;  %s56_s15 = sshll.u32 %s995_s5, 4  ;;  %s57_s15 = int_to_ptr.hbm [resolvable:$true] %s56_s15 }
   0x9   :  { %s26_s13 = sshll.u32 %s840_s12, 4  ;;  %s841_s16 = smov 128   ;;  %s27_s13 = int_to_ptr.vmem [resolvable:$true] %s26_s13 }
   0xa   :  { %s842_s17 = smov 8   ;;  %s843_s18 = smov [#allocation6]  }
   0xb   :  { %32 = dma.hbm_to_vmem [thread:$0]  %s25_s30, 512, %s27_s13, [#allocation3], %s841_s16, %s841_s16, %s842_s17  }
   0xc   :  { %s58_s19 = sshll.u32 %s843_s18, 4  ;;  %s80_s0 = sshll.u32 %s997_s7, 4  ;;  %s59_s19 = int_to_ptr.vmem [resolvable:$true] %s58_s19  ;;  %s81_s0 = int_to_ptr.hbm [resolvable:$true] %s80_s0 }
   0xd   :  { %64 = dma.hbm_to_vmem [thread:$0]  %s57_s15, 1024, %s59_s19, [#allocation5], %s837_s25, %s837_s25, %s838_s26  }
   0xe   :  { %s844_s22 = smov [#allocation9]  }
   0xf   :  { %s82_s23 = sshll.u32 %s844_s22, 4  ;;  %s83_s23 = int_to_ptr.vmem [resolvable:$true] %s82_s23 }
  0x10   :  { %88 = dma.hbm_to_vmem [thread:$0]  %s81_s0, 1024, %s83_s23, [#allocation8], %s837_s25, %s837_s25, %s838_s26  }
  0x11   :  { %830 = dma.done.wait [#allocation3], 512  }
  0x12   :  { %831 = vsyncadd [#allocation3], 4294966784 }
  0x13   :  { %832 = dma.done.wait [#allocation5], 2048  }
  0x14   :  { %833 = vsyncadd [#allocation5], 4294965248 }
  0x15   :  { %834 = dma.done.wait [#allocation8], 1040  }
  0x16   :  { %835 = vsyncadd [#allocation8], 4294966256  ;;  %v113_v0 = vld [vmem:[#allocation2 + $0x10] sm:$0xff]  ;;  %v111_v1 = vld [vmem:[#allocation2] sm:$0xff]  ;;  %v845_v4 = vmov 128.0  }
  0x17   :  { %121 = vadd.xlane.f32.xlu1 %v113_v0  ;;  %117 = vadd.xlane.f32.xlu0 %v111_v1  ;;  %v114_v2 = vld [vmem:[#allocation2 + $0x18] sm:$0xff]  ;;  %v112_v3 = vld [vmem:[#allocation2 + $0x8] sm:$0xff]  ;;  %700 = vrcp.f32 %v845_v4  ;;  %v626_v30 = vld [vmem:[#allocation4 + $0x30] sm:$0xff] }
  0x18   :  { %v627_v27 = vld [vmem:[#allocation4 + $0x38] sm:$0xff]  ;;  %v634_v31 = vld [vmem:[#allocation6 + $0x30] sm:$0xff]  ;;  %v625_v33 = vld [vmem:[#allocation4 + $0x28] sm:$0xff] }
  0x19   :  { %v635_v28 = vld [vmem:[#allocation6 + $0x38] sm:$0xff]  ;;  %288 = vmatpush.bf16.msra.mxu0 %v627_v27  ;;  %677 = vmatpush.bf16.msra.mxu3 %v627_v27  ;;  %v633_v34 = vld [vmem:[#allocation6 + $0x28] sm:$0xff]  ;;  %v624_v36 = vld [vmem:[#allocation4 + $0x20] sm:$0xff] }
  0x1a   :  { %v643_v29 = vld [vmem:[#allocation9 + $0x38] sm:$0xff]  ;;  %387 = vmatpush.bf16.msra.mxu1 %v635_v28  ;;  %v642_v32 = vld [vmem:[#allocation9 + $0x30] sm:$0xff]  ;;  %v641_v35 = vld [vmem:[#allocation9 + $0x28] sm:$0xff] }
  0x1b   :  { %482 = vmatpush.bf16.msra.mxu2 %v643_v29  ;;  %v632_v37 = vld [vmem:[#allocation6 + $0x20] sm:$0xff]  ;;  %v623_v39 = vld [vmem:[#allocation4 + $0x18] sm:$0xff]  ;;  %v622_v42 = vld [vmem:[#allocation4 + $0x10] sm:$0xff] }
  0x1c   :  { %v640_v38 = vld [vmem:[#allocation9 + $0x20] sm:$0xff]  ;;  %v631_v40 = vld [vmem:[#allocation6 + $0x18] sm:$0xff]  ;;  %v630_v43 = vld [vmem:[#allocation6 + $0x10] sm:$0xff] }
  0x1d   :  { %v701_v5 = vpop.eup %700  ;;  %289 = vmatpush.bf16.msra.mxu0 %v626_v30  ;;  %678 = vmatpush.bf16.msra.mxu3 %v626_v30  ;;  %v639_v41 = vld [vmem:[#allocation9 + $0x18] sm:$0xff]  ;;  %v638_v44 = vld [vmem:[#allocation9 + $0x10] sm:$0xff]  ;;  %v621_v45 = vld [vmem:[#allocation4 + $0x8] sm:$0xff] }
  0x1e   :  { %v126_v6 = vmul.f32 128.0, %v701_v5  ;;  %vm130_vm0 = vweird.f32 %v701_v5  ;;  %388 = vmatpush.bf16.msra.mxu1 %v634_v31  ;;  %v629_v46 = vld [vmem:[#allocation6 + $0x8] sm:$0xff]  ;;  %v620_v52 = vld [vmem:[#allocation4] sm:$0xff] }
  0x1f   :  { %123 = vadd.xlane.f32.xlu1 %v114_v2  ;;  %119 = vadd.xlane.f32.xlu0 %v112_v3  ;;  %v637_v47 = vld [vmem:[#allocation9 + $0x8] sm:$0xff]  ;;  %v628_v53 = vld [vmem:[#allocation6] sm:$0xff] }
  0x20   :  { %v127_v7 = vsub.f32 1.0, %v126_v6  ;;  %483 = vmatpush.bf16.msra.mxu2 %v642_v32  ;;  %v636_v54 = vld [vmem:[#allocation9] sm:$0xff]  ;;  %v695_v28 = vld [vmem:[%s991_s1] ss:$0 sm:$0xff] }
  0x21   :  { %290 = vmatpush.bf16.msra.mxu0 %v625_v33  ;;  %679 = vmatpush.bf16.msra.mxu3 %v625_v33 }
  0x22   :  { %v128_v8 = vmul.f32 %v701_v5, %v127_v7  ;;  %389 = vmatpush.bf16.msra.mxu1 %v633_v34 }
  0x24   :  { %v129_v9 = vadd.f32 %v701_v5, %v128_v8  ;;  %484 = vmatpush.bf16.msra.mxu2 %v641_v35 }
  0x25   :  { %291 = vmatpush.bf16.msra.mxu0 %v624_v36  ;;  %680 = vmatpush.bf16.msra.mxu3 %v624_v36 }
  0x26   :  { %v930_v10 = vsel %vm130_vm0, %v701_v5, %v129_v9  ;;  %390 = vmatpush.bf16.msra.mxu1 %v632_v37 }
  0x28   :  { %485 = vmatpush.bf16.msra.mxu2 %v640_v38 }
  0x29   :  { %292 = vmatpush.bf16.msra.mxu0 %v623_v39  ;;  %681 = vmatpush.bf16.msra.mxu3 %v623_v39 }
  0x2a   :  { %391 = vmatpush.bf16.msra.mxu1 %v631_v40 }
  0x2c   :  { %486 = vmatpush.bf16.msra.mxu2 %v639_v41 }
  0x2d   :  { %293 = vmatpush.bf16.msra.mxu0 %v622_v42  ;;  %682 = vmatpush.bf16.msra.mxu3 %v622_v42 }
  0x2e   :  { %392 = vmatpush.bf16.msra.mxu1 %v630_v43 }
  0x30   :  { %487 = vmatpush.bf16.msra.mxu2 %v638_v44 }
  0x31   :  { %294 = vmatpush.bf16.msra.mxu0 %v621_v45  ;;  %683 = vmatpush.bf16.msra.mxu3 %v621_v45 }
  0x32   :  { %393 = vmatpush.bf16.msra.mxu1 %v629_v46  ;;  %v698_v46 = vld [vmem:[#allocation7] ss:$0 sm:$0xff] }
  0x34   :  { %488 = vmatpush.bf16.msra.mxu2 %v637_v47 }
  0x35   :  { %295 = vmatpush.bf16.msra.mxu0 %v620_v52  ;;  %684 = vmatpush.bf16.msra.mxu3 %v620_v52 }
  0x36   :  { %394 = vmatpush.bf16.msra.mxu1 %v628_v53 }
  0x38   :  { %489 = vmatpush.bf16.msra.mxu2 %v636_v54 }
  0x8a   :  { %v122_v11 = vpop.xlane.xlu1 %121  ;;  %v118_v12 = vpop.xlane.xlu0 %117 }
  0x8b   :  { %v134_v13 = vmul.f32 %v930_v10, %v122_v11  ;;  %v132_v14 = vmul.f32 %v930_v10, %v118_v12 }
  0x8d   :  { %v934_v15 = vsub.f32 %v113_v0, %v134_v13  ;;  %v936_v16 = vsub.f32 %v111_v1, %v132_v14 }
  0x8f   :  { %v142_v17 = vmul.f32 %v934_v15, %v934_v15  ;;  %v140_v18 = vmul.f32 %v936_v16, %v936_v16 }
  0x91   :  { %148 = vadd.xlane.f32.xlu0 %v142_v17  ;;  %144 = vadd.xlane.f32.xlu2 %v140_v18 }
  0x92   :  { %v124_v19 = vpop.xlane.xlu1 %123  ;;  %v120_v20 = vpop.xlane.xlu0 %119 }
  0x93   :  { %v135_v21 = vmul.f32 %v930_v10, %v124_v19  ;;  %v133_v22 = vmul.f32 %v930_v10, %v120_v20 }
  0x95   :  { %v944_v23 = vsub.f32 %v114_v2, %v135_v21  ;;  %v946_v24 = vsub.f32 %v112_v3, %v133_v22 }
  0x97   :  { %v143_v25 = vmul.f32 %v944_v23, %v944_v23  ;;  %v141_v26 = vmul.f32 %v946_v24, %v946_v24 }
  0x99   :  { %150 = vadd.xlane.f32.xlu1 %v143_v25  ;;  %146 = vadd.xlane.f32.xlu2 %v141_v26 }
 0x104   :  { %v145_v48 = vpop.xlane.xlu2 %144  ;;  %v149_v49 = vpop.xlane.xlu0 %148 }
 0x105   :  { %v152_v50 = vmul.f32 %v145_v48, %v930_v10  ;;  %v154_v51 = vmul.f32 %v149_v49, %v930_v10 }
 0x107   :  { %v156_v55 = vadd.f32 1e-06, %v152_v50  ;;  %v158_v56 = vadd.f32 1e-06, %v154_v51 }
 0x109   :  { %702 = vrsqrt.f32 %v156_v55  ;;  %vm186_vm1 = vweird.f32 %v158_v56  ;;  %vm166_vm5 = vweird.f32 %v156_v55 }
 0x10a   :  { %704 = vrsqrt.f32 %v158_v56 }
 0x10c   :  { %v151_v57 = vpop.xlane.xlu1 %150  ;;  %v147_v58 = vpop.xlane.xlu2 %146 }
 0x10d   :  { %v155_v59 = vmul.f32 %v151_v57, %v930_v10  ;;  %v153_v60 = vmul.f32 %v147_v58, %v930_v10 }
 0x10f   :  { %v703_v61 = vpop.eup %702  ;;  %v159_v62 = vadd.f32 1e-06, %v155_v59  ;;  %v157_v63 = vadd.f32 1e-06, %v153_v60  ;;  %v699_v59 = vld [vmem:[%s998_s8] ss:$0 sm:$0xff] }
 0x110   :  { %v705_v0 = vpop.eup %704  ;;  %v161_v1 = vmul.f32 %v703_v61, %v156_v55  ;;  %vm167_vm3 = vweird.f32 %v703_v61 }
 0x111   :  { %v181_v2 = vmul.f32 %v705_v0, %v158_v56  ;;  %706 = vrsqrt.f32 %v159_v62  ;;  %vm187_vm2 = vweird.f32 %v705_v0  ;;  %vm168_vm6 = vmor %vm166_vm5, %vm167_vm3  ;;  %vm196_vm7 = vweird.f32 %v159_v62 }
 0x112   :  { %v162_v3 = vmul.f32 %v703_v61, %v161_v1  ;;  %708 = vrsqrt.f32 %v157_v63  ;;  %vm188_vm4 = vmor %vm186_vm1, %vm187_vm2  ;;  %vm176_vm11 = vweird.f32 %v157_v63 }
 0x113   :  { %v182_v4 = vmul.f32 %v705_v0, %v181_v2 }
 0x114   :  { %v163_v5 = vmul.f32 0.5, %v162_v3 }
 0x115   :  { %v183_v6 = vmul.f32 0.5, %v182_v4 }
 0x116   :  { %v164_v7 = vsub.f32 1.5, %v163_v5 }
 0x117   :  { %v707_v8 = vpop.eup %706  ;;  %v184_v9 = vsub.f32 1.5, %v183_v6 }
 0x118   :  { %v709_v11 = vpop.eup %708  ;;  %v191_v12 = vmul.f32 %v707_v8, %v159_v62  ;;  %v165_v10 = vmul.f32 %v703_v61, %v164_v7  ;;  %vm197_vm8 = vweird.f32 %v707_v8 }
 0x119   :  { %v185_v13 = vmul.f32 %v705_v0, %v184_v9  ;;  %v171_v14 = vmul.f32 %v709_v11, %v157_v63  ;;  %vm198_vm9 = vmor %vm196_vm7, %vm197_vm8  ;;  %vm177_vm10 = vweird.f32 %v709_v11 }
 0x11a   :  { %v192_v17 = vmul.f32 %v707_v8, %v191_v12  ;;  %v169_v21 = vsel %vm168_vm6, %v703_v61, %v165_v10  ;;  %vm178_vm12 = vmor %vm176_vm11, %vm177_vm10 }
 0x11b   :  { %v172_v18 = vmul.f32 %v709_v11, %v171_v14  ;;  %v189_v19 = vsel %vm188_vm4, %v705_v0, %v185_v13  ;;  %v200_v29 = vmul.f32 %v169_v21, %v936_v16 }
 0x11c   :  { %v193_v20 = vmul.f32 0.5, %v192_v17  ;;  %v202_v26 = vmul.f32 %v189_v19, %v934_v15  ;;  %v696_v15 = vld [vmem:[%s992_s2] ss:$0 sm:$0xff] }
 0x11d   :  { %v173_v22 = vmul.f32 0.5, %v172_v18  ;;  %v207_v37 = vmul.f32 %v695_v28, %v200_v29 }
 0x11e   :  { %v194_v25 = vsub.f32 1.5, %v193_v20  ;;  %v209_v35 = vmul.f32 %v695_v28, %v202_v26 }
 0x11f   :  { %v174_v27 = vsub.f32 1.5, %v173_v22  ;;  %v214_v41 = vadd.f32 %v696_v15, %v207_v37 }
 0x120   :  { %v195_v30 = vmul.f32 %v707_v8, %v194_v25  ;;  %v216_v40 = vadd.f32 %v696_v15, %v209_v35 }
 0x121   :  { %v175_v31 = vmul.f32 %v709_v11, %v174_v27 }
 0x122   :  { %v199_v32 = vsel %vm198_vm9, %v707_v8, %v195_v30 }
 0x123   :  { %v203_v33 = vmul.f32 %v199_v32, %v944_v23  ;;  %v179_v34 = vsel %vm178_vm12, %v709_v11, %v175_v31 }
 0x124   :  { %v201_v36 = vmul.f32 %v179_v34, %v946_v24  ;;  %v697_v24 = vld [vmem:[%s994_s4] ss:$0 sm:$0xff] }
 0x125   :  { %v210_v38 = vmul.f32 %v695_v28, %v203_v33 }
 0x126   :  { %v208_v39 = vmul.f32 %v695_v28, %v201_v36 }
 0x127   :  { %v217_v16 = vadd.f32 %v696_v15, %v210_v38 }
 0x128   :  { %v215_v42 = vadd.f32 %v696_v15, %v208_v39 }
 0x129   :  { %v219_v43 = vpack.c.bf16 %v217_v16, %v216_v40 }
 0x12a   :  { %v218_v44 = vpack.c.bf16 %v215_v42, %v214_v41 }
 0x12b   :  { %301 = vmatmul.bf16.vlgmr.msra.gmra.mxu3 %v219_v43 }
 0x12c   :  { %296 = vmatmul.bf16.vlgmr.msra.gmra.mxu0 %v218_v44  ;;  %395 = vmatmul.bf16.vlgmr.msra.gmra.mxu1 %v218_v44 }
 0x12d   :  { %490 = vmatmul.bf16.vlgmr.msra.gmra.mxu2 %v218_v44 }
 0x13c   :  { %400 = vmatmul.bf16.gmra.mxu1 %v219_v43 }
 0x13d   :  { %495 = vmatmul.bf16.gmra.mxu2 %v219_v43 }
 0x1a9   :  { %v297_v23 = vpop.f32.mrf.mxu0  ;;  %v396_v45 = vpop.f32.mrf.mxu1 }
 0x1aa   :  { %v298_v48 = vadd.f32 %v697_v24, %v297_v23  ;;  %v397_v52 = vadd.f32 %v698_v46, %v396_v45 }
 0x1ac   :  { %v307_v55 = vmul.f32 0.17677669, %v298_v48 }
 0x1ae   :  { %v302_v47 = vpop.f32.mrf.mxu3 }
 0x1af   :  { %v303_v58 = vadd.f32 %v697_v24, %v302_v47 }
 0x1b0   :  { %v491_v49 = vpop.f32.mrf.mxu2 }
 0x1b1   :  { %v299_v50 = vpop.f32.mrf.mxu0  ;;  %v398_v51 = vpop.f32.mrf.mxu1  ;;  %v309_v0 = vmul.f32 0.17677669, %v303_v58  ;;  %v492_v1 = vadd.f32 %v699_v59, %v491_v49 }
 0x1b2   :  { %v300_v53 = vadd.f32 %v697_v24, %v299_v50  ;;  %v399_v54 = vadd.f32 %v698_v46, %v398_v51 }
 0x1b4   :  { %v308_v56 = vmul.f32 0.17677669, %v300_v53  ;;  %v657_v57 = vpack.c.bf16 %v399_v54, %v397_v52 }
 0x1b6   :  { %v647_v60 = vpack.c.bf16 %v308_v56, %v307_v55  ;;  %658 = vst [vmem:[%s1000_s10] sm:$0xff] %v657_v57   ;;  %v304_v61 = vpop.f32.mrf.mxu3 }
 0x1b7   :  { %v305_v62 = vadd.f32 %v697_v24, %v304_v61 }
 0x1b8   :  { %648 = vst [vmem:[%s999_s9] sm:$0xff] %v647_v60   ;;  %v493_v63 = vpop.f32.mrf.mxu2 }
 0x1b9   :  { %v310_v2 = vmul.f32 0.17677669, %v305_v62  ;;  %v494_v3 = vadd.f32 %v699_v59, %v493_v63  ;;  %v401_v4 = vpop.f32.mrf.mxu1 }
 0x1ba   :  { %v402_v9 = vadd.f32 %v698_v46, %v401_v4 }
 0x1bb   :  { %v652_v5 = vpack.c.bf16 %v310_v2, %v309_v0  ;;  %v667_v6 = vpack.c.bf16 %v494_v3, %v492_v1 }
 0x1bd   :  { %674 = vst [vmem:[%s999_s9 + $0x8] sm:$0xff] %v652_v5  }
 0x1be   :  { %668 = vst [vmem:[%s1001_s11] sm:$0xff] %v667_v6  }
 0x1c0   :  { %v496_v7 = vpop.f32.mrf.mxu2 }
 0x1c1   :  { %v403_v8 = vpop.f32.mrf.mxu1  ;;  %v497_v13 = vadd.f32 %v699_v59, %v496_v7 }
 0x1c2   :  { %v404_v11 = vadd.f32 %v698_v46, %v403_v8 }
 0x1c4   :  { %v662_v12 = vpack.c.bf16 %v404_v11, %v402_v9 }
 0x1c6   :  { %675 = vst [vmem:[%s1000_s10 + $0x8] sm:$0xff] %v662_v12  }
 0x1c8   :  { %v498_v10 = vpop.f32.mrf.mxu2 }
 0x1c9   :  { %v499_v14 = vadd.f32 %v699_v59, %v498_v10 }
 0x1cb   :  { %v672_v17 = vpack.c.bf16 %v499_v14, %v497_v13 }
 0x1cd   :  { %676 = vst [vmem:[%s1001_s11 + $0x8] sm:$0xff] %v672_v17  }
 0x1ce   :  { %521 = vsyncpa [#allocation3], 1 }
 0x1cf   :  { %522 = vsyncpa [#allocation5], 1 }
 0x1d0   :  { %523 = vsyncpa [#allocation8], 1 }

// kernel: siglip_encoder.9
= control target key start
LH: loop header
LB: loop body
LE: loop exit
PB: predicated region body
PF: predicated region fallthrough
CT: control target
= control target key end

     0   :  { %v622_v4 = vmov 128.0   ;;  %s830_s0 = inlined_call_operand.vmem [shape: f32[32,128], index: 0, kind: input, shape index: {}]   ;;  %s831_s1 = inlined_call_operand.vmem [shape: f32[1,128], index: 1, kind: input, shape index: {}]   ;;  %s832_s2 = inlined_call_operand.vmem [shape: f32[1,128], index: 2, kind: input, shape index: {}]   ;;  %s833_s4 = inlined_call_operand.vmem [shape: f32[1,128], index: 4, kind: input, shape index: {}]   ;;  %s834_s3 = inlined_call_operand.vmem [shape: bf16[128,128], index: 3, kind: input, shape index: {}]   ;;  %s835_s5 = inlined_call_operand.vmem [shape: bf16[128,128], index: 5, kind: input, shape index: {}]   ;;  %s836_s7 = inlined_call_operand.vmem [shape: bf16[128,128], index: 7, kind: input, shape index: {}]   ;;  %s837_s6 = inlined_call_operand.vmem [shape: f32[1,128], index: 6, kind: input, shape index: {}]   ;;  %s838_s8 = inlined_call_operand.vmem [shape: f32[1,128], index: 8, kind: input, shape index: {}]   ;;  %s839_s10 = inlined_call_operand.vmem [shape: bf16[32,128], index: 10, kind: output, shape index: {1}]   ;;  %s840_s9 = inlined_call_operand.vmem [shape: bf16[32,128], index: 9, kind: output, shape index: {0}]   ;;  %s841_s11 = inlined_call_operand.vmem [shape: bf16[32,128], index: 11, kind: output, shape index: {2}]  }
   0x1   :  { %v37_v0 = vld [vmem:[%s830_s0 + $0x10] sm:$0xff]  ;;  %v35_v1 = vld [vmem:[%s830_s0] sm:$0xff]  ;;  %v38_v2 = vld [vmem:[%s830_s0 + $0x18] sm:$0xff]  ;;  %612 = vrcp.f32 %v622_v4 }
   0x2   :  { %45 = vadd.xlane.f32.xlu1 %v37_v0  ;;  %41 = vadd.xlane.f32.xlu0 %v35_v1  ;;  %v36_v3 = vld [vmem:[%s830_s0 + $0x8] sm:$0xff]  ;;  %v548_v27 = vld [vmem:[%s834_s3 + $0x38] sm:$0xff]  ;;  %v547_v30 = vld [vmem:[%s834_s3 + $0x30] sm:$0xff] }
   0x3   :  { %v556_v28 = vld [vmem:[%s835_s5 + $0x38] sm:$0xff]  ;;  %212 = vmatpush.bf16.msra.mxu0 %v548_v27  ;;  %598 = vmatpush.bf16.msra.mxu3 %v548_v27  ;;  %v555_v31 = vld [vmem:[%s835_s5 + $0x30] sm:$0xff]  ;;  %v546_v33 = vld [vmem:[%s834_s3 + $0x28] sm:$0xff] }
   0x4   :  { %v564_v29 = vld [vmem:[%s836_s7 + $0x38] sm:$0xff]  ;;  %311 = vmatpush.bf16.msra.mxu1 %v556_v28  ;;  %v563_v32 = vld [vmem:[%s836_s7 + $0x30] sm:$0xff]  ;;  %v554_v34 = vld [vmem:[%s835_s5 + $0x28] sm:$0xff] }
   0x5   :  { %406 = vmatpush.bf16.msra.mxu2 %v564_v29  ;;  %v562_v35 = vld [vmem:[%s836_s7 + $0x28] sm:$0xff]  ;;  %v545_v36 = vld [vmem:[%s834_s3 + $0x20] sm:$0xff]  ;;  %v544_v39 = vld [vmem:[%s834_s3 + $0x18] sm:$0xff] }
   0x6   :  { %v553_v37 = vld [vmem:[%s835_s5 + $0x20] sm:$0xff]  ;;  %v552_v40 = vld [vmem:[%s835_s5 + $0x18] sm:$0xff]  ;;  %v543_v42 = vld [vmem:[%s834_s3 + $0x10] sm:$0xff] }
   0x7   :  { %v613_v5 = vpop.eup %612  ;;  %213 = vmatpush.bf16.msra.mxu0 %v547_v30  ;;  %599 = vmatpush.bf16.msra.mxu3 %v547_v30  ;;  %v561_v38 = vld [vmem:[%s836_s7 + $0x20] sm:$0xff]  ;;  %v560_v41 = vld [vmem:[%s836_s7 + $0x18] sm:$0xff]  ;;  %v551_v43 = vld [vmem:[%s835_s5 + $0x10] sm:$0xff] }
   0x8   :  { %v50_v6 = vmul.f32 128.0, %v613_v5  ;;  %vm54_vm0 = vweird.f32 %v613_v5  ;;  %312 = vmatpush.bf16.msra.mxu1 %v555_v31  ;;  %v559_v44 = vld [vmem:[%s836_s7 + $0x10] sm:$0xff]  ;;  %v542_v45 = vld [vmem:[%s834_s3 + $0x8] sm:$0xff]  ;;  %v541_v52 = vld [vmem:[%s834_s3] sm:$0xff] }
   0x9   :  { %407 = vmatpush.bf16.msra.mxu2 %v563_v32  ;;  %v550_v46 = vld [vmem:[%s835_s5 + $0x8] sm:$0xff]  ;;  %v549_v53 = vld [vmem:[%s835_s5] sm:$0xff] }
   0xa   :  { %47 = vadd.xlane.f32.xlu1 %v38_v2  ;;  %43 = vadd.xlane.f32.xlu0 %v36_v3  ;;  %v51_v7 = vsub.f32 1.0, %v50_v6  ;;  %v558_v47 = vld [vmem:[%s836_s7 + $0x8] sm:$0xff]  ;;  %v557_v54 = vld [vmem:[%s836_s7] sm:$0xff] }
   0xb   :  { %214 = vmatpush.bf16.msra.mxu0 %v546_v33  ;;  %600 = vmatpush.bf16.msra.mxu3 %v546_v33  ;;  %v607_v28 = vld [vmem:[%s831_s1] ss:$0 sm:$0xff] }
   0xc   :  { %v52_v8 = vmul.f32 %v613_v5, %v51_v7  ;;  %313 = vmatpush.bf16.msra.mxu1 %v554_v34 }
   0xd   :  { %408 = vmatpush.bf16.msra.mxu2 %v562_v35 }
   0xe   :  { %v53_v9 = vadd.f32 %v613_v5, %v52_v8 }
   0xf   :  { %215 = vmatpush.bf16.msra.mxu0 %v545_v36  ;;  %601 = vmatpush.bf16.msra.mxu3 %v545_v36 }
  0x10   :  { %v695_v10 = vsel %vm54_vm0, %v613_v5, %v53_v9  ;;  %314 = vmatpush.bf16.msra.mxu1 %v553_v37 }
  0x11   :  { %409 = vmatpush.bf16.msra.mxu2 %v561_v38 }
  0x13   :  { %216 = vmatpush.bf16.msra.mxu0 %v544_v39  ;;  %602 = vmatpush.bf16.msra.mxu3 %v544_v39 }
  0x14   :  { %315 = vmatpush.bf16.msra.mxu1 %v552_v40 }
  0x15   :  { %410 = vmatpush.bf16.msra.mxu2 %v560_v41 }
  0x17   :  { %217 = vmatpush.bf16.msra.mxu0 %v543_v42  ;;  %603 = vmatpush.bf16.msra.mxu3 %v543_v42 }
  0x18   :  { %316 = vmatpush.bf16.msra.mxu1 %v551_v43 }
  0x19   :  { %411 = vmatpush.bf16.msra.mxu2 %v559_v44 }
  0x1b   :  { %218 = vmatpush.bf16.msra.mxu0 %v542_v45  ;;  %604 = vmatpush.bf16.msra.mxu3 %v542_v45 }
  0x1c   :  { %317 = vmatpush.bf16.msra.mxu1 %v550_v46  ;;  %v610_v46 = vld [vmem:[%s837_s6] ss:$0 sm:$0xff] }
  0x1d   :  { %412 = vmatpush.bf16.msra.mxu2 %v558_v47 }
  0x1f   :  { %219 = vmatpush.bf16.msra.mxu0 %v541_v52  ;;  %605 = vmatpush.bf16.msra.mxu3 %v541_v52 }
  0x20   :  { %318 = vmatpush.bf16.msra.mxu1 %v549_v53 }
  0x21   :  { %413 = vmatpush.bf16.msra.mxu2 %v557_v54 }
  0x75   :  { %v46_v11 = vpop.xlane.xlu1 %45  ;;  %v42_v12 = vpop.xlane.xlu0 %41 }
  0x76   :  { %v58_v13 = vmul.f32 %v695_v10, %v46_v11  ;;  %v56_v14 = vmul.f32 %v695_v10, %v42_v12 }
  0x78   :  { %v699_v15 = vsub.f32 %v37_v0, %v58_v13  ;;  %v701_v16 = vsub.f32 %v35_v1, %v56_v14 }
  0x7a   :  { %v66_v17 = vmul.f32 %v699_v15, %v699_v15  ;;  %v64_v18 = vmul.f32 %v701_v16, %v701_v16 }
  0x7c   :  { %72 = vadd.xlane.f32.xlu0 %v66_v17  ;;  %68 = vadd.xlane.f32.xlu2 %v64_v18 }
  0x7d   :  { %v48_v19 = vpop.xlane.xlu1 %47  ;;  %v44_v20 = vpop.xlane.xlu0 %43 }
  0x7e   :  { %v59_v21 = vmul.f32 %v695_v10, %v48_v19  ;;  %v57_v22 = vmul.f32 %v695_v10, %v44_v20 }
  0x80   :  { %v709_v23 = vsub.f32 %v38_v2, %v59_v21  ;;  %v711_v24 = vsub.f32 %v36_v3, %v57_v22 }
  0x82   :  { %v67_v25 = vmul.f32 %v709_v23, %v709_v23  ;;  %v65_v26 = vmul.f32 %v711_v24, %v711_v24 }
  0x84   :  { %74 = vadd.xlane.f32.xlu1 %v67_v25  ;;  %70 = vadd.xlane.f32.xlu2 %v65_v26 }
  0xef   :  { %v69_v48 = vpop.xlane.xlu2 %68  ;;  %v73_v49 = vpop.xlane.xlu0 %72 }
  0xf0   :  { %v76_v50 = vmul.f32 %v69_v48, %v695_v10  ;;  %v78_v51 = vmul.f32 %v73_v49, %v695_v10 }
  0xf2   :  { %v80_v55 = vadd.f32 1e-06, %v76_v50  ;;  %v82_v56 = vadd.f32 1e-06, %v78_v51 }
  0xf4   :  { %614 = vrsqrt.f32 %v80_v55  ;;  %vm110_vm1 = vweird.f32 %v82_v56  ;;  %vm90_vm5 = vweird.f32 %v80_v55 }
  0xf5   :  { %616 = vrsqrt.f32 %v82_v56 }
  0xf7   :  { %v75_v57 = vpop.xlane.xlu1 %74  ;;  %v71_v58 = vpop.xlane.xlu2 %70 }
  0xf8   :  { %v79_v59 = vmul.f32 %v75_v57, %v695_v10  ;;  %v77_v60 = vmul.f32 %v71_v58, %v695_v10 }
  0xfa   :  { %v615_v61 = vpop.eup %614  ;;  %v83_v62 = vadd.f32 1e-06, %v79_v59  ;;  %v81_v63 = vadd.f32 1e-06, %v77_v60  ;;  %v611_v59 = vld [vmem:[%s838_s8] ss:$0 sm:$0xff] }
  0xfb   :  { %v617_v0 = vpop.eup %616  ;;  %v85_v1 = vmul.f32 %v615_v61, %v80_v55  ;;  %vm91_vm3 = vweird.f32 %v615_v61 }
  0xfc   :  { %v105_v2 = vmul.f32 %v617_v0, %v82_v56  ;;  %618 = vrsqrt.f32 %v83_v62  ;;  %vm111_vm2 = vweird.f32 %v617_v0  ;;  %vm92_vm6 = vmor %vm90_vm5, %vm91_vm3  ;;  %vm120_vm7 = vweird.f32 %v83_v62 }
  0xfd   :  { %v86_v3 = vmul.f32 %v615_v61, %v85_v1  ;;  %620 = vrsqrt.f32 %v81_v63  ;;  %vm112_vm4 = vmor %vm110_vm1, %vm111_vm2  ;;  %vm100_vm11 = vweird.f32 %v81_v63 }
  0xfe   :  { %v106_v4 = vmul.f32 %v617_v0, %v105_v2 }
  0xff   :  { %v87_v5 = vmul.f32 0.5, %v86_v3 }
 0x100   :  { %v107_v6 = vmul.f32 0.5, %v106_v4 }
 0x101   :  { %v88_v7 = vsub.f32 1.5, %v87_v5 }
 0x102   :  { %v619_v8 = vpop.eup %618  ;;  %v108_v9 = vsub.f32 1.5, %v107_v6 }
 0x103   :  { %v621_v11 = vpop.eup %620  ;;  %v115_v12 = vmul.f32 %v619_v8, %v83_v62  ;;  %v89_v10 = vmul.f32 %v615_v61, %v88_v7  ;;  %vm121_vm8 = vweird.f32 %v619_v8 }
 0x104   :  { %v109_v13 = vmul.f32 %v617_v0, %v108_v9  ;;  %v95_v14 = vmul.f32 %v621_v11, %v81_v63  ;;  %vm122_vm9 = vmor %vm120_vm7, %vm121_vm8  ;;  %vm101_vm10 = vweird.f32 %v621_v11 }
 0x105   :  { %v116_v17 = vmul.f32 %v619_v8, %v115_v12  ;;  %v93_v21 = vsel %vm92_vm6, %v615_v61, %v89_v10  ;;  %vm102_vm12 = vmor %vm100_vm11, %vm101_vm10 }
 0x106   :  { %v96_v18 = vmul.f32 %v621_v11, %v95_v14  ;;  %v113_v19 = vsel %vm112_vm4, %v617_v0, %v109_v13  ;;  %v124_v29 = vmul.f32 %v93_v21, %v701_v16 }
 0x107   :  { %v117_v20 = vmul.f32 0.5, %v116_v17  ;;  %v126_v26 = vmul.f32 %v113_v19, %v699_v15  ;;  %v608_v15 = vld [vmem:[%s832_s2] ss:$0 sm:$0xff] }
 0x108   :  { %v97_v22 = vmul.f32 0.5, %v96_v18  ;;  %v131_v37 = vmul.f32 %v607_v28, %v124_v29 }
 0x109   :  { %v118_v25 = vsub.f32 1.5, %v117_v20  ;;  %v133_v35 = vmul.f32 %v607_v28, %v126_v26 }
 0x10a   :  { %v98_v27 = vsub.f32 1.5, %v97_v22  ;;  %v138_v41 = vadd.f32 %v608_v15, %v131_v37 }
 0x10b   :  { %v119_v30 = vmul.f32 %v619_v8, %v118_v25  ;;  %v140_v40 = vadd.f32 %v608_v15, %v133_v35 }
 0x10c   :  { %v99_v31 = vmul.f32 %v621_v11, %v98_v27 }
 0x10d   :  { %v123_v32 = vsel %vm122_vm9, %v619_v8, %v119_v30 }
 0x10e   :  { %v127_v33 = vmul.f32 %v123_v32, %v709_v23  ;;  %v103_v34 = vsel %vm102_vm12, %v621_v11, %v99_v31 }
 0x10f   :  { %v125_v36 = vmul.f32 %v103_v34, %v711_v24  ;;  %v609_v24 = vld [vmem:[%s833_s4] ss:$0 sm:$0xff] }
 0x110   :  { %v134_v38 = vmul.f32 %v607_v28, %v127_v33 }
 0x111   :  { %v132_v39 = vmul.f32 %v607_v28, %v125_v36 }
 0x112   :  { %v141_v16 = vadd.f32 %v608_v15, %v134_v38 }
 0x113   :  { %v139_v42 = vadd.f32 %v608_v15, %v132_v39 }
 0x114   :  { %v143_v43 = vpack.c.bf16 %v141_v16, %v140_v40 }
 0x115   :  { %v142_v44 = vpack.c.bf16 %v139_v42, %v138_v41 }
 0x116   :  { %225 = vmatmul.bf16.vlgmr.msra.gmra.mxu3 %v143_v43 }
 0x117   :  { %220 = vmatmul.bf16.vlgmr.msra.gmra.mxu0 %v142_v44  ;;  %319 = vmatmul.bf16.vlgmr.msra.gmra.mxu1 %v142_v44 }
 0x118   :  { %414 = vmatmul.bf16.vlgmr.msra.gmra.mxu2 %v142_v44 }
 0x127   :  { %324 = vmatmul.bf16.gmra.mxu1 %v143_v43 }
 0x128   :  { %419 = vmatmul.bf16.gmra.mxu2 %v143_v43 }
 0x194   :  { %v221_v23 = vpop.f32.mrf.mxu0  ;;  %v320_v45 = vpop.f32.mrf.mxu1 }
 0x195   :  { %v222_v48 = vadd.f32 %v609_v24, %v221_v23  ;;  %v321_v52 = vadd.f32 %v610_v46, %v320_v45 }
 0x197   :  { %v231_v55 = vmul.f32 0.17677669, %v222_v48 }
 0x199   :  { %v226_v47 = vpop.f32.mrf.mxu3 }
 0x19a   :  { %v227_v58 = vadd.f32 %v609_v24, %v226_v47 }
 0x19b   :  { %v415_v49 = vpop.f32.mrf.mxu2 }
 0x19c   :  { %v223_v50 = vpop.f32.mrf.mxu0  ;;  %v322_v51 = vpop.f32.mrf.mxu1  ;;  %v233_v0 = vmul.f32 0.17677669, %v227_v58  ;;  %v416_v1 = vadd.f32 %v611_v59, %v415_v49 }
 0x19d   :  { %v224_v53 = vadd.f32 %v609_v24, %v223_v50  ;;  %v323_v54 = vadd.f32 %v610_v46, %v322_v51 }
 0x19f   :  { %v232_v56 = vmul.f32 0.17677669, %v224_v53  ;;  %v578_v57 = vpack.c.bf16 %v323_v54, %v321_v52 }
 0x1a1   :  { %v568_v60 = vpack.c.bf16 %v232_v56, %v231_v55  ;;  %579 = vst [vmem:[%s839_s10] sm:$0xff] %v578_v57   ;;  %v228_v61 = vpop.f32.mrf.mxu3 }
 0x1a2   :  { %v229_v62 = vadd.f32 %v609_v24, %v228_v61 }
 0x1a3   :  { %569 = vst [vmem:[%s840_s9] sm:$0xff] %v568_v60   ;;  %v417_v63 = vpop.f32.mrf.mxu2 }
 0x1a4   :  { %v234_v2 = vmul.f32 0.17677669, %v229_v62  ;;  %v418_v3 = vadd.f32 %v611_v59, %v417_v63  ;;  %v325_v4 = vpop.f32.mrf.mxu1 }
 0x1a5   :  { %v326_v9 = vadd.f32 %v610_v46, %v325_v4 }
 0x1a6   :  { %v573_v5 = vpack.c.bf16 %v234_v2, %v233_v0  ;;  %v588_v6 = vpack.c.bf16 %v418_v3, %v416_v1 }
 0x1a8   :  { %595 = vst [vmem:[%s840_s9 + $0x8] sm:$0xff] %v573_v5  }
 0x1a9   :  { %589 = vst [vmem:[%s841_s11] sm:$0xff] %v588_v6  }
 0x1ab   :  { %v420_v7 = vpop.f32.mrf.mxu2 }
 0x1ac   :  { %v327_v8 = vpop.f32.mrf.mxu1  ;;  %v421_v13 = vadd.f32 %v611_v59, %v420_v7 }
 0x1ad   :  { %v328_v11 = vadd.f32 %v610_v46, %v327_v8 }
 0x1af   :  { %v583_v12 = vpack.c.bf16 %v328_v11, %v326_v9 }
 0x1b1   :  { %596 = vst [vmem:[%s839_s10 + $0x8] sm:$0xff] %v583_v12  }
 0x1b3   :  { %v422_v10 = vpop.f32.mrf.mxu2 }
 0x1b4   :  { %v423_v14 = vadd.f32 %v611_v59, %v422_v10 }
 0x1b6   :  { %v593_v17 = vpack.c.bf16 %v423_v14, %v421_v13 }
 0x1b8   :  { %597 = vst [vmem:[%s841_s11 + $0x8] sm:$0xff] %v593_v17  }

// kernel: siglip_encoder.8
= control target key start
LH: loop header
LB: loop body
LE: loop exit
PB: predicated region body
PF: predicated region fallthrough
CT: control target
= control target key end

     0   :  { %v1163_v27 = vmov 128.0   ;;  %s1845_s2 = inlined_call_operand.vmem [shape: bf16[128,128], index: 2, kind: input, shape index: {}]   ;;  %s1846_s3 = inlined_call_operand.vmem [shape: f32[1,128], index: 3, kind: input, shape index: {}]   ;;  %s1847_s1 = inlined_call_operand.vmem [shape: bf16[32,128], index: 1, kind: input, shape index: {}]   ;;  %s1848_s0 = inlined_call_operand.vmem [shape: f32[32,128], index: 0, kind: input, shape index: {}]   ;;  %s1849_s4 = inlined_call_operand.vmem [shape: f32[1,128], index: 4, kind: input, shape index: {}]   ;;  %s1850_s5 = inlined_call_operand.vmem [shape: f32[1,128], index: 5, kind: input, shape index: {}]   ;;  %s1851_s6 = inlined_call_operand.vmem [shape: bf16[128,256], index: 6, kind: input, shape index: {}]   ;;  %s1852_s9 = inlined_call_operand.vmem [shape: f32[1,128], index: 9, kind: input, shape index: {}]   ;;  %s1853_s7 = inlined_call_operand.vmem [shape: f32[1,256], index: 7, kind: input, shape index: {}]   ;;  %s1854_s8 = inlined_call_operand.vmem [shape: bf16[256,128], index: 8, kind: input, shape index: {}]   ;;  %s1855_s10 = inlined_call_operand.vmem [shape: f32[32,128], index: 10, kind: output, shape index: {}]  }
   0x1   :  { %v1074_v0 = vld [vmem:[%s1845_s2 + $0x38] sm:$0xff]  ;;  %v1073_v1 = vld [vmem:[%s1845_s2 + $0x30] sm:$0xff]  ;;  %v1072_v2 = vld [vmem:[%s1845_s2 + $0x28] sm:$0xff]  ;;  %1121 = vrcp.f32 %v1163_v27 }
   0x2   :  { %119 = vmatpush.bf16.msra.mxu0 %v1074_v0  ;;  %v1071_v3 = vld [vmem:[%s1845_s2 + $0x20] sm:$0xff]  ;;  %v1070_v4 = vld [vmem:[%s1845_s2 + $0x18] sm:$0xff]  ;;  %v1069_v5 = vld [vmem:[%s1845_s2 + $0x10] sm:$0xff] }
   0x3   :  { %v1068_v6 = vld [vmem:[%s1845_s2 + $0x8] sm:$0xff]  ;;  %v1067_v7 = vld [vmem:[%s1845_s2] sm:$0xff]  ;;  %v140_v20 = vld [vmem:[%s1848_s0 + $0x10] sm:$0xff] }
   0x4   :  { %v1065_v8 = vld [vmem:[%s1847_s1] sm:$0xff]  ;;  %v1066_v9 = vld [vmem:[%s1847_s1 + $0x8] sm:$0xff]  ;;  %v141_v24 = vld [vmem:[%s1848_s0 + $0x18] sm:$0xff] }
   0x5   :  { %v1117_v10 = vld [vmem:[%s1846_s3] ss:$0 sm:$0xff]  ;;  %v139_v16 = vld [vmem:[%s1848_s0 + $0x8] sm:$0xff]  ;;  %v995_v50 = vld [vmem:[%s1851_s6 + $0x70] sm:$0xf] }
   0x6   :  { %120 = vmatpush.bf16.msra.mxu0 %v1073_v1  ;;  %v138_v12 = vld [vmem:[%s1848_s0] sm:$0xff]  ;;  %v1090_v51 = vld [vmem:[%s1851_s6 + $0x74] sm:$0xf0]  ;;  %v1089_v52 = vld [vmem:[%s1851_s6 + $0x74] sm:$0xf] }
   0x7   :  { %v1122_v28 = vpop.eup %1121  ;;  %v996_v53 = vor.u32 %v1090_v51, %v995_v50  ;;  %v997_v54 = vld [vmem:[%s1851_s6 + $0x78] sm:$0xf0]  ;;  %v987_v56 = vld [vmem:[%s1851_s6 + $0x60] sm:$0xf]  ;;  %v1088_v57 = vld [vmem:[%s1851_s6 + $0x64] sm:$0xf0] }
   0x8   :  { %v157_v29 = vmul.f32 128.0, %v1122_v28  ;;  %vm161_vm0 = vweird.f32 %v1122_v28  ;;  %v1000_v55 = vor.u32 %v1089_v52, %v997_v54  ;;  %v1087_v58 = vld [vmem:[%s1851_s6 + $0x64] sm:$0xf]  ;;  %v988_v59 = vor.u32 %v1088_v57, %v987_v56  ;;  %v989_v60 = vld [vmem:[%s1851_s6 + $0x68] sm:$0xf0] }
   0x9   :  { %353 = vmatpush.bf16.msra.mxu1 %v996_v53  ;;  %v992_v61 = vor.u32 %v1087_v58, %v989_v60  ;;  %v979_v62 = vld [vmem:[%s1851_s6 + $0x50] sm:$0xf]  ;;  %v1086_v63 = vld [vmem:[%s1851_s6 + $0x54] sm:$0xf0]  ;;  %v1085_v0 = vld [vmem:[%s1851_s6 + $0x54] sm:$0xf] }
   0xa   :  { %121 = vmatpush.bf16.msra.mxu0 %v1072_v2  ;;  %v158_v30 = vsub.f32 1.0, %v157_v29  ;;  %372 = vmatpush.bf16.msra.mxu2 %v1000_v55  ;;  %v980_v1 = vor.u32 %v1086_v63, %v979_v62  ;;  %v981_v2 = vld [vmem:[%s1851_s6 + $0x58] sm:$0xf0]  ;;  %v1078_v27 = vld [vmem:[%s1851_s6 + $0x14] sm:$0xf0] }
   0xc   :  { %v159_v31 = vmul.f32 %v1122_v28, %v158_v30  ;;  %v949_v30 = vld [vmem:[%s1851_s6 + $0x18] sm:$0xf0] }
   0xd   :  { %354 = vmatpush.bf16.msra.mxu1 %v988_v59 }
   0xe   :  { %122 = vmatpush.bf16.msra.mxu0 %v1071_v3  ;;  %v160_v32 = vadd.f32 %v1122_v28, %v159_v31  ;;  %373 = vmatpush.bf16.msra.mxu2 %v992_v61  ;;  %v984_v3 = vor.u32 %v1085_v0, %v981_v2 }
  0x10   :  { %v1277_v33 = vsel %vm161_vm0, %v1122_v28, %v160_v32  ;;  %v1077_v28 = vld [vmem:[%s1851_s6 + $0x14] sm:$0xf] }
  0x11   :  { %355 = vmatpush.bf16.msra.mxu1 %v980_v1  ;;  %v952_v31 = vor.u32 %v1077_v28, %v949_v30 }
  0x12   :  { %123 = vmatpush.bf16.msra.mxu0 %v1070_v4  ;;  %374 = vmatpush.bf16.msra.mxu2 %v984_v3  ;;  %v971_v4 = vld [vmem:[%s1851_s6 + $0x40] sm:$0xf] }
  0x16   :  { %124 = vmatpush.bf16.msra.mxu0 %v1069_v5  ;;  %v1084_v5 = vld [vmem:[%s1851_s6 + $0x44] sm:$0xf0] }
  0x1a   :  { %125 = vmatpush.bf16.msra.mxu0 %v1068_v6  ;;  %v1083_v6 = vld [vmem:[%s1851_s6 + $0x44] sm:$0xf] }
  0x1e   :  { %126 = vmatpush.bf16.msra.mxu0 %v1067_v7  ;;  %v972_v7 = vor.u32 %v1084_v5, %v971_v4  ;;  %v1118_v5 = vld [vmem:[%s1849_s4] ss:$0 sm:$0xff] }
  0x20   :  { %356 = vmatpush.bf16.msra.mxu1 %v972_v7 }
  0x21   :  { %127 = vmatmul.bf16.vlgmr.msra.gmra.mxu0 %v1065_v8  ;;  %v973_v8 = vld [vmem:[%s1851_s6 + $0x48] sm:$0xf0] }
  0x31   :  { %132 = vmatmul.bf16.gmra.mxu0 %v1066_v9  ;;  %v976_v9 = vor.u32 %v1083_v6, %v973_v8 }
  0x33   :  { %375 = vmatpush.bf16.msra.mxu2 %v976_v9 }
  0x9e   :  { %v128_v11 = vpop.f32.mrf.mxu0 }
  0x9f   :  { %v129_v13 = vadd.f32 %v1117_v10, %v128_v11  ;;  %v1082_v11 = vld [vmem:[%s1851_s6 + $0x34] sm:$0xf0] }
  0xa1   :  { %v1256_v14 = vadd.f32 %v138_v12, %v129_v13  ;;  %v1081_v12 = vld [vmem:[%s1851_s6 + $0x34] sm:$0xf] }
  0xa3   :  { %148 = vadd.xlane.f32.xlu0 %v1256_v14 }
  0xa6   :  { %v130_v15 = vpop.f32.mrf.mxu0 }
  0xa7   :  { %v131_v17 = vadd.f32 %v1117_v10, %v130_v15  ;;  %v965_v15 = vld [vmem:[%s1851_s6 + $0x38] sm:$0xf0] }
  0xa9   :  { %v1262_v18 = vadd.f32 %v139_v16, %v131_v17  ;;  %v968_v16 = vor.u32 %v1081_v12, %v965_v15  ;;  %v955_v17 = vld [vmem:[%s1851_s6 + $0x20] sm:$0xf] }
  0xab   :  { %150 = vadd.xlane.f32.xlu0 %v1262_v18  ;;  %376 = vmatpush.bf16.msra.mxu2 %v968_v16 }
  0xae   :  { %v133_v19 = vpop.f32.mrf.mxu0 }
  0xaf   :  { %v134_v21 = vadd.f32 %v1117_v10, %v133_v19  ;;  %v1080_v19 = vld [vmem:[%s1851_s6 + $0x24] sm:$0xf0] }
  0xb1   :  { %v1268_v22 = vadd.f32 %v140_v20, %v134_v21  ;;  %v1079_v20 = vld [vmem:[%s1851_s6 + $0x24] sm:$0xf]  ;;  %v956_v21 = vor.u32 %v1080_v19, %v955_v17 }
  0xb3   :  { %152 = vadd.xlane.f32.xlu1 %v1268_v22 }
  0xb6   :  { %v135_v23 = vpop.f32.mrf.mxu0 }
  0xb7   :  { %v136_v25 = vadd.f32 %v1117_v10, %v135_v23  ;;  %v963_v10 = vld [vmem:[%s1851_s6 + $0x30] sm:$0xf]  ;;  %v957_v23 = vld [vmem:[%s1851_s6 + $0x28] sm:$0xf0] }
  0xb8   :  { %v964_v13 = vor.u32 %v1082_v11, %v963_v10  ;;  %v1119_v11 = vld [vmem:[%s1850_s5] ss:$0 sm:$0xff] }
  0xb9   :  { %v1274_v26 = vadd.f32 %v141_v24, %v136_v25  ;;  %v960_v24 = vor.u32 %v1079_v20, %v957_v23  ;;  %v947_v25 = vld [vmem:[%s1851_s6 + $0x10] sm:$0xf] }
  0xba   :  { %357 = vmatpush.bf16.msra.mxu1 %v964_v13  ;;  %v948_v29 = vor.u32 %v1078_v27, %v947_v25 }
  0xbb   :  { %154 = vadd.xlane.f32.xlu1 %v1274_v26  ;;  %377 = vmatpush.bf16.msra.mxu2 %v960_v24 }
  0xbe   :  { %358 = vmatpush.bf16.msra.mxu1 %v956_v21 }
  0xbf   :  { %378 = vmatpush.bf16.msra.mxu2 %v952_v31 }
  0xc2   :  { %359 = vmatpush.bf16.msra.mxu1 %v948_v29 }
 0x116   :  { %v149_v34 = vpop.xlane.xlu0 %148 }
 0x117   :  { %v163_v35 = vmul.f32 %v1277_v33, %v149_v34 }
 0x119   :  { %v1281_v36 = vsub.f32 %v1256_v14, %v163_v35  ;;  %v939_v35 = vld [vmem:[%s1851_s6] sm:$0xf] }
 0x11b   :  { %v171_v37 = vmul.f32 %v1281_v36, %v1281_v36 }
 0x11d   :  { %175 = vadd.xlane.f32.xlu2 %v171_v37  ;;  %v1076_v37 = vld [vmem:[%s1851_s6 + $0x4] sm:$0xf0] }
 0x11e   :  { %v151_v38 = vpop.xlane.xlu0 %150 }
 0x11f   :  { %v164_v39 = vmul.f32 %v1277_v33, %v151_v38  ;;  %v1075_v38 = vld [vmem:[%s1851_s6 + $0x4] sm:$0xf] }
 0x121   :  { %v1287_v40 = vsub.f32 %v1262_v18, %v164_v39  ;;  %v940_v39 = vor.u32 %v1076_v37, %v939_v35 }
 0x123   :  { %v172_v41 = vmul.f32 %v1287_v40, %v1287_v40  ;;  %360 = vmatpush.bf16.msra.mxu1 %v940_v39 }
 0x125   :  { %177 = vadd.xlane.f32.xlu2 %v172_v41  ;;  %v941_v41 = vld [vmem:[%s1851_s6 + $0x8] sm:$0xf0] }
 0x126   :  { %v153_v42 = vpop.xlane.xlu1 %152 }
 0x127   :  { %v165_v43 = vmul.f32 %v1277_v33, %v153_v42 }
 0x129   :  { %v1293_v44 = vsub.f32 %v1268_v22, %v165_v43  ;;  %v944_v43 = vor.u32 %v1075_v38, %v941_v41  ;;  %v267_v38 = vld [vmem:[%s1853_s7] sm:$0x3] }
 0x12a   :  { %v1416_v39 = vperm.slane %v267_v38, 0 }
 0x12b   :  { %v173_v45 = vmul.f32 %v1293_v44, %v1293_v44  ;;  %379 = vmatpush.bf16.msra.mxu2 %v944_v43 }
 0x12d   :  { %179 = vadd.xlane.f32.xlu0 %v173_v45 }
 0x12e   :  { %v155_v46 = vpop.xlane.xlu1 %154 }
 0x12f   :  { %v166_v47 = vmul.f32 %v1277_v33, %v155_v46 }
 0x131   :  { %v1299_v48 = vsub.f32 %v1274_v26, %v166_v47 }
 0x133   :  { %v174_v49 = vmul.f32 %v1299_v48, %v1299_v48 }
 0x135   :  { %181 = vadd.xlane.f32.xlu1 %v174_v49 }
 0x190   :  { %v176_v32 = vpop.xlane.xlu2 %175 }
 0x191   :  { %v183_v34 = vmul.f32 %v176_v32, %v1277_v33 }
 0x193   :  { %v187_v42 = vadd.f32 1e-06, %v183_v34 }
 0x195   :  { %1123 = vrsqrt.f32 %v187_v42  ;;  %vm197_vm2 = vweird.f32 %v187_v42 }
 0x198   :  { %v178_v45 = vpop.xlane.xlu2 %177 }
 0x199   :  { %v184_v46 = vmul.f32 %v178_v45, %v1277_v33 }
 0x19b   :  { %v1124_v47 = vpop.eup %1123  ;;  %v188_v49 = vadd.f32 1e-06, %v184_v46 }
 0x19c   :  { %v192_v50 = vmul.f32 %v1124_v47, %v187_v42  ;;  %vm198_vm1 = vweird.f32 %v1124_v47 }
 0x19d   :  { %1125 = vrsqrt.f32 %v188_v49  ;;  %vm199_vm3 = vmor %vm197_vm2, %vm198_vm1  ;;  %vm207_vm5 = vweird.f32 %v188_v49 }
 0x19e   :  { %v193_v51 = vmul.f32 %v1124_v47, %v192_v50 }
 0x1a0   :  { %v194_v52 = vmul.f32 0.5, %v193_v51  ;;  %v180_v53 = vpop.xlane.xlu0 %179 }
 0x1a1   :  { %v185_v54 = vmul.f32 %v180_v53, %v1277_v33 }
 0x1a2   :  { %v195_v55 = vsub.f32 1.5, %v194_v52 }
 0x1a3   :  { %v1126_v56 = vpop.eup %1125  ;;  %v189_v57 = vadd.f32 1e-06, %v185_v54 }
 0x1a4   :  { %v196_v58 = vmul.f32 %v1124_v47, %v195_v55  ;;  %v202_v59 = vmul.f32 %v1126_v56, %v188_v49  ;;  %vm208_vm4 = vweird.f32 %v1126_v56 }
 0x1a5   :  { %1127 = vrsqrt.f32 %v189_v57  ;;  %vm209_vm6 = vmor %vm207_vm5, %vm208_vm4  ;;  %vm217_vm8 = vweird.f32 %v189_v57 }
 0x1a6   :  { %v203_v60 = vmul.f32 %v1126_v56, %v202_v59  ;;  %v200_v63 = vsel %vm199_vm3, %v1124_v47, %v196_v58  ;;  %v1098_v59 = vld [vmem:[%s1854_s8 + $0x38] sm:$0xff] }
 0x1a7   :  { %v231_v4 = vmul.f32 %v200_v63, %v1281_v36  ;;  %847 = vmatpush.bf16.msra.mxu3 %v1098_v59  ;;  %v1094_v59 = vld [vmem:[%s1854_s8 + $0x18] sm:$0xff] }
 0x1a8   :  { %v204_v61 = vmul.f32 0.5, %v203_v60  ;;  %v182_v62 = vpop.xlane.xlu1 %181 }
 0x1a9   :  { %v186_v0 = vmul.f32 %v182_v62, %v1277_v33  ;;  %v238_v33 = vmul.f32 %v1118_v5, %v231_v4 }
 0x1aa   :  { %v205_v1 = vsub.f32 1.5, %v204_v61 }
 0x1ab   :  { %v1128_v2 = vpop.eup %1127  ;;  %v190_v3 = vadd.f32 1e-06, %v186_v0  ;;  %v245_v16 = vadd.f32 %v1119_v11, %v238_v33 }
 0x1ac   :  { %v206_v6 = vmul.f32 %v1126_v56, %v205_v1  ;;  %v212_v7 = vmul.f32 %v1128_v2, %v189_v57  ;;  %vm218_vm7 = vweird.f32 %v1128_v2 }
 0x1ad   :  { %1129 = vrsqrt.f32 %v190_v3  ;;  %vm219_vm9 = vmor %vm217_vm8, %vm218_vm7  ;;  %vm227_vm11 = vweird.f32 %v190_v3 }
 0x1ae   :  { %v213_v8 = vmul.f32 %v1128_v2, %v212_v7  ;;  %v210_v9 = vsel %vm209_vm6, %v1126_v56, %v206_v6  ;;  %v1106_v7 = vld [vmem:[%s1854_s8 + $0x78] sm:$0xff] }
 0x1af   :  { %v232_v10 = vmul.f32 %v210_v9, %v1287_v40  ;;  %866 = vmatpush.bf16.msrb.mxu0 %v1106_v7  ;;  %1107 = vmatpush.bf16.msrb.mxu1 %v1106_v7 }
 0x1b0   :  { %v214_v12 = vmul.f32 0.5, %v213_v8 }
 0x1b1   :  { %v239_v36 = vmul.f32 %v1118_v5, %v232_v10 }
 0x1b2   :  { %v215_v13 = vsub.f32 1.5, %v214_v12 }
 0x1b3   :  { %v1130_v15 = vpop.eup %1129  ;;  %v246_v17 = vadd.f32 %v1119_v11, %v239_v36  ;;  %v1096_v36 = vld [vmem:[%s1854_s8 + $0x28] sm:$0xff] }
 0x1b4   :  { %v216_v19 = vmul.f32 %v1128_v2, %v215_v13  ;;  %v222_v20 = vmul.f32 %v1130_v15, %v190_v3  ;;  %vm228_vm10 = vweird.f32 %v1130_v15 }
 0x1b5   :  { %v249_v21 = vpack.c.bf16 %v246_v17, %v245_v16  ;;  %vm229_vm12 = vmor %vm227_vm11, %vm228_vm10 }
 0x1b6   :  { %v223_v23 = vmul.f32 %v1130_v15, %v222_v20  ;;  %v220_v24 = vsel %vm219_vm9, %v1128_v2, %v216_v19  ;;  %v1097_v2 = vld [vmem:[%s1854_s8 + $0x30] sm:$0xff] }
 0x1b7   :  { %361 = vmatmul.bf16.vlgmr.msra.gmra.mxu1 %v249_v21  ;;  %380 = vmatmul.bf16.vlgmr.msra.gmra.mxu2 %v249_v21  ;;  %v233_v27 = vmul.f32 %v220_v24, %v1293_v44  ;;  %v1164_v21 = vmov -1.0  }
 0x1b8   :  { %v224_v40 = vmul.f32 0.5, %v223_v23  ;;  %848 = vmatpush.bf16.msra.mxu3 %v1097_v2 }
 0x1b9   :  { %v240_v31 = vmul.f32 %v1118_v5, %v233_v27 }
 0x1ba   :  { %v225_v25 = vsub.f32 1.5, %v224_v40 }
 0x1bb   :  { %v247_v34 = vadd.f32 %v1119_v11, %v240_v31 }
 0x1bc   :  { %v226_v28 = vmul.f32 %v1130_v15, %v225_v25  ;;  %849 = vmatpush.bf16.msra.mxu3 %v1096_v36  ;;  %v1105_v25 = vld [vmem:[%s1854_s8 + $0x70] sm:$0xff] }
 0x1bd   :  { %867 = vmatpush.bf16.msrb.mxu0 %v1105_v25  ;;  %1108 = vmatpush.bf16.msrb.mxu1 %v1105_v25 }
 0x1be   :  { %v230_v29 = vsel %vm229_vm12, %v1130_v15, %v226_v28 }
 0x1bf   :  { %v234_v30 = vmul.f32 %v230_v29, %v1299_v48  ;;  %v1424_v48 = vperm.slane %v267_v38, 1  ;;  %v1095_v38 = vld [vmem:[%s1854_s8 + $0x20] sm:$0xff] }
 0x1c0   :  { %850 = vmatpush.bf16.msra.mxu3 %v1095_v38 }
 0x1c1   :  { %v241_v32 = vmul.f32 %v1118_v5, %v234_v30 }
 0x1c3   :  { %v248_v35 = vadd.f32 %v1119_v11, %v241_v32 }
 0x1c4   :  { %851 = vmatpush.bf16.msra.mxu3 %v1094_v59 }
 0x1c5   :  { %v250_v37 = vpack.c.bf16 %v248_v35, %v247_v34 }
 0x1c7   :  { %366 = vmatmul.bf16.gmra.mxu1 %v250_v37  ;;  %385 = vmatmul.bf16.gmra.mxu2 %v250_v37 }
 0x234   :  { %v362_v44 = vpop.f32.mrf.mxu1 }
 0x235   :  { %v1419_v41 = vadd.f32 %v362_v44, %v1416_v39 }
 0x237   :  { %v1422_v42 = vmul.f32 0.70710677, %v1419_v41 }
 0x239   :  { %v423_v43 = vand.u32 2147483647, %v1422_v42 }
 0x23a   :  { %v381_v45 = vpop.f32.mrf.mxu2 }
 0x23b   :  { %v382_v46 = vadd.f32 %v381_v45, %v1424_v48  ;;  %v431_v49 = vmul.f32 0.3275911, %v423_v43  ;;  %v639_v60 = vsub.f32 0.0, %v423_v43 }
 0x23c   :  { %v364_v47 = vpop.f32.mrf.mxu1 }
 0x23d   :  { %v400_v50 = vmul.f32 0.70710677, %v382_v46  ;;  %v1429_v51 = vadd.f32 %v364_v47, %v1416_v39  ;;  %v1434_v54 = vadd.f32 1.0, %v431_v49  ;;  %v647_v3 = vmul.f32 %v639_v60, %v423_v43  ;;  %v1104_v47 = vld [vmem:[%s1854_s8 + $0x68] sm:$0xff] }
 0x23e   :  { %v1476_v20 = vmul.f32 0.5, %v382_v46  ;;  %868 = vmatpush.bf16.msrb.mxu0 %v1104_v47  ;;  %1109 = vmatpush.bf16.msrb.mxu1 %v1104_v47 }
 0x23f   :  { %v424_v52 = vand.u32 2147483647, %v400_v50  ;;  %v1432_v53 = vmul.f32 0.70710677, %v1429_v51  ;;  %1131 = vrcp.f32 %v1434_v54  ;;  %vm408_vm13 = vcmp.ge.f32.partialorder %v400_v50, 0.0 }
 0x240   :  { %v458_v10 = vand.u32 2147483648, %v1434_v54  ;;  %v655_v15 = vmul.f32 1.442695, %v647_v3  ;;  %v1480_v23 = vsel %vm408_vm13, 1.0, %v1164_v21  ;;  %v456_v28 = vand.u32 2147483647, %v1434_v54 }
 0x241   :  { %v432_v55 = vmul.f32 0.3275911, %v424_v52  ;;  %v425_v57 = vand.u32 2147483647, %v1432_v53  ;;  %v640_v4 = vsub.f32 0.0, %v424_v52  ;;  %vm452_vm3 = vweird.f32 %v1434_v54 }
 0x242   :  { %v383_v56 = vpop.f32.mrf.mxu2  ;;  %v1490_v29 = vor.u32 1.1754944e-38, %v458_v10  ;;  %vm1606_vm9 = vcmp.eq.f32.partialorder %v456_v28, 8.507059e+37 }
 0x243   :  { %v384_v58 = vadd.f32 %v383_v56, %v1424_v48  ;;  %v1441_v61 = vadd.f32 1.0, %v432_v55  ;;  %v433_v0 = vmul.f32 0.3275911, %v425_v57  ;;  %v641_v6 = vsub.f32 0.0, %v425_v57 }
 0x244   :  { %v367_v62 = vpop.f32.mrf.mxu1  ;;  %v648_v16 = vmul.f32 %v640_v4, %v424_v52  ;;  %v1103_v4 = vld [vmem:[%s1854_s8 + $0x60] sm:$0xff] }
 0x245   :  { %v1444_v63 = vmul.f32 0.70710677, %v384_v58  ;;  %1133 = vrcp.f32 %v1441_v61  ;;  %v1448_v1 = vadd.f32 %v367_v62, %v1416_v39  ;;  %v1461_v33 = vpop.eup %1131  ;;  %v1463_v11 = vadd.f32 1.0, %v433_v0  ;;  %869 = vmatpush.bf16.msrb.mxu0 %v1103_v4  ;;  %1110 = vmatpush.bf16.msrb.mxu1 %v1103_v4 }
 0x246   :  { %v649_v24 = vmul.f32 %v641_v6, %v425_v57  ;;  %v448_v27 = vmul.f32 %v1461_v33, %v1434_v54  ;;  %v471_v31 = vand.u32 2147483647, %v1441_v61  ;;  %v473_v34 = vand.u32 2147483648, %v1441_v61 }
 0x247   :  { %v1454_v5 = vand.u32 2147483647, %v1444_v63  ;;  %v1466_v12 = vmul.f32 0.70710677, %v1448_v1  ;;  %v657_v35 = vmul.f32 1.442695, %v648_v16  ;;  %vm467_vm15 = vweird.f32 %v1441_v61 }
 0x248   :  { %v659_v43 = vmul.f32 1.442695, %v649_v24  ;;  %v449_v49 = vsub.f32 1.0, %v448_v27  ;;  %v1509_v50 = vmul.f32 0.5, %v384_v58  ;;  %vm410_vm0 = vcmp.ge.f32.partialorder %v1444_v63, 0.0 }
 0x249   :  { %v434_v8 = vmul.f32 0.3275911, %v1454_v5  ;;  %v1495_v32 = vand.u32 2147483647, %v1466_v12  ;;  %v642_v56 = vsub.f32 0.0, %v1454_v5  ;;  %v474_v58 = vor.u32 1.1754944e-38, %v473_v34 }
 0x24a   :  { %v386_v9 = vpop.f32.mrf.mxu2  ;;  %vm472_vm2 = vcmp.eq.f32.partialorder %v471_v31, 8.507059e+37  ;;  %v450_v7 = vmul.f32 %v1461_v33, %v449_v49  ;;  %vm453_vm6 = vweird.f32 %v1461_v33  ;;  %vm482_vm10 = vweird.f32 %v1463_v11 }
 0x24b   :  { %v1134_v13 = vpop.eup %1133  ;;  %v1471_v17 = vadd.f32 1.0, %v434_v8  ;;  %v1474_v19 = vadd.f32 %v386_v9, %v1424_v48  ;;  %v435_v45 = vmul.f32 0.3275911, %v1495_v32  ;;  %v650_v36 = vmul.f32 %v642_v56, %v1454_v5  ;;  %vm1635_vm11 = vmor %vm452_vm3, %vm453_vm6 }
 0x24c   :  { %v463_v40 = vmul.f32 %v1134_v13, %v1441_v61  ;;  %vm468_vm14 = vweird.f32 %v1134_v13  ;;  %v369_v46 = vpop.f32.mrf.mxu1  ;;  %v643_v56 = vsub.f32 0.0, %v1495_v32 }
 0x24d   :  { %1135 = vrcp.f32 %v1471_v17  ;;  %v1499_v37 = vmul.f32 0.70710677, %v1474_v19  ;;  %v1516_v57 = vadd.f32 1.0, %v435_v45  ;;  %vm469_vm1 = vmor %vm467_vm15, %vm468_vm14  ;;  %v1526_v62 = vadd.f32 %v369_v46, %v1416_v39 }
 0x24e   :  { %v464_v30 = vsub.f32 1.0, %v463_v40  ;;  %1137 = vrcp.f32 %v1463_v11  ;;  %v1543_v39 = vsel %vm410_vm0, 1.0, %v1164_v21  ;;  %v501_v16 = vand.u32 2147483647, %v1471_v17 }
 0x24f   :  { %1139 = vpow2.f32 %v655_v15  ;;  %v1512_v52 = vand.u32 2147483647, %v1499_v37  ;;  %v1093_v15 = vld [vmem:[%s1854_s8 + $0x10] sm:$0xff]  ;;  %v503_v40 = vand.u32 2147483648, %v1471_v17  ;;  %v1559_v24 = vmul.f32 0.70710677, %v1526_v62 }
 0x250   :  { %v465_v44 = vmul.f32 %v1134_v13, %v464_v30  ;;  %1141 = vpow2.f32 %v657_v35  ;;  %v1102_v30 = vld [vmem:[%s1854_s8 + $0x58] sm:$0xff]  ;;  %vm497_vm5 = vweird.f32 %v1471_v17  ;;  %852 = vmatpush.bf16.msra.mxu3 %v1093_v15  ;;  %v1572_v35 = vadd.f32 %v1461_v33, %v450_v7 }
 0x251   :  { %v436_v61 = vmul.f32 0.3275911, %v1512_v52  ;;  %1143 = vpow2.f32 %v659_v43  ;;  %v644_v34 = vsub.f32 0.0, %v1512_v52  ;;  %v1580_v45 = vand.u32 2147483647, %v1559_v24  ;;  %870 = vmatpush.bf16.msrb.mxu0 %v1102_v30  ;;  %1111 = vmatpush.bf16.msrb.mxu1 %v1102_v30 }
 0x252   :  { %v466_v55 = vadd.f32 %v1134_v13, %v465_v44  ;;  %1145 = vrcp.f32 %v1516_v57  ;;  %v388_v5 = vpop.f32.mrf.mxu2  ;;  %vm502_vm8 = vcmp.eq.f32.partialorder %v501_v16, 8.507059e+37  ;;  %v504_v49 = vor.u32 1.1754944e-38, %v503_v40 }
 0x253   :  { %v1521_v60 = vpop.eup %1135  ;;  %v1583_v46 = vadd.f32 %v388_v5, %v1424_v48  ;;  %v1622_v28 = vmul.f32 %v643_v56, %v1495_v32 }
 0x254   :  { %v1528_v0 = vpop.eup %1137  ;;  %v470_v2 = vsel %vm469_vm1, %v1134_v13, %v466_v55  ;;  %v493_v3 = vmul.f32 %v1521_v60, %v1471_v17  ;;  %v1548_v13 = vadd.f32 1.0, %v436_v61  ;;  %vm498_vm4 = vweird.f32 %v1521_v60  ;;  %v1092_v17 = vld [vmem:[%s1854_s8 + $0x8] sm:$0xff] }
 0x255   :  { %v1535_v6 = vpop.eup %1139  ;;  %v1538_v8 = vsel %vm472_vm2, %v474_v58, %v470_v2  ;;  %v478_v63 = vmul.f32 %v1528_v0, %v1463_v11  ;;  %vm499_vm7 = vmor %vm497_vm5, %vm498_vm4  ;;  %v661_v55 = vmul.f32 1.442695, %v650_v36  ;;  %v437_v61 = vmul.f32 0.3275911, %v1580_v45  ;;  %v1101_v2 = vld [vmem:[%s1854_s8 + $0x50] sm:$0xff]  ;;  %853 = vmatpush.bf16.msra.mxu3 %v1092_v17 }
 0x256   :  { %v568_v9 = vmul.f32 1.0614054, %v1538_v8  ;;  %v494_v10 = vsub.f32 1.0, %v493_v3  ;;  %1147 = vrcp.f32 %v1548_v13  ;;  %v1567_v31 = vpop.eup %1141  ;;  %v531_v7 = vand.u32 2147483647, %v1548_v13  ;;  %871 = vmatpush.bf16.msrb.mxu0 %v1101_v2  ;;  %1112 = vmatpush.bf16.msrb.mxu1 %v1101_v2 }
 0x257   :  { %v1575_v38 = vpop.eup %1143  ;;  %v479_v58 = vsub.f32 1.0, %v478_v63  ;;  %v1612_v63 = vadd.f32 1.0, %v437_v61  ;;  %v1615_v16 = vmul.f32 0.70710677, %v1583_v46  ;;  %1149 = vpow2.f32 %v661_v55 }
 0x258   :  { %v576_v25 = vadd.f32 -1.4531521, %v568_v9  ;;  %v495_v27 = vmul.f32 %v1521_v60, %v494_v10  ;;  %v1588_v47 = vpop.eup %1145  ;;  %v652_v9 = vmul.f32 %v644_v34, %v1512_v52  ;;  %v1091_v52 = vld [vmem:[%s1854_s8] sm:$0xff]  ;;  %v533_v5 = vand.u32 2147483648, %v1548_v13  ;;  %v1100_v34 = vld [vmem:[%s1854_s8 + $0x48] sm:$0xff] }
 0x259   :  { %v508_v4 = vmul.f32 %v1588_v47, %v1516_v57  ;;  %1151 = vrcp.f32 %v1612_v63  ;;  %854 = vmatpush.bf16.msra.mxu3 %v1091_v52  ;;  %vm1647_vm12 = vcmp.eq.f32.partialorder %v531_v7, 8.507059e+37  ;;  %v645_v61 = vsub.f32 0.0, %v1580_v45 }
 0x25a   :  { %v584_v44 = vmul.f32 %v576_v25, %v1538_v8  ;;  %v496_v43 = vadd.f32 %v1521_v60, %v495_v27  ;;  %v480_v27 = vmul.f32 %v1528_v0, %v479_v58  ;;  %v1639_v17 = vmul.f32 1.442695, %v652_v9  ;;  %872 = vmatpush.bf16.msrb.mxu0 %v1100_v34  ;;  %1113 = vmatpush.bf16.msrb.mxu1 %v1100_v34 }
 0x25b   :  { %vm527_vm14 = vweird.f32 %v1548_v13  ;;  %vm483_vm15 = vweird.f32 %v1528_v0  ;;  %vm512_vm1 = vweird.f32 %v1516_v57  ;;  %vm542_vm5 = vweird.f32 %v1612_v63 }
 0x25c   :  { %v592_v59 = vadd.f32 1.4214138, %v584_v44  ;;  %v500_v48 = vsel %vm499_vm7, %v1521_v60, %v496_v43  ;;  %v1148_v10 = vpop.eup %1147  ;;  %v509_v44 = vsub.f32 1.0, %v508_v4  ;;  %vm1687_vm2 = vmor %vm482_vm10, %vm483_vm15  ;;  %vm513_vm6 = vweird.f32 %v1588_v47 }
 0x25d   :  { %v1598_v3 = vsel %vm502_vm8, %v504_v49, %v500_v48  ;;  %v523_v40 = vmul.f32 %v1148_v10, %v1548_v13  ;;  %v455_v49 = vsel %vm1635_vm11, %v1461_v33, %v1572_v35  ;;  %vm528_vm13 = vweird.f32 %v1148_v10  ;;  %v1150_v4 = vpop.eup %1149 }
 0x25e   :  { %v600_v36 = vmul.f32 %v592_v59, %v1538_v8  ;;  %v570_v15 = vmul.f32 1.0614054, %v1598_v3  ;;  %v1652_v59 = vand.u32 2147483647, %v1615_v16  ;;  %v534_v48 = vor.u32 1.1754944e-38, %v533_v5  ;;  %vm529_vm0 = vmor %vm527_vm14, %vm528_vm13 }
 0x25f   :  { %v524_v43 = vsub.f32 1.0, %v523_v40  ;;  %v510_v7 = vmul.f32 %v1588_v47, %v509_v44  ;;  %v1670_v13 = vsel %vm1606_vm9, %v1490_v29, %v455_v49  ;;  %vm1721_vm9 = vmor %vm512_vm1, %vm513_vm6  ;;  %vm407_vm11 = vcmp.ge.f32.partialorder %v1422_v42, 0.0 }
 0x260   :  { %v608_v25 = vadd.f32 -0.28449672, %v600_v36  ;;  %v578_v30 = vadd.f32 -1.4531521, %v570_v15  ;;  %v438_v35 = vmul.f32 0.3275911, %v1652_v59  ;;  %v481_v36 = vadd.f32 %v1528_v0, %v480_v27  ;;  %v1660_v15 = vpop.eup %1151 }
 0x261   :  { %v525_v58 = vmul.f32 %v1148_v10, %v524_v43  ;;  %v538_v27 = vmul.f32 %v1660_v15, %v1612_v63  ;;  %v1697_v43 = vadd.f32 %v1588_v47, %v510_v7  ;;  %vm543_vm10 = vweird.f32 %v1660_v15 }
 0x262   :  { %v616_v55 = vmul.f32 %v608_v25, %v1538_v8  ;;  %v586_v56 = vmul.f32 %v578_v30, %v1598_v3  ;;  %v1665_v5 = vadd.f32 1.0, %v438_v35  ;;  %v486_v30 = vand.u32 2147483647, %v1463_v11  ;;  %vm1758_vm14 = vmor %vm542_vm5, %vm543_vm10 }
 0x263   :  { %v526_v9 = vadd.f32 %v1148_v10, %v525_v58  ;;  %vm412_vm1 = vcmp.ge.f32.partialorder %v1499_v37, 0.0 }
 0x264   :  { %v624_v2 = vadd.f32 0.2548296, %v616_v55  ;;  %v594_v33 = vadd.f32 1.4214138, %v586_v56  ;;  %1153 = vrcp.f32 %v1665_v5  ;;  %v539_v56 = vsub.f32 1.0, %v538_v27 }
 0x265   :  { %v530_v25 = vsel %vm529_vm0, %v1148_v10, %v526_v9  ;;  %v567_v10 = vmul.f32 1.0614054, %v1670_v13  ;;  %v561_v58 = vand.u32 2147483647, %v1665_v5  ;;  %vm557_vm3 = vweird.f32 %v1665_v5 }
 0x266   :  { %v632_v52 = vmul.f32 %v624_v2, %v1538_v8  ;;  %v602_v40 = vmul.f32 %v594_v33, %v1598_v3  ;;  %v488_v8 = vand.u32 2147483648, %v1463_v11  ;;  %v1680_v44 = vsel %vm1647_vm12, %v534_v48, %v530_v25 }
 0x267   :  { %v572_v60 = vmul.f32 1.0614054, %v1680_v44  ;;  %v563_v11 = vand.u32 2147483648, %v1665_v5  ;;  %v646_v48 = vsub.f32 0.0, %v1652_v59  ;;  %vm487_vm4 = vcmp.eq.f32.partialorder %v486_v30, 8.507059e+37 }
 0x268   :  { %v672_v34 = vmul.f32 %v1567_v31, %v632_v52  ;;  %v610_v32 = vadd.f32 -0.28449672, %v602_v40  ;;  %v485_v31 = vsel %vm1687_vm2, %v1528_v0, %v481_v36  ;;  %v489_v2 = vor.u32 1.1754944e-38, %v488_v8 }
 0x269   :  { %v580_v54 = vadd.f32 -1.4531521, %v572_v60  ;;  %v575_v9 = vadd.f32 -1.4531521, %v567_v10  ;;  %v540_v40 = vmul.f32 %v1660_v15, %v539_v56  ;;  %v564_v25 = vor.u32 1.1754944e-38, %v563_v11 }
 0x26a   :  { %v680_v49 = vsub.f32 1.0, %v672_v34  ;;  %v618_v55 = vmul.f32 %v610_v32, %v1598_v3  ;;  %v1707_v7 = vsel %vm487_vm4, %v489_v2, %v485_v31  ;;  %v1154_v36 = vpop.eup %1153  ;;  %vm1714_vm7 = vcmp.eq.f32.partialorder %v561_v58, 8.507059e+37 }
 0x26b   :  { %v588_v35 = vmul.f32 %v580_v54, %v1680_v44  ;;  %v553_v30 = vmul.f32 %v1154_v36, %v1665_v5  ;;  %v583_v32 = vmul.f32 %v575_v9, %v1670_v13  ;;  %vm558_vm8 = vweird.f32 %v1154_v36 }
 0x26c   :  { %v688_v33 = vmul.f32 %v680_v49, %v1480_v23  ;;  %v626_v0 = vadd.f32 0.2548296, %v618_v55  ;;  %v569_v23 = vmul.f32 1.0614054, %v1707_v7  ;;  %v516_v31 = vand.u32 2147483647, %v1516_v57  ;;  %vm1745_vm12 = vmor %vm557_vm3, %vm558_vm8 }
 0x26d   :  { %v596_v8 = vadd.f32 1.4214138, %v588_v35  ;;  %v554_v49 = vsub.f32 1.0, %v553_v30  ;;  %v591_v55 = vadd.f32 1.4214138, %v583_v32  ;;  %v515_v56 = vsel %vm1721_vm9, %v1588_v47, %v1697_v43  ;;  %v1099_v35 = vld [vmem:[%s1854_s8 + $0x40] sm:$0xff] }
 0x26e   :  { %v634_v52 = vmul.f32 %v626_v0, %v1598_v3  ;;  %v696_v27 = vadd.f32 1.0, %v688_v33  ;;  %v577_v60 = vadd.f32 -1.4531521, %v569_v23  ;;  %v518_v54 = vand.u32 2147483648, %v1516_v57  ;;  %873 = vmatpush.bf16.msrb.mxu0 %v1099_v35  ;;  %1114 = vmatpush.bf16.msrb.mxu1 %v1099_v35 }
 0x26f   :  { %v604_v10 = vmul.f32 %v596_v8, %v1680_v44  ;;  %v541_v58 = vadd.f32 %v1660_v15, %v540_v40  ;;  %v555_v33 = vmul.f32 %v1154_v36, %v554_v49  ;;  %v599_v0 = vmul.f32 %v591_v55, %v1670_v13 }
 0x270   :  { %v674_v29 = vmul.f32 %v1150_v4, %v634_v52  ;;  %v585_v11 = vmul.f32 %v577_v60, %v1707_v7  ;;  %v704_v9 = vmul.f32 %v696_v27, %v1476_v20  ;;  %v519_v52 = vor.u32 1.1754944e-38, %v518_v54 }
 0x271   :  { %v612_v2 = vadd.f32 -0.28449672, %v604_v10  ;;  %v556_v57 = vadd.f32 %v1154_v36, %v555_v33  ;;  %v607_v23 = vadd.f32 -0.28449672, %v599_v0  ;;  %vm517_vm13 = vcmp.eq.f32.partialorder %v516_v31, 8.507059e+37 }
 0x272   :  { %v682_v4 = vsub.f32 1.0, %v674_v29  ;;  %v593_v43 = vadd.f32 1.4214138, %v585_v11  ;;  %v546_v8 = vand.u32 2147483647, %v1612_v63  ;;  %v1752_v30 = vsel %vm517_vm13, %v519_v52, %v515_v56 }
 0x273   :  { %v560_v32 = vsel %vm1745_vm12, %v1154_v36, %v556_v57  ;;  %v615_v29 = vmul.f32 %v607_v23, %v1670_v13  ;;  %v545_v60 = vsel %vm1758_vm14, %v1660_v15, %v541_v58  ;;  %v548_v3 = vand.u32 2147483648, %v1612_v63 }
 0x274   :  { %v690_v47 = vmul.f32 %v682_v4, %v1543_v39  ;;  %v620_v39 = vmul.f32 %v612_v2, %v1680_v44  ;;  %v601_v27 = vmul.f32 %v593_v43, %v1707_v7  ;;  %v1772_v10 = vsel %vm1714_vm7, %v564_v25, %v560_v32 }
 0x275   :  { %v571_v55 = vmul.f32 1.0614054, %v1752_v30  ;;  %v574_v56 = vmul.f32 1.0614054, %v1772_v10  ;;  %v654_v36 = vmul.f32 %v646_v48, %v1652_v59  ;;  %v623_v4 = vadd.f32 0.2548296, %v615_v29 }
 0x276   :  { %v698_v20 = vadd.f32 1.0, %v690_v47  ;;  %v609_v49 = vadd.f32 -0.28449672, %v601_v27  ;;  %v549_v11 = vor.u32 1.1754944e-38, %v548_v3  ;;  %vm547_vm15 = vcmp.eq.f32.partialorder %v546_v8, 8.507059e+37 }
 0x277   :  { %v628_v54 = vadd.f32 0.2548296, %v620_v39  ;;  %v582_v34 = vadd.f32 -1.4531521, %v574_v56  ;;  %v631_v25 = vmul.f32 %v623_v4, %v1670_v13  ;;  %1155 = vpow2.f32 %v1639_v17 }
 0x278   :  { %v706_v31 = vmul.f32 %v698_v20, %v1509_v50  ;;  %v617_v15 = vmul.f32 %v609_v49, %v1707_v7  ;;  %v579_v50 = vadd.f32 -1.4531521, %v571_v55  ;;  %v1781_v58 = vsel %vm547_vm15, %v549_v11, %v545_v60 }
 0x279   :  { %v573_v33 = vmul.f32 1.0614054, %v1781_v58  ;;  %vm409_vm0 = vcmp.ge.f32.partialorder %v1432_v53, 0.0  ;;  %v663_v48 = vmul.f32 1.442695, %v1622_v28  ;;  %v590_v0 = vmul.f32 %v582_v34, %v1772_v10 }
 0x27a   :  { %v712_v63 = vpack.c.bf16 %v706_v31, %v704_v9  ;;  %v625_v2 = vadd.f32 0.2548296, %v617_v15  ;;  %v587_v59 = vmul.f32 %v579_v50, %v1752_v30  ;;  %v671_v35 = vmul.f32 %v1535_v6, %v631_v25 }
 0x27b   :  { %v653_v13 = vmul.f32 %v645_v61, %v1580_v45  ;;  %v581_v9 = vadd.f32 -1.4531521, %v573_v33  ;;  %v636_v43 = vmul.f32 %v628_v54, %v1680_v44  ;;  %v598_v52 = vadd.f32 1.4214138, %v590_v0 }
 0x27c   :  { %874 = vmatmul.bf16.vlgmr.msrb.gmra.mxu0 %v712_v63  ;;  %v633_v17 = vmul.f32 %v625_v2, %v1707_v7  ;;  %v595_v47 = vadd.f32 1.4214138, %v587_v59  ;;  %v669_v57 = vmul.f32 1.442695, %v654_v36  ;;  %v679_v40 = vsub.f32 1.0, %v671_v35 }
 0x27d   :  { %v415_v28 = vsel %vm407_vm11, 1.0, %v1164_v21  ;;  %v589_v6 = vmul.f32 %v581_v9, %v1781_v58  ;;  %v417_v45 = vsel %vm409_vm0, 1.0, %v1164_v21  ;;  %v606_v61 = vmul.f32 %v598_v52, %v1772_v10  ;;  %v1156_v7 = vpop.eup %1155 }
 0x27e   :  { %v673_v23 = vmul.f32 %v1575_v38, %v633_v17  ;;  %v603_v8 = vmul.f32 %v595_v47, %v1752_v30  ;;  %v687_v44 = vmul.f32 %v679_v40, %v415_v28  ;;  %1157 = vpow2.f32 %v663_v48 }
 0x27f   :  { %v597_v39 = vadd.f32 1.4214138, %v589_v6  ;;  %v676_v42 = vmul.f32 %v1156_v7, %v636_v43  ;;  %v667_v5 = vmul.f32 1.442695, %v653_v13  ;;  %v614_v32 = vadd.f32 -0.28449672, %v606_v61 }
 0x280   :  { %v681_v20 = vsub.f32 1.0, %v673_v23  ;;  %v611_v27 = vadd.f32 -0.28449672, %v603_v8  ;;  %1159 = vpow2.f32 %v669_v57  ;;  %v695_v29 = vadd.f32 1.0, %v687_v44 }
 0x281   :  { %v605_v60 = vmul.f32 %v597_v39, %v1781_v58  ;;  %v391_v53 = vmul.f32 0.5, %v1419_v41  ;;  %v622_v31 = vmul.f32 %v614_v32, %v1772_v10  ;;  %v393_v49 = vmul.f32 0.5, %v1429_v51 }
 0x282   :  { %v689_v38 = vmul.f32 %v681_v20, %v417_v45  ;;  %v619_v3 = vmul.f32 %v611_v27, %v1752_v30  ;;  %v684_v4 = vsub.f32 1.0, %v676_v42  ;;  %1161 = vpow2.f32 %v667_v5 }
 0x283   :  { %v613_v56 = vadd.f32 -0.28449672, %v605_v60  ;;  %v630_v11 = vadd.f32 0.2548296, %v622_v31  ;;  %v703_v63 = vmul.f32 %v695_v29, %v391_v53  ;;  %vm411_vm2 = vcmp.ge.f32.partialorder %v1466_v12, 0.0 }
 0x284   :  { %v697_v55 = vadd.f32 1.0, %v689_v38  ;;  %v627_v36 = vadd.f32 0.2548296, %v619_v3  ;;  %v1158_v15 = vpop.eup %1157  ;;  %v420_v25 = vsel %vm412_vm1, 1.0, %v1164_v21  ;;  %vm414_vm3 = vcmp.ge.f32.partialorder %v1615_v16, 0.0 }
 0x285   :  { %v621_v54 = vmul.f32 %v613_v56, %v1781_v58  ;;  %v638_v51 = vmul.f32 %v630_v11, %v1772_v10  ;;  %v692_v59 = vmul.f32 %v684_v4, %v420_v25  ;;  %vm413_vm4 = vcmp.ge.f32.partialorder %v1559_v24, 0.0 }
 0x286   :  { %v705_v50 = vmul.f32 %v697_v55, %v393_v49  ;;  %v635_v34 = vmul.f32 %v627_v36, %v1752_v30  ;;  %v1160_v41 = vpop.eup %1159  ;;  %v419_v30 = vsel %vm411_vm2, 1.0, %v1164_v21  ;;  %v422_v12 = vsel %vm414_vm3, 1.0, %v1164_v21 }
 0x287   :  { %v629_v33 = vadd.f32 0.2548296, %v621_v54  ;;  %v678_v48 = vmul.f32 %v1160_v41, %v638_v51  ;;  %v700_v47 = vadd.f32 1.0, %v692_v59  ;;  %v396_v16 = vmul.f32 0.5, %v1474_v19  ;;  %v1120_v19 = vld [vmem:[%s1852_s9] ss:$0 sm:$0xff] }
 0x288   :  { %v711_v2 = vpack.c.bf16 %v705_v50, %v703_v63  ;;  %v675_v37 = vmul.f32 %v1158_v15, %v635_v34  ;;  %v1162_v13 = vpop.eup %1161  ;;  %v421_v57 = vsel %vm413_vm4, 1.0, %v1164_v21  ;;  %v395_v24 = vmul.f32 0.5, %v1448_v1 }
 0x289   :  { %v637_v0 = vmul.f32 %v629_v33, %v1781_v58  ;;  %v686_v17 = vsub.f32 1.0, %v678_v48  ;;  %v398_v58 = vmul.f32 0.5, %v1583_v46  ;;  %v708_v6 = vmul.f32 %v700_v47, %v396_v16 }
 0x28a   :  { %855 = vmatmul.bf16.vlgmr.msra.gmra.mxu3 %v711_v2  ;;  %v683_v35 = vsub.f32 1.0, %v675_v37  ;;  %v397_v45 = vmul.f32 0.5, %v1526_v62 }
 0x28b   :  { %v677_v10 = vmul.f32 %v1162_v13, %v637_v0  ;;  %v694_v43 = vmul.f32 %v686_v17, %v422_v12 }
 0x28c   :  { %v691_v9 = vmul.f32 %v683_v35, %v419_v30 }
 0x28d   :  { %v685_v52 = vsub.f32 1.0, %v677_v10  ;;  %v702_v40 = vadd.f32 1.0, %v694_v43 }
 0x28e   :  { %v699_v23 = vadd.f32 1.0, %v691_v9 }
 0x28f   :  { %v693_v28 = vmul.f32 %v685_v52, %v421_v57  ;;  %v710_v8 = vmul.f32 %v702_v40, %v398_v58 }
 0x290   :  { %v707_v7 = vmul.f32 %v699_v23, %v395_v24 }
 0x291   :  { %v701_v61 = vadd.f32 1.0, %v693_v28  ;;  %v714_v44 = vpack.c.bf16 %v710_v8, %v708_v6 }
 0x293   :  { %v709_v20 = vmul.f32 %v701_v61, %v397_v45  ;;  %879 = vmatmul.bf16.vlgmr.msrb.gmra.mxu1 %v714_v44 }
 0x295   :  { %v713_v39 = vpack.c.bf16 %v709_v20, %v707_v7 }
 0x29a   :  { %860 = vmatmul.bf16.gmra.mxu3 %v713_v39 }
 0x2f9   :  { %v875_v46 = vpop.f32.mrf.mxu0 }
 0x301   :  { %v877_v32 = vpop.f32.mrf.mxu0 }
 0x30d   :  { %v856_v21 = vpop.f32.mrf.mxu3 }
 0x30e   :  { %v857_v27 = vadd.f32 %v1120_v19, %v856_v21 }
 0x310   :  { %v876_v42 = vadd.f32 %v875_v46, %v857_v27  ;;  %v880_v3 = vpop.f32.mrf.mxu1 }
 0x312   :  { %v885_v5 = vadd.f32 %v876_v42, %v1256_v14 }
 0x314   :  { %889 = vst [vmem:[%s1855_s10] sm:$0xff] %v885_v5 }
 0x315   :  { %v858_v1 = vpop.f32.mrf.mxu3 }
 0x316   :  { %v859_v62 = vadd.f32 %v1120_v19, %v858_v1 }
 0x318   :  { %v878_v38 = vadd.f32 %v877_v32, %v859_v62  ;;  %v882_v56 = vpop.f32.mrf.mxu1 }
 0x31a   :  { %v886_v29 = vadd.f32 %v878_v38, %v1262_v18 }
 0x31c   :  { %890 = vst [vmem:[%s1855_s10 + $0x8] sm:$0xff] %v886_v29 }
 0x31d   :  { %v861_v60 = vpop.f32.mrf.mxu3 }
 0x31e   :  { %v862_v53 = vadd.f32 %v1120_v19, %v861_v60 }
 0x320   :  { %v881_v31 = vadd.f32 %v880_v3, %v862_v53 }
 0x322   :  { %v887_v14 = vadd.f32 %v881_v31, %v1268_v22 }
 0x324   :  { %891 = vst [vmem:[%s1855_s10 + $0x10] sm:$0xff] %v887_v14 }
 0x325   :  { %v863_v49 = vpop.f32.mrf.mxu3 }
 0x326   :  { %v864_v55 = vadd.f32 %v1120_v19, %v863_v49 }
 0x328   :  { %v883_v36 = vadd.f32 %v882_v56, %v864_v55 }
 0x32a   :  { %v888_v18 = vadd.f32 %v883_v36, %v1274_v26 }
 0x32c   :  { %892 = vst [vmem:[%s1855_s10 + $0x18] sm:$0xff] %v888_v18 }

// kernel: siglip_encoder.11
= control target key start
LH: loop header
LB: loop body
LE: loop exit
PB: predicated region body
PF: predicated region fallthrough
CT: control target
= control target key end

     0   :  { %s1883_s0 = inlined_call_operand.vmem [shape: f32[32,128], index: 0, kind: input, shape index: {}]   ;;  %s1884_s1 = inlined_call_operand.vmem [shape: bf16[32,128], index: 1, kind: input, shape index: {}]   ;;  %s1885_s2 = inlined_call_operand.vmem [shape: bf16[128,128], index: 2, kind: input, shape index: {}]   ;;  %s1886_s3 = inlined_call_operand.vmem [shape: f32[1,128], index: 3, kind: input, shape index: {}]   ;;  %s1887_s4 = inlined_call_operand.vmem [shape: f32[1,128], index: 4, kind: input, shape index: {}]   ;;  %s1888_s5 = inlined_call_operand.vmem [shape: f32[1,128], index: 5, kind: input, shape index: {}]   ;;  %s1889_s6 = inlined_call_operand.vmem [shape: bf16[128,256], index: 6, kind: input, shape index: {}]   ;;  %s1890_s7 = inlined_call_operand.vmem [shape: f32[1,256], index: 7, kind: input, shape index: {}]   ;;  %s1891_s8 = inlined_call_operand.vmem [shape: bf16[256,128], index: 8, kind: input, shape index: {}]   ;;  %s1892_s9 = inlined_call_operand.vmem [shape: f32[1,128], index: 9, kind: input, shape index: {}]   ;;  %s1893_s10 = inlined_call_operand.hbm [shape: f32[32,128], index: 10, kind: output, shape index: {}]  }
   0x1   :  { %v1089_v0 = vld [vmem:[%s1885_s2 + $0x38] sm:$0xff]  ;;  %v1088_v1 = vld [vmem:[%s1885_s2 + $0x30] sm:$0xff] }
   0x2   :  { %120 = vmatpush.bf16.msra.mxu0 %v1089_v0 }
   0x3   :  { %15 = vsyncpa [#allocation3], 0  ;;  %v1087_v2 = vld [vmem:[%s1885_s2 + $0x28] sm:$0xff]  ;;  %v1086_v3 = vld [vmem:[%s1885_s2 + $0x20] sm:$0xff]  ;;  %v1207_v27 = vmov 128.0   ;;  %s900_s21 = sshll.u32 %s1893_s10, 4  ;;  %s901_s21 = int_to_ptr.hbm [resolvable:$true] %s900_s21 }
   0x4   :  { %v1085_v4 = vld [vmem:[%s1885_s2 + $0x18] sm:$0xff]  ;;  %v1084_v5 = vld [vmem:[%s1885_s2 + $0x10] sm:$0xff]  ;;  %v1083_v6 = vld [vmem:[%s1885_s2 + $0x8] sm:$0xff]  ;;  %1139 = vrcp.f32 %v1207_v27  ;;  %s1210_s22 = smov 128   ;;  %s1211_s23 = smov 8  }
   0x5   :  { %v1082_v7 = vld [vmem:[%s1885_s2] sm:$0xff]  ;;  %v1081_v9 = vld [vmem:[%s1884_s1 + $0x8] sm:$0xff]  ;;  %v141_v20 = vld [vmem:[%s1883_s0 + $0x10] sm:$0xff] }
   0x6   :  { %121 = vmatpush.bf16.msra.mxu0 %v1088_v1  ;;  %v1080_v8 = vld [vmem:[%s1884_s1] sm:$0xff]  ;;  %v140_v16 = vld [vmem:[%s1883_s0 + $0x8] sm:$0xff]  ;;  %v142_v24 = vld [vmem:[%s1883_s0 + $0x18] sm:$0xff] }
   0x7   :  { %v1135_v10 = vld [vmem:[%s1886_s3] ss:$0 sm:$0xff]  ;;  %v1010_v50 = vld [vmem:[%s1889_s6 + $0x70] sm:$0xf]  ;;  %v1105_v51 = vld [vmem:[%s1889_s6 + $0x74] sm:$0xf0] }
   0x8   :  { %v139_v12 = vld [vmem:[%s1883_s0] sm:$0xff]  ;;  %v1104_v52 = vld [vmem:[%s1889_s6 + $0x74] sm:$0xf]  ;;  %v1011_v53 = vor.u32 %v1105_v51, %v1010_v50  ;;  %v1012_v54 = vld [vmem:[%s1889_s6 + $0x78] sm:$0xf0] }
   0x9   :  { %v1015_v55 = vor.u32 %v1104_v52, %v1012_v54  ;;  %v1002_v56 = vld [vmem:[%s1889_s6 + $0x60] sm:$0xf]  ;;  %v1103_v57 = vld [vmem:[%s1889_s6 + $0x64] sm:$0xf0]  ;;  %v1102_v58 = vld [vmem:[%s1889_s6 + $0x64] sm:$0xf] }
   0xa   :  { %122 = vmatpush.bf16.msra.mxu0 %v1087_v2  ;;  %v1140_v28 = vpop.eup %1139  ;;  %354 = vmatpush.bf16.msra.mxu1 %v1011_v53  ;;  %v1003_v59 = vor.u32 %v1103_v57, %v1002_v56  ;;  %v1004_v60 = vld [vmem:[%s1889_s6 + $0x68] sm:$0xf0]  ;;  %v994_v62 = vld [vmem:[%s1889_s6 + $0x50] sm:$0xf]  ;;  %v1101_v63 = vld [vmem:[%s1889_s6 + $0x54] sm:$0xf0] }
   0xb   :  { %v158_v29 = vmul.f32 128.0, %v1140_v28  ;;  %vm162_vm0 = vweird.f32 %v1140_v28  ;;  %373 = vmatpush.bf16.msra.mxu2 %v1015_v55  ;;  %v1007_v61 = vor.u32 %v1102_v58, %v1004_v60  ;;  %v1100_v0 = vld [vmem:[%s1889_s6 + $0x54] sm:$0xf]  ;;  %v995_v1 = vor.u32 %v1101_v63, %v994_v62  ;;  %v996_v2 = vld [vmem:[%s1889_s6 + $0x58] sm:$0xf0] }
   0xc   :  { %v1093_v27 = vld [vmem:[%s1889_s6 + $0x14] sm:$0xf0] }
   0xd   :  { %v159_v30 = vsub.f32 1.0, %v158_v29 }
   0xe   :  { %123 = vmatpush.bf16.msra.mxu0 %v1086_v3  ;;  %355 = vmatpush.bf16.msra.mxu1 %v1003_v59  ;;  %v999_v3 = vor.u32 %v1100_v0, %v996_v2 }
   0xf   :  { %v160_v31 = vmul.f32 %v1140_v28, %v159_v30  ;;  %374 = vmatpush.bf16.msra.mxu2 %v1007_v61  ;;  %v964_v30 = vld [vmem:[%s1889_s6 + $0x18] sm:$0xf0] }
  0x11   :  { %v161_v32 = vadd.f32 %v1140_v28, %v160_v31 }
  0x12   :  { %124 = vmatpush.bf16.msra.mxu0 %v1085_v4  ;;  %356 = vmatpush.bf16.msra.mxu1 %v995_v1  ;;  %v986_v4 = vld [vmem:[%s1889_s6 + $0x40] sm:$0xf] }
  0x13   :  { %v1324_v33 = vsel %vm162_vm0, %v1140_v28, %v161_v32  ;;  %375 = vmatpush.bf16.msra.mxu2 %v999_v3  ;;  %v1092_v28 = vld [vmem:[%s1889_s6 + $0x14] sm:$0xf] }
  0x14   :  { %v967_v31 = vor.u32 %v1092_v28, %v964_v30 }
  0x16   :  { %125 = vmatpush.bf16.msra.mxu0 %v1084_v5  ;;  %v1099_v5 = vld [vmem:[%s1889_s6 + $0x44] sm:$0xf0] }
  0x1a   :  { %126 = vmatpush.bf16.msra.mxu0 %v1083_v6  ;;  %v1098_v6 = vld [vmem:[%s1889_s6 + $0x44] sm:$0xf] }
  0x1e   :  { %127 = vmatpush.bf16.msra.mxu0 %v1082_v7  ;;  %v987_v7 = vor.u32 %v1099_v5, %v986_v4  ;;  %v1136_v5 = vld [vmem:[%s1887_s4] ss:$0 sm:$0xff] }
  0x20   :  { %357 = vmatpush.bf16.msra.mxu1 %v987_v7 }
  0x21   :  { %128 = vmatmul.bf16.vlgmr.msra.gmra.mxu0 %v1080_v8  ;;  %v988_v8 = vld [vmem:[%s1889_s6 + $0x48] sm:$0xf0] }
  0x31   :  { %133 = vmatmul.bf16.gmra.mxu0 %v1081_v9  ;;  %v991_v9 = vor.u32 %v1098_v6, %v988_v8 }
  0x33   :  { %376 = vmatpush.bf16.msra.mxu2 %v991_v9 }
  0x9e   :  { %v129_v11 = vpop.f32.mrf.mxu0 }
  0x9f   :  { %v130_v13 = vadd.f32 %v1135_v10, %v129_v11  ;;  %v1097_v11 = vld [vmem:[%s1889_s6 + $0x34] sm:$0xf0] }
  0xa1   :  { %v1303_v14 = vadd.f32 %v139_v12, %v130_v13  ;;  %v1096_v12 = vld [vmem:[%s1889_s6 + $0x34] sm:$0xf] }
  0xa3   :  { %149 = vadd.xlane.f32.xlu0 %v1303_v14 }
  0xa6   :  { %v131_v15 = vpop.f32.mrf.mxu0 }
  0xa7   :  { %v132_v17 = vadd.f32 %v1135_v10, %v131_v15  ;;  %v980_v15 = vld [vmem:[%s1889_s6 + $0x38] sm:$0xf0] }
  0xa9   :  { %v1309_v18 = vadd.f32 %v140_v16, %v132_v17  ;;  %v983_v16 = vor.u32 %v1096_v12, %v980_v15  ;;  %v970_v17 = vld [vmem:[%s1889_s6 + $0x20] sm:$0xf] }
  0xab   :  { %151 = vadd.xlane.f32.xlu0 %v1309_v18  ;;  %377 = vmatpush.bf16.msra.mxu2 %v983_v16 }
  0xae   :  { %v134_v19 = vpop.f32.mrf.mxu0 }
  0xaf   :  { %v135_v21 = vadd.f32 %v1135_v10, %v134_v19  ;;  %v1095_v19 = vld [vmem:[%s1889_s6 + $0x24] sm:$0xf0] }
  0xb1   :  { %v1315_v22 = vadd.f32 %v141_v20, %v135_v21  ;;  %v1094_v20 = vld [vmem:[%s1889_s6 + $0x24] sm:$0xf]  ;;  %v971_v21 = vor.u32 %v1095_v19, %v970_v17 }
  0xb3   :  { %153 = vadd.xlane.f32.xlu1 %v1315_v22 }
  0xb6   :  { %v136_v23 = vpop.f32.mrf.mxu0 }
  0xb7   :  { %v137_v25 = vadd.f32 %v1135_v10, %v136_v23  ;;  %v978_v10 = vld [vmem:[%s1889_s6 + $0x30] sm:$0xf]  ;;  %v972_v23 = vld [vmem:[%s1889_s6 + $0x28] sm:$0xf0] }
  0xb8   :  { %v979_v13 = vor.u32 %v1097_v11, %v978_v10  ;;  %v1137_v11 = vld [vmem:[%s1888_s5] ss:$0 sm:$0xff] }
  0xb9   :  { %v1321_v26 = vadd.f32 %v142_v24, %v137_v25  ;;  %v975_v24 = vor.u32 %v1094_v20, %v972_v23  ;;  %v962_v25 = vld [vmem:[%s1889_s6 + $0x10] sm:$0xf] }
  0xba   :  { %358 = vmatpush.bf16.msra.mxu1 %v979_v13  ;;  %v963_v29 = vor.u32 %v1093_v27, %v962_v25 }
  0xbb   :  { %155 = vadd.xlane.f32.xlu1 %v1321_v26  ;;  %378 = vmatpush.bf16.msra.mxu2 %v975_v24 }
  0xbe   :  { %359 = vmatpush.bf16.msra.mxu1 %v971_v21 }
  0xbf   :  { %379 = vmatpush.bf16.msra.mxu2 %v967_v31 }
  0xc2   :  { %360 = vmatpush.bf16.msra.mxu1 %v963_v29 }
 0x116   :  { %v150_v34 = vpop.xlane.xlu0 %149 }
 0x117   :  { %v164_v35 = vmul.f32 %v1324_v33, %v150_v34 }
 0x119   :  { %v1328_v36 = vsub.f32 %v1303_v14, %v164_v35  ;;  %v954_v35 = vld [vmem:[%s1889_s6] sm:$0xf] }
 0x11b   :  { %v172_v37 = vmul.f32 %v1328_v36, %v1328_v36 }
 0x11d   :  { %176 = vadd.xlane.f32.xlu2 %v172_v37  ;;  %v1091_v37 = vld [vmem:[%s1889_s6 + $0x4] sm:$0xf0] }
 0x11e   :  { %v152_v38 = vpop.xlane.xlu0 %151 }
 0x11f   :  { %v165_v39 = vmul.f32 %v1324_v33, %v152_v38  ;;  %v1090_v38 = vld [vmem:[%s1889_s6 + $0x4] sm:$0xf] }
 0x121   :  { %v1334_v40 = vsub.f32 %v1309_v18, %v165_v39  ;;  %v955_v39 = vor.u32 %v1091_v37, %v954_v35 }
 0x123   :  { %v173_v41 = vmul.f32 %v1334_v40, %v1334_v40  ;;  %361 = vmatpush.bf16.msra.mxu1 %v955_v39 }
 0x125   :  { %178 = vadd.xlane.f32.xlu2 %v173_v41  ;;  %v956_v41 = vld [vmem:[%s1889_s6 + $0x8] sm:$0xf0] }
 0x126   :  { %v154_v42 = vpop.xlane.xlu1 %153 }
 0x127   :  { %v166_v43 = vmul.f32 %v1324_v33, %v154_v42 }
 0x129   :  { %v1340_v44 = vsub.f32 %v1315_v22, %v166_v43  ;;  %v959_v43 = vor.u32 %v1090_v38, %v956_v41  ;;  %v268_v38 = vld [vmem:[%s1890_s7] sm:$0x3] }
 0x12a   :  { %v1463_v39 = vperm.slane %v268_v38, 0 }
 0x12b   :  { %v174_v45 = vmul.f32 %v1340_v44, %v1340_v44  ;;  %380 = vmatpush.bf16.msra.mxu2 %v959_v43 }
 0x12d   :  { %180 = vadd.xlane.f32.xlu0 %v174_v45 }
 0x12e   :  { %v156_v46 = vpop.xlane.xlu1 %155 }
 0x12f   :  { %v167_v47 = vmul.f32 %v1324_v33, %v156_v46 }
 0x131   :  { %v1346_v48 = vsub.f32 %v1321_v26, %v167_v47 }
 0x133   :  { %v175_v49 = vmul.f32 %v1346_v48, %v1346_v48 }
 0x135   :  { %182 = vadd.xlane.f32.xlu1 %v175_v49 }
 0x190   :  { %v177_v32 = vpop.xlane.xlu2 %176 }
 0x191   :  { %v184_v34 = vmul.f32 %v177_v32, %v1324_v33 }
 0x193   :  { %v188_v42 = vadd.f32 1e-06, %v184_v34 }
 0x195   :  { %1141 = vrsqrt.f32 %v188_v42  ;;  %vm198_vm2 = vweird.f32 %v188_v42 }
 0x198   :  { %v179_v45 = vpop.xlane.xlu2 %178 }
 0x199   :  { %v185_v46 = vmul.f32 %v179_v45, %v1324_v33 }
 0x19b   :  { %v1142_v47 = vpop.eup %1141  ;;  %v189_v49 = vadd.f32 1e-06, %v185_v46 }
 0x19c   :  { %v193_v50 = vmul.f32 %v1142_v47, %v188_v42  ;;  %vm199_vm1 = vweird.f32 %v1142_v47 }
 0x19d   :  { %1143 = vrsqrt.f32 %v189_v49  ;;  %vm200_vm3 = vmor %vm198_vm2, %vm199_vm1  ;;  %vm208_vm5 = vweird.f32 %v189_v49 }
 0x19e   :  { %v194_v51 = vmul.f32 %v1142_v47, %v193_v50 }
 0x1a0   :  { %v195_v52 = vmul.f32 0.5, %v194_v51  ;;  %v181_v53 = vpop.xlane.xlu0 %180 }
 0x1a1   :  { %v186_v54 = vmul.f32 %v181_v53, %v1324_v33 }
 0x1a2   :  { %v196_v55 = vsub.f32 1.5, %v195_v52 }
 0x1a3   :  { %v1144_v56 = vpop.eup %1143  ;;  %v190_v57 = vadd.f32 1e-06, %v186_v54 }
 0x1a4   :  { %v197_v58 = vmul.f32 %v1142_v47, %v196_v55  ;;  %v203_v59 = vmul.f32 %v1144_v56, %v189_v49  ;;  %vm209_vm4 = vweird.f32 %v1144_v56 }
 0x1a5   :  { %1145 = vrsqrt.f32 %v190_v57  ;;  %vm210_vm6 = vmor %vm208_vm5, %vm209_vm4  ;;  %vm218_vm8 = vweird.f32 %v190_v57 }
 0x1a6   :  { %v204_v60 = vmul.f32 %v1144_v56, %v203_v59  ;;  %v201_v63 = vsel %vm200_vm3, %v1142_v47, %v197_v58  ;;  %v1113_v59 = vld [vmem:[%s1891_s8 + $0x38] sm:$0xff] }
 0x1a7   :  { %v232_v4 = vmul.f32 %v201_v63, %v1328_v36  ;;  %848 = vmatpush.bf16.msra.mxu3 %v1113_v59  ;;  %v1109_v59 = vld [vmem:[%s1891_s8 + $0x18] sm:$0xff] }
 0x1a8   :  { %v205_v61 = vmul.f32 0.5, %v204_v60  ;;  %v183_v62 = vpop.xlane.xlu1 %182 }
 0x1a9   :  { %v187_v0 = vmul.f32 %v183_v62, %v1324_v33  ;;  %v239_v33 = vmul.f32 %v1136_v5, %v232_v4 }
 0x1aa   :  { %v206_v1 = vsub.f32 1.5, %v205_v61 }
 0x1ab   :  { %v1146_v2 = vpop.eup %1145  ;;  %v191_v3 = vadd.f32 1e-06, %v187_v0  ;;  %v246_v16 = vadd.f32 %v1137_v11, %v239_v33 }
 0x1ac   :  { %v207_v6 = vmul.f32 %v1144_v56, %v206_v1  ;;  %v213_v7 = vmul.f32 %v1146_v2, %v190_v57  ;;  %vm219_vm7 = vweird.f32 %v1146_v2 }
 0x1ad   :  { %1147 = vrsqrt.f32 %v191_v3  ;;  %vm220_vm9 = vmor %vm218_vm8, %vm219_vm7  ;;  %vm228_vm11 = vweird.f32 %v191_v3 }
 0x1ae   :  { %v214_v8 = vmul.f32 %v1146_v2, %v213_v7  ;;  %v211_v9 = vsel %vm210_vm6, %v1144_v56, %v207_v6  ;;  %v1121_v7 = vld [vmem:[%s1891_s8 + $0x78] sm:$0xff] }
 0x1af   :  { %v233_v10 = vmul.f32 %v211_v9, %v1334_v40  ;;  %867 = vmatpush.bf16.msrb.mxu0 %v1121_v7  ;;  %1122 = vmatpush.bf16.msrb.mxu1 %v1121_v7 }
 0x1b0   :  { %v215_v12 = vmul.f32 0.5, %v214_v8 }
 0x1b1   :  { %v240_v36 = vmul.f32 %v1136_v5, %v233_v10 }
 0x1b2   :  { %v216_v13 = vsub.f32 1.5, %v215_v12 }
 0x1b3   :  { %v1148_v15 = vpop.eup %1147  ;;  %v247_v17 = vadd.f32 %v1137_v11, %v240_v36  ;;  %v1111_v36 = vld [vmem:[%s1891_s8 + $0x28] sm:$0xff] }
 0x1b4   :  { %v217_v19 = vmul.f32 %v1146_v2, %v216_v13  ;;  %v223_v20 = vmul.f32 %v1148_v15, %v191_v3  ;;  %vm229_vm10 = vweird.f32 %v1148_v15 }
 0x1b5   :  { %v250_v21 = vpack.c.bf16 %v247_v17, %v246_v16  ;;  %vm230_vm12 = vmor %vm228_vm11, %vm229_vm10 }
 0x1b6   :  { %v224_v23 = vmul.f32 %v1148_v15, %v223_v20  ;;  %v221_v24 = vsel %vm220_vm9, %v1146_v2, %v217_v19  ;;  %v1112_v2 = vld [vmem:[%s1891_s8 + $0x30] sm:$0xff] }
 0x1b7   :  { %362 = vmatmul.bf16.vlgmr.msra.gmra.mxu1 %v250_v21  ;;  %381 = vmatmul.bf16.vlgmr.msra.gmra.mxu2 %v250_v21  ;;  %v234_v27 = vmul.f32 %v221_v24, %v1340_v44  ;;  %v1208_v21 = vmov -1.0  }
 0x1b8   :  { %v225_v40 = vmul.f32 0.5, %v224_v23  ;;  %849 = vmatpush.bf16.msra.mxu3 %v1112_v2 }
 0x1b9   :  { %v241_v31 = vmul.f32 %v1136_v5, %v234_v27 }
 0x1ba   :  { %v226_v25 = vsub.f32 1.5, %v225_v40 }
 0x1bb   :  { %v248_v34 = vadd.f32 %v1137_v11, %v241_v31 }
 0x1bc   :  { %v227_v28 = vmul.f32 %v1148_v15, %v226_v25  ;;  %850 = vmatpush.bf16.msra.mxu3 %v1111_v36  ;;  %v1120_v25 = vld [vmem:[%s1891_s8 + $0x70] sm:$0xff] }
 0x1bd   :  { %868 = vmatpush.bf16.msrb.mxu0 %v1120_v25  ;;  %1123 = vmatpush.bf16.msrb.mxu1 %v1120_v25 }
 0x1be   :  { %v231_v29 = vsel %vm230_vm12, %v1148_v15, %v227_v28 }
 0x1bf   :  { %v235_v30 = vmul.f32 %v231_v29, %v1346_v48  ;;  %v1471_v48 = vperm.slane %v268_v38, 1  ;;  %v1110_v38 = vld [vmem:[%s1891_s8 + $0x20] sm:$0xff] }
 0x1c0   :  { %851 = vmatpush.bf16.msra.mxu3 %v1110_v38 }
 0x1c1   :  { %v242_v32 = vmul.f32 %v1136_v5, %v235_v30 }
 0x1c3   :  { %v249_v35 = vadd.f32 %v1137_v11, %v242_v32 }
 0x1c4   :  { %852 = vmatpush.bf16.msra.mxu3 %v1109_v59 }
 0x1c5   :  { %v251_v37 = vpack.c.bf16 %v249_v35, %v248_v34 }
 0x1c7   :  { %367 = vmatmul.bf16.gmra.mxu1 %v251_v37  ;;  %386 = vmatmul.bf16.gmra.mxu2 %v251_v37 }
 0x234   :  { %v363_v44 = vpop.f32.mrf.mxu1 }
 0x235   :  { %v1466_v41 = vadd.f32 %v363_v44, %v1463_v39 }
 0x237   :  { %v1469_v42 = vmul.f32 0.70710677, %v1466_v41 }
 0x239   :  { %v424_v43 = vand.u32 2147483647, %v1469_v42 }
 0x23a   :  { %v382_v45 = vpop.f32.mrf.mxu2 }
 0x23b   :  { %v383_v46 = vadd.f32 %v382_v45, %v1471_v48  ;;  %v432_v49 = vmul.f32 0.3275911, %v424_v43  ;;  %v640_v60 = vsub.f32 0.0, %v424_v43 }
 0x23c   :  { %v365_v47 = vpop.f32.mrf.mxu1 }
 0x23d   :  { %v401_v50 = vmul.f32 0.70710677, %v383_v46  ;;  %v1476_v51 = vadd.f32 %v365_v47, %v1463_v39  ;;  %v1481_v54 = vadd.f32 1.0, %v432_v49  ;;  %v648_v3 = vmul.f32 %v640_v60, %v424_v43  ;;  %v1119_v47 = vld [vmem:[%s1891_s8 + $0x68] sm:$0xff] }
 0x23e   :  { %v1523_v20 = vmul.f32 0.5, %v383_v46  ;;  %869 = vmatpush.bf16.msrb.mxu0 %v1119_v47  ;;  %1124 = vmatpush.bf16.msrb.mxu1 %v1119_v47 }
 0x23f   :  { %v425_v52 = vand.u32 2147483647, %v401_v50  ;;  %v1479_v53 = vmul.f32 0.70710677, %v1476_v51  ;;  %1149 = vrcp.f32 %v1481_v54  ;;  %vm409_vm13 = vcmp.ge.f32.partialorder %v401_v50, 0.0 }
 0x240   :  { %v459_v10 = vand.u32 2147483648, %v1481_v54  ;;  %v656_v15 = vmul.f32 1.442695, %v648_v3  ;;  %v1527_v23 = vsel %vm409_vm13, 1.0, %v1208_v21  ;;  %v457_v28 = vand.u32 2147483647, %v1481_v54 }
 0x241   :  { %v433_v55 = vmul.f32 0.3275911, %v425_v52  ;;  %v426_v57 = vand.u32 2147483647, %v1479_v53  ;;  %v641_v4 = vsub.f32 0.0, %v425_v52  ;;  %vm453_vm3 = vweird.f32 %v1481_v54 }
 0x242   :  { %v384_v56 = vpop.f32.mrf.mxu2  ;;  %v1537_v29 = vor.u32 1.1754944e-38, %v459_v10  ;;  %vm1653_vm9 = vcmp.eq.f32.partialorder %v457_v28, 8.507059e+37 }
 0x243   :  { %v385_v58 = vadd.f32 %v384_v56, %v1471_v48  ;;  %v1488_v61 = vadd.f32 1.0, %v433_v55  ;;  %v434_v0 = vmul.f32 0.3275911, %v426_v57  ;;  %v642_v6 = vsub.f32 0.0, %v426_v57 }
 0x244   :  { %v368_v62 = vpop.f32.mrf.mxu1  ;;  %v649_v16 = vmul.f32 %v641_v4, %v425_v52  ;;  %v1118_v4 = vld [vmem:[%s1891_s8 + $0x60] sm:$0xff] }
 0x245   :  { %v1491_v63 = vmul.f32 0.70710677, %v385_v58  ;;  %1151 = vrcp.f32 %v1488_v61  ;;  %v1495_v1 = vadd.f32 %v368_v62, %v1463_v39  ;;  %v1508_v33 = vpop.eup %1149  ;;  %v1510_v11 = vadd.f32 1.0, %v434_v0  ;;  %870 = vmatpush.bf16.msrb.mxu0 %v1118_v4  ;;  %1125 = vmatpush.bf16.msrb.mxu1 %v1118_v4 }
 0x246   :  { %v650_v24 = vmul.f32 %v642_v6, %v426_v57  ;;  %v449_v27 = vmul.f32 %v1508_v33, %v1481_v54  ;;  %v472_v31 = vand.u32 2147483647, %v1488_v61  ;;  %v474_v34 = vand.u32 2147483648, %v1488_v61 }
 0x247   :  { %v1501_v5 = vand.u32 2147483647, %v1491_v63  ;;  %v1513_v12 = vmul.f32 0.70710677, %v1495_v1  ;;  %v658_v35 = vmul.f32 1.442695, %v649_v16  ;;  %vm468_vm15 = vweird.f32 %v1488_v61 }
 0x248   :  { %v660_v43 = vmul.f32 1.442695, %v650_v24  ;;  %v450_v49 = vsub.f32 1.0, %v449_v27  ;;  %v1556_v50 = vmul.f32 0.5, %v385_v58  ;;  %vm411_vm0 = vcmp.ge.f32.partialorder %v1491_v63, 0.0 }
 0x249   :  { %v435_v8 = vmul.f32 0.3275911, %v1501_v5  ;;  %v1542_v32 = vand.u32 2147483647, %v1513_v12  ;;  %v643_v56 = vsub.f32 0.0, %v1501_v5  ;;  %v475_v58 = vor.u32 1.1754944e-38, %v474_v34 }
 0x24a   :  { %v387_v9 = vpop.f32.mrf.mxu2  ;;  %vm473_vm2 = vcmp.eq.f32.partialorder %v472_v31, 8.507059e+37  ;;  %v451_v7 = vmul.f32 %v1508_v33, %v450_v49  ;;  %vm454_vm6 = vweird.f32 %v1508_v33  ;;  %vm483_vm10 = vweird.f32 %v1510_v11 }
 0x24b   :  { %v1152_v13 = vpop.eup %1151  ;;  %v1518_v17 = vadd.f32 1.0, %v435_v8  ;;  %v1521_v19 = vadd.f32 %v387_v9, %v1471_v48  ;;  %v436_v45 = vmul.f32 0.3275911, %v1542_v32  ;;  %v651_v36 = vmul.f32 %v643_v56, %v1501_v5  ;;  %vm1682_vm11 = vmor %vm453_vm3, %vm454_vm6 }
 0x24c   :  { %v464_v40 = vmul.f32 %v1152_v13, %v1488_v61  ;;  %vm469_vm14 = vweird.f32 %v1152_v13  ;;  %v370_v46 = vpop.f32.mrf.mxu1  ;;  %v644_v56 = vsub.f32 0.0, %v1542_v32 }
 0x24d   :  { %1153 = vrcp.f32 %v1518_v17  ;;  %v1546_v37 = vmul.f32 0.70710677, %v1521_v19  ;;  %v1563_v57 = vadd.f32 1.0, %v436_v45  ;;  %vm470_vm1 = vmor %vm468_vm15, %vm469_vm14  ;;  %v1573_v62 = vadd.f32 %v370_v46, %v1463_v39 }
 0x24e   :  { %v465_v30 = vsub.f32 1.0, %v464_v40  ;;  %1155 = vrcp.f32 %v1510_v11  ;;  %v1590_v39 = vsel %vm411_vm0, 1.0, %v1208_v21  ;;  %v502_v16 = vand.u32 2147483647, %v1518_v17 }
 0x24f   :  { %1157 = vpow2.f32 %v656_v15  ;;  %v1559_v52 = vand.u32 2147483647, %v1546_v37  ;;  %v1108_v15 = vld [vmem:[%s1891_s8 + $0x10] sm:$0xff]  ;;  %v504_v40 = vand.u32 2147483648, %v1518_v17  ;;  %v1606_v24 = vmul.f32 0.70710677, %v1573_v62 }
 0x250   :  { %v466_v44 = vmul.f32 %v1152_v13, %v465_v30  ;;  %1159 = vpow2.f32 %v658_v35  ;;  %v1117_v30 = vld [vmem:[%s1891_s8 + $0x58] sm:$0xff]  ;;  %vm498_vm5 = vweird.f32 %v1518_v17  ;;  %853 = vmatpush.bf16.msra.mxu3 %v1108_v15  ;;  %v1619_v35 = vadd.f32 %v1508_v33, %v451_v7 }
 0x251   :  { %v437_v61 = vmul.f32 0.3275911, %v1559_v52  ;;  %1161 = vpow2.f32 %v660_v43  ;;  %v645_v34 = vsub.f32 0.0, %v1559_v52  ;;  %v1627_v45 = vand.u32 2147483647, %v1606_v24  ;;  %871 = vmatpush.bf16.msrb.mxu0 %v1117_v30  ;;  %1126 = vmatpush.bf16.msrb.mxu1 %v1117_v30 }
 0x252   :  { %v467_v55 = vadd.f32 %v1152_v13, %v466_v44  ;;  %1163 = vrcp.f32 %v1563_v57  ;;  %v389_v5 = vpop.f32.mrf.mxu2  ;;  %vm503_vm8 = vcmp.eq.f32.partialorder %v502_v16, 8.507059e+37  ;;  %v505_v49 = vor.u32 1.1754944e-38, %v504_v40 }
 0x253   :  { %v1568_v60 = vpop.eup %1153  ;;  %v1630_v46 = vadd.f32 %v389_v5, %v1471_v48  ;;  %v1669_v28 = vmul.f32 %v644_v56, %v1542_v32 }
 0x254   :  { %v1575_v0 = vpop.eup %1155  ;;  %v471_v2 = vsel %vm470_vm1, %v1152_v13, %v467_v55  ;;  %v494_v3 = vmul.f32 %v1568_v60, %v1518_v17  ;;  %v1595_v13 = vadd.f32 1.0, %v437_v61  ;;  %vm499_vm4 = vweird.f32 %v1568_v60  ;;  %v1107_v17 = vld [vmem:[%s1891_s8 + $0x8] sm:$0xff] }
 0x255   :  { %v1582_v6 = vpop.eup %1157  ;;  %v1585_v8 = vsel %vm473_vm2, %v475_v58, %v471_v2  ;;  %v479_v63 = vmul.f32 %v1575_v0, %v1510_v11  ;;  %vm500_vm7 = vmor %vm498_vm5, %vm499_vm4  ;;  %v662_v55 = vmul.f32 1.442695, %v651_v36  ;;  %v438_v61 = vmul.f32 0.3275911, %v1627_v45  ;;  %v1116_v2 = vld [vmem:[%s1891_s8 + $0x50] sm:$0xff]  ;;  %854 = vmatpush.bf16.msra.mxu3 %v1107_v17 }
 0x256   :  { %v569_v9 = vmul.f32 1.0614054, %v1585_v8  ;;  %v495_v10 = vsub.f32 1.0, %v494_v3  ;;  %1165 = vrcp.f32 %v1595_v13  ;;  %v1614_v31 = vpop.eup %1159  ;;  %v532_v7 = vand.u32 2147483647, %v1595_v13  ;;  %872 = vmatpush.bf16.msrb.mxu0 %v1116_v2  ;;  %1127 = vmatpush.bf16.msrb.mxu1 %v1116_v2 }
 0x257   :  { %v1622_v38 = vpop.eup %1161  ;;  %v480_v58 = vsub.f32 1.0, %v479_v63  ;;  %v1659_v63 = vadd.f32 1.0, %v438_v61  ;;  %v1662_v16 = vmul.f32 0.70710677, %v1630_v46  ;;  %1167 = vpow2.f32 %v662_v55 }
 0x258   :  { %v577_v25 = vadd.f32 -1.4531521, %v569_v9  ;;  %v496_v27 = vmul.f32 %v1568_v60, %v495_v10  ;;  %v1635_v47 = vpop.eup %1163  ;;  %v653_v9 = vmul.f32 %v645_v34, %v1559_v52  ;;  %v1106_v52 = vld [vmem:[%s1891_s8] sm:$0xff]  ;;  %v534_v5 = vand.u32 2147483648, %v1595_v13  ;;  %v1115_v34 = vld [vmem:[%s1891_s8 + $0x48] sm:$0xff] }
 0x259   :  { %v509_v4 = vmul.f32 %v1635_v47, %v1563_v57  ;;  %1169 = vrcp.f32 %v1659_v63  ;;  %855 = vmatpush.bf16.msra.mxu3 %v1106_v52  ;;  %vm1694_vm12 = vcmp.eq.f32.partialorder %v532_v7, 8.507059e+37  ;;  %v646_v61 = vsub.f32 0.0, %v1627_v45 }
 0x25a   :  { %v585_v44 = vmul.f32 %v577_v25, %v1585_v8  ;;  %v497_v43 = vadd.f32 %v1568_v60, %v496_v27  ;;  %v481_v27 = vmul.f32 %v1575_v0, %v480_v58  ;;  %v1686_v17 = vmul.f32 1.442695, %v653_v9  ;;  %873 = vmatpush.bf16.msrb.mxu0 %v1115_v34  ;;  %1128 = vmatpush.bf16.msrb.mxu1 %v1115_v34 }
 0x25b   :  { %vm528_vm14 = vweird.f32 %v1595_v13  ;;  %vm484_vm15 = vweird.f32 %v1575_v0  ;;  %vm513_vm1 = vweird.f32 %v1563_v57  ;;  %vm543_vm5 = vweird.f32 %v1659_v63 }
 0x25c   :  { %v593_v59 = vadd.f32 1.4214138, %v585_v44  ;;  %v501_v48 = vsel %vm500_vm7, %v1568_v60, %v497_v43  ;;  %v1166_v10 = vpop.eup %1165  ;;  %v510_v44 = vsub.f32 1.0, %v509_v4  ;;  %vm1734_vm2 = vmor %vm483_vm10, %vm484_vm15  ;;  %vm514_vm6 = vweird.f32 %v1635_v47 }
 0x25d   :  { %v1645_v3 = vsel %vm503_vm8, %v505_v49, %v501_v48  ;;  %v524_v40 = vmul.f32 %v1166_v10, %v1595_v13  ;;  %v456_v49 = vsel %vm1682_vm11, %v1508_v33, %v1619_v35  ;;  %vm529_vm13 = vweird.f32 %v1166_v10  ;;  %v1168_v4 = vpop.eup %1167 }
 0x25e   :  { %v601_v36 = vmul.f32 %v593_v59, %v1585_v8  ;;  %v571_v15 = vmul.f32 1.0614054, %v1645_v3  ;;  %v1699_v59 = vand.u32 2147483647, %v1662_v16  ;;  %v535_v48 = vor.u32 1.1754944e-38, %v534_v5  ;;  %vm530_vm0 = vmor %vm528_vm14, %vm529_vm13 }
 0x25f   :  { %v525_v43 = vsub.f32 1.0, %v524_v40  ;;  %v511_v7 = vmul.f32 %v1635_v47, %v510_v44  ;;  %v1717_v13 = vsel %vm1653_vm9, %v1537_v29, %v456_v49  ;;  %vm1768_vm9 = vmor %vm513_vm1, %vm514_vm6  ;;  %vm408_vm11 = vcmp.ge.f32.partialorder %v1469_v42, 0.0 }
 0x260   :  { %v609_v25 = vadd.f32 -0.28449672, %v601_v36  ;;  %v579_v30 = vadd.f32 -1.4531521, %v571_v15  ;;  %v439_v35 = vmul.f32 0.3275911, %v1699_v59  ;;  %v482_v36 = vadd.f32 %v1575_v0, %v481_v27  ;;  %v1707_v15 = vpop.eup %1169 }
 0x261   :  { %v526_v58 = vmul.f32 %v1166_v10, %v525_v43  ;;  %v539_v27 = vmul.f32 %v1707_v15, %v1659_v63  ;;  %v1744_v43 = vadd.f32 %v1635_v47, %v511_v7  ;;  %vm544_vm10 = vweird.f32 %v1707_v15 }
 0x262   :  { %v617_v55 = vmul.f32 %v609_v25, %v1585_v8  ;;  %v587_v56 = vmul.f32 %v579_v30, %v1645_v3  ;;  %v1712_v5 = vadd.f32 1.0, %v439_v35  ;;  %v487_v30 = vand.u32 2147483647, %v1510_v11  ;;  %vm1805_vm14 = vmor %vm543_vm5, %vm544_vm10 }
 0x263   :  { %v527_v9 = vadd.f32 %v1166_v10, %v526_v58  ;;  %vm413_vm1 = vcmp.ge.f32.partialorder %v1546_v37, 0.0 }
 0x264   :  { %v625_v2 = vadd.f32 0.2548296, %v617_v55  ;;  %v595_v33 = vadd.f32 1.4214138, %v587_v56  ;;  %1171 = vrcp.f32 %v1712_v5  ;;  %v540_v56 = vsub.f32 1.0, %v539_v27 }
 0x265   :  { %v531_v25 = vsel %vm530_vm0, %v1166_v10, %v527_v9  ;;  %v568_v10 = vmul.f32 1.0614054, %v1717_v13  ;;  %v562_v58 = vand.u32 2147483647, %v1712_v5  ;;  %vm558_vm3 = vweird.f32 %v1712_v5 }
 0x266   :  { %v633_v52 = vmul.f32 %v625_v2, %v1585_v8  ;;  %v603_v40 = vmul.f32 %v595_v33, %v1645_v3  ;;  %v489_v8 = vand.u32 2147483648, %v1510_v11  ;;  %v1727_v44 = vsel %vm1694_vm12, %v535_v48, %v531_v25 }
 0x267   :  { %v573_v60 = vmul.f32 1.0614054, %v1727_v44  ;;  %v564_v11 = vand.u32 2147483648, %v1712_v5  ;;  %v647_v48 = vsub.f32 0.0, %v1699_v59  ;;  %vm488_vm4 = vcmp.eq.f32.partialorder %v487_v30, 8.507059e+37 }
 0x268   :  { %v673_v34 = vmul.f32 %v1614_v31, %v633_v52  ;;  %v611_v32 = vadd.f32 -0.28449672, %v603_v40  ;;  %v486_v31 = vsel %vm1734_vm2, %v1575_v0, %v482_v36  ;;  %v490_v2 = vor.u32 1.1754944e-38, %v489_v8 }
 0x269   :  { %v581_v54 = vadd.f32 -1.4531521, %v573_v60  ;;  %v576_v9 = vadd.f32 -1.4531521, %v568_v10  ;;  %v541_v40 = vmul.f32 %v1707_v15, %v540_v56  ;;  %v565_v25 = vor.u32 1.1754944e-38, %v564_v11 }
 0x26a   :  { %v681_v49 = vsub.f32 1.0, %v673_v34  ;;  %v619_v55 = vmul.f32 %v611_v32, %v1645_v3  ;;  %v1754_v7 = vsel %vm488_vm4, %v490_v2, %v486_v31  ;;  %v1172_v36 = vpop.eup %1171  ;;  %vm1761_vm7 = vcmp.eq.f32.partialorder %v562_v58, 8.507059e+37 }
 0x26b   :  { %v589_v35 = vmul.f32 %v581_v54, %v1727_v44  ;;  %v554_v30 = vmul.f32 %v1172_v36, %v1712_v5  ;;  %v584_v32 = vmul.f32 %v576_v9, %v1717_v13  ;;  %vm559_vm8 = vweird.f32 %v1172_v36 }
 0x26c   :  { %v689_v33 = vmul.f32 %v681_v49, %v1527_v23  ;;  %v627_v0 = vadd.f32 0.2548296, %v619_v55  ;;  %v570_v23 = vmul.f32 1.0614054, %v1754_v7  ;;  %v517_v31 = vand.u32 2147483647, %v1563_v57  ;;  %vm1792_vm12 = vmor %vm558_vm3, %vm559_vm8 }
 0x26d   :  { %v597_v8 = vadd.f32 1.4214138, %v589_v35  ;;  %v555_v49 = vsub.f32 1.0, %v554_v30  ;;  %v592_v55 = vadd.f32 1.4214138, %v584_v32  ;;  %v516_v56 = vsel %vm1768_vm9, %v1635_v47, %v1744_v43  ;;  %v1114_v35 = vld [vmem:[%s1891_s8 + $0x40] sm:$0xff] }
 0x26e   :  { %v635_v52 = vmul.f32 %v627_v0, %v1645_v3  ;;  %v697_v27 = vadd.f32 1.0, %v689_v33  ;;  %v578_v60 = vadd.f32 -1.4531521, %v570_v23  ;;  %v519_v54 = vand.u32 2147483648, %v1563_v57  ;;  %874 = vmatpush.bf16.msrb.mxu0 %v1114_v35  ;;  %1129 = vmatpush.bf16.msrb.mxu1 %v1114_v35 }
 0x26f   :  { %v605_v10 = vmul.f32 %v597_v8, %v1727_v44  ;;  %v542_v58 = vadd.f32 %v1707_v15, %v541_v40  ;;  %v556_v33 = vmul.f32 %v1172_v36, %v555_v49  ;;  %v600_v0 = vmul.f32 %v592_v55, %v1717_v13 }
 0x270   :  { %v675_v29 = vmul.f32 %v1168_v4, %v635_v52  ;;  %v586_v11 = vmul.f32 %v578_v60, %v1754_v7  ;;  %v705_v9 = vmul.f32 %v697_v27, %v1523_v20  ;;  %v520_v52 = vor.u32 1.1754944e-38, %v519_v54 }
 0x271   :  { %v613_v2 = vadd.f32 -0.28449672, %v605_v10  ;;  %v557_v57 = vadd.f32 %v1172_v36, %v556_v33  ;;  %v608_v23 = vadd.f32 -0.28449672, %v600_v0  ;;  %vm518_vm13 = vcmp.eq.f32.partialorder %v517_v31, 8.507059e+37 }
 0x272   :  { %v683_v4 = vsub.f32 1.0, %v675_v29  ;;  %v594_v43 = vadd.f32 1.4214138, %v586_v11  ;;  %v547_v8 = vand.u32 2147483647, %v1659_v63  ;;  %v1799_v30 = vsel %vm518_vm13, %v520_v52, %v516_v56 }
 0x273   :  { %v561_v32 = vsel %vm1792_vm12, %v1172_v36, %v557_v57  ;;  %v616_v29 = vmul.f32 %v608_v23, %v1717_v13  ;;  %v546_v60 = vsel %vm1805_vm14, %v1707_v15, %v542_v58  ;;  %v549_v3 = vand.u32 2147483648, %v1659_v63 }
 0x274   :  { %v691_v47 = vmul.f32 %v683_v4, %v1590_v39  ;;  %v621_v39 = vmul.f32 %v613_v2, %v1727_v44  ;;  %v602_v27 = vmul.f32 %v594_v43, %v1754_v7  ;;  %v1819_v10 = vsel %vm1761_vm7, %v565_v25, %v561_v32 }
 0x275   :  { %v572_v55 = vmul.f32 1.0614054, %v1799_v30  ;;  %v575_v56 = vmul.f32 1.0614054, %v1819_v10  ;;  %v655_v36 = vmul.f32 %v647_v48, %v1699_v59  ;;  %v624_v4 = vadd.f32 0.2548296, %v616_v29 }
 0x276   :  { %v699_v20 = vadd.f32 1.0, %v691_v47  ;;  %v610_v49 = vadd.f32 -0.28449672, %v602_v27  ;;  %v550_v11 = vor.u32 1.1754944e-38, %v549_v3  ;;  %vm548_vm15 = vcmp.eq.f32.partialorder %v547_v8, 8.507059e+37 }
 0x277   :  { %v629_v54 = vadd.f32 0.2548296, %v621_v39  ;;  %v583_v34 = vadd.f32 -1.4531521, %v575_v56  ;;  %v632_v25 = vmul.f32 %v624_v4, %v1717_v13  ;;  %1173 = vpow2.f32 %v1686_v17 }
 0x278   :  { %v707_v31 = vmul.f32 %v699_v20, %v1556_v50  ;;  %v618_v15 = vmul.f32 %v610_v49, %v1754_v7  ;;  %v580_v50 = vadd.f32 -1.4531521, %v572_v55  ;;  %v1828_v58 = vsel %vm548_vm15, %v550_v11, %v546_v60 }
 0x279   :  { %v574_v33 = vmul.f32 1.0614054, %v1828_v58  ;;  %vm410_vm0 = vcmp.ge.f32.partialorder %v1479_v53, 0.0  ;;  %v664_v48 = vmul.f32 1.442695, %v1669_v28  ;;  %v591_v0 = vmul.f32 %v583_v34, %v1819_v10 }
 0x27a   :  { %v713_v63 = vpack.c.bf16 %v707_v31, %v705_v9  ;;  %v626_v2 = vadd.f32 0.2548296, %v618_v15  ;;  %v588_v59 = vmul.f32 %v580_v50, %v1799_v30  ;;  %v672_v35 = vmul.f32 %v1582_v6, %v632_v25 }
 0x27b   :  { %v654_v13 = vmul.f32 %v646_v61, %v1627_v45  ;;  %v582_v9 = vadd.f32 -1.4531521, %v574_v33  ;;  %v637_v43 = vmul.f32 %v629_v54, %v1727_v44  ;;  %v599_v52 = vadd.f32 1.4214138, %v591_v0 }
 0x27c   :  { %875 = vmatmul.bf16.vlgmr.msrb.gmra.mxu0 %v713_v63  ;;  %v634_v17 = vmul.f32 %v626_v2, %v1754_v7  ;;  %v596_v47 = vadd.f32 1.4214138, %v588_v59  ;;  %v670_v57 = vmul.f32 1.442695, %v655_v36  ;;  %v680_v40 = vsub.f32 1.0, %v672_v35 }
 0x27d   :  { %v416_v28 = vsel %vm408_vm11, 1.0, %v1208_v21  ;;  %v590_v6 = vmul.f32 %v582_v9, %v1828_v58  ;;  %v418_v45 = vsel %vm410_vm0, 1.0, %v1208_v21  ;;  %v607_v61 = vmul.f32 %v599_v52, %v1819_v10  ;;  %v1174_v7 = vpop.eup %1173 }
 0x27e   :  { %v674_v23 = vmul.f32 %v1622_v38, %v634_v17  ;;  %v604_v8 = vmul.f32 %v596_v47, %v1799_v30  ;;  %v688_v44 = vmul.f32 %v680_v40, %v416_v28  ;;  %1175 = vpow2.f32 %v664_v48 }
 0x27f   :  { %v598_v39 = vadd.f32 1.4214138, %v590_v6  ;;  %v677_v42 = vmul.f32 %v1174_v7, %v637_v43  ;;  %v668_v5 = vmul.f32 1.442695, %v654_v13  ;;  %v615_v32 = vadd.f32 -0.28449672, %v607_v61 }
 0x280   :  { %v682_v20 = vsub.f32 1.0, %v674_v23  ;;  %v612_v27 = vadd.f32 -0.28449672, %v604_v8  ;;  %1177 = vpow2.f32 %v670_v57  ;;  %v696_v29 = vadd.f32 1.0, %v688_v44 }
 0x281   :  { %v606_v60 = vmul.f32 %v598_v39, %v1828_v58  ;;  %v392_v53 = vmul.f32 0.5, %v1466_v41  ;;  %v623_v31 = vmul.f32 %v615_v32, %v1819_v10  ;;  %v394_v49 = vmul.f32 0.5, %v1476_v51 }
 0x282   :  { %v690_v38 = vmul.f32 %v682_v20, %v418_v45  ;;  %v620_v3 = vmul.f32 %v612_v27, %v1799_v30  ;;  %v685_v4 = vsub.f32 1.0, %v677_v42  ;;  %1179 = vpow2.f32 %v668_v5 }
 0x283   :  { %v614_v56 = vadd.f32 -0.28449672, %v606_v60  ;;  %v631_v11 = vadd.f32 0.2548296, %v623_v31  ;;  %v704_v63 = vmul.f32 %v696_v29, %v392_v53  ;;  %vm412_vm2 = vcmp.ge.f32.partialorder %v1513_v12, 0.0 }
 0x284   :  { %v698_v55 = vadd.f32 1.0, %v690_v38  ;;  %v628_v36 = vadd.f32 0.2548296, %v620_v3  ;;  %v1176_v15 = vpop.eup %1175  ;;  %v421_v25 = vsel %vm413_vm1, 1.0, %v1208_v21  ;;  %vm415_vm3 = vcmp.ge.f32.partialorder %v1662_v16, 0.0 }
 0x285   :  { %v622_v54 = vmul.f32 %v614_v56, %v1828_v58  ;;  %v639_v51 = vmul.f32 %v631_v11, %v1819_v10  ;;  %v693_v59 = vmul.f32 %v685_v4, %v421_v25  ;;  %vm414_vm4 = vcmp.ge.f32.partialorder %v1606_v24, 0.0 }
 0x286   :  { %v706_v50 = vmul.f32 %v698_v55, %v394_v49  ;;  %v636_v34 = vmul.f32 %v628_v36, %v1799_v30  ;;  %v1178_v41 = vpop.eup %1177  ;;  %v420_v30 = vsel %vm412_vm2, 1.0, %v1208_v21  ;;  %v423_v12 = vsel %vm415_vm3, 1.0, %v1208_v21 }
 0x287   :  { %v630_v33 = vadd.f32 0.2548296, %v622_v54  ;;  %v679_v48 = vmul.f32 %v1178_v41, %v639_v51  ;;  %v701_v47 = vadd.f32 1.0, %v693_v59  ;;  %v397_v16 = vmul.f32 0.5, %v1521_v19  ;;  %v1138_v19 = vld [vmem:[%s1892_s9] ss:$0 sm:$0xff] }
 0x288   :  { %v712_v2 = vpack.c.bf16 %v706_v50, %v704_v63  ;;  %v676_v37 = vmul.f32 %v1176_v15, %v636_v34  ;;  %v1180_v13 = vpop.eup %1179  ;;  %v422_v57 = vsel %vm414_vm4, 1.0, %v1208_v21  ;;  %v396_v24 = vmul.f32 0.5, %v1495_v1  ;;  %s1209_s9 = smov [#allocation2]  }
 0x289   :  { %v638_v0 = vmul.f32 %v630_v33, %v1828_v58  ;;  %v687_v17 = vsub.f32 1.0, %v679_v48  ;;  %v399_v58 = vmul.f32 0.5, %v1630_v46  ;;  %v709_v6 = vmul.f32 %v701_v47, %v397_v16  ;;  %s898_s19 = sshll.u32 %s1209_s9, 4  ;;  %s899_s19 = int_to_ptr.vmem [resolvable:$true] %s898_s19 }
 0x28a   :  { %856 = vmatmul.bf16.vlgmr.msra.gmra.mxu3 %v712_v2  ;;  %v684_v35 = vsub.f32 1.0, %v676_v37  ;;  %v398_v45 = vmul.f32 0.5, %v1573_v62 }
 0x28b   :  { %v678_v10 = vmul.f32 %v1180_v13, %v638_v0  ;;  %v695_v43 = vmul.f32 %v687_v17, %v423_v12 }
 0x28c   :  { %v692_v9 = vmul.f32 %v684_v35, %v420_v30 }
 0x28d   :  { %v686_v52 = vsub.f32 1.0, %v678_v10  ;;  %v703_v40 = vadd.f32 1.0, %v695_v43 }
 0x28e   :  { %v700_v23 = vadd.f32 1.0, %v692_v9 }
 0x28f   :  { %v694_v28 = vmul.f32 %v686_v52, %v422_v57  ;;  %v711_v8 = vmul.f32 %v703_v40, %v399_v58 }
 0x290   :  { %v708_v7 = vmul.f32 %v700_v23, %v396_v24 }
 0x291   :  { %v702_v61 = vadd.f32 1.0, %v694_v28  ;;  %v715_v44 = vpack.c.bf16 %v711_v8, %v709_v6 }
 0x293   :  { %v710_v20 = vmul.f32 %v702_v61, %v398_v45  ;;  %880 = vmatmul.bf16.vlgmr.msrb.gmra.mxu1 %v715_v44 }
 0x295   :  { %v714_v39 = vpack.c.bf16 %v710_v20, %v708_v7 }
 0x29a   :  { %861 = vmatmul.bf16.gmra.mxu3 %v714_v39 }
 0x2f9   :  { %v876_v46 = vpop.f32.mrf.mxu0 }
 0x301   :  { %v878_v32 = vpop.f32.mrf.mxu0 }
 0x30d   :  { %v857_v21 = vpop.f32.mrf.mxu3 }
 0x30e   :  { %v858_v27 = vadd.f32 %v1138_v19, %v857_v21 }
 0x310   :  { %v877_v42 = vadd.f32 %v876_v46, %v858_v27  ;;  %v881_v3 = vpop.f32.mrf.mxu1 }
 0x312   :  { %v886_v5 = vadd.f32 %v877_v42, %v1303_v14 }
 0x314   :  { %890 = vst [vmem:[#allocation2] sm:$0xff] %v886_v5 }
 0x315   :  { %v859_v1 = vpop.f32.mrf.mxu3 }
 0x316   :  { %v860_v62 = vadd.f32 %v1138_v19, %v859_v1 }
 0x318   :  { %v879_v38 = vadd.f32 %v878_v32, %v860_v62  ;;  %v883_v14 = vpop.f32.mrf.mxu1 }
 0x31a   :  { %v887_v29 = vadd.f32 %v879_v38, %v1309_v18 }
 0x31c   :  { %891 = vst [vmem:[#allocation2 + $0x8] sm:$0xff] %v887_v29 }
 0x31d   :  { %v862_v60 = vpop.f32.mrf.mxu3 }
 0x31e   :  { %v863_v53 = vadd.f32 %v1138_v19, %v862_v60 }
 0x320   :  { %v882_v31 = vadd.f32 %v881_v3, %v863_v53 }
 0x322   :  { %v888_v49 = vadd.f32 %v882_v31, %v1315_v22 }
 0x324   :  { %892 = vst [vmem:[#allocation2 + $0x10] sm:$0xff] %v888_v49 }
 0x325   :  { %v864_v55 = vpop.f32.mrf.mxu3 }
 0x326   :  { %v865_v56 = vadd.f32 %v1138_v19, %v864_v55 }
 0x328   :  { %v884_v36 = vadd.f32 %v883_v14, %v865_v56 }
 0x32a   :  { %v889_v18 = vadd.f32 %v884_v36, %v1321_v26 }
 0x32c   :  { %893 = vst [vmem:[#allocation2 + $0x18] sm:$0xff] %v889_v18 }
 0x32d   :  { %906 = dma.vmem_to_hbm [thread:$0]  %s899_s19, 512, %s901_s21, [#allocation3], %s1210_s22, %s1210_s22, %s1211_s23  }
 0x32e   :  { %1205 = dma.done.wait [#allocation3], 512  }
 0x32f   :  { %1206 = vsyncadd [#allocation3], 4294966784 }
 0x330   :  { %911 = vsyncpa [#allocation3], 1 }

// kernel: siglip_encoder.7
= control target key start
LH: loop header
LB: loop body
LE: loop exit
PB: predicated region body
PF: predicated region fallthrough
CT: control target
= control target key end

     0   :  { %s817_s12 = smov 0   ;;  %s890_s0 = inlined_call_operand.vmem [shape: bf16[2,4,16,32], index: 0, kind: input, shape index: {}]   ;;  %s891_s1 = inlined_call_operand.vmem [shape: bf16[2,4,16,32], index: 1, kind: input, shape index: {}]   ;;  %s892_s2 = inlined_call_operand.vmem [shape: bf16[2,4,16,32], index: 2, kind: input, shape index: {}]   ;;  %s893_s3 = inlined_call_operand.vmem [shape: bf16[2,4,16,32], index: 3, kind: output, shape index: {}]  }
   0x1 LB: > { %s662_s13 = sadd.s32 4294967295, %s795_s12   ;;  %p666_p0 = scmp.ge.s32.totalorder %s795_s12, 1  ;;  %s795_s12 = sphi %s817_s12, %s13_s12  }
   0x2   : > { %p157_p1 = scmp.lt.s32.totalorder %s795_s12, 3 }
   0x4   : > { %p158_p2 = pnand %p666_p0, %p157_p1 }
   0x5   : > { %p191_p3 = scmp.lt.s32.totalorder (!%p158_p2), %s662_s13, 1 }
   0x6   : > { %161 = sbr.rel (%p158_p2) target bundleno = 570 (0x23a), region = 32 }
   0xb   : > { %s895_s13 = smov (!%p191_p3, %s662_s13), 1  ;;  %vm238_vm0 = vcmask 261120   ;;  %vm349_vm1 = vcmask 130048   ;;  %vm574_vm2 = vcmask 257024  }
   0xc   : > { %s825_s14 = sshll.u32 %s895_s13, 5 }
   0xd   : > { %s200_s17 = scalar_lea.vmem %s891_s1, %s825_s14  ;;  %s195_s20 = scalar_lea.vmem %s890_s0, %s825_s14 }
   0xe   : > { %v741_v0 = vld [vmem:[%s200_s17] sm:$0xff]  ;;  %v743_v1 = vld [vmem:[%s200_s17 + $0x10] sm:$0xff]  ;;  %v744_v2 = vld [vmem:[%s200_s17 + $0x18] sm:$0xff]  ;;  %s205_s23 = scalar_lea.vmem %s892_s2, %s825_s14  ;;  %s210_s26 = scalar_lea.vmem %s893_s3, %s825_s14 }
   0xf   : > { %v742_v3 = vld [vmem:[%s200_s17 + $0x8] sm:$0xff]  ;;  %v243_v4 = vsel %vm238_vm0, %v741_v0, 0  ;;  %v303_v5 = vsel %vm238_vm0, %v743_v1, 0  ;;  %v333_v6 = vsel %vm238_vm0, %v744_v2, 0  ;;  %v737_v8 = vld [vmem:[%s195_s20] sm:$0xff]  ;;  %v739_v9 = vld [vmem:[%s195_s20 + $0x10] sm:$0xff] }
  0x10   : > { %252 = vmatpush.bf16.xpose.msra.mxu0 %v243_v4  ;;  %312 = vmatpush.bf16.xpose.msra.mxu2 %v303_v5  ;;  %v273_v7 = vsel %vm238_vm0, %v742_v3, 0  ;;  %v740_v10 = vld [vmem:[%s195_s20 + $0x18] sm:$0xff]  ;;  %v738_v11 = vld [vmem:[%s195_s20 + $0x8] sm:$0xff]  ;;  %v747_v4 = vld [vmem:[%s205_s23 + $0x10] sm:$0xff] }
  0x11   : > { %342 = vmatpush.bf16.xpose.msra.mxu3 %v333_v6  ;;  %282 = vmatpush.bf16.xpose.msra.mxu1 %v273_v7  ;;  %v748_v5 = vld [vmem:[%s205_s23 + $0x18] sm:$0xff]  ;;  %v745_v6 = vld [vmem:[%s205_s23] sm:$0xff]  ;;  %v746_v7 = vld [vmem:[%s205_s23 + $0x8] sm:$0xff] }
  0x17   : > { %683 = vmatmul.msk.bf16.vlgmr.msra.gmra.mxu0 %vm238_vm0, %v737_v8  ;;  %701 = vmatmul.msk.bf16.vlgmr.msra.gmra.mxu2 %vm238_vm0, %v739_v9 }
  0x18   : > { %710 = vmatmul.msk.bf16.vlgmr.msra.gmra.mxu3 %vm238_vm0, %v740_v10  ;;  %692 = vmatmul.msk.bf16.vlgmr.msra.gmra.mxu1 %vm238_vm0, %v738_v11 }
  0x19   : > { %531 = vmatpush.bf16.msrb.mxu2 %v747_v4  ;;  %559 = vmatpush.bf16.msrb.mxu3 %v748_v5 }
  0x1a   : > { %475 = vmatpush.bf16.msrb.mxu0 %v745_v6  ;;  %503 = vmatpush.bf16.msrb.mxu1 %v746_v7 }
  0x94   : > { %v254_v12 = vpop.f32.mrf.mxu0 }
  0x95   : > { %v350_v13 = vsel %vm349_vm1, %v254_v12, -inf  ;;  %v284_v20 = vpop.f32.mrf.mxu1 }
  0x96   : > { %351 = vmax.xlane.f32.xlu2 %v350_v13  ;;  %v356_v26 = vsel %vm349_vm1, %v284_v20, -inf }
  0x9a   : > { %v314_v14 = vpop.f32.mrf.mxu2 }
  0x9b   : > { %v344_v15 = vpop.f32.mrf.mxu3  ;;  %v362_v16 = vsel %vm349_vm1, %v314_v14, -inf }
  0x9c   : > { %v368_v17 = vsel %vm349_vm1, %v344_v15, -inf  ;;  %363 = vmax.xlane.f32.xlu0 %v362_v16  ;;  %v256_v18 = vpop.f32.mrf.mxu0 }
  0x9d   : > { %369 = vmax.xlane.f32.xlu1 %v368_v17  ;;  %v353_v19 = vsel %vm349_vm1, %v256_v18, -inf  ;;  %v286_v25 = vpop.f32.mrf.mxu1 }
  0x9e   : > { %354 = vmax.xlane.f32.xlu2 %v353_v19  ;;  %v359_v27 = vsel %vm349_vm1, %v286_v25, -inf }
  0xa2   : > { %v316_v21 = vpop.f32.mrf.mxu2 }
  0xa3   : > { %v346_v22 = vpop.f32.mrf.mxu3  ;;  %v365_v23 = vsel %vm349_vm1, %v316_v21, -inf }
  0xa4   : > { %v371_v24 = vsel %vm349_vm1, %v346_v22, -inf  ;;  %366 = vmax.xlane.f32.xlu0 %v365_v23 }
  0xa5   : > { %372 = vmax.xlane.f32.xlu1 %v371_v24 }
  0xac   : > { %357 = vmax.xlane.f32.xlu0 %v356_v26 }
  0xad   : > { %360 = vmax.xlane.f32.xlu1 %v359_v27 }
 0x109   : > { %v352_v28 = vpop.xlane.xlu2 %351 }
 0x10a   : > { %v374_v29 = vsub.f32 %v254_v12, %v352_v28 }
 0x10c   : > { %v382_v30 = vmul.f32 1.442695, %v374_v29 }
 0x10e   : > { %757 = vpow2.f32 %v382_v30 }
 0x10f   : > { %v364_v31 = vpop.xlane.xlu0 %363 }
 0x110   : > { %v370_v32 = vpop.xlane.xlu1 %369  ;;  %v378_v33 = vsub.f32 %v314_v14, %v364_v31 }
 0x111   : > { %v380_v34 = vsub.f32 %v344_v15, %v370_v32  ;;  %v355_v35 = vpop.xlane.xlu2 %354 }
 0x112   : > { %v390_v36 = vmul.f32 1.442695, %v378_v33  ;;  %v375_v38 = vsub.f32 %v256_v18, %v355_v35 }
 0x113   : > { %v394_v37 = vmul.f32 1.442695, %v380_v34 }
 0x114   : > { %v851_v39 = vpop.eup %757  ;;  %759 = vpow2.f32 %v390_v36  ;;  %v384_v41 = vmul.f32 1.442695, %v375_v38 }
 0x115   : > { %761 = vpow2.f32 %v394_v37  ;;  %v398_v40 = vsel %vm349_vm1, %v851_v39, 0.0 }
 0x116   : > { %399 = vadd.xlane.f32.xlu0 %v398_v40  ;;  %763 = vpow2.f32 %v384_v41 }
 0x117   : > { %v367_v42 = vpop.xlane.xlu0 %366 }
 0x118   : > { %v373_v43 = vpop.xlane.xlu1 %372  ;;  %v379_v44 = vsub.f32 %v316_v21, %v367_v42 }
 0x119   : > { %v381_v45 = vsub.f32 %v346_v22, %v373_v43 }
 0x11a   : > { %v760_v46 = vpop.eup %759  ;;  %v392_v47 = vmul.f32 1.442695, %v379_v44 }
 0x11b   : > { %v762_v48 = vpop.eup %761  ;;  %v396_v49 = vmul.f32 1.442695, %v381_v45  ;;  %v410_v50 = vsel %vm349_vm1, %v760_v46, 0.0 }
 0x11c   : > { %765 = vpow2.f32 %v392_v47  ;;  %v416_v51 = vsel %vm349_vm1, %v762_v48, 0.0  ;;  %411 = vadd.xlane.f32.xlu2 %v410_v50  ;;  %v764_v55 = vpop.eup %763 }
 0x11d   : > { %767 = vpow2.f32 %v396_v49  ;;  %417 = vadd.xlane.f32.xlu1 %v416_v51  ;;  %v401_v63 = vsel %vm349_vm1, %v764_v55, 0.0 }
 0x11f   : > { %v358_v52 = vpop.xlane.xlu0 %357 }
 0x120   : > { %v376_v53 = vsub.f32 %v284_v20, %v358_v52  ;;  %v361_v54 = vpop.xlane.xlu1 %360 }
 0x121   : > { %v377_v56 = vsub.f32 %v286_v25, %v361_v54 }
 0x122   : > { %v766_v57 = vpop.eup %765  ;;  %v386_v58 = vmul.f32 1.442695, %v376_v53 }
 0x123   : > { %v768_v59 = vpop.eup %767  ;;  %v388_v60 = vmul.f32 1.442695, %v377_v56  ;;  %v413_v61 = vsel %vm349_vm1, %v766_v57, 0.0 }
 0x124   : > { %769 = vpow2.f32 %v386_v58  ;;  %414 = vadd.xlane.f32.xlu0 %v413_v61  ;;  %v419_v62 = vsel %vm349_vm1, %v768_v59, 0.0 }
 0x125   : > { %771 = vpow2.f32 %v388_v60  ;;  %420 = vadd.xlane.f32.xlu2 %v419_v62  ;;  %402 = vadd.xlane.f32.xlu1 %v401_v63 }
 0x12a   : > { %v860_v0 = vpop.eup %769 }
 0x12b   : > { %v772_v1 = vpop.eup %771  ;;  %v404_v2 = vsel %vm349_vm1, %v860_v0, 0.0 }
 0x12c   : > { %v407_v3 = vsel %vm349_vm1, %v772_v1, 0.0 }
 0x12d   : > { %408 = vadd.xlane.f32.xlu0 %v407_v3  ;;  %405 = vadd.xlane.f32.xlu2 %v404_v2 }
 0x189   : > { %v400_v8 = vpop.xlane.xlu0 %399 }
 0x18f   : > { %v412_v9 = vpop.xlane.xlu2 %411 }
 0x190   : > { %v418_v10 = vpop.xlane.xlu1 %417  ;;  %773 = vrcp.f32 %v412_v9 }
 0x191   : > { %775 = vrcp.f32 %v400_v8 }
 0x192   : > { %777 = vrcp.f32 %v418_v10 }
 0x196   : > { %v774_v12 = vpop.eup %773 }
 0x197   : > { %v415_v11 = vpop.xlane.xlu0 %414  ;;  %v776_v15 = vpop.eup %775  ;;  %v434_v17 = vmul.f32 %v774_v12, %v760_v46 }
 0x198   : > { %779 = vrcp.f32 %v415_v11  ;;  %v403_v13 = vpop.xlane.xlu1 %402  ;;  %v421_v14 = vpop.xlane.xlu2 %420  ;;  %v430_v18 = vmul.f32 %v776_v15, %v851_v39 }
 0x199   : > { %781 = vrcp.f32 %v403_v13  ;;  %v778_v16 = vpop.eup %777  ;;  %v442_v22 = vpack.c.bf16 %v434_v17, %v434_v17 }
 0x19a   : > { %783 = vrcp.f32 %v421_v14  ;;  %v436_v19 = vmul.f32 %v778_v16, %v762_v48  ;;  %v438_v25 = vpack.c.bf16 %v430_v18, %v430_v18 }
 0x19b   : > { %v512_v33 = vunpack.c.l.b16 %v442_v22 }
 0x19c   : > { %v444_v29 = vpack.c.bf16 %v436_v19, %v436_v19  ;;  %v456_v36 = vunpack.c.l.b16 %v438_v25 }
 0x19e   : > { %v780_v20 = vpop.eup %779  ;;  %v540_v38 = vunpack.c.l.b16 %v444_v29 }
 0x19f   : > { %v782_v21 = vpop.eup %781  ;;  %v435_v23 = vmul.f32 %v780_v20, %v766_v57 }
 0x1a0   : > { %v784_v24 = vpop.eup %783  ;;  %v431_v26 = vmul.f32 %v782_v21, %v764_v55  ;;  %v409_v27 = vpop.xlane.xlu0 %408 }
 0x1a1   : > { %v406_v28 = vpop.xlane.xlu2 %405  ;;  %v443_v30 = vpack.c.bf16 %v435_v23, %v435_v23  ;;  %v437_v31 = vmul.f32 %v784_v24, %v768_v59  ;;  %785 = vrcp.f32 %v409_v27 }
 0x1a2   : > { %v439_v32 = vpack.c.bf16 %v431_v26, %v431_v26  ;;  %787 = vrcp.f32 %v406_v28 }
 0x1a3   : > { %v513_v34 = vunpack.c.l.b16 %v443_v30  ;;  %v445_v35 = vpack.c.bf16 %v437_v31, %v437_v31 }
 0x1a4   : > { %v457_v37 = vunpack.c.l.b16 %v439_v32 }
 0x1a5   : > { %v541_v39 = vunpack.c.l.b16 %v445_v35  ;;  %v514_v40 = vpack.c.b16 %v513_v34, %v512_v33 }
 0x1a6   : > { %v458_v41 = vpack.c.b16 %v457_v37, %v456_v36 }
 0x1a7   : > { %v786_v42 = vpop.eup %785  ;;  %725 = vmatmul.msk.bf16.vlgmr.msrb.gmra.mxu2 %vm349_vm1, %v514_v40  ;;  %v542_v43 = vpack.c.b16 %v541_v39, %v540_v38 }
 0x1a8   : > { %v788_v44 = vpop.eup %787  ;;  %v433_v45 = vmul.f32 %v786_v42, %v772_v1  ;;  %715 = vmatmul.msk.bf16.vlgmr.msrb.gmra.mxu0 %vm349_vm1, %v458_v41 }
 0x1a9   : > { %v432_v46 = vmul.f32 %v788_v44, %v860_v0  ;;  %730 = vmatmul.msk.bf16.vlgmr.msrb.gmra.mxu3 %vm349_vm1, %v542_v43 }
 0x1aa   : > { %v441_v47 = vpack.c.bf16 %v433_v45, %v433_v45 }
 0x1ab   : > { %v440_v48 = vpack.c.bf16 %v432_v46, %v432_v46 }
 0x1ac   : > { %v485_v49 = vunpack.c.l.b16 %v441_v47 }
 0x1ad   : > { %v484_v50 = vunpack.c.l.b16 %v440_v48 }
 0x1af   : > { %v486_v51 = vpack.c.b16 %v485_v49, %v484_v50 }
 0x1b1   : > { %720 = vmatmul.msk.bf16.vlgmr.msrb.gmra.mxu1 %vm349_vm1, %v486_v51 }
 0x225   : > { %v477_v52 = vpop.f32.mrf.mxu0 }
 0x226   : > { %v566_v53 = vpack.c.bf16 %v477_v52, %v477_v52 }
 0x228   : > { %575 = vst.msk [vmem:[%s210_s26] sm:$0xf] %vm574_vm2, %v566_v53 }
 0x22a   : > { %v533_v54 = vpop.f32.mrf.mxu2 }
 0x22b   : > { %v570_v55 = vpack.c.bf16 %v533_v54, %v533_v54 }
 0x22c   : > { %v561_v56 = vpop.f32.mrf.mxu3 }
 0x22d   : > { %579 = vst.msk [vmem:[%s210_s26 + $0x10] sm:$0xf] %vm574_vm2, %v570_v55  ;;  %v572_v57 = vpack.c.bf16 %v561_v56, %v561_v56  ;;  %v479_v58 = vpop.f32.mrf.mxu0 }
 0x22e   : > { %v567_v59 = vpack.c.bf16 %v479_v58, %v479_v58  ;;  %v505_v60 = vpop.f32.mrf.mxu1 }
 0x22f   : > { %581 = vst.msk [vmem:[%s210_s26 + $0x18] sm:$0xf] %vm574_vm2, %v572_v57  ;;  %v568_v61 = vpack.c.bf16 %v505_v60, %v505_v60 }
 0x230   : > { %576 = vst.msk [vmem:[%s210_s26 + $0x4] sm:$0xf] %vm574_vm2, %v567_v59 }
 0x231   : > { %577 = vst.msk [vmem:[%s210_s26 + $0x8] sm:$0xf] %vm574_vm2, %v568_v61 }
 0x232   : > { %v535_v62 = vpop.f32.mrf.mxu2 }
 0x233   : > { %v571_v63 = vpack.c.bf16 %v535_v62, %v535_v62 }
 0x234   : > { %v563_v0 = vpop.f32.mrf.mxu3 }
 0x235   : > { %580 = vst.msk [vmem:[%s210_s26 + $0x14] sm:$0xf] %vm574_vm2, %v571_v63  ;;  %v573_v1 = vpack.c.bf16 %v563_v0, %v563_v0 }
 0x236   : > { %v507_v2 = vpop.f32.mrf.mxu1 }
 0x237   : > { %582 = vst.msk [vmem:[%s210_s26 + $0x1c] sm:$0xf] %vm574_vm2, %v573_v1  ;;  %v569_v3 = vpack.c.bf16 %v507_v2, %v507_v2 }
 0x239   : > { %578 = vst.msk [vmem:[%s210_s26 + $0xc] sm:$0xf] %vm574_vm2, %v569_v3 }
 0x23a PF: > { %s13_s12 = sadd.s32 1, %s795_s12  }
 0x23b   : > { %p10_p4 = scmp.ge.s32.totalorder %s13_s12, 4  }
 0x23d   :  { %12 = sbr.rel (!%p10_p4) target bundleno = 1 (0x1), region = 68 }

// kernel: siglip_encoder.6
= control target key start
LH: loop header
LB: loop body
LE: loop exit
PB: predicated region body
PF: predicated region fallthrough
CT: control target
= control target key end

     0   :  { %17 = vsyncpa [#allocation3], 0  ;;  %s990_s0 = inlined_call_operand.hbm [shape: f32[32,128], index: 0, kind: input, shape index: {}]   ;;  %s991_s1 = inlined_call_operand.vmem [shape: f32[1,128], index: 1, kind: input, shape index: {}]   ;;  %s992_s2 = inlined_call_operand.vmem [shape: f32[1,128], index: 2, kind: input, shape index: {}]   ;;  %s993_s3 = inlined_call_operand.hbm [shape: bf16[128,128], index: 3, kind: input, shape index: {}]   ;;  %s994_s4 = inlined_call_operand.vmem [shape: f32[1,128], index: 4, kind: input, shape index: {}]   ;;  %s995_s5 = inlined_call_operand.hbm [shape: bf16[128,128], index: 5, kind: input, shape index: {}]   ;;  %s996_s6 = inlined_call_operand.hbm [shape: f32[1,128], index: 6, kind: input, shape index: {}]   ;;  %s997_s7 = inlined_call_operand.hbm [shape: bf16[128,128], index: 7, kind: input, shape index: {}]   ;;  %s998_s8 = inlined_call_operand.vmem [shape: f32[1,128], index: 8, kind: input, shape index: {}]   ;;  %s999_s9 = inlined_call_operand.vmem [shape: bf16[32,128], index: 9, kind: output, shape index: {0}]   ;;  %s1000_s10 = inlined_call_operand.vmem [shape: bf16[32,128], index: 10, kind: output, shape index: {1}]   ;;  %s1001_s11 = inlined_call_operand.vmem [shape: bf16[32,128], index: 11, kind: output, shape index: {2}]  }
   0x1   :  { %18 = vsyncpa [#allocation5], 0  ;;  %s41_s19 = sshll.u32 %s993_s3, 4  ;;  %s42_s19 = int_to_ptr.hbm [resolvable:$true] %s41_s19 }
   0x2   :  { %19 = vsyncpa [#allocation8], 0  ;;  %s836_s20 = smov [#allocation4]   ;;  %s70_s24 = sshll.u32 %s996_s6, 4  ;;  %s71_s24 = int_to_ptr.hbm [resolvable:$true] %s70_s24 }
   0x3   :  { %s43_s21 = sshll.u32 %s836_s20, 4  ;;  %s837_s25 = smov 64   ;;  %s44_s21 = int_to_ptr.vmem [resolvable:$true] %s43_s21 }
   0x4   :  { %s838_s26 = smov 4   ;;  %s839_s27 = smov [#allocation7]  }
   0x5   :  { %49 = dma.hbm_to_vmem [thread:$0]  %s42_s19, 1024, %s44_s21, [#allocation5], %s837_s25, %s837_s25, %s838_s26  }
   0x6   :  { %s72_s28 = sshll.u32 %s839_s27, 4  ;;  %s24_s30 = sshll.u32 %s990_s0, 4  ;;  %s73_s28 = int_to_ptr.vmem [resolvable:$true] %s72_s28  ;;  %s25_s30 = int_to_ptr.hbm [resolvable:$true] %s24_s30 }
   0x7   :  { %75 = dma.hbm_to_vmem [thread:$0]  %s71_s24, 16, %s73_s28, [#allocation8]  }
   0x8   :  { %s840_s12 = smov [#allocation2]   ;;  %s56_s15 = sshll.u32 %s995_s5, 4  ;;  %s57_s15 = int_to_ptr.hbm [resolvable:$true] %s56_s15 }
   0x9   :  { %s26_s13 = sshll.u32 %s840_s12, 4  ;;  %s841_s16 = smov 128   ;;  %s27_s13 = int_to_ptr.vmem [resolvable:$true] %s26_s13 }
   0xa   :  { %s842_s17 = smov 8   ;;  %s843_s18 = smov [#allocation6]  }
   0xb   :  { %32 = dma.hbm_to_vmem [thread:$0]  %s25_s30, 512, %s27_s13, [#allocation3], %s841_s16, %s841_s16, %s842_s17  }
   0xc   :  { %s58_s19 = sshll.u32 %s843_s18, 4  ;;  %s80_s0 = sshll.u32 %s997_s7, 4  ;;  %s59_s19 = int_to_ptr.vmem [resolvable:$true] %s58_s19  ;;  %s81_s0 = int_to_ptr.hbm [resolvable:$true] %s80_s0 }
   0xd   :  { %64 = dma.hbm_to_vmem [thread:$0]  %s57_s15, 1024, %s59_s19, [#allocation5], %s837_s25, %s837_s25, %s838_s26  }
   0xe   :  { %s844_s22 = smov [#allocation9]  }
   0xf   :  { %s82_s23 = sshll.u32 %s844_s22, 4  ;;  %s83_s23 = int_to_ptr.vmem [resolvable:$true] %s82_s23 }
  0x10   :  { %88 = dma.hbm_to_vmem [thread:$0]  %s81_s0, 1024, %s83_s23, [#allocation8], %s837_s25, %s837_s25, %s838_s26  }
  0x11   :  { %830 = dma.done.wait [#allocation3], 512  }
  0x12   :  { %831 = vsyncadd [#allocation3], 4294966784 }
  0x13   :  { %832 = dma.done.wait [#allocation5], 2048  }
  0x14   :  { %833 = vsyncadd [#allocation5], 4294965248 }
  0x15   :  { %834 = dma.done.wait [#allocation8], 1040  }
  0x16   :  { %835 = vsyncadd [#allocation8], 4294966256  ;;  %v113_v0 = vld [vmem:[#allocation2 + $0x10] sm:$0xff]  ;;  %v111_v1 = vld [vmem:[#allocation2] sm:$0xff]  ;;  %v845_v4 = vmov 128.0  }
  0x17   :  { %121 = vadd.xlane.f32.xlu1 %v113_v0  ;;  %117 = vadd.xlane.f32.xlu0 %v111_v1  ;;  %v114_v2 = vld [vmem:[#allocation2 + $0x18] sm:$0xff]  ;;  %v112_v3 = vld [vmem:[#allocation2 + $0x8] sm:$0xff]  ;;  %700 = vrcp.f32 %v845_v4  ;;  %v626_v30 = vld [vmem:[#allocation4 + $0x30] sm:$0xff] }
  0x18   :  { %v627_v27 = vld [vmem:[#allocation4 + $0x38] sm:$0xff]  ;;  %v634_v31 = vld [vmem:[#allocation6 + $0x30] sm:$0xff]  ;;  %v625_v33 = vld [vmem:[#allocation4 + $0x28] sm:$0xff] }
  0x19   :  { %v635_v28 = vld [vmem:[#allocation6 + $0x38] sm:$0xff]  ;;  %288 = vmatpush.bf16.msra.mxu0 %v627_v27  ;;  %677 = vmatpush.bf16.msra.mxu3 %v627_v27  ;;  %v633_v34 = vld [vmem:[#allocation6 + $0x28] sm:$0xff]  ;;  %v624_v36 = vld [vmem:[#allocation4 + $0x20] sm:$0xff] }
  0x1a   :  { %v643_v29 = vld [vmem:[#allocation9 + $0x38] sm:$0xff]  ;;  %387 = vmatpush.bf16.msra.mxu1 %v635_v28  ;;  %v642_v32 = vld [vmem:[#allocation9 + $0x30] sm:$0xff]  ;;  %v641_v35 = vld [vmem:[#allocation9 + $0x28] sm:$0xff] }
  0x1b   :  { %482 = vmatpush.bf16.msra.mxu2 %v643_v29  ;;  %v632_v37 = vld [vmem:[#allocation6 + $0x20] sm:$0xff]  ;;  %v623_v39 = vld [vmem:[#allocation4 + $0x18] sm:$0xff]  ;;  %v622_v42 = vld [vmem:[#allocation4 + $0x10] sm:$0xff] }
  0x1c   :  { %v640_v38 = vld [vmem:[#allocation9 + $0x20] sm:$0xff]  ;;  %v631_v40 = vld [vmem:[#allocation6 + $0x18] sm:$0xff]  ;;  %v630_v43 = vld [vmem:[#allocation6 + $0x10] sm:$0xff] }
  0x1d   :  { %v701_v5 = vpop.eup %700  ;;  %289 = vmatpush.bf16.msra.mxu0 %v626_v30  ;;  %678 = vmatpush.bf16.msra.mxu3 %v626_v30  ;;  %v639_v41 = vld [vmem:[#allocation9 + $0x18] sm:$0xff]  ;;  %v638_v44 = vld [vmem:[#allocation9 + $0x10] sm:$0xff]  ;;  %v621_v45 = vld [vmem:[#allocation4 + $0x8] sm:$0xff] }
  0x1e   :  { %v126_v6 = vmul.f32 128.0, %v701_v5  ;;  %vm130_vm0 = vweird.f32 %v701_v5  ;;  %388 = vmatpush.bf16.msra.mxu1 %v634_v31  ;;  %v629_v46 = vld [vmem:[#allocation6 + $0x8] sm:$0xff]  ;;  %v620_v52 = vld [vmem:[#allocation4] sm:$0xff] }
  0x1f   :  { %123 = vadd.xlane.f32.xlu1 %v114_v2  ;;  %119 = vadd.xlane.f32.xlu0 %v112_v3  ;;  %v637_v47 = vld [vmem:[#allocation9 + $0x8] sm:$0xff]  ;;  %v628_v53 = vld [vmem:[#allocation6] sm:$0xff] }
  0x20   :  { %v127_v7 = vsub.f32 1.0, %v126_v6  ;;  %483 = vmatpush.bf16.msra.mxu2 %v642_v32  ;;  %v636_v54 = vld [vmem:[#allocation9] sm:$0xff]  ;;  %v695_v28 = vld [vmem:[%s991_s1] ss:$0 sm:$0xff] }
  0x21   :  { %290 = vmatpush.bf16.msra.mxu0 %v625_v33  ;;  %679 = vmatpush.bf16.msra.mxu3 %v625_v33 }
  0x22   :  { %v128_v8 = vmul.f32 %v701_v5, %v127_v7  ;;  %389 = vmatpush.bf16.msra.mxu1 %v633_v34 }
  0x24   :  { %v129_v9 = vadd.f32 %v701_v5, %v128_v8  ;;  %484 = vmatpush.bf16.msra.mxu2 %v641_v35 }
  0x25   :  { %291 = vmatpush.bf16.msra.mxu0 %v624_v36  ;;  %680 = vmatpush.bf16.msra.mxu3 %v624_v36 }
  0x26   :  { %v930_v10 = vsel %vm130_vm0, %v701_v5, %v129_v9  ;;  %390 = vmatpush.bf16.msra.mxu1 %v632_v37 }
  0x28   :  { %485 = vmatpush.bf16.msra.mxu2 %v640_v38 }
  0x29   :  { %292 = vmatpush.bf16.msra.mxu0 %v623_v39  ;;  %681 = vmatpush.bf16.msra.mxu3 %v623_v39 }
  0x2a   :  { %391 = vmatpush.bf16.msra.mxu1 %v631_v40 }
  0x2c   :  { %486 = vmatpush.bf16.msra.mxu2 %v639_v41 }
  0x2d   :  { %293 = vmatpush.bf16.msra.mxu0 %v622_v42  ;;  %682 = vmatpush.bf16.msra.mxu3 %v622_v42 }
  0x2e   :  { %392 = vmatpush.bf16.msra.mxu1 %v630_v43 }
  0x30   :  { %487 = vmatpush.bf16.msra.mxu2 %v638_v44 }
  0x31   :  { %294 = vmatpush.bf16.msra.mxu0 %v621_v45  ;;  %683 = vmatpush.bf16.msra.mxu3 %v621_v45 }
  0x32   :  { %393 = vmatpush.bf16.msra.mxu1 %v629_v46  ;;  %v698_v46 = vld [vmem:[#allocation7] ss:$0 sm:$0xff] }
  0x34   :  { %488 = vmatpush.bf16.msra.mxu2 %v637_v47 }
  0x35   :  { %295 = vmatpush.bf16.msra.mxu0 %v620_v52  ;;  %684 = vmatpush.bf16.msra.mxu3 %v620_v52 }
  0x36   :  { %394 = vmatpush.bf16.msra.mxu1 %v628_v53 }
  0x38   :  { %489 = vmatpush.bf16.msra.mxu2 %v636_v54 }
  0x8a   :  { %v122_v11 = vpop.xlane.xlu1 %121  ;;  %v118_v12 = vpop.xlane.xlu0 %117 }
  0x8b   :  { %v134_v13 = vmul.f32 %v930_v10, %v122_v11  ;;  %v132_v14 = vmul.f32 %v930_v10, %v118_v12 }
  0x8d   :  { %v934_v15 = vsub.f32 %v113_v0, %v134_v13  ;;  %v936_v16 = vsub.f32 %v111_v1, %v132_v14 }
  0x8f   :  { %v142_v17 = vmul.f32 %v934_v15, %v934_v15  ;;  %v140_v18 = vmul.f32 %v936_v16, %v936_v16 }
  0x91   :  { %148 = vadd.xlane.f32.xlu0 %v142_v17  ;;  %144 = vadd.xlane.f32.xlu2 %v140_v18 }
  0x92   :  { %v124_v19 = vpop.xlane.xlu1 %123  ;;  %v120_v20 = vpop.xlane.xlu0 %119 }
  0x93   :  { %v135_v21 = vmul.f32 %v930_v10, %v124_v19  ;;  %v133_v22 = vmul.f32 %v930_v10, %v120_v20 }
  0x95   :  { %v944_v23 = vsub.f32 %v114_v2, %v135_v21  ;;  %v946_v24 = vsub.f32 %v112_v3, %v133_v22 }
  0x97   :  { %v143_v25 = vmul.f32 %v944_v23, %v944_v23  ;;  %v141_v26 = vmul.f32 %v946_v24, %v946_v24 }
  0x99   :  { %150 = vadd.xlane.f32.xlu1 %v143_v25  ;;  %146 = vadd.xlane.f32.xlu2 %v141_v26 }
 0x104   :  { %v145_v48 = vpop.xlane.xlu2 %144  ;;  %v149_v49 = vpop.xlane.xlu0 %148 }
 0x105   :  { %v152_v50 = vmul.f32 %v145_v48, %v930_v10  ;;  %v154_v51 = vmul.f32 %v149_v49, %v930_v10 }
 0x107   :  { %v156_v55 = vadd.f32 1e-06, %v152_v50  ;;  %v158_v56 = vadd.f32 1e-06, %v154_v51 }
 0x109   :  { %702 = vrsqrt.f32 %v156_v55  ;;  %vm186_vm1 = vweird.f32 %v158_v56  ;;  %vm166_vm5 = vweird.f32 %v156_v55 }
 0x10a   :  { %704 = vrsqrt.f32 %v158_v56 }
 0x10c   :  { %v151_v57 = vpop.xlane.xlu1 %150  ;;  %v147_v58 = vpop.xlane.xlu2 %146 }
 0x10d   :  { %v155_v59 = vmul.f32 %v151_v57, %v930_v10  ;;  %v153_v60 = vmul.f32 %v147_v58, %v930_v10 }
 0x10f   :  { %v703_v61 = vpop.eup %702  ;;  %v159_v62 = vadd.f32 1e-06, %v155_v59  ;;  %v157_v63 = vadd.f32 1e-06, %v153_v60  ;;  %v699_v59 = vld [vmem:[%s998_s8] ss:$0 sm:$0xff] }
 0x110   :  { %v705_v0 = vpop.eup %704  ;;  %v161_v1 = vmul.f32 %v703_v61, %v156_v55  ;;  %vm167_vm3 = vweird.f32 %v703_v61 }
 0x111   :  { %v181_v2 = vmul.f32 %v705_v0, %v158_v56  ;;  %706 = vrsqrt.f32 %v159_v62  ;;  %vm187_vm2 = vweird.f32 %v705_v0  ;;  %vm168_vm6 = vmor %vm166_vm5, %vm167_vm3  ;;  %vm196_vm7 = vweird.f32 %v159_v62 }
 0x112   :  { %v162_v3 = vmul.f32 %v703_v61, %v161_v1  ;;  %708 = vrsqrt.f32 %v157_v63  ;;  %vm188_vm4 = vmor %vm186_vm1, %vm187_vm2  ;;  %vm176_vm11 = vweird.f32 %v157_v63 }
 0x113   :  { %v182_v4 = vmul.f32 %v705_v0, %v181_v2 }
 0x114   :  { %v163_v5 = vmul.f32 0.5, %v162_v3 }
 0x115   :  { %v183_v6 = vmul.f32 0.5, %v182_v4 }
 0x116   :  { %v164_v7 = vsub.f32 1.5, %v163_v5 }
 0x117   :  { %v707_v8 = vpop.eup %706  ;;  %v184_v9 = vsub.f32 1.5, %v183_v6 }
 0x118   :  { %v709_v11 = vpop.eup %708  ;;  %v191_v12 = vmul.f32 %v707_v8, %v159_v62  ;;  %v165_v10 = vmul.f32 %v703_v61, %v164_v7  ;;  %vm197_vm8 = vweird.f32 %v707_v8 }
 0x119   :  { %v185_v13 = vmul.f32 %v705_v0, %v184_v9  ;;  %v171_v14 = vmul.f32 %v709_v11, %v157_v63  ;;  %vm198_vm9 = vmor %vm196_vm7, %vm197_vm8  ;;  %vm177_vm10 = vweird.f32 %v709_v11 }
 0x11a   :  { %v192_v17 = vmul.f32 %v707_v8, %v191_v12  ;;  %v169_v21 = vsel %vm168_vm6, %v703_v61, %v165_v10  ;;  %vm178_vm12 = vmor %vm176_vm11, %vm177_vm10 }
 0x11b   :  { %v172_v18 = vmul.f32 %v709_v11, %v171_v14  ;;  %v189_v19 = vsel %vm188_vm4, %v705_v0, %v185_v13  ;;  %v200_v29 = vmul.f32 %v169_v21, %v936_v16 }
 0x11c   :  { %v193_v20 = vmul.f32 0.5, %v192_v17  ;;  %v202_v26 = vmul.f32 %v189_v19, %v934_v15  ;;  %v696_v15 = vld [vmem:[%s992_s2] ss:$0 sm:$0xff] }
 0x11d   :  { %v173_v22 = vmul.f32 0.5, %v172_v18  ;;  %v207_v37 = vmul.f32 %v695_v28, %v200_v29 }
 0x11e   :  { %v194_v25 = vsub.f32 1.5, %v193_v20  ;;  %v209_v35 = vmul.f32 %v695_v28, %v202_v26 }
 0x11f   :  { %v174_v27 = vsub.f32 1.5, %v173_v22  ;;  %v214_v41 = vadd.f32 %v696_v15, %v207_v37 }
 0x120   :  { %v195_v30 = vmul.f32 %v707_v8, %v194_v25  ;;  %v216_v40 = vadd.f32 %v696_v15, %v209_v35 }
 0x121   :  { %v175_v31 = vmul.f32 %v709_v11, %v174_v27 }
 0x122   :  { %v199_v32 = vsel %vm198_vm9, %v707_v8, %v195_v30 }
 0x123   :  { %v203_v33 = vmul.f32 %v199_v32, %v944_v23  ;;  %v179_v34 = vsel %vm178_vm12, %v709_v11, %v175_v31 }
 0x124   :  { %v201_v36 = vmul.f32 %v179_v34, %v946_v24  ;;  %v697_v24 = vld [vmem:[%s994_s4] ss:$0 sm:$0xff] }
 0x125   :  { %v210_v38 = vmul.f32 %v695_v28, %v203_v33 }
 0x126   :  { %v208_v39 = vmul.f32 %v695_v28, %v201_v36 }
 0x127   :  { %v217_v16 = vadd.f32 %v696_v15, %v210_v38 }
 0x128   :  { %v215_v42 = vadd.f32 %v696_v15, %v208_v39 }
 0x129   :  { %v219_v43 = vpack.c.bf16 %v217_v16, %v216_v40 }
 0x12a   :  { %v218_v44 = vpack.c.bf16 %v215_v42, %v214_v41 }
 0x12b   :  { %301 = vmatmul.bf16.vlgmr.msra.gmra.mxu3 %v219_v43 }
 0x12c   :  { %296 = vmatmul.bf16.vlgmr.msra.gmra.mxu0 %v218_v44  ;;  %395 = vmatmul.bf16.vlgmr.msra.gmra.mxu1 %v218_v44 }
 0x12d   :  { %490 = vmatmul.bf16.vlgmr.msra.gmra.mxu2 %v218_v44 }
 0x13c   :  { %400 = vmatmul.bf16.gmra.mxu1 %v219_v43 }
 0x13d   :  { %495 = vmatmul.bf16.gmra.mxu2 %v219_v43 }
 0x1a9   :  { %v297_v23 = vpop.f32.mrf.mxu0  ;;  %v396_v45 = vpop.f32.mrf.mxu1 }
 0x1aa   :  { %v298_v48 = vadd.f32 %v697_v24, %v297_v23  ;;  %v397_v52 = vadd.f32 %v698_v46, %v396_v45 }
 0x1ac   :  { %v307_v55 = vmul.f32 0.17677669, %v298_v48 }
 0x1ae   :  { %v302_v47 = vpop.f32.mrf.mxu3 }
 0x1af   :  { %v303_v58 = vadd.f32 %v697_v24, %v302_v47 }
 0x1b0   :  { %v491_v49 = vpop.f32.mrf.mxu2 }
 0x1b1   :  { %v299_v50 = vpop.f32.mrf.mxu0  ;;  %v398_v51 = vpop.f32.mrf.mxu1  ;;  %v309_v0 = vmul.f32 0.17677669, %v303_v58  ;;  %v492_v1 = vadd.f32 %v699_v59, %v491_v49 }
 0x1b2   :  { %v300_v53 = vadd.f32 %v697_v24, %v299_v50  ;;  %v399_v54 = vadd.f32 %v698_v46, %v398_v51 }
 0x1b4   :  { %v308_v56 = vmul.f32 0.17677669, %v300_v53  ;;  %v657_v57 = vpack.c.bf16 %v399_v54, %v397_v52 }
 0x1b6   :  { %v647_v60 = vpack.c.bf16 %v308_v56, %v307_v55  ;;  %658 = vst [vmem:[%s1000_s10] sm:$0xff] %v657_v57   ;;  %v304_v61 = vpop.f32.mrf.mxu3 }
 0x1b7   :  { %v305_v62 = vadd.f32 %v697_v24, %v304_v61 }
 0x1b8   :  { %648 = vst [vmem:[%s999_s9] sm:$0xff] %v647_v60   ;;  %v493_v63 = vpop.f32.mrf.mxu2 }
 0x1b9   :  { %v310_v2 = vmul.f32 0.17677669, %v305_v62  ;;  %v494_v3 = vadd.f32 %v699_v59, %v493_v63  ;;  %v401_v4 = vpop.f32.mrf.mxu1 }
 0x1ba   :  { %v402_v9 = vadd.f32 %v698_v46, %v401_v4 }
 0x1bb   :  { %v652_v5 = vpack.c.bf16 %v310_v2, %v309_v0  ;;  %v667_v6 = vpack.c.bf16 %v494_v3, %v492_v1 }
 0x1bd   :  { %674 = vst [vmem:[%s999_s9 + $0x8] sm:$0xff] %v652_v5  }
 0x1be   :  { %668 = vst [vmem:[%s1001_s11] sm:$0xff] %v667_v6  }
 0x1c0   :  { %v496_v7 = vpop.f32.mrf.mxu2 }
 0x1c1   :  { %v403_v8 = vpop.f32.mrf.mxu1  ;;  %v497_v13 = vadd.f32 %v699_v59, %v496_v7 }
 0x1c2   :  { %v404_v11 = vadd.f32 %v698_v46, %v403_v8 }
 0x1c4   :  { %v662_v12 = vpack.c.bf16 %v404_v11, %v402_v9 }
 0x1c6   :  { %675 = vst [vmem:[%s1000_s10 + $0x8] sm:$0xff] %v662_v12  }
 0x1c8   :  { %v498_v10 = vpop.f32.mrf.mxu2 }
 0x1c9   :  { %v499_v14 = vadd.f32 %v699_v59, %v498_v10 }
 0x1cb   :  { %v672_v17 = vpack.c.bf16 %v499_v14, %v497_v13 }
 0x1cd   :  { %676 = vst [vmem:[%s1001_s11 + $0x8] sm:$0xff] %v672_v17  }
 0x1ce   :  { %521 = vsyncpa [#allocation3], 1 }
 0x1cf   :  { %522 = vsyncpa [#allocation5], 1 }
 0x1d0   :  { %523 = vsyncpa [#allocation8], 1 }

// kernel: siglip_encoder.8
= control target key start
LH: loop header
LB: loop body
LE: loop exit
PB: predicated region body
PF: predicated region fallthrough
CT: control target
= control target key end

     0   :  { %v1163_v27 = vmov 128.0   ;;  %s1845_s2 = inlined_call_operand.vmem [shape: bf16[128,128], index: 2, kind: input, shape index: {}]   ;;  %s1846_s3 = inlined_call_operand.vmem [shape: f32[1,128], index: 3, kind: input, shape index: {}]   ;;  %s1847_s1 = inlined_call_operand.vmem [shape: bf16[32,128], index: 1, kind: input, shape index: {}]   ;;  %s1848_s0 = inlined_call_operand.vmem [shape: f32[32,128], index: 0, kind: input, shape index: {}]   ;;  %s1849_s4 = inlined_call_operand.vmem [shape: f32[1,128], index: 4, kind: input, shape index: {}]   ;;  %s1850_s5 = inlined_call_operand.vmem [shape: f32[1,128], index: 5, kind: input, shape index: {}]   ;;  %s1851_s6 = inlined_call_operand.vmem [shape: bf16[128,256], index: 6, kind: input, shape index: {}]   ;;  %s1852_s9 = inlined_call_operand.vmem [shape: f32[1,128], index: 9, kind: input, shape index: {}]   ;;  %s1853_s7 = inlined_call_operand.vmem [shape: f32[1,256], index: 7, kind: input, shape index: {}]   ;;  %s1854_s8 = inlined_call_operand.vmem [shape: bf16[256,128], index: 8, kind: input, shape index: {}]   ;;  %s1855_s10 = inlined_call_operand.vmem [shape: f32[32,128], index: 10, kind: output, shape index: {}]  }
   0x1   :  { %v1074_v0 = vld [vmem:[%s1845_s2 + $0x38] sm:$0xff]  ;;  %v1073_v1 = vld [vmem:[%s1845_s2 + $0x30] sm:$0xff]  ;;  %v1072_v2 = vld [vmem:[%s1845_s2 + $0x28] sm:$0xff]  ;;  %1121 = vrcp.f32 %v1163_v27 }
   0x2   :  { %119 = vmatpush.bf16.msra.mxu0 %v1074_v0  ;;  %v1071_v3 = vld [vmem:[%s1845_s2 + $0x20] sm:$0xff]  ;;  %v1070_v4 = vld [vmem:[%s1845_s2 + $0x18] sm:$0xff]  ;;  %v1069_v5 = vld [vmem:[%s1845_s2 + $0x10] sm:$0xff] }
   0x3   :  { %v1068_v6 = vld [vmem:[%s1845_s2 + $0x8] sm:$0xff]  ;;  %v1067_v7 = vld [vmem:[%s1845_s2] sm:$0xff]  ;;  %v140_v20 = vld [vmem:[%s1848_s0 + $0x10] sm:$0xff] }
   0x4   :  { %v1065_v8 = vld [vmem:[%s1847_s1] sm:$0xff]  ;;  %v1066_v9 = vld [vmem:[%s1847_s1 + $0x8] sm:$0xff]  ;;  %v141_v24 = vld [vmem:[%s1848_s0 + $0x18] sm:$0xff] }
   0x5   :  { %v1117_v10 = vld [vmem:[%s1846_s3] ss:$0 sm:$0xff]  ;;  %v139_v16 = vld [vmem:[%s1848_s0 + $0x8] sm:$0xff]  ;;  %v995_v50 = vld [vmem:[%s1851_s6 + $0x70] sm:$0xf] }
   0x6   :  { %120 = vmatpush.bf16.msra.mxu0 %v1073_v1  ;;  %v138_v12 = vld [vmem:[%s1848_s0] sm:$0xff]  ;;  %v1090_v51 = vld [vmem:[%s1851_s6 + $0x74] sm:$0xf0]  ;;  %v1089_v52 = vld [vmem:[%s1851_s6 + $0x74] sm:$0xf] }
   0x7   :  { %v1122_v28 = vpop.eup %1121  ;;  %v996_v53 = vor.u32 %v1090_v51, %v995_v50  ;;  %v997_v54 = vld [vmem:[%s1851_s6 + $0x78] sm:$0xf0]  ;;  %v987_v56 = vld [vmem:[%s1851_s6 + $0x60] sm:$0xf]  ;;  %v1088_v57 = vld [vmem:[%s1851_s6 + $0x64] sm:$0xf0] }
   0x8   :  { %v157_v29 = vmul.f32 128.0, %v1122_v28  ;;  %vm161_vm0 = vweird.f32 %v1122_v28  ;;  %v1000_v55 = vor.u32 %v1089_v52, %v997_v54  ;;  %v1087_v58 = vld [vmem:[%s1851_s6 + $0x64] sm:$0xf]  ;;  %v988_v59 = vor.u32 %v1088_v57, %v987_v56  ;;  %v989_v60 = vld [vmem:[%s1851_s6 + $0x68] sm:$0xf0] }
   0x9   :  { %353 = vmatpush.bf16.msra.mxu1 %v996_v53  ;;  %v992_v61 = vor.u32 %v1087_v58, %v989_v60  ;;  %v979_v62 = vld [vmem:[%s1851_s6 + $0x50] sm:$0xf]  ;;  %v1086_v63 = vld [vmem:[%s1851_s6 + $0x54] sm:$0xf0]  ;;  %v1085_v0 = vld [vmem:[%s1851_s6 + $0x54] sm:$0xf] }
   0xa   :  { %121 = vmatpush.bf16.msra.mxu0 %v1072_v2  ;;  %v158_v30 = vsub.f32 1.0, %v157_v29  ;;  %372 = vmatpush.bf16.msra.mxu2 %v1000_v55  ;;  %v980_v1 = vor.u32 %v1086_v63, %v979_v62  ;;  %v981_v2 = vld [vmem:[%s1851_s6 + $0x58] sm:$0xf0]  ;;  %v1078_v27 = vld [vmem:[%s1851_s6 + $0x14] sm:$0xf0] }
   0xc   :  { %v159_v31 = vmul.f32 %v1122_v28, %v158_v30  ;;  %v949_v30 = vld [vmem:[%s1851_s6 + $0x18] sm:$0xf0] }
   0xd   :  { %354 = vmatpush.bf16.msra.mxu1 %v988_v59 }
   0xe   :  { %122 = vmatpush.bf16.msra.mxu0 %v1071_v3  ;;  %v160_v32 = vadd.f32 %v1122_v28, %v159_v31  ;;  %373 = vmatpush.bf16.msra.mxu2 %v992_v61  ;;  %v984_v3 = vor.u32 %v1085_v0, %v981_v2 }
  0x10   :  { %v1277_v33 = vsel %vm161_vm0, %v1122_v28, %v160_v32  ;;  %v1077_v28 = vld [vmem:[%s1851_s6 + $0x14] sm:$0xf] }
  0x11   :  { %355 = vmatpush.bf16.msra.mxu1 %v980_v1  ;;  %v952_v31 = vor.u32 %v1077_v28, %v949_v30 }
  0x12   :  { %123 = vmatpush.bf16.msra.mxu0 %v1070_v4  ;;  %374 = vmatpush.bf16.msra.mxu2 %v984_v3  ;;  %v971_v4 = vld [vmem:[%s1851_s6 + $0x40] sm:$0xf] }
  0x16   :  { %124 = vmatpush.bf16.msra.mxu0 %v1069_v5  ;;  %v1084_v5 = vld [vmem:[%s1851_s6 + $0x44] sm:$0xf0] }
  0x1a   :  { %125 = vmatpush.bf16.msra.mxu0 %v1068_v6  ;;  %v1083_v6 = vld [vmem:[%s1851_s6 + $0x44] sm:$0xf] }
  0x1e   :  { %126 = vmatpush.bf16.msra.mxu0 %v1067_v7  ;;  %v972_v7 = vor.u32 %v1084_v5, %v971_v4  ;;  %v1118_v5 = vld [vmem:[%s1849_s4] ss:$0 sm:$0xff] }
  0x20   :  { %356 = vmatpush.bf16.msra.mxu1 %v972_v7 }
  0x21   :  { %127 = vmatmul.bf16.vlgmr.msra.gmra.mxu0 %v1065_v8  ;;  %v973_v8 = vld [vmem:[%s1851_s6 + $0x48] sm:$0xf0] }
  0x31   :  { %132 = vmatmul.bf16.gmra.mxu0 %v1066_v9  ;;  %v976_v9 = vor.u32 %v1083_v6, %v973_v8 }
  0x33   :  { %375 = vmatpush.bf16.msra.mxu2 %v976_v9 }
  0x9e   :  { %v128_v11 = vpop.f32.mrf.mxu0 }
  0x9f   :  { %v129_v13 = vadd.f32 %v1117_v10, %v128_v11  ;;  %v1082_v11 = vld [vmem:[%s1851_s6 + $0x34] sm:$0xf0] }
  0xa1   :  { %v1256_v14 = vadd.f32 %v138_v12, %v129_v13  ;;  %v1081_v12 = vld [vmem:[%s1851_s6 + $0x34] sm:$0xf] }
  0xa3   :  { %148 = vadd.xlane.f32.xlu0 %v1256_v14 }
  0xa6   :  { %v130_v15 = vpop.f32.mrf.mxu0 }
  0xa7   :  { %v131_v17 = vadd.f32 %v1117_v10, %v130_v15  ;;  %v965_v15 = vld [vmem:[%s1851_s6 + $0x38] sm:$0xf0] }
  0xa9   :  { %v1262_v18 = vadd.f32 %v139_v16, %v131_v17  ;;  %v968_v16 = vor.u32 %v1081_v12, %v965_v15  ;;  %v955_v17 = vld [vmem:[%s1851_s6 + $0x20] sm:$0xf] }
  0xab   :  { %150 = vadd.xlane.f32.xlu0 %v1262_v18  ;;  %376 = vmatpush.bf16.msra.mxu2 %v968_v16 }
  0xae   :  { %v133_v19 = vpop.f32.mrf.mxu0 }
  0xaf   :  { %v134_v21 = vadd.f32 %v1117_v10, %v133_v19  ;;  %v1080_v19 = vld [vmem:[%s1851_s6 + $0x24] sm:$0xf0] }
  0xb1   :  { %v1268_v22 = vadd.f32 %v140_v20, %v134_v21  ;;  %v1079_v20 = vld [vmem:[%s1851_s6 + $0x24] sm:$0xf]  ;;  %v956_v21 = vor.u32 %v1080_v19, %v955_v17 }
  0xb3   :  { %152 = vadd.xlane.f32.xlu1 %v1268_v22 }
  0xb6   :  { %v135_v23 = vpop.f32.mrf.mxu0 }
  0xb7   :  { %v136_v25 = vadd.f32 %v1117_v10, %v135_v23  ;;  %v963_v10 = vld [vmem:[%s1851_s6 + $0x30] sm:$0xf]  ;;  %v957_v23 = vld [vmem:[%s1851_s6 + $0x28] sm:$0xf0] }
  0xb8   :  { %v964_v13 = vor.u32 %v1082_v11, %v963_v10  ;;  %v1119_v11 = vld [vmem:[%s1850_s5] ss:$0 sm:$0xff] }
  0xb9   :  { %v1274_v26 = vadd.f32 %v141_v24, %v136_v25  ;;  %v960_v24 = vor.u32 %v1079_v20, %v957_v23  ;;  %v947_v25 = vld [vmem:[%s1851_s6 + $0x10] sm:$0xf] }
  0xba   :  { %357 = vmatpush.bf16.msra.mxu1 %v964_v13  ;;  %v948_v29 = vor.u32 %v1078_v27, %v947_v25 }
  0xbb   :  { %154 = vadd.xlane.f32.xlu1 %v1274_v26  ;;  %377 = vmatpush.bf16.msra.mxu2 %v960_v24 }
  0xbe   :  { %358 = vmatpush.bf16.msra.mxu1 %v956_v21 }
  0xbf   :  { %378 = vmatpush.bf16.msra.mxu2 %v952_v31 }
  0xc2   :  { %359 = vmatpush.bf16.msra.mxu1 %v948_v29 }
 0x116   :  { %v149_v34 = vpop.xlane.xlu0 %148 }
 0x117   :  { %v163_v35 = vmul.f32 %v1277_v33, %v149_v34 }
 0x119   :  { %v1281_v36 = vsub.f32 %v1256_v14, %v163_v35  ;;  %v939_v35 = vld [vmem:[%s1851_s6] sm:$0xf] }
 0x11b   :  { %v171_v37 = vmul.f32 %v1281_v36, %v1281_v36 }
 0x11d   :  { %175 = vadd.xlane.f32.xlu2 %v171_v37  ;;  %v1076_v37 = vld [vmem:[%s1851_s6 + $0x4] sm:$0xf0] }
 0x11e   :  { %v151_v38 = vpop.xlane.xlu0 %150 }
 0x11f   :  { %v164_v39 = vmul.f32 %v1277_v33, %v151_v38  ;;  %v1075_v38 = vld [vmem:[%s1851_s6 + $0x4] sm:$0xf] }
 0x121   :  { %v1287_v40 = vsub.f32 %v1262_v18, %v164_v39  ;;  %v940_v39 = vor.u32 %v1076_v37, %v939_v35 }
 0x123   :  { %v172_v41 = vmul.f32 %v1287_v40, %v1287_v40  ;;  %360 = vmatpush.bf16.msra.mxu1 %v940_v39 }
 0x125   :  { %177 = vadd.xlane.f32.xlu2 %v172_v41  ;;  %v941_v41 = vld [vmem:[%s1851_s6 + $0x8] sm:$0xf0] }
 0x126   :  { %v153_v42 = vpop.xlane.xlu1 %152 }
 0x127   :  { %v165_v43 = vmul.f32 %v1277_v33, %v153_v42 }
 0x129   :  { %v1293_v44 = vsub.f32 %v1268_v22, %v165_v43  ;;  %v944_v43 = vor.u32 %v1075_v38, %v941_v41  ;;  %v267_v38 = vld [vmem:[%s1853_s7] sm:$0x3] }
 0x12a   :  { %v1416_v39 = vperm.slane %v267_v38, 0 }
 0x12b   :  { %v173_v45 = vmul.f32 %v1293_v44, %v1293_v44  ;;  %379 = vmatpush.bf16.msra.mxu2 %v944_v43 }
 0x12d   :  { %179 = vadd.xlane.f32.xlu0 %v173_v45 }
 0x12e   :  { %v155_v46 = vpop.xlane.xlu1 %154 }
 0x12f   :  { %v166_v47 = vmul.f32 %v1277_v33, %v155_v46 }
 0x131   :  { %v1299_v48 = vsub.f32 %v1274_v26, %v166_v47 }
 0x133   :  { %v174_v49 = vmul.f32 %v1299_v48, %v1299_v48 }
 0x135   :  { %181 = vadd.xlane.f32.xlu1 %v174_v49 }
 0x190   :  { %v176_v32 = vpop.xlane.xlu2 %175 }
 0x191   :  { %v183_v34 = vmul.f32 %v176_v32, %v1277_v33 }
 0x193   :  { %v187_v42 = vadd.f32 1e-06, %v183_v34 }
 0x195   :  { %1123 = vrsqrt.f32 %v187_v42  ;;  %vm197_vm2 = vweird.f32 %v187_v42 }
 0x198   :  { %v178_v45 = vpop.xlane.xlu2 %177 }
 0x199   :  { %v184_v46 = vmul.f32 %v178_v45, %v1277_v33 }
 0x19b   :  { %v1124_v47 = vpop.eup %1123  ;;  %v188_v49 = vadd.f32 1e-06, %v184_v46 }
 0x19c   :  { %v192_v50 = vmul.f32 %v1124_v47, %v187_v42  ;;  %vm198_vm1 = vweird.f32 %v1124_v47 }
 0x19d   :  { %1125 = vrsqrt.f32 %v188_v49  ;;  %vm199_vm3 = vmor %vm197_vm2, %vm198_vm1  ;;  %vm207_vm5 = vweird.f32 %v188_v49 }
 0x19e   :  { %v193_v51 = vmul.f32 %v1124_v47, %v192_v50 }
 0x1a0   :  { %v194_v52 = vmul.f32 0.5, %v193_v51  ;;  %v180_v53 = vpop.xlane.xlu0 %179 }
 0x1a1   :  { %v185_v54 = vmul.f32 %v180_v53, %v1277_v33 }
 0x1a2   :  { %v195_v55 = vsub.f32 1.5, %v194_v52 }
 0x1a3   :  { %v1126_v56 = vpop.eup %1125  ;;  %v189_v57 = vadd.f32 1e-06, %v185_v54 }
 0x1a4   :  { %v196_v58 = vmul.f32 %v1124_v47, %v195_v55  ;;  %v202_v59 = vmul.f32 %v1126_v56, %v188_v49  ;;  %vm208_vm4 = vweird.f32 %v1126_v56 }
 0x1a5   :  { %1127 = vrsqrt.f32 %v189_v57  ;;  %vm209_vm6 = vmor %vm207_vm5, %vm208_vm4  ;;  %vm217_vm8 = vweird.f32 %v189_v57 }
 0x1a6   :  { %v203_v60 = vmul.f32 %v1126_v56, %v202_v59  ;;  %v200_v63 = vsel %vm199_vm3, %v1124_v47, %v196_v58  ;;  %v1098_v59 = vld [vmem:[%s1854_s8 + $0x38] sm:$0xff] }
 0x1a7   :  { %v231_v4 = vmul.f32 %v200_v63, %v1281_v36  ;;  %847 = vmatpush.bf16.msra.mxu3 %v1098_v59  ;;  %v1094_v59 = vld [vmem:[%s1854_s8 + $0x18] sm:$0xff] }
 0x1a8   :  { %v204_v61 = vmul.f32 0.5, %v203_v60  ;;  %v182_v62 = vpop.xlane.xlu1 %181 }
 0x1a9   :  { %v186_v0 = vmul.f32 %v182_v62, %v1277_v33  ;;  %v238_v33 = vmul.f32 %v1118_v5, %v231_v4 }
 0x1aa   :  { %v205_v1 = vsub.f32 1.5, %v204_v61 }
 0x1ab   :  { %v1128_v2 = vpop.eup %1127  ;;  %v190_v3 = vadd.f32 1e-06, %v186_v0  ;;  %v245_v16 = vadd.f32 %v1119_v11, %v238_v33 }
 0x1ac   :  { %v206_v6 = vmul.f32 %v1126_v56, %v205_v1  ;;  %v212_v7 = vmul.f32 %v1128_v2, %v189_v57  ;;  %vm218_vm7 = vweird.f32 %v1128_v2 }
 0x1ad   :  { %1129 = vrsqrt.f32 %v190_v3  ;;  %vm219_vm9 = vmor %vm217_vm8, %vm218_vm7  ;;  %vm227_vm11 = vweird.f32 %v190_v3 }
 0x1ae   :  { %v213_v8 = vmul.f32 %v1128_v2, %v212_v7  ;;  %v210_v9 = vsel %vm209_vm6, %v1126_v56, %v206_v6  ;;  %v1106_v7 = vld [vmem:[%s1854_s8 + $0x78] sm:$0xff] }
 0x1af   :  { %v232_v10 = vmul.f32 %v210_v9, %v1287_v40  ;;  %866 = vmatpush.bf16.msrb.mxu0 %v1106_v7  ;;  %1107 = vmatpush.bf16.msrb.mxu1 %v1106_v7 }
 0x1b0   :  { %v214_v12 = vmul.f32 0.5, %v213_v8 }
 0x1b1   :  { %v239_v36 = vmul.f32 %v1118_v5, %v232_v10 }
 0x1b2   :  { %v215_v13 = vsub.f32 1.5, %v214_v12 }
 0x1b3   :  { %v1130_v15 = vpop.eup %1129  ;;  %v246_v17 = vadd.f32 %v1119_v11, %v239_v36  ;;  %v1096_v36 = vld [vmem:[%s1854_s8 + $0x28] sm:$0xff] }
 0x1b4   :  { %v216_v19 = vmul.f32 %v1128_v2, %v215_v13  ;;  %v222_v20 = vmul.f32 %v1130_v15, %v190_v3  ;;  %vm228_vm10 = vweird.f32 %v1130_v15 }
 0x1b5   :  { %v249_v21 = vpack.c.bf16 %v246_v17, %v245_v16  ;;  %vm229_vm12 = vmor %vm227_vm11, %vm228_vm10 }
 0x1b6   :  { %v223_v23 = vmul.f32 %v1130_v15, %v222_v20  ;;  %v220_v24 = vsel %vm219_vm9, %v1128_v2, %v216_v19  ;;  %v1097_v2 = vld [vmem:[%s1854_s8 + $0x30] sm:$0xff] }
 0x1b7   :  { %361 = vmatmul.bf16.vlgmr.msra.gmra.mxu1 %v249_v21  ;;  %380 = vmatmul.bf16.vlgmr.msra.gmra.mxu2 %v249_v21  ;;  %v233_v27 = vmul.f32 %v220_v24, %v1293_v44  ;;  %v1164_v21 = vmov -1.0  }
 0x1b8   :  { %v224_v40 = vmul.f32 0.5, %v223_v23  ;;  %848 = vmatpush.bf16.msra.mxu3 %v1097_v2 }
 0x1b9   :  { %v240_v31 = vmul.f32 %v1118_v5, %v233_v27 }
 0x1ba   :  { %v225_v25 = vsub.f32 1.5, %v224_v40 }
 0x1bb   :  { %v247_v34 = vadd.f32 %v1119_v11, %v240_v31 }
 0x1bc   :  { %v226_v28 = vmul.f32 %v1130_v15, %v225_v25  ;;  %849 = vmatpush.bf16.msra.mxu3 %v1096_v36  ;;  %v1105_v25 = vld [vmem:[%s1854_s8 + $0x70] sm:$0xff] }
 0x1bd   :  { %867 = vmatpush.bf16.msrb.mxu0 %v1105_v25  ;;  %1108 = vmatpush.bf16.msrb.mxu1 %v1105_v25 }
 0x1be   :  { %v230_v29 = vsel %vm229_vm12, %v1130_v15, %v226_v28 }
 0x1bf   :  { %v234_v30 = vmul.f32 %v230_v29, %v1299_v48  ;;  %v1424_v48 = vperm.slane %v267_v38, 1  ;;  %v1095_v38 = vld [vmem:[%s1854_s8 + $0x20] sm:$0xff] }
 0x1c0   :  { %850 = vmatpush.bf16.msra.mxu3 %v1095_v38 }
 0x1c1   :  { %v241_v32 = vmul.f32 %v1118_v5, %v234_v30 }
 0x1c3   :  { %v248_v35 = vadd.f32 %v1119_v11, %v241_v32 }
 0x1c4   :  { %851 = vmatpush.bf16.msra.mxu3 %v1094_v59 }
 0x1c5   :  { %v250_v37 = vpack.c.bf16 %v248_v35, %v247_v34 }
 0x1c7   :  { %366 = vmatmul.bf16.gmra.mxu1 %v250_v37  ;;  %385 = vmatmul.bf16.gmra.mxu2 %v250_v37 }
 0x234   :  { %v362_v44 = vpop.f32.mrf.mxu1 }
 0x235   :  { %v1419_v41 = vadd.f32 %v362_v44, %v1416_v39 }
 0x237   :  { %v1422_v42 = vmul.f32 0.70710677, %v1419_v41 }
 0x239   :  { %v423_v43 = vand.u32 2147483647, %v1422_v42 }
 0x23a   :  { %v381_v45 = vpop.f32.mrf.mxu2 }
 0x23b   :  { %v382_v46 = vadd.f32 %v381_v45, %v1424_v48  ;;  %v431_v49 = vmul.f32 0.3275911, %v423_v43  ;;  %v639_v60 = vsub.f32 0.0, %v423_v43 }
 0x23c   :  { %v364_v47 = vpop.f32.mrf.mxu1 }
 0x23d   :  { %v400_v50 = vmul.f32 0.70710677, %v382_v46  ;;  %v1429_v51 = vadd.f32 %v364_v47, %v1416_v39  ;;  %v1434_v54 = vadd.f32 1.0, %v431_v49  ;;  %v647_v3 = vmul.f32 %v639_v60, %v423_v43  ;;  %v1104_v47 = vld [vmem:[%s1854_s8 + $0x68] sm:$0xff] }
 0x23e   :  { %v1476_v20 = vmul.f32 0.5, %v382_v46  ;;  %868 = vmatpush.bf16.msrb.mxu0 %v1104_v47  ;;  %1109 = vmatpush.bf16.msrb.mxu1 %v1104_v47 }
 0x23f   :  { %v424_v52 = vand.u32 2147483647, %v400_v50  ;;  %v1432_v53 = vmul.f32 0.70710677, %v1429_v51  ;;  %1131 = vrcp.f32 %v1434_v54  ;;  %vm408_vm13 = vcmp.ge.f32.partialorder %v400_v50, 0.0 }
 0x240   :  { %v458_v10 = vand.u32 2147483648, %v1434_v54  ;;  %v655_v15 = vmul.f32 1.442695, %v647_v3  ;;  %v1480_v23 = vsel %vm408_vm13, 1.0, %v1164_v21  ;;  %v456_v28 = vand.u32 2147483647, %v1434_v54 }
 0x241   :  { %v432_v55 = vmul.f32 0.3275911, %v424_v52  ;;  %v425_v57 = vand.u32 2147483647, %v1432_v53  ;;  %v640_v4 = vsub.f32 0.0, %v424_v52  ;;  %vm452_vm3 = vweird.f32 %v1434_v54 }
 0x242   :  { %v383_v56 = vpop.f32.mrf.mxu2  ;;  %v1490_v29 = vor.u32 1.1754944e-38, %v458_v10  ;;  %vm1606_vm9 = vcmp.eq.f32.partialorder %v456_v28, 8.507059e+37 }
 0x243   :  { %v384_v58 = vadd.f32 %v383_v56, %v1424_v48  ;;  %v1441_v61 = vadd.f32 1.0, %v432_v55  ;;  %v433_v0 = vmul.f32 0.3275911, %v425_v57  ;;  %v641_v6 = vsub.f32 0.0, %v425_v57 }
 0x244   :  { %v367_v62 = vpop.f32.mrf.mxu1  ;;  %v648_v16 = vmul.f32 %v640_v4, %v424_v52  ;;  %v1103_v4 = vld [vmem:[%s1854_s8 + $0x60] sm:$0xff] }
 0x245   :  { %v1444_v63 = vmul.f32 0.70710677, %v384_v58  ;;  %1133 = vrcp.f32 %v1441_v61  ;;  %v1448_v1 = vadd.f32 %v367_v62, %v1416_v39  ;;  %v1461_v33 = vpop.eup %1131  ;;  %v1463_v11 = vadd.f32 1.0, %v433_v0  ;;  %869 = vmatpush.bf16.msrb.mxu0 %v1103_v4  ;;  %1110 = vmatpush.bf16.msrb.mxu1 %v1103_v4 }
 0x246   :  { %v649_v24 = vmul.f32 %v641_v6, %v425_v57  ;;  %v448_v27 = vmul.f32 %v1461_v33, %v1434_v54  ;;  %v471_v31 = vand.u32 2147483647, %v1441_v61  ;;  %v473_v34 = vand.u32 2147483648, %v1441_v61 }
 0x247   :  { %v1454_v5 = vand.u32 2147483647, %v1444_v63  ;;  %v1466_v12 = vmul.f32 0.70710677, %v1448_v1  ;;  %v657_v35 = vmul.f32 1.442695, %v648_v16  ;;  %vm467_vm15 = vweird.f32 %v1441_v61 }
 0x248   :  { %v659_v43 = vmul.f32 1.442695, %v649_v24  ;;  %v449_v49 = vsub.f32 1.0, %v448_v27  ;;  %v1509_v50 = vmul.f32 0.5, %v384_v58  ;;  %vm410_vm0 = vcmp.ge.f32.partialorder %v1444_v63, 0.0 }
 0x249   :  { %v434_v8 = vmul.f32 0.3275911, %v1454_v5  ;;  %v1495_v32 = vand.u32 2147483647, %v1466_v12  ;;  %v642_v56 = vsub.f32 0.0, %v1454_v5  ;;  %v474_v58 = vor.u32 1.1754944e-38, %v473_v34 }
 0x24a   :  { %v386_v9 = vpop.f32.mrf.mxu2  ;;  %vm472_vm2 = vcmp.eq.f32.partialorder %v471_v31, 8.507059e+37  ;;  %v450_v7 = vmul.f32 %v1461_v33, %v449_v49  ;;  %vm453_vm6 = vweird.f32 %v1461_v33  ;;  %vm482_vm10 = vweird.f32 %v1463_v11 }
 0x24b   :  { %v1134_v13 = vpop.eup %1133  ;;  %v1471_v17 = vadd.f32 1.0, %v434_v8  ;;  %v1474_v19 = vadd.f32 %v386_v9, %v1424_v48  ;;  %v435_v45 = vmul.f32 0.3275911, %v1495_v32  ;;  %v650_v36 = vmul.f32 %v642_v56, %v1454_v5  ;;  %vm1635_vm11 = vmor %vm452_vm3, %vm453_vm6 }
 0x24c   :  { %v463_v40 = vmul.f32 %v1134_v13, %v1441_v61  ;;  %vm468_vm14 = vweird.f32 %v1134_v13  ;;  %v369_v46 = vpop.f32.mrf.mxu1  ;;  %v643_v56 = vsub.f32 0.0, %v1495_v32 }
 0x24d   :  { %1135 = vrcp.f32 %v1471_v17  ;;  %v1499_v37 = vmul.f32 0.70710677, %v1474_v19  ;;  %v1516_v57 = vadd.f32 1.0, %v435_v45  ;;  %vm469_vm1 = vmor %vm467_vm15, %vm468_vm14  ;;  %v1526_v62 = vadd.f32 %v369_v46, %v1416_v39 }
 0x24e   :  { %v464_v30 = vsub.f32 1.0, %v463_v40  ;;  %1137 = vrcp.f32 %v1463_v11  ;;  %v1543_v39 = vsel %vm410_vm0, 1.0, %v1164_v21  ;;  %v501_v16 = vand.u32 2147483647, %v1471_v17 }
 0x24f   :  { %1139 = vpow2.f32 %v655_v15  ;;  %v1512_v52 = vand.u32 2147483647, %v1499_v37  ;;  %v1093_v15 = vld [vmem:[%s1854_s8 + $0x10] sm:$0xff]  ;;  %v503_v40 = vand.u32 2147483648, %v1471_v17  ;;  %v1559_v24 = vmul.f32 0.70710677, %v1526_v62 }
 0x250   :  { %v465_v44 = vmul.f32 %v1134_v13, %v464_v30  ;;  %1141 = vpow2.f32 %v657_v35  ;;  %v1102_v30 = vld [vmem:[%s1854_s8 + $0x58] sm:$0xff]  ;;  %vm497_vm5 = vweird.f32 %v1471_v17  ;;  %852 = vmatpush.bf16.msra.mxu3 %v1093_v15  ;;  %v1572_v35 = vadd.f32 %v1461_v33, %v450_v7 }
 0x251   :  { %v436_v61 = vmul.f32 0.3275911, %v1512_v52  ;;  %1143 = vpow2.f32 %v659_v43  ;;  %v644_v34 = vsub.f32 0.0, %v1512_v52  ;;  %v1580_v45 = vand.u32 2147483647, %v1559_v24  ;;  %870 = vmatpush.bf16.msrb.mxu0 %v1102_v30  ;;  %1111 = vmatpush.bf16.msrb.mxu1 %v1102_v30 }
 0x252   :  { %v466_v55 = vadd.f32 %v1134_v13, %v465_v44  ;;  %1145 = vrcp.f32 %v1516_v57  ;;  %v388_v5 = vpop.f32.mrf.mxu2  ;;  %vm502_vm8 = vcmp.eq.f32.partialorder %v501_v16, 8.507059e+37  ;;  %v504_v49 = vor.u32 1.1754944e-38, %v503_v40 }
 0x253   :  { %v1521_v60 = vpop.eup %1135  ;;  %v1583_v46 = vadd.f32 %v388_v5, %v1424_v48  ;;  %v1622_v28 = vmul.f32 %v643_v56, %v1495_v32 }
 0x254   :  { %v1528_v0 = vpop.eup %1137  ;;  %v470_v2 = vsel %vm469_vm1, %v1134_v13, %v466_v55  ;;  %v493_v3 = vmul.f32 %v1521_v60, %v1471_v17  ;;  %v1548_v13 = vadd.f32 1.0, %v436_v61  ;;  %vm498_vm4 = vweird.f32 %v1521_v60  ;;  %v1092_v17 = vld [vmem:[%s1854_s8 + $0x8] sm:$0xff] }
 0x255   :  { %v1535_v6 = vpop.eup %1139  ;;  %v1538_v8 = vsel %vm472_vm2, %v474_v58, %v470_v2  ;;  %v478_v63 = vmul.f32 %v1528_v0, %v1463_v11  ;;  %vm499_vm7 = vmor %vm497_vm5, %vm498_vm4  ;;  %v661_v55 = vmul.f32 1.442695, %v650_v36  ;;  %v437_v61 = vmul.f32 0.3275911, %v1580_v45  ;;  %v1101_v2 = vld [vmem:[%s1854_s8 + $0x50] sm:$0xff]  ;;  %853 = vmatpush.bf16.msra.mxu3 %v1092_v17 }
 0x256   :  { %v568_v9 = vmul.f32 1.0614054, %v1538_v8  ;;  %v494_v10 = vsub.f32 1.0, %v493_v3  ;;  %1147 = vrcp.f32 %v1548_v13  ;;  %v1567_v31 = vpop.eup %1141  ;;  %v531_v7 = vand.u32 2147483647, %v1548_v13  ;;  %871 = vmatpush.bf16.msrb.mxu0 %v1101_v2  ;;  %1112 = vmatpush.bf16.msrb.mxu1 %v1101_v2 }
 0x257   :  { %v1575_v38 = vpop.eup %1143  ;;  %v479_v58 = vsub.f32 1.0, %v478_v63  ;;  %v1612_v63 = vadd.f32 1.0, %v437_v61  ;;  %v1615_v16 = vmul.f32 0.70710677, %v1583_v46  ;;  %1149 = vpow2.f32 %v661_v55 }
 0x258   :  { %v576_v25 = vadd.f32 -1.4531521, %v568_v9  ;;  %v495_v27 = vmul.f32 %v1521_v60, %v494_v10  ;;  %v1588_v47 = vpop.eup %1145  ;;  %v652_v9 = vmul.f32 %v644_v34, %v1512_v52  ;;  %v1091_v52 = vld [vmem:[%s1854_s8] sm:$0xff]  ;;  %v533_v5 = vand.u32 2147483648, %v1548_v13  ;;  %v1100_v34 = vld [vmem:[%s1854_s8 + $0x48] sm:$0xff] }
 0x259   :  { %v508_v4 = vmul.f32 %v1588_v47, %v1516_v57  ;;  %1151 = vrcp.f32 %v1612_v63  ;;  %854 = vmatpush.bf16.msra.mxu3 %v1091_v52  ;;  %vm1647_vm12 = vcmp.eq.f32.partialorder %v531_v7, 8.507059e+37  ;;  %v645_v61 = vsub.f32 0.0, %v1580_v45 }
 0x25a   :  { %v584_v44 = vmul.f32 %v576_v25, %v1538_v8  ;;  %v496_v43 = vadd.f32 %v1521_v60, %v495_v27  ;;  %v480_v27 = vmul.f32 %v1528_v0, %v479_v58  ;;  %v1639_v17 = vmul.f32 1.442695, %v652_v9  ;;  %872 = vmatpush.bf16.msrb.mxu0 %v1100_v34  ;;  %1113 = vmatpush.bf16.msrb.mxu1 %v1100_v34 }
 0x25b   :  { %vm527_vm14 = vweird.f32 %v1548_v13  ;;  %vm483_vm15 = vweird.f32 %v1528_v0  ;;  %vm512_vm1 = vweird.f32 %v1516_v57  ;;  %vm542_vm5 = vweird.f32 %v1612_v63 }
 0x25c   :  { %v592_v59 = vadd.f32 1.4214138, %v584_v44  ;;  %v500_v48 = vsel %vm499_vm7, %v1521_v60, %v496_v43  ;;  %v1148_v10 = vpop.eup %1147  ;;  %v509_v44 = vsub.f32 1.0, %v508_v4  ;;  %vm1687_vm2 = vmor %vm482_vm10, %vm483_vm15  ;;  %vm513_vm6 = vweird.f32 %v1588_v47 }
 0x25d   :  { %v1598_v3 = vsel %vm502_vm8, %v504_v49, %v500_v48  ;;  %v523_v40 = vmul.f32 %v1148_v10, %v1548_v13  ;;  %v455_v49 = vsel %vm1635_vm11, %v1461_v33, %v1572_v35  ;;  %vm528_vm13 = vweird.f32 %v1148_v10  ;;  %v1150_v4 = vpop.eup %1149 }
 0x25e   :  { %v600_v36 = vmul.f32 %v592_v59, %v1538_v8  ;;  %v570_v15 = vmul.f32 1.0614054, %v1598_v3  ;;  %v1652_v59 = vand.u32 2147483647, %v1615_v16  ;;  %v534_v48 = vor.u32 1.1754944e-38, %v533_v5  ;;  %vm529_vm0 = vmor %vm527_vm14, %vm528_vm13 }
 0x25f   :  { %v524_v43 = vsub.f32 1.0, %v523_v40  ;;  %v510_v7 = vmul.f32 %v1588_v47, %v509_v44  ;;  %v1670_v13 = vsel %vm1606_vm9, %v1490_v29, %v455_v49  ;;  %vm1721_vm9 = vmor %vm512_vm1, %vm513_vm6  ;;  %vm407_vm11 = vcmp.ge.f32.partialorder %v1422_v42, 0.0 }
 0x260   :  { %v608_v25 = vadd.f32 -0.28449672, %v600_v36  ;;  %v578_v30 = vadd.f32 -1.4531521, %v570_v15  ;;  %v438_v35 = vmul.f32 0.3275911, %v1652_v59  ;;  %v481_v36 = vadd.f32 %v1528_v0, %v480_v27  ;;  %v1660_v15 = vpop.eup %1151 }
 0x261   :  { %v525_v58 = vmul.f32 %v1148_v10, %v524_v43  ;;  %v538_v27 = vmul.f32 %v1660_v15, %v1612_v63  ;;  %v1697_v43 = vadd.f32 %v1588_v47, %v510_v7  ;;  %vm543_vm10 = vweird.f32 %v1660_v15 }
 0x262   :  { %v616_v55 = vmul.f32 %v608_v25, %v1538_v8  ;;  %v586_v56 = vmul.f32 %v578_v30, %v1598_v3  ;;  %v1665_v5 = vadd.f32 1.0, %v438_v35  ;;  %v486_v30 = vand.u32 2147483647, %v1463_v11  ;;  %vm1758_vm14 = vmor %vm542_vm5, %vm543_vm10 }
 0x263   :  { %v526_v9 = vadd.f32 %v1148_v10, %v525_v58  ;;  %vm412_vm1 = vcmp.ge.f32.partialorder %v1499_v37, 0.0 }
 0x264   :  { %v624_v2 = vadd.f32 0.2548296, %v616_v55  ;;  %v594_v33 = vadd.f32 1.4214138, %v586_v56  ;;  %1153 = vrcp.f32 %v1665_v5  ;;  %v539_v56 = vsub.f32 1.0, %v538_v27 }
 0x265   :  { %v530_v25 = vsel %vm529_vm0, %v1148_v10, %v526_v9  ;;  %v567_v10 = vmul.f32 1.0614054, %v1670_v13  ;;  %v561_v58 = vand.u32 2147483647, %v1665_v5  ;;  %vm557_vm3 = vweird.f32 %v1665_v5 }
 0x266   :  { %v632_v52 = vmul.f32 %v624_v2, %v1538_v8  ;;  %v602_v40 = vmul.f32 %v594_v33, %v1598_v3  ;;  %v488_v8 = vand.u32 2147483648, %v1463_v11  ;;  %v1680_v44 = vsel %vm1647_vm12, %v534_v48, %v530_v25 }
 0x267   :  { %v572_v60 = vmul.f32 1.0614054, %v1680_v44  ;;  %v563_v11 = vand.u32 2147483648, %v1665_v5  ;;  %v646_v48 = vsub.f32 0.0, %v1652_v59  ;;  %vm487_vm4 = vcmp.eq.f32.partialorder %v486_v30, 8.507059e+37 }
 0x268   :  { %v672_v34 = vmul.f32 %v1567_v31, %v632_v52  ;;  %v610_v32 = vadd.f32 -0.28449672, %v602_v40  ;;  %v485_v31 = vsel %vm1687_vm2, %v1528_v0, %v481_v36  ;;  %v489_v2 = vor.u32 1.1754944e-38, %v488_v8 }
 0x269   :  { %v580_v54 = vadd.f32 -1.4531521, %v572_v60  ;;  %v575_v9 = vadd.f32 -1.4531521, %v567_v10  ;;  %v540_v40 = vmul.f32 %v1660_v15, %v539_v56  ;;  %v564_v25 = vor.u32 1.1754944e-38, %v563_v11 }
 0x26a   :  { %v680_v49 = vsub.f32 1.0, %v672_v34  ;;  %v618_v55 = vmul.f32 %v610_v32, %v1598_v3  ;;  %v1707_v7 = vsel %vm487_vm4, %v489_v2, %v485_v31  ;;  %v1154_v36 = vpop.eup %1153  ;;  %vm1714_vm7 = vcmp.eq.f32.partialorder %v561_v58, 8.507059e+37 }
 0x26b   :  { %v588_v35 = vmul.f32 %v580_v54, %v1680_v44  ;;  %v553_v30 = vmul.f32 %v1154_v36, %v1665_v5  ;;  %v583_v32 = vmul.f32 %v575_v9, %v1670_v13  ;;  %vm558_vm8 = vweird.f32 %v1154_v36 }
 0x26c   :  { %v688_v33 = vmul.f32 %v680_v49, %v1480_v23  ;;  %v626_v0 = vadd.f32 0.2548296, %v618_v55  ;;  %v569_v23 = vmul.f32 1.0614054, %v1707_v7  ;;  %v516_v31 = vand.u32 2147483647, %v1516_v57  ;;  %vm1745_vm12 = vmor %vm557_vm3, %vm558_vm8 }
 0x26d   :  { %v596_v8 = vadd.f32 1.4214138, %v588_v35  ;;  %v554_v49 = vsub.f32 1.0, %v553_v30  ;;  %v591_v55 = vadd.f32 1.4214138, %v583_v32  ;;  %v515_v56 = vsel %vm1721_vm9, %v1588_v47, %v1697_v43  ;;  %v1099_v35 = vld [vmem:[%s1854_s8 + $0x40] sm:$0xff] }
 0x26e   :  { %v634_v52 = vmul.f32 %v626_v0, %v1598_v3  ;;  %v696_v27 = vadd.f32 1.0, %v688_v33  ;;  %v577_v60 = vadd.f32 -1.4531521, %v569_v23  ;;  %v518_v54 = vand.u32 2147483648, %v1516_v57  ;;  %873 = vmatpush.bf16.msrb.mxu0 %v1099_v35  ;;  %1114 = vmatpush.bf16.msrb.mxu1 %v1099_v35 }
 0x26f   :  { %v604_v10 = vmul.f32 %v596_v8, %v1680_v44  ;;  %v541_v58 = vadd.f32 %v1660_v15, %v540_v40  ;;  %v555_v33 = vmul.f32 %v1154_v36, %v554_v49  ;;  %v599_v0 = vmul.f32 %v591_v55, %v1670_v13 }
 0x270   :  { %v674_v29 = vmul.f32 %v1150_v4, %v634_v52  ;;  %v585_v11 = vmul.f32 %v577_v60, %v1707_v7  ;;  %v704_v9 = vmul.f32 %v696_v27, %v1476_v20  ;;  %v519_v52 = vor.u32 1.1754944e-38, %v518_v54 }
 0x271   :  { %v612_v2 = vadd.f32 -0.28449672, %v604_v10  ;;  %v556_v57 = vadd.f32 %v1154_v36, %v555_v33  ;;  %v607_v23 = vadd.f32 -0.28449672, %v599_v0  ;;  %vm517_vm13 = vcmp.eq.f32.partialorder %v516_v31, 8.507059e+37 }
 0x272   :  { %v682_v4 = vsub.f32 1.0, %v674_v29  ;;  %v593_v43 = vadd.f32 1.4214138, %v585_v11  ;;  %v546_v8 = vand.u32 2147483647, %v1612_v63  ;;  %v1752_v30 = vsel %vm517_vm13, %v519_v52, %v515_v56 }
 0x273   :  { %v560_v32 = vsel %vm1745_vm12, %v1154_v36, %v556_v57  ;;  %v615_v29 = vmul.f32 %v607_v23, %v1670_v13  ;;  %v545_v60 = vsel %vm1758_vm14, %v1660_v15, %v541_v58  ;;  %v548_v3 = vand.u32 2147483648, %v1612_v63 }
 0x274   :  { %v690_v47 = vmul.f32 %v682_v4, %v1543_v39  ;;  %v620_v39 = vmul.f32 %v612_v2, %v1680_v44  ;;  %v601_v27 = vmul.f32 %v593_v43, %v1707_v7  ;;  %v1772_v10 = vsel %vm1714_vm7, %v564_v25, %v560_v32 }
 0x275   :  { %v571_v55 = vmul.f32 1.0614054, %v1752_v30  ;;  %v574_v56 = vmul.f32 1.0614054, %v1772_v10  ;;  %v654_v36 = vmul.f32 %v646_v48, %v1652_v59  ;;  %v623_v4 = vadd.f32 0.2548296, %v615_v29 }
 0x276   :  { %v698_v20 = vadd.f32 1.0, %v690_v47  ;;  %v609_v49 = vadd.f32 -0.28449672, %v601_v27  ;;  %v549_v11 = vor.u32 1.1754944e-38, %v548_v3  ;;  %vm547_vm15 = vcmp.eq.f32.partialorder %v546_v8, 8.507059e+37 }
 0x277   :  { %v628_v54 = vadd.f32 0.2548296, %v620_v39  ;;  %v582_v34 = vadd.f32 -1.4531521, %v574_v56  ;;  %v631_v25 = vmul.f32 %v623_v4, %v1670_v13  ;;  %1155 = vpow2.f32 %v1639_v17 }
 0x278   :  { %v706_v31 = vmul.f32 %v698_v20, %v1509_v50  ;;  %v617_v15 = vmul.f32 %v609_v49, %v1707_v7  ;;  %v579_v50 = vadd.f32 -1.4531521, %v571_v55  ;;  %v1781_v58 = vsel %vm547_vm15, %v549_v11, %v545_v60 }
 0x279   :  { %v573_v33 = vmul.f32 1.0614054, %v1781_v58  ;;  %vm409_vm0 = vcmp.ge.f32.partialorder %v1432_v53, 0.0  ;;  %v663_v48 = vmul.f32 1.442695, %v1622_v28  ;;  %v590_v0 = vmul.f32 %v582_v34, %v1772_v10 }
 0x27a   :  { %v712_v63 = vpack.c.bf16 %v706_v31, %v704_v9  ;;  %v625_v2 = vadd.f32 0.2548296, %v617_v15  ;;  %v587_v59 = vmul.f32 %v579_v50, %v1752_v30  ;;  %v671_v35 = vmul.f32 %v1535_v6, %v631_v25 }
 0x27b   :  { %v653_v13 = vmul.f32 %v645_v61, %v1580_v45  ;;  %v581_v9 = vadd.f32 -1.4531521, %v573_v33  ;;  %v636_v43 = vmul.f32 %v628_v54, %v1680_v44  ;;  %v598_v52 = vadd.f32 1.4214138, %v590_v0 }
 0x27c   :  { %874 = vmatmul.bf16.vlgmr.msrb.gmra.mxu0 %v712_v63  ;;  %v633_v17 = vmul.f32 %v625_v2, %v1707_v7  ;;  %v595_v47 = vadd.f32 1.4214138, %v587_v59  ;;  %v669_v57 = vmul.f32 1.442695, %v654_v36  ;;  %v679_v40 = vsub.f32 1.0, %v671_v35 }
 0x27d   :  { %v415_v28 = vsel %vm407_vm11, 1.0, %v1164_v21  ;;  %v589_v6 = vmul.f32 %v581_v9, %v1781_v58  ;;  %v417_v45 = vsel %vm409_vm0, 1.0, %v1164_v21  ;;  %v606_v61 = vmul.f32 %v598_v52, %v1772_v10  ;;  %v1156_v7 = vpop.eup %1155 }
 0x27e   :  { %v673_v23 = vmul.f32 %v1575_v38, %v633_v17  ;;  %v603_v8 = vmul.f32 %v595_v47, %v1752_v30  ;;  %v687_v44 = vmul.f32 %v679_v40, %v415_v28  ;;  %1157 = vpow2.f32 %v663_v48 }
 0x27f   :  { %v597_v39 = vadd.f32 1.4214138, %v589_v6  ;;  %v676_v42 = vmul.f32 %v1156_v7, %v636_v43  ;;  %v667_v5 = vmul.f32 1.442695, %v653_v13  ;;  %v614_v32 = vadd.f32 -0.28449672, %v606_v61 }
 0x280   :  { %v681_v20 = vsub.f32 1.0, %v673_v23  ;;  %v611_v27 = vadd.f32 -0.28449672, %v603_v8  ;;  %1159 = vpow2.f32 %v669_v57  ;;  %v695_v29 = vadd.f32 1.0, %v687_v44 }
 0x281   :  { %v605_v60 = vmul.f32 %v597_v39, %v1781_v58  ;;  %v391_v53 = vmul.f32 0.5, %v1419_v41  ;;  %v622_v31 = vmul.f32 %v614_v32, %v1772_v10  ;;  %v393_v49 = vmul.f32 0.5, %v1429_v51 }
 0x282   :  { %v689_v38 = vmul.f32 %v681_v20, %v417_v45  ;;  %v619_v3 = vmul.f32 %v611_v27, %v1752_v30  ;;  %v684_v4 = vsub.f32 1.0, %v676_v42  ;;  %1161 = vpow2.f32 %v667_v5 }
 0x283   :  { %v613_v56 = vadd.f32 -0.28449672, %v605_v60  ;;  %v630_v11 = vadd.f32 0.2548296, %v622_v31  ;;  %v703_v63 = vmul.f32 %v695_v29, %v391_v53  ;;  %vm411_vm2 = vcmp.ge.f32.partialorder %v1466_v12, 0.0 }
 0x284   :  { %v697_v55 = vadd.f32 1.0, %v689_v38  ;;  %v627_v36 = vadd.f32 0.2548296, %v619_v3  ;;  %v1158_v15 = vpop.eup %1157  ;;  %v420_v25 = vsel %vm412_vm1, 1.0, %v1164_v21  ;;  %vm414_vm3 = vcmp.ge.f32.partialorder %v1615_v16, 0.0 }
 0x285   :  { %v621_v54 = vmul.f32 %v613_v56, %v1781_v58  ;;  %v638_v51 = vmul.f32 %v630_v11, %v1772_v10  ;;  %v692_v59 = vmul.f32 %v684_v4, %v420_v25  ;;  %vm413_vm4 = vcmp.ge.f32.partialorder %v1559_v24, 0.0 }
 0x286   :  { %v705_v50 = vmul.f32 %v697_v55, %v393_v49  ;;  %v635_v34 = vmul.f32 %v627_v36, %v1752_v30  ;;  %v1160_v41 = vpop.eup %1159  ;;  %v419_v30 = vsel %vm411_vm2, 1.0, %v1164_v21  ;;  %v422_v12 = vsel %vm414_vm3, 1.0, %v1164_v21 }
 0x287   :  { %v629_v33 = vadd.f32 0.2548296, %v621_v54  ;;  %v678_v48 = vmul.f32 %v1160_v41, %v638_v51  ;;  %v700_v47 = vadd.f32 1.0, %v692_v59  ;;  %v396_v16 = vmul.f32 0.5, %v1474_v19  ;;  %v1120_v19 = vld [vmem:[%s1852_s9] ss:$0 sm:$0xff] }
 0x288   :  { %v711_v2 = vpack.c.bf16 %v705_v50, %v703_v63  ;;  %v675_v37 = vmul.f32 %v1158_v15, %v635_v34  ;;  %v1162_v13 = vpop.eup %1161  ;;  %v421_v57 = vsel %vm413_vm4, 1.0, %v1164_v21  ;;  %v395_v24 = vmul.f32 0.5, %v1448_v1 }
 0x289   :  { %v637_v0 = vmul.f32 %v629_v33, %v1781_v58  ;;  %v686_v17 = vsub.f32 1.0, %v678_v48  ;;  %v398_v58 = vmul.f32 0.5, %v1583_v46  ;;  %v708_v6 = vmul.f32 %v700_v47, %v396_v16 }
 0x28a   :  { %855 = vmatmul.bf16.vlgmr.msra.gmra.mxu3 %v711_v2  ;;  %v683_v35 = vsub.f32 1.0, %v675_v37  ;;  %v397_v45 = vmul.f32 0.5, %v1526_v62 }
 0x28b   :  { %v677_v10 = vmul.f32 %v1162_v13, %v637_v0  ;;  %v694_v43 = vmul.f32 %v686_v17, %v422_v12 }
 0x28c   :  { %v691_v9 = vmul.f32 %v683_v35, %v419_v30 }
 0x28d   :  { %v685_v52 = vsub.f32 1.0, %v677_v10  ;;  %v702_v40 = vadd.f32 1.0, %v694_v43 }
 0x28e   :  { %v699_v23 = vadd.f32 1.0, %v691_v9 }
 0x28f   :  { %v693_v28 = vmul.f32 %v685_v52, %v421_v57  ;;  %v710_v8 = vmul.f32 %v702_v40, %v398_v58 }
 0x290   :  { %v707_v7 = vmul.f32 %v699_v23, %v395_v24 }
 0x291   :  { %v701_v61 = vadd.f32 1.0, %v693_v28  ;;  %v714_v44 = vpack.c.bf16 %v710_v8, %v708_v6 }
 0x293   :  { %v709_v20 = vmul.f32 %v701_v61, %v397_v45  ;;  %879 = vmatmul.bf16.vlgmr.msrb.gmra.mxu1 %v714_v44 }
 0x295   :  { %v713_v39 = vpack.c.bf16 %v709_v20, %v707_v7 }
 0x29a   :  { %860 = vmatmul.bf16.gmra.mxu3 %v713_v39 }
 0x2f9   :  { %v875_v46 = vpop.f32.mrf.mxu0 }
 0x301   :  { %v877_v32 = vpop.f32.mrf.mxu0 }
 0x30d   :  { %v856_v21 = vpop.f32.mrf.mxu3 }
 0x30e   :  { %v857_v27 = vadd.f32 %v1120_v19, %v856_v21 }
 0x310   :  { %v876_v42 = vadd.f32 %v875_v46, %v857_v27  ;;  %v880_v3 = vpop.f32.mrf.mxu1 }
 0x312   :  { %v885_v5 = vadd.f32 %v876_v42, %v1256_v14 }
 0x314   :  { %889 = vst [vmem:[%s1855_s10] sm:$0xff] %v885_v5 }
 0x315   :  { %v858_v1 = vpop.f32.mrf.mxu3 }
 0x316   :  { %v859_v62 = vadd.f32 %v1120_v19, %v858_v1 }
 0x318   :  { %v878_v38 = vadd.f32 %v877_v32, %v859_v62  ;;  %v882_v56 = vpop.f32.mrf.mxu1 }
 0x31a   :  { %v886_v29 = vadd.f32 %v878_v38, %v1262_v18 }
 0x31c   :  { %890 = vst [vmem:[%s1855_s10 + $0x8] sm:$0xff] %v886_v29 }
 0x31d   :  { %v861_v60 = vpop.f32.mrf.mxu3 }
 0x31e   :  { %v862_v53 = vadd.f32 %v1120_v19, %v861_v60 }
 0x320   :  { %v881_v31 = vadd.f32 %v880_v3, %v862_v53 }
 0x322   :  { %v887_v14 = vadd.f32 %v881_v31, %v1268_v22 }
 0x324   :  { %891 = vst [vmem:[%s1855_s10 + $0x10] sm:$0xff] %v887_v14 }
 0x325   :  { %v863_v49 = vpop.f32.mrf.mxu3 }
 0x326   :  { %v864_v55 = vadd.f32 %v1120_v19, %v863_v49 }
 0x328   :  { %v883_v36 = vadd.f32 %v882_v56, %v864_v55 }
 0x32a   :  { %v888_v18 = vadd.f32 %v883_v36, %v1274_v26 }
 0x32c   :  { %892 = vst [vmem:[%s1855_s10 + $0x18] sm:$0xff] %v888_v18 }

// kernel: siglip_encoder.9
= control target key start
LH: loop header
LB: loop body
LE: loop exit
PB: predicated region body
PF: predicated region fallthrough
CT: control target
= control target key end

     0   :  { %v622_v4 = vmov 128.0   ;;  %s830_s0 = inlined_call_operand.vmem [shape: f32[32,128], index: 0, kind: input, shape index: {}]   ;;  %s831_s1 = inlined_call_operand.vmem [shape: f32[1,128], index: 1, kind: input, shape index: {}]   ;;  %s832_s2 = inlined_call_operand.vmem [shape: f32[1,128], index: 2, kind: input, shape index: {}]   ;;  %s833_s4 = inlined_call_operand.vmem [shape: f32[1,128], index: 4, kind: input, shape index: {}]   ;;  %s834_s3 = inlined_call_operand.vmem [shape: bf16[128,128], index: 3, kind: input, shape index: {}]   ;;  %s835_s5 = inlined_call_operand.vmem [shape: bf16[128,128], index: 5, kind: input, shape index: {}]   ;;  %s836_s7 = inlined_call_operand.vmem [shape: bf16[128,128], index: 7, kind: input, shape index: {}]   ;;  %s837_s6 = inlined_call_operand.vmem [shape: f32[1,128], index: 6, kind: input, shape index: {}]   ;;  %s838_s8 = inlined_call_operand.vmem [shape: f32[1,128], index: 8, kind: input, shape index: {}]   ;;  %s839_s10 = inlined_call_operand.vmem [shape: bf16[32,128], index: 10, kind: output, shape index: {1}]   ;;  %s840_s9 = inlined_call_operand.vmem [shape: bf16[32,128], index: 9, kind: output, shape index: {0}]   ;;  %s841_s11 = inlined_call_operand.vmem [shape: bf16[32,128], index: 11, kind: output, shape index: {2}]  }
   0x1   :  { %v37_v0 = vld [vmem:[%s830_s0 + $0x10] sm:$0xff]  ;;  %v35_v1 = vld [vmem:[%s830_s0] sm:$0xff]  ;;  %v38_v2 = vld [vmem:[%s830_s0 + $0x18] sm:$0xff]  ;;  %612 = vrcp.f32 %v622_v4 }
   0x2   :  { %45 = vadd.xlane.f32.xlu1 %v37_v0  ;;  %41 = vadd.xlane.f32.xlu0 %v35_v1  ;;  %v36_v3 = vld [vmem:[%s830_s0 + $0x8] sm:$0xff]  ;;  %v548_v27 = vld [vmem:[%s834_s3 + $0x38] sm:$0xff]  ;;  %v547_v30 = vld [vmem:[%s834_s3 + $0x30] sm:$0xff] }
   0x3   :  { %v556_v28 = vld [vmem:[%s835_s5 + $0x38] sm:$0xff]  ;;  %212 = vmatpush.bf16.msra.mxu0 %v548_v27  ;;  %598 = vmatpush.bf16.msra.mxu3 %v548_v27  ;;  %v555_v31 = vld [vmem:[%s835_s5 + $0x30] sm:$0xff]  ;;  %v546_v33 = vld [vmem:[%s834_s3 + $0x28] sm:$0xff] }
   0x4   :  { %v564_v29 = vld [vmem:[%s836_s7 + $0x38] sm:$0xff]  ;;  %311 = vmatpush.bf16.msra.mxu1 %v556_v28  ;;  %v563_v32 = vld [vmem:[%s836_s7 + $0x30] sm:$0xff]  ;;  %v554_v34 = vld [vmem:[%s835_s5 + $0x28] sm:$0xff] }
   0x5   :  { %406 = vmatpush.bf16.msra.mxu2 %v564_v29  ;;  %v562_v35 = vld [vmem:[%s836_s7 + $0x28] sm:$0xff]  ;;  %v545_v36 = vld [vmem:[%s834_s3 + $0x20] sm:$0xff]  ;;  %v544_v39 = vld [vmem:[%s834_s3 + $0x18] sm:$0xff] }
   0x6   :  { %v553_v37 = vld [vmem:[%s835_s5 + $0x20] sm:$0xff]  ;;  %v552_v40 = vld [vmem:[%s835_s5 + $0x18] sm:$0xff]  ;;  %v543_v42 = vld [vmem:[%s834_s3 + $0x10] sm:$0xff] }
   0x7   :  { %v613_v5 = vpop.eup %612  ;;  %213 = vmatpush.bf16.msra.mxu0 %v547_v30  ;;  %599 = vmatpush.bf16.msra.mxu3 %v547_v30  ;;  %v561_v38 = vld [vmem:[%s836_s7 + $0x20] sm:$0xff]  ;;  %v560_v41 = vld [vmem:[%s836_s7 + $0x18] sm:$0xff]  ;;  %v551_v43 = vld [vmem:[%s835_s5 + $0x10] sm:$0xff] }
   0x8   :  { %v50_v6 = vmul.f32 128.0, %v613_v5  ;;  %vm54_vm0 = vweird.f32 %v613_v5  ;;  %312 = vmatpush.bf16.msra.mxu1 %v555_v31  ;;  %v559_v44 = vld [vmem:[%s836_s7 + $0x10] sm:$0xff]  ;;  %v542_v45 = vld [vmem:[%s834_s3 + $0x8] sm:$0xff]  ;;  %v541_v52 = vld [vmem:[%s834_s3] sm:$0xff] }
   0x9   :  { %407 = vmatpush.bf16.msra.mxu2 %v563_v32  ;;  %v550_v46 = vld [vmem:[%s835_s5 + $0x8] sm:$0xff]  ;;  %v549_v53 = vld [vmem:[%s835_s5] sm:$0xff] }
   0xa   :  { %47 = vadd.xlane.f32.xlu1 %v38_v2  ;;  %43 = vadd.xlane.f32.xlu0 %v36_v3  ;;  %v51_v7 = vsub.f32 1.0, %v50_v6  ;;  %v558_v47 = vld [vmem:[%s836_s7 + $0x8] sm:$0xff]  ;;  %v557_v54 = vld [vmem:[%s836_s7] sm:$0xff] }
   0xb   :  { %214 = vmatpush.bf16.msra.mxu0 %v546_v33  ;;  %600 = vmatpush.bf16.msra.mxu3 %v546_v33  ;;  %v607_v28 = vld [vmem:[%s831_s1] ss:$0 sm:$0xff] }
   0xc   :  { %v52_v8 = vmul.f32 %v613_v5, %v51_v7  ;;  %313 = vmatpush.bf16.msra.mxu1 %v554_v34 }
   0xd   :  { %408 = vmatpush.bf16.msra.mxu2 %v562_v35 }
   0xe   :  { %v53_v9 = vadd.f32 %v613_v5, %v52_v8 }
   0xf   :  { %215 = vmatpush.bf16.msra.mxu0 %v545_v36  ;;  %601 = vmatpush.bf16.msra.mxu3 %v545_v36 }
  0x10   :  { %v695_v10 = vsel %vm54_vm0, %v613_v5, %v53_v9  ;;  %314 = vmatpush.bf16.msra.mxu1 %v553_v37 }
  0x11   :  { %409 = vmatpush.bf16.msra.mxu2 %v561_v38 }
  0x13   :  { %216 = vmatpush.bf16.msra.mxu0 %v544_v39  ;;  %602 = vmatpush.bf16.msra.mxu3 %v544_v39 }
  0x14   :  { %315 = vmatpush.bf16.msra.mxu1 %v552_v40 }
  0x15   :  { %410 = vmatpush.bf16.msra.mxu2 %v560_v41 }
  0x17   :  { %217 = vmatpush.bf16.msra.mxu0 %v543_v42  ;;  %603 = vmatpush.bf16.msra.mxu3 %v543_v42 }
  0x18   :  { %316 = vmatpush.bf16.msra.mxu1 %v551_v43 }
  0x19   :  { %411 = vmatpush.bf16.msra.mxu2 %v559_v44 }
  0x1b   :  { %218 = vmatpush.bf16.msra.mxu0 %v542_v45  ;;  %604 = vmatpush.bf16.msra.mxu3 %v542_v45 }
  0x1c   :  { %317 = vmatpush.bf16.msra.mxu1 %v550_v46  ;;  %v610_v46 = vld [vmem:[%s837_s6] ss:$0 sm:$0xff] }
  0x1d   :  { %412 = vmatpush.bf16.msra.mxu2 %v558_v47 }
  0x1f   :  { %219 = vmatpush.bf16.msra.mxu0 %v541_v52  ;;  %605 = vmatpush.bf16.msra.mxu3 %v541_v52 }
  0x20   :  { %318 = vmatpush.bf16.msra.mxu1 %v549_v53 }
  0x21   :  { %413 = vmatpush.bf16.msra.mxu2 %v557_v54 }
  0x75   :  { %v46_v11 = vpop.xlane.xlu1 %45  ;;  %v42_v12 = vpop.xlane.xlu0 %41 }
  0x76   :  { %v58_v13 = vmul.f32 %v695_v10, %v46_v11  ;;  %v56_v14 = vmul.f32 %v695_v10, %v42_v12 }
  0x78   :  { %v699_v15 = vsub.f32 %v37_v0, %v58_v13  ;;  %v701_v16 = vsub.f32 %v35_v1, %v56_v14 }
  0x7a   :  { %v66_v17 = vmul.f32 %v699_v15, %v699_v15  ;;  %v64_v18 = vmul.f32 %v701_v16, %v701_v16 }
  0x7c   :  { %72 = vadd.xlane.f32.xlu0 %v66_v17  ;;  %68 = vadd.xlane.f32.xlu2 %v64_v18 }
  0x7d   :  { %v48_v19 = vpop.xlane.xlu1 %47  ;;  %v44_v20 = vpop.xlane.xlu0 %43 }
  0x7e   :  { %v59_v21 = vmul.f32 %v695_v10, %v48_v19  ;;  %v57_v22 = vmul.f32 %v695_v10, %v44_v20 }
  0x80   :  { %v709_v23 = vsub.f32 %v38_v2, %v59_v21  ;;  %v711_v24 = vsub.f32 %v36_v3, %v57_v22 }
  0x82   :  { %v67_v25 = vmul.f32 %v709_v23, %v709_v23  ;;  %v65_v26 = vmul.f32 %v711_v24, %v711_v24 }
  0x84   :  { %74 = vadd.xlane.f32.xlu1 %v67_v25  ;;  %70 = vadd.xlane.f32.xlu2 %v65_v26 }
  0xef   :  { %v69_v48 = vpop.xlane.xlu2 %68  ;;  %v73_v49 = vpop.xlane.xlu0 %72 }
  0xf0   :  { %v76_v50 = vmul.f32 %v69_v48, %v695_v10  ;;  %v78_v51 = vmul.f32 %v73_v49, %v695_v10 }
  0xf2   :  { %v80_v55 = vadd.f32 1e-06, %v76_v50  ;;  %v82_v56 = vadd.f32 1e-06, %v78_v51 }
  0xf4   :  { %614 = vrsqrt.f32 %v80_v55  ;;  %vm110_vm1 = vweird.f32 %v82_v56  ;;  %vm90_vm5 = vweird.f32 %v80_v55 }
  0xf5   :  { %616 = vrsqrt.f32 %v82_v56 }
  0xf7   :  { %v75_v57 = vpop.xlane.xlu1 %74  ;;  %v71_v58 = vpop.xlane.xlu2 %70 }
  0xf8   :  { %v79_v59 = vmul.f32 %v75_v57, %v695_v10  ;;  %v77_v60 = vmul.f32 %v71_v58, %v695_v10 }
  0xfa   :  { %v615_v61 = vpop.eup %614  ;;  %v83_v62 = vadd.f32 1e-06, %v79_v59  ;;  %v81_v63 = vadd.f32 1e-06, %v77_v60  ;;  %v611_v59 = vld [vmem:[%s838_s8] ss:$0 sm:$0xff] }
  0xfb   :  { %v617_v0 = vpop.eup %616  ;;  %v85_v1 = vmul.f32 %v615_v61, %v80_v55  ;;  %vm91_vm3 = vweird.f32 %v615_v61 }
  0xfc   :  { %v105_v2 = vmul.f32 %v617_v0, %v82_v56  ;;  %618 = vrsqrt.f32 %v83_v62  ;;  %vm111_vm2 = vweird.f32 %v617_v0  ;;  %vm92_vm6 = vmor %vm90_vm5, %vm91_vm3  ;;  %vm120_vm7 = vweird.f32 %v83_v62 }
  0xfd   :  { %v86_v3 = vmul.f32 %v615_v61, %v85_v1  ;;  %620 = vrsqrt.f32 %v81_v63  ;;  %vm112_vm4 = vmor %vm110_vm1, %vm111_vm2  ;;  %vm100_vm11 = vweird.f32 %v81_v63 }
  0xfe   :  { %v106_v4 = vmul.f32 %v617_v0, %v105_v2 }
  0xff   :  { %v87_v5 = vmul.f32 0.5, %v86_v3 }
 0x100   :  { %v107_v6 = vmul.f32 0.5, %v106_v4 }
 0x101   :  { %v88_v7 = vsub.f32 1.5, %v87_v5 }
 0x102   :  { %v619_v8 = vpop.eup %618  ;;  %v108_v9 = vsub.f32 1.5, %v107_v6 }
 0x103   :  { %v621_v11 = vpop.eup %620  ;;  %v115_v12 = vmul.f32 %v619_v8, %v83_v62  ;;  %v89_v10 = vmul.f32 %v615_v61, %v88_v7  ;;  %vm121_vm8 = vweird.f32 %v619_v8 }
 0x104   :  { %v109_v13 = vmul.f32 %v617_v0, %v108_v9  ;;  %v95_v14 = vmul.f32 %v621_v11, %v81_v63  ;;  %vm122_vm9 = vmor %vm120_vm7, %vm121_vm8  ;;  %vm101_vm10 = vweird.f32 %v621_v11 }
 0x105   :  { %v116_v17 = vmul.f32 %v619_v8, %v115_v12  ;;  %v93_v21 = vsel %vm92_vm6, %v615_v61, %v89_v10  ;;  %vm102_vm12 = vmor %vm100_vm11, %vm101_vm10 }
 0x106   :  { %v96_v18 = vmul.f32 %v621_v11, %v95_v14  ;;  %v113_v19 = vsel %vm112_vm4, %v617_v0, %v109_v13  ;;  %v124_v29 = vmul.f32 %v93_v21, %v701_v16 }
 0x107   :  { %v117_v20 = vmul.f32 0.5, %v116_v17  ;;  %v126_v26 = vmul.f32 %v113_v19, %v699_v15  ;;  %v608_v15 = vld [vmem:[%s832_s2] ss:$0 sm:$0xff] }
 0x108   :  { %v97_v22 = vmul.f32 0.5, %v96_v18  ;;  %v131_v37 = vmul.f32 %v607_v28, %v124_v29 }
 0x109   :  { %v118_v25 = vsub.f32 1.5, %v117_v20  ;;  %v133_v35 = vmul.f32 %v607_v28, %v126_v26 }
 0x10a   :  { %v98_v27 = vsub.f32 1.5, %v97_v22  ;;  %v138_v41 = vadd.f32 %v608_v15, %v131_v37 }
 0x10b   :  { %v119_v30 = vmul.f32 %v619_v8, %v118_v25  ;;  %v140_v40 = vadd.f32 %v608_v15, %v133_v35 }
 0x10c   :  { %v99_v31 = vmul.f32 %v621_v11, %v98_v27 }
 0x10d   :  { %v123_v32 = vsel %vm122_vm9, %v619_v8, %v119_v30 }
 0x10e   :  { %v127_v33 = vmul.f32 %v123_v32, %v709_v23  ;;  %v103_v34 = vsel %vm102_vm12, %v621_v11, %v99_v31 }
 0x10f   :  { %v125_v36 = vmul.f32 %v103_v34, %v711_v24  ;;  %v609_v24 = vld [vmem:[%s833_s4] ss:$0 sm:$0xff] }
 0x110   :  { %v134_v38 = vmul.f32 %v607_v28, %v127_v33 }
 0x111   :  { %v132_v39 = vmul.f32 %v607_v28, %v125_v36 }
 0x112   :  { %v141_v16 = vadd.f32 %v608_v15, %v134_v38 }
 0x113   :  { %v139_v42 = vadd.f32 %v608_v15, %v132_v39 }
 0x114   :  { %v143_v43 = vpack.c.bf16 %v141_v16, %v140_v40 }
 0x115   :  { %v142_v44 = vpack.c.bf16 %v139_v42, %v138_v41 }
 0x116   :  { %225 = vmatmul.bf16.vlgmr.msra.gmra.mxu3 %v143_v43 }
 0x117   :  { %220 = vmatmul.bf16.vlgmr.msra.gmra.mxu0 %v142_v44  ;;  %319 = vmatmul.bf16.vlgmr.msra.gmra.mxu1 %v142_v44 }
 0x118   :  { %414 = vmatmul.bf16.vlgmr.msra.gmra.mxu2 %v142_v44 }
 0x127   :  { %324 = vmatmul.bf16.gmra.mxu1 %v143_v43 }
 0x128   :  { %419 = vmatmul.bf16.gmra.mxu2 %v143_v43 }
 0x194   :  { %v221_v23 = vpop.f32.mrf.mxu0  ;;  %v320_v45 = vpop.f32.mrf.mxu1 }
 0x195   :  { %v222_v48 = vadd.f32 %v609_v24, %v221_v23  ;;  %v321_v52 = vadd.f32 %v610_v46, %v320_v45 }
 0x197   :  { %v231_v55 = vmul.f32 0.17677669, %v222_v48 }
 0x199   :  { %v226_v47 = vpop.f32.mrf.mxu3 }
 0x19a   :  { %v227_v58 = vadd.f32 %v609_v24, %v226_v47 }
 0x19b   :  { %v415_v49 = vpop.f32.mrf.mxu2 }
 0x19c   :  { %v223_v50 = vpop.f32.mrf.mxu0  ;;  %v322_v51 = vpop.f32.mrf.mxu1  ;;  %v233_v0 = vmul.f32 0.17677669, %v227_v58  ;;  %v416_v1 = vadd.f32 %v611_v59, %v415_v49 }
 0x19d   :  { %v224_v53 = vadd.f32 %v609_v24, %v223_v50  ;;  %v323_v54 = vadd.f32 %v610_v46, %v322_v51 }
 0x19f   :  { %v232_v56 = vmul.f32 0.17677669, %v224_v53  ;;  %v578_v57 = vpack.c.bf16 %v323_v54, %v321_v52 }
 0x1a1   :  { %v568_v60 = vpack.c.bf16 %v232_v56, %v231_v55  ;;  %579 = vst [vmem:[%s839_s10] sm:$0xff] %v578_v57   ;;  %v228_v61 = vpop.f32.mrf.mxu3 }
 0x1a2   :  { %v229_v62 = vadd.f32 %v609_v24, %v228_v61 }
 0x1a3   :  { %569 = vst [vmem:[%s840_s9] sm:$0xff] %v568_v60   ;;  %v417_v63 = vpop.f32.mrf.mxu2 }
 0x1a4   :  { %v234_v2 = vmul.f32 0.17677669, %v229_v62  ;;  %v418_v3 = vadd.f32 %v611_v59, %v417_v63  ;;  %v325_v4 = vpop.f32.mrf.mxu1 }
 0x1a5   :  { %v326_v9 = vadd.f32 %v610_v46, %v325_v4 }
 0x1a6   :  { %v573_v5 = vpack.c.bf16 %v234_v2, %v233_v0  ;;  %v588_v6 = vpack.c.bf16 %v418_v3, %v416_v1 }
 0x1a8   :  { %595 = vst [vmem:[%s840_s9 + $0x8] sm:$0xff] %v573_v5  }
 0x1a9   :  { %589 = vst [vmem:[%s841_s11] sm:$0xff] %v588_v6  }
 0x1ab   :  { %v420_v7 = vpop.f32.mrf.mxu2 }
 0x1ac   :  { %v327_v8 = vpop.f32.mrf.mxu1  ;;  %v421_v13 = vadd.f32 %v611_v59, %v420_v7 }
 0x1ad   :  { %v328_v11 = vadd.f32 %v610_v46, %v327_v8 }
 0x1af   :  { %v583_v12 = vpack.c.bf16 %v328_v11, %v326_v9 }
 0x1b1   :  { %596 = vst [vmem:[%s839_s10 + $0x8] sm:$0xff] %v583_v12  }
 0x1b3   :  { %v422_v10 = vpop.f32.mrf.mxu2 }
 0x1b4   :  { %v423_v14 = vadd.f32 %v611_v59, %v422_v10 }
 0x1b6   :  { %v593_v17 = vpack.c.bf16 %v423_v14, %v421_v13 }
 0x1b8   :  { %597 = vst [vmem:[%s841_s11 + $0x8] sm:$0xff] %v593_v17  }

// kernel: siglip_encoder.11
= control target key start
LH: loop header
LB: loop body
LE: loop exit
PB: predicated region body
PF: predicated region fallthrough
CT: control target
= control target key end

     0   :  { %s1883_s0 = inlined_call_operand.vmem [shape: f32[32,128], index: 0, kind: input, shape index: {}]   ;;  %s1884_s1 = inlined_call_operand.vmem [shape: bf16[32,128], index: 1, kind: input, shape index: {}]   ;;  %s1885_s2 = inlined_call_operand.vmem [shape: bf16[128,128], index: 2, kind: input, shape index: {}]   ;;  %s1886_s3 = inlined_call_operand.vmem [shape: f32[1,128], index: 3, kind: input, shape index: {}]   ;;  %s1887_s4 = inlined_call_operand.vmem [shape: f32[1,128], index: 4, kind: input, shape index: {}]   ;;  %s1888_s5 = inlined_call_operand.vmem [shape: f32[1,128], index: 5, kind: input, shape index: {}]   ;;  %s1889_s6 = inlined_call_operand.vmem [shape: bf16[128,256], index: 6, kind: input, shape index: {}]   ;;  %s1890_s7 = inlined_call_operand.vmem [shape: f32[1,256], index: 7, kind: input, shape index: {}]   ;;  %s1891_s8 = inlined_call_operand.vmem [shape: bf16[256,128], index: 8, kind: input, shape index: {}]   ;;  %s1892_s9 = inlined_call_operand.vmem [shape: f32[1,128], index: 9, kind: input, shape index: {}]   ;;  %s1893_s10 = inlined_call_operand.hbm [shape: f32[32,128], index: 10, kind: output, shape index: {}]  }
   0x1   :  { %v1089_v0 = vld [vmem:[%s1885_s2 + $0x38] sm:$0xff]  ;;  %v1088_v1 = vld [vmem:[%s1885_s2 + $0x30] sm:$0xff] }
   0x2   :  { %120 = vmatpush.bf16.msra.mxu0 %v1089_v0 }
   0x3   :  { %15 = vsyncpa [#allocation3], 0  ;;  %v1087_v2 = vld [vmem:[%s1885_s2 + $0x28] sm:$0xff]  ;;  %v1086_v3 = vld [vmem:[%s1885_s2 + $0x20] sm:$0xff]  ;;  %v1207_v27 = vmov 128.0   ;;  %s900_s21 = sshll.u32 %s1893_s10, 4  ;;  %s901_s21 = int_to_ptr.hbm [resolvable:$true] %s900_s21 }
   0x4   :  { %v1085_v4 = vld [vmem:[%s1885_s2 + $0x18] sm:$0xff]  ;;  %v1084_v5 = vld [vmem:[%s1885_s2 + $0x10] sm:$0xff]  ;;  %v1083_v6 = vld [vmem:[%s1885_s2 + $0x8] sm:$0xff]  ;;  %1139 = vrcp.f32 %v1207_v27  ;;  %s1210_s22 = smov 128   ;;  %s1211_s23 = smov 8  }
   0x5   :  { %v1082_v7 = vld [vmem:[%s1885_s2] sm:$0xff]  ;;  %v1081_v9 = vld [vmem:[%s1884_s1 + $0x8] sm:$0xff]  ;;  %v141_v20 = vld [vmem:[%s1883_s0 + $0x10] sm:$0xff] }
   0x6   :  { %121 = vmatpush.bf16.msra.mxu0 %v1088_v1  ;;  %v1080_v8 = vld [vmem:[%s1884_s1] sm:$0xff]  ;;  %v140_v16 = vld [vmem:[%s1883_s0 + $0x8] sm:$0xff]  ;;  %v142_v24 = vld [vmem:[%s1883_s0 + $0x18] sm:$0xff] }
   0x7   :  { %v1135_v10 = vld [vmem:[%s1886_s3] ss:$0 sm:$0xff]  ;;  %v1010_v50 = vld [vmem:[%s1889_s6 + $0x70] sm:$0xf]  ;;  %v1105_v51 = vld [vmem:[%s1889_s6 + $0x74] sm:$0xf0] }
   0x8   :  { %v139_v12 = vld [vmem:[%s1883_s0] sm:$0xff]  ;;  %v1104_v52 = vld [vmem:[%s1889_s6 + $0x74] sm:$0xf]  ;;  %v1011_v53 = vor.u32 %v1105_v51, %v1010_v50  ;;  %v1012_v54 = vld [vmem:[%s1889_s6 + $0x78] sm:$0xf0] }
   0x9   :  { %v1015_v55 = vor.u32 %v1104_v52, %v1012_v54  ;;  %v1002_v56 = vld [vmem:[%s1889_s6 + $0x60] sm:$0xf]  ;;  %v1103_v57 = vld [vmem:[%s1889_s6 + $0x64] sm:$0xf0]  ;;  %v1102_v58 = vld [vmem:[%s1889_s6 + $0x64] sm:$0xf] }
   0xa   :  { %122 = vmatpush.bf16.msra.mxu0 %v1087_v2  ;;  %v1140_v28 = vpop.eup %1139  ;;  %354 = vmatpush.bf16.msra.mxu1 %v1011_v53  ;;  %v1003_v59 = vor.u32 %v1103_v57, %v1002_v56  ;;  %v1004_v60 = vld [vmem:[%s1889_s6 + $0x68] sm:$0xf0]  ;;  %v994_v62 = vld [vmem:[%s1889_s6 + $0x50] sm:$0xf]  ;;  %v1101_v63 = vld [vmem:[%s1889_s6 + $0x54] sm:$0xf0] }
   0xb   :  { %v158_v29 = vmul.f32 128.0, %v1140_v28  ;;  %vm162_vm0 = vweird.f32 %v1140_v28  ;;  %373 = vmatpush.bf16.msra.mxu2 %v1015_v55  ;;  %v1007_v61 = vor.u32 %v1102_v58, %v1004_v60  ;;  %v1100_v0 = vld [vmem:[%s1889_s6 + $0x54] sm:$0xf]  ;;  %v995_v1 = vor.u32 %v1101_v63, %v994_v62  ;;  %v996_v2 = vld [vmem:[%s1889_s6 + $0x58] sm:$0xf0] }
   0xc   :  { %v1093_v27 = vld [vmem:[%s1889_s6 + $0x14] sm:$0xf0] }
   0xd   :  { %v159_v30 = vsub.f32 1.0, %v158_v29 }
   0xe   :  { %123 = vmatpush.bf16.msra.mxu0 %v1086_v3  ;;  %355 = vmatpush.bf16.msra.mxu1 %v1003_v59  ;;  %v999_v3 = vor.u32 %v1100_v0, %v996_v2 }
   0xf   :  { %v160_v31 = vmul.f32 %v1140_v28, %v159_v30  ;;  %374 = vmatpush.bf16.msra.mxu2 %v1007_v61  ;;  %v964_v30 = vld [vmem:[%s1889_s6 + $0x18] sm:$0xf0] }
  0x11   :  { %v161_v32 = vadd.f32 %v1140_v28, %v160_v31 }
  0x12   :  { %124 = vmatpush.bf16.msra.mxu0 %v1085_v4  ;;  %356 = vmatpush.bf16.msra.mxu1 %v995_v1  ;;  %v986_v4 = vld [vmem:[%s1889_s6 + $0x40] sm:$0xf] }
  0x13   :  { %v1324_v33 = vsel %vm162_vm0, %v1140_v28, %v161_v32  ;;  %375 = vmatpush.bf16.msra.mxu2 %v999_v3  ;;  %v1092_v28 = vld [vmem:[%s1889_s6 + $0x14] sm:$0xf] }
  0x14   :  { %v967_v31 = vor.u32 %v1092_v28, %v964_v30 }
  0x16   :  { %125 = vmatpush.bf16.msra.mxu0 %v1084_v5  ;;  %v1099_v5 = vld [vmem:[%s1889_s6 + $0x44] sm:$0xf0] }
  0x1a   :  { %126 = vmatpush.bf16.msra.mxu0 %v1083_v6  ;;  %v1098_v6 = vld [vmem:[%s1889_s6 + $0x44] sm:$0xf] }
  0x1e   :  { %127 = vmatpush.bf16.msra.mxu0 %v1082_v7  ;;  %v987_v7 = vor.u32 %v1099_v5, %v986_v4  ;;  %v1136_v5 = vld [vmem:[%s1887_s4] ss:$0 sm:$0xff] }
  0x20   :  { %357 = vmatpush.bf16.msra.mxu1 %v987_v7 }
  0x21   :  { %128 = vmatmul.bf16.vlgmr.msra.gmra.mxu0 %v1080_v8  ;;  %v988_v8 = vld [vmem:[%s1889_s6 + $0x48] sm:$0xf0] }
  0x31   :  { %133 = vmatmul.bf16.gmra.mxu0 %v1081_v9  ;;  %v991_v9 = vor.u32 %v1098_v6, %v988_v8 }
  0x33   :  { %376 = vmatpush.bf16.msra.mxu2 %v991_v9 }
  0x9e   :  { %v129_v11 = vpop.f32.mrf.mxu0 }
  0x9f   :  { %v130_v13 = vadd.f32 %v1135_v10, %v129_v11  ;;  %v1097_v11 = vld [vmem:[%s1889_s6 + $0x34] sm:$0xf0] }
  0xa1   :  { %v1303_v14 = vadd.f32 %v139_v12, %v130_v13  ;;  %v1096_v12 = vld [vmem:[%s1889_s6 + $0x34] sm:$0xf] }
  0xa3   :  { %149 = vadd.xlane.f32.xlu0 %v1303_v14 }
  0xa6   :  { %v131_v15 = vpop.f32.mrf.mxu0 }
  0xa7   :  { %v132_v17 = vadd.f32 %v1135_v10, %v131_v15  ;;  %v980_v15 = vld [vmem:[%s1889_s6 + $0x38] sm:$0xf0] }
  0xa9   :  { %v1309_v18 = vadd.f32 %v140_v16, %v132_v17  ;;  %v983_v16 = vor.u32 %v1096_v12, %v980_v15  ;;  %v970_v17 = vld [vmem:[%s1889_s6 + $0x20] sm:$0xf] }
  0xab   :  { %151 = vadd.xlane.f32.xlu0 %v1309_v18  ;;  %377 = vmatpush.bf16.msra.mxu2 %v983_v16 }
  0xae   :  { %v134_v19 = vpop.f32.mrf.mxu0 }
  0xaf   :  { %v135_v21 = vadd.f32 %v1135_v10, %v134_v19  ;;  %v1095_v19 = vld [vmem:[%s1889_s6 + $0x24] sm:$0xf0] }
  0xb1   :  { %v1315_v22 = vadd.f32 %v141_v20, %v135_v21  ;;  %v1094_v20 = vld [vmem:[%s1889_s6 + $0x24] sm:$0xf]  ;;  %v971_v21 = vor.u32 %v1095_v19, %v970_v17 }
  0xb3   :  { %153 = vadd.xlane.f32.xlu1 %v1315_v22 }
  0xb6   :  { %v136_v23 = vpop.f32.mrf.mxu0 }
  0xb7   :  { %v137_v25 = vadd.f32 %v1135_v10, %v136_v23  ;;  %v978_v10 = vld [vmem:[%s1889_s6 + $0x30] sm:$0xf]  ;;  %v972_v23 = vld [vmem:[%s1889_s6 + $0x28] sm:$0xf0] }
  0xb8   :  { %v979_v13 = vor.u32 %v1097_v11, %v978_v10  ;;  %v1137_v11 = vld [vmem:[%s1888_s5] ss:$0 sm:$0xff] }
  0xb9   :  { %v1321_v26 = vadd.f32 %v142_v24, %v137_v25  ;;  %v975_v24 = vor.u32 %v1094_v20, %v972_v23  ;;  %v962_v25 = vld [vmem:[%s1889_s6 + $0x10] sm:$0xf] }
  0xba   :  { %358 = vmatpush.bf16.msra.mxu1 %v979_v13  ;;  %v963_v29 = vor.u32 %v1093_v27, %v962_v25 }
  0xbb   :  { %155 = vadd.xlane.f32.xlu1 %v1321_v26  ;;  %378 = vmatpush.bf16.msra.mxu2 %v975_v24 }
  0xbe   :  { %359 = vmatpush.bf16.msra.mxu1 %v971_v21 }
  0xbf   :  { %379 = vmatpush.bf16.msra.mxu2 %v967_v31 }
  0xc2   :  { %360 = vmatpush.bf16.msra.mxu1 %v963_v29 }
 0x116   :  { %v150_v34 = vpop.xlane.xlu0 %149 }
 0x117   :  { %v164_v35 = vmul.f32 %v1324_v33, %v150_v34 }
 0x119   :  { %v1328_v36 = vsub.f32 %v1303_v14, %v164_v35  ;;  %v954_v35 = vld [vmem:[%s1889_s6] sm:$0xf] }
 0x11b   :  { %v172_v37 = vmul.f32 %v1328_v36, %v1328_v36 }
 0x11d   :  { %176 = vadd.xlane.f32.xlu2 %v172_v37  ;;  %v1091_v37 = vld [vmem:[%s1889_s6 + $0x4] sm:$0xf0] }
 0x11e   :  { %v152_v38 = vpop.xlane.xlu0 %151 }
 0x11f   :  { %v165_v39 = vmul.f32 %v1324_v33, %v152_v38  ;;  %v1090_v38 = vld [vmem:[%s1889_s6 + $0x4] sm:$0xf] }
 0x121   :  { %v1334_v40 = vsub.f32 %v1309_v18, %v165_v39  ;;  %v955_v39 = vor.u32 %v1091_v37, %v954_v35 }
 0x123   :  { %v173_v41 = vmul.f32 %v1334_v40, %v1334_v40  ;;  %361 = vmatpush.bf16.msra.mxu1 %v955_v39 }
 0x125   :  { %178 = vadd.xlane.f32.xlu2 %v173_v41  ;;  %v956_v41 = vld [vmem:[%s1889_s6 + $0x8] sm:$0xf0] }
 0x126   :  { %v154_v42 = vpop.xlane.xlu1 %153 }
 0x127   :  { %v166_v43 = vmul.f32 %v1324_v33, %v154_v42 }
 0x129   :  { %v1340_v44 = vsub.f32 %v1315_v22, %v166_v43  ;;  %v959_v43 = vor.u32 %v1090_v38, %v956_v41  ;;  %v268_v38 = vld [vmem:[%s1890_s7] sm:$0x3] }
 0x12a   :  { %v1463_v39 = vperm.slane %v268_v38, 0 }
 0x12b   :  { %v174_v45 = vmul.f32 %v1340_v44, %v1340_v44  ;;  %380 = vmatpush.bf16.msra.mxu2 %v959_v43 }
 0x12d   :  { %180 = vadd.xlane.f32.xlu0 %v174_v45 }
 0x12e   :  { %v156_v46 = vpop.xlane.xlu1 %155 }
 0x12f   :  { %v167_v47 = vmul.f32 %v1324_v33, %v156_v46 }
 0x131   :  { %v1346_v48 = vsub.f32 %v1321_v26, %v167_v47 }
 0x133   :  { %v175_v49 = vmul.f32 %v1346_v48, %v1346_v48 }
 0x135   :  { %182 = vadd.xlane.f32.xlu1 %v175_v49 }
 0x190   :  { %v177_v32 = vpop.xlane.xlu2 %176 }
 0x191   :  { %v184_v34 = vmul.f32 %v177_v32, %v1324_v33 }
 0x193   :  { %v188_v42 = vadd.f32 1e-06, %v184_v34 }
 0x195   :  { %1141 = vrsqrt.f32 %v188_v42  ;;  %vm198_vm2 = vweird.f32 %v188_v42 }
 0x198   :  { %v179_v45 = vpop.xlane.xlu2 %178 }
 0x199   :  { %v185_v46 = vmul.f32 %v179_v45, %v1324_v33 }
 0x19b   :  { %v1142_v47 = vpop.eup %1141  ;;  %v189_v49 = vadd.f32 1e-06, %v185_v46 }
 0x19c   :  { %v193_v50 = vmul.f32 %v1142_v47, %v188_v42  ;;  %vm199_vm1 = vweird.f32 %v1142_v47 }
 0x19d   :  { %1143 = vrsqrt.f32 %v189_v49  ;;  %vm200_vm3 = vmor %vm198_vm2, %vm199_vm1  ;;  %vm208_vm5 = vweird.f32 %v189_v49 }
 0x19e   :  { %v194_v51 = vmul.f32 %v1142_v47, %v193_v50 }
 0x1a0   :  { %v195_v52 = vmul.f32 0.5, %v194_v51  ;;  %v181_v53 = vpop.xlane.xlu0 %180 }
 0x1a1   :  { %v186_v54 = vmul.f32 %v181_v53, %v1324_v33 }
 0x1a2   :  { %v196_v55 = vsub.f32 1.5, %v195_v52 }
 0x1a3   :  { %v1144_v56 = vpop.eup %1143  ;;  %v190_v57 = vadd.f32 1e-06, %v186_v54 }
 0x1a4   :  { %v197_v58 = vmul.f32 %v1142_v47, %v196_v55  ;;  %v203_v59 = vmul.f32 %v1144_v56, %v189_v49  ;;  %vm209_vm4 = vweird.f32 %v1144_v56 }
 0x1a5   :  { %1145 = vrsqrt.f32 %v190_v57  ;;  %vm210_vm6 = vmor %vm208_vm5, %vm209_vm4  ;;  %vm218_vm8 = vweird.f32 %v190_v57 }
 0x1a6   :  { %v204_v60 = vmul.f32 %v1144_v56, %v203_v59  ;;  %v201_v63 = vsel %vm200_vm3, %v1142_v47, %v197_v58  ;;  %v1113_v59 = vld [vmem:[%s1891_s8 + $0x38] sm:$0xff] }
 0x1a7   :  { %v232_v4 = vmul.f32 %v201_v63, %v1328_v36  ;;  %848 = vmatpush.bf16.msra.mxu3 %v1113_v59  ;;  %v1109_v59 = vld [vmem:[%s1891_s8 + $0x18] sm:$0xff] }
 0x1a8   :  { %v205_v61 = vmul.f32 0.5, %v204_v60  ;;  %v183_v62 = vpop.xlane.xlu1 %182 }
 0x1a9   :  { %v187_v0 = vmul.f32 %v183_v62, %v1324_v33  ;;  %v239_v33 = vmul.f32 %v1136_v5, %v232_v4 }
 0x1aa   :  { %v206_v1 = vsub.f32 1.5, %v205_v61 }
 0x1ab   :  { %v1146_v2 = vpop.eup %1145  ;;  %v191_v3 = vadd.f32 1e-06, %v187_v0  ;;  %v246_v16 = vadd.f32 %v1137_v11, %v239_v33 }
 0x1ac   :  { %v207_v6 = vmul.f32 %v1144_v56, %v206_v1  ;;  %v213_v7 = vmul.f32 %v1146_v2, %v190_v57  ;;  %vm219_vm7 = vweird.f32 %v1146_v2 }
 0x1ad   :  { %1147 = vrsqrt.f32 %v191_v3  ;;  %vm220_vm9 = vmor %vm218_vm8, %vm219_vm7  ;;  %vm228_vm11 = vweird.f32 %v191_v3 }
 0x1ae   :  { %v214_v8 = vmul.f32 %v1146_v2, %v213_v7  ;;  %v211_v9 = vsel %vm210_vm6, %v1144_v56, %v207_v6  ;;  %v1121_v7 = vld [vmem:[%s1891_s8 + $0x78] sm:$0xff] }
 0x1af   :  { %v233_v10 = vmul.f32 %v211_v9, %v1334_v40  ;;  %867 = vmatpush.bf16.msrb.mxu0 %v1121_v7  ;;  %1122 = vmatpush.bf16.msrb.mxu1 %v1121_v7 }
 0x1b0   :  { %v215_v12 = vmul.f32 0.5, %v214_v8 }
 0x1b1   :  { %v240_v36 = vmul.f32 %v1136_v5, %v233_v10 }
 0x1b2   :  { %v216_v13 = vsub.f32 1.5, %v215_v12 }
 0x1b3   :  { %v1148_v15 = vpop.eup %1147  ;;  %v247_v17 = vadd.f32 %v1137_v11, %v240_v36  ;;  %v1111_v36 = vld [vmem:[%s1891_s8 + $0x28] sm:$0xff] }
 0x1b4   :  { %v217_v19 = vmul.f32 %v1146_v2, %v216_v13  ;;  %v223_v20 = vmul.f32 %v1148_v15, %v191_v3  ;;  %vm229_vm10 = vweird.f32 %v1148_v15 }
 0x1b5   :  { %v250_v21 = vpack.c.bf16 %v247_v17, %v246_v16  ;;  %vm230_vm12 = vmor %vm228_vm11, %vm229_vm10 }
 0x1b6   :  { %v224_v23 = vmul.f32 %v1148_v15, %v223_v20  ;;  %v221_v24 = vsel %vm220_vm9, %v1146_v2, %v217_v19  ;;  %v1112_v2 = vld [vmem:[%s1891_s8 + $0x30] sm:$0xff] }
 0x1b7   :  { %362 = vmatmul.bf16.vlgmr.msra.gmra.mxu1 %v250_v21  ;;  %381 = vmatmul.bf16.vlgmr.msra.gmra.mxu2 %v250_v21  ;;  %v234_v27 = vmul.f32 %v221_v24, %v1340_v44  ;;  %v1208_v21 = vmov -1.0  }
 0x1b8   :  { %v225_v40 = vmul.f32 0.5, %v224_v23  ;;  %849 = vmatpush.bf16.msra.mxu3 %v1112_v2 }
 0x1b9   :  { %v241_v31 = vmul.f32 %v1136_v5, %v234_v27 }
 0x1ba   :  { %v226_v25 = vsub.f32 1.5, %v225_v40 }
 0x1bb   :  { %v248_v34 = vadd.f32 %v1137_v11, %v241_v31 }
 0x1bc   :  { %v227_v28 = vmul.f32 %v1148_v15, %v226_v25  ;;  %850 = vmatpush.bf16.msra.mxu3 %v1111_v36  ;;  %v1120_v25 = vld [vmem:[%s1891_s8 + $0x70] sm:$0xff] }
 0x1bd   :  { %868 = vmatpush.bf16.msrb.mxu0 %v1120_v25  ;;  %1123 = vmatpush.bf16.msrb.mxu1 %v1120_v25 }
 0x1be   :  { %v231_v29 = vsel %vm230_vm12, %v1148_v15, %v227_v28 }
 0x1bf   :  { %v235_v30 = vmul.f32 %v231_v29, %v1346_v48  ;;  %v1471_v48 = vperm.slane %v268_v38, 1  ;;  %v1110_v38 = vld [vmem:[%s1891_s8 + $0x20] sm:$0xff] }
 0x1c0   :  { %851 = vmatpush.bf16.msra.mxu3 %v1110_v38 }
 0x1c1   :  { %v242_v32 = vmul.f32 %v1136_v5, %v235_v30 }
 0x1c3   :  { %v249_v35 = vadd.f32 %v1137_v11, %v242_v32 }
 0x1c4   :  { %852 = vmatpush.bf16.msra.mxu3 %v1109_v59 }
 0x1c5   :  { %v251_v37 = vpack.c.bf16 %v249_v35, %v248_v34 }
 0x1c7   :  { %367 = vmatmul.bf16.gmra.mxu1 %v251_v37  ;;  %386 = vmatmul.bf16.gmra.mxu2 %v251_v37 }
 0x234   :  { %v363_v44 = vpop.f32.mrf.mxu1 }
 0x235   :  { %v1466_v41 = vadd.f32 %v363_v44, %v1463_v39 }
 0x237   :  { %v1469_v42 = vmul.f32 0.70710677, %v1466_v41 }
 0x239   :  { %v424_v43 = vand.u32 2147483647, %v1469_v42 }
 0x23a   :  { %v382_v45 = vpop.f32.mrf.mxu2 }
 0x23b   :  { %v383_v46 = vadd.f32 %v382_v45, %v1471_v48  ;;  %v432_v49 = vmul.f32 0.3275911, %v424_v43  ;;  %v640_v60 = vsub.f32 0.0, %v424_v43 }
 0x23c   :  { %v365_v47 = vpop.f32.mrf.mxu1 }
 0x23d   :  { %v401_v50 = vmul.f32 0.70710677, %v383_v46  ;;  %v1476_v51 = vadd.f32 %v365_v47, %v1463_v39  ;;  %v1481_v54 = vadd.f32 1.0, %v432_v49  ;;  %v648_v3 = vmul.f32 %v640_v60, %v424_v43  ;;  %v1119_v47 = vld [vmem:[%s1891_s8 + $0x68] sm:$0xff] }
 0x23e   :  { %v1523_v20 = vmul.f32 0.5, %v383_v46  ;;  %869 = vmatpush.bf16.msrb.mxu0 %v1119_v47  ;;  %1124 = vmatpush.bf16.msrb.mxu1 %v1119_v47 }
 0x23f   :  { %v425_v52 = vand.u32 2147483647, %v401_v50  ;;  %v1479_v53 = vmul.f32 0.70710677, %v1476_v51  ;;  %1149 = vrcp.f32 %v1481_v54  ;;  %vm409_vm13 = vcmp.ge.f32.partialorder %v401_v50, 0.0 }
 0x240   :  { %v459_v10 = vand.u32 2147483648, %v1481_v54  ;;  %v656_v15 = vmul.f32 1.442695, %v648_v3  ;;  %v1527_v23 = vsel %vm409_vm13, 1.0, %v1208_v21  ;;  %v457_v28 = vand.u32 2147483647, %v1481_v54 }
 0x241   :  { %v433_v55 = vmul.f32 0.3275911, %v425_v52  ;;  %v426_v57 = vand.u32 2147483647, %v1479_v53  ;;  %v641_v4 = vsub.f32 0.0, %v425_v52  ;;  %vm453_vm3 = vweird.f32 %v1481_v54 }
 0x242   :  { %v384_v56 = vpop.f32.mrf.mxu2  ;;  %v1537_v29 = vor.u32 1.1754944e-38, %v459_v10  ;;  %vm1653_vm9 = vcmp.eq.f32.partialorder %v457_v28, 8.507059e+37 }
 0x243   :  { %v385_v58 = vadd.f32 %v384_v56, %v1471_v48  ;;  %v1488_v61 = vadd.f32 1.0, %v433_v55  ;;  %v434_v0 = vmul.f32 0.3275911, %v426_v57  ;;  %v642_v6 = vsub.f32 0.0, %v426_v57 }
 0x244   :  { %v368_v62 = vpop.f32.mrf.mxu1  ;;  %v649_v16 = vmul.f32 %v641_v4, %v425_v52  ;;  %v1118_v4 = vld [vmem:[%s1891_s8 + $0x60] sm:$0xff] }
 0x245   :  { %v1491_v63 = vmul.f32 0.70710677, %v385_v58  ;;  %1151 = vrcp.f32 %v1488_v61  ;;  %v1495_v1 = vadd.f32 %v368_v62, %v1463_v39  ;;  %v1508_v33 = vpop.eup %1149  ;;  %v1510_v11 = vadd.f32 1.0, %v434_v0  ;;  %870 = vmatpush.bf16.msrb.mxu0 %v1118_v4  ;;  %1125 = vmatpush.bf16.msrb.mxu1 %v1118_v4 }
 0x246   :  { %v650_v24 = vmul.f32 %v642_v6, %v426_v57  ;;  %v449_v27 = vmul.f32 %v1508_v33, %v1481_v54  ;;  %v472_v31 = vand.u32 2147483647, %v1488_v61  ;;  %v474_v34 = vand.u32 2147483648, %v1488_v61 }
 0x247   :  { %v1501_v5 = vand.u32 2147483647, %v1491_v63  ;;  %v1513_v12 = vmul.f32 0.70710677, %v1495_v1  ;;  %v658_v35 = vmul.f32 1.442695, %v649_v16  ;;  %vm468_vm15 = vweird.f32 %v1488_v61 }
 0x248   :  { %v660_v43 = vmul.f32 1.442695, %v650_v24  ;;  %v450_v49 = vsub.f32 1.0, %v449_v27  ;;  %v1556_v50 = vmul.f32 0.5, %v385_v58  ;;  %vm411_vm0 = vcmp.ge.f32.partialorder %v1491_v63, 0.0 }
 0x249   :  { %v435_v8 = vmul.f32 0.3275911, %v1501_v5  ;;  %v1542_v32 = vand.u32 2147483647, %v1513_v12  ;;  %v643_v56 = vsub.f32 0.0, %v1501_v5  ;;  %v475_v58 = vor.u32 1.1754944e-38, %v474_v34 }
 0x24a   :  { %v387_v9 = vpop.f32.mrf.mxu2  ;;  %vm473_vm2 = vcmp.eq.f32.partialorder %v472_v31, 8.507059e+37  ;;  %v451_v7 = vmul.f32 %v1508_v33, %v450_v49  ;;  %vm454_vm6 = vweird.f32 %v1508_v33  ;;  %vm483_vm10 = vweird.f32 %v1510_v11 }
 0x24b   :  { %v1152_v13 = vpop.eup %1151  ;;  %v1518_v17 = vadd.f32 1.0, %v435_v8  ;;  %v1521_v19 = vadd.f32 %v387_v9, %v1471_v48  ;;  %v436_v45 = vmul.f32 0.3275911, %v1542_v32  ;;  %v651_v36 = vmul.f32 %v643_v56, %v1501_v5  ;;  %vm1682_vm11 = vmor %vm453_vm3, %vm454_vm6 }
 0x24c   :  { %v464_v40 = vmul.f32 %v1152_v13, %v1488_v61  ;;  %vm469_vm14 = vweird.f32 %v1152_v13  ;;  %v370_v46 = vpop.f32.mrf.mxu1  ;;  %v644_v56 = vsub.f32 0.0, %v1542_v32 }
 0x24d   :  { %1153 = vrcp.f32 %v1518_v17  ;;  %v1546_v37 = vmul.f32 0.70710677, %v1521_v19  ;;  %v1563_v57 = vadd.f32 1.0, %v436_v45  ;;  %vm470_vm1 = vmor %vm468_vm15, %vm469_vm14  ;;  %v1573_v62 = vadd.f32 %v370_v46, %v1463_v39 }
 0x24e   :  { %v465_v30 = vsub.f32 1.0, %v464_v40  ;;  %1155 = vrcp.f32 %v1510_v11  ;;  %v1590_v39 = vsel %vm411_vm0, 1.0, %v1208_v21  ;;  %v502_v16 = vand.u32 2147483647, %v1518_v17 }
 0x24f   :  { %1157 = vpow2.f32 %v656_v15  ;;  %v1559_v52 = vand.u32 2147483647, %v1546_v37  ;;  %v1108_v15 = vld [vmem:[%s1891_s8 + $0x10] sm:$0xff]  ;;  %v504_v40 = vand.u32 2147483648, %v1518_v17  ;;  %v1606_v24 = vmul.f32 0.70710677, %v1573_v62 }
 0x250   :  { %v466_v44 = vmul.f32 %v1152_v13, %v465_v30  ;;  %1159 = vpow2.f32 %v658_v35  ;;  %v1117_v30 = vld [vmem:[%s1891_s8 + $0x58] sm:$0xff]  ;;  %vm498_vm5 = vweird.f32 %v1518_v17  ;;  %853 = vmatpush.bf16.msra.mxu3 %v1108_v15  ;;  %v1619_v35 = vadd.f32 %v1508_v33, %v451_v7 }
 0x251   :  { %v437_v61 = vmul.f32 0.3275911, %v1559_v52  ;;  %1161 = vpow2.f32 %v660_v43  ;;  %v645_v34 = vsub.f32 0.0, %v1559_v52  ;;  %v1627_v45 = vand.u32 2147483647, %v1606_v24  ;;  %871 = vmatpush.bf16.msrb.mxu0 %v1117_v30  ;;  %1126 = vmatpush.bf16.msrb.mxu1 %v1117_v30 }
 0x252   :  { %v467_v55 = vadd.f32 %v1152_v13, %v466_v44  ;;  %1163 = vrcp.f32 %v1563_v57  ;;  %v389_v5 = vpop.f32.mrf.mxu2  ;;  %vm503_vm8 = vcmp.eq.f32.partialorder %v502_v16, 8.507059e+37  ;;  %v505_v49 = vor.u32 1.1754944e-38, %v504_v40 }
 0x253   :  { %v1568_v60 = vpop.eup %1153  ;;  %v1630_v46 = vadd.f32 %v389_v5, %v1471_v48  ;;  %v1669_v28 = vmul.f32 %v644_v56, %v1542_v32 }
 0x254   :  { %v1575_v0 = vpop.eup %1155  ;;  %v471_v2 = vsel %vm470_vm1, %v1152_v13, %v467_v55  ;;  %v494_v3 = vmul.f32 %v1568_v60, %v1518_v17  ;;  %v1595_v13 = vadd.f32 1.0, %v437_v61  ;;  %vm499_vm4 = vweird.f32 %v1568_v60  ;;  %v1107_v17 = vld [vmem:[%s1891_s8 + $0x8] sm:$0xff] }
 0x255   :  { %v1582_v6 = vpop.eup %1157  ;;  %v1585_v8 = vsel %vm473_vm2, %v475_v58, %v471_v2  ;;  %v479_v63 = vmul.f32 %v1575_v0, %v1510_v11  ;;  %vm500_vm7 = vmor %vm498_vm5, %vm499_vm4  ;;  %v662_v55 = vmul.f32 1.442695, %v651_v36  ;;  %v438_v61 = vmul.f32 0.3275911, %v1627_v45  ;;  %v1116_v2 = vld [vmem:[%s1891_s8 + $0x50] sm:$0xff]  ;;  %854 = vmatpush.bf16.msra.mxu3 %v1107_v17 }
 0x256   :  { %v569_v9 = vmul.f32 1.0614054, %v1585_v8  ;;  %v495_v10 = vsub.f32 1.0, %v494_v3  ;;  %1165 = vrcp.f32 %v1595_v13  ;;  %v1614_v31 = vpop.eup %1159  ;;  %v532_v7 = vand.u32 2147483647, %v1595_v13  ;;  %872 = vmatpush.bf16.msrb.mxu0 %v1116_v2  ;;  %1127 = vmatpush.bf16.msrb.mxu1 %v1116_v2 }
 0x257   :  { %v1622_v38 = vpop.eup %1161  ;;  %v480_v58 = vsub.f32 1.0, %v479_v63  ;;  %v1659_v63 = vadd.f32 1.0, %v438_v61  ;;  %v1662_v16 = vmul.f32 0.70710677, %v1630_v46  ;;  %1167 = vpow2.f32 %v662_v55 }
 0x258   :  { %v577_v25 = vadd.f32 -1.4531521, %v569_v9  ;;  %v496_v27 = vmul.f32 %v1568_v60, %v495_v10  ;;  %v1635_v47 = vpop.eup %1163  ;;  %v653_v9 = vmul.f32 %v645_v34, %v1559_v52  ;;  %v1106_v52 = vld [vmem:[%s1891_s8] sm:$0xff]  ;;  %v534_v5 = vand.u32 2147483648, %v1595_v13  ;;  %v1115_v34 = vld [vmem:[%s1891_s8 + $0x48] sm:$0xff] }
 0x259   :  { %v509_v4 = vmul.f32 %v1635_v47, %v1563_v57  ;;  %1169 = vrcp.f32 %v1659_v63  ;;  %855 = vmatpush.bf16.msra.mxu3 %v1106_v52  ;;  %vm1694_vm12 = vcmp.eq.f32.partialorder %v532_v7, 8.507059e+37  ;;  %v646_v61 = vsub.f32 0.0, %v1627_v45 }
 0x25a   :  { %v585_v44 = vmul.f32 %v577_v25, %v1585_v8  ;;  %v497_v43 = vadd.f32 %v1568_v60, %v496_v27  ;;  %v481_v27 = vmul.f32 %v1575_v0, %v480_v58  ;;  %v1686_v17 = vmul.f32 1.442695, %v653_v9  ;;  %873 = vmatpush.bf16.msrb.mxu0 %v1115_v34  ;;  %1128 = vmatpush.bf16.msrb.mxu1 %v1115_v34 }
 0x25b   :  { %vm528_vm14 = vweird.f32 %v1595_v13  ;;  %vm484_vm15 = vweird.f32 %v1575_v0  ;;  %vm513_vm1 = vweird.f32 %v1563_v57  ;;  %vm543_vm5 = vweird.f32 %v1659_v63 }
 0x25c   :  { %v593_v59 = vadd.f32 1.4214138, %v585_v44  ;;  %v501_v48 = vsel %vm500_vm7, %v1568_v60, %v497_v43  ;;  %v1166_v10 = vpop.eup %1165  ;;  %v510_v44 = vsub.f32 1.0, %v509_v4  ;;  %vm1734_vm2 = vmor %vm483_vm10, %vm484_vm15  ;;  %vm514_vm6 = vweird.f32 %v1635_v47 }
 0x25d   :  { %v1645_v3 = vsel %vm503_vm8, %v505_v49, %v501_v48  ;;  %v524_v40 = vmul.f32 %v1166_v10, %v1595_v13  ;;  %v456_v49 = vsel %vm1682_vm11, %v1508_v33, %v1619_v35  ;;  %vm529_vm13 = vweird.f32 %v1166_v10  ;;  %v1168_v4 = vpop.eup %1167 }
 0x25e   :  { %v601_v36 = vmul.f32 %v593_v59, %v1585_v8  ;;  %v571_v15 = vmul.f32 1.0614054, %v1645_v3  ;;  %v1699_v59 = vand.u32 2147483647, %v1662_v16  ;;  %v535_v48 = vor.u32 1.1754944e-38, %v534_v5  ;;  %vm530_vm0 = vmor %vm528_vm14, %vm529_vm13 }
 0x25f   :  { %v525_v43 = vsub.f32 1.0, %v524_v40  ;;  %v511_v7 = vmul.f32 %v1635_v47, %v510_v44  ;;  %v1717_v13 = vsel %vm1653_vm9, %v1537_v29, %v456_v49  ;;  %vm1768_vm9 = vmor %vm513_vm1, %vm514_vm6  ;;  %vm408_vm11 = vcmp.ge.f32.partialorder %v1469_v42, 0.0 }
 0x260   :  { %v609_v25 = vadd.f32 -0.28449672, %v601_v36  ;;  %v579_v30 = vadd.f32 -1.4531521, %v571_v15  ;;  %v439_v35 = vmul.f32 0.3275911, %v1699_v59  ;;  %v482_v36 = vadd.f32 %v1575_v0, %v481_v27  ;;  %v1707_v15 = vpop.eup %1169 }
 0x261   :  { %v526_v58 = vmul.f32 %v1166_v10, %v525_v43  ;;  %v539_v27 = vmul.f32 %v1707_v15, %v1659_v63  ;;  %v1744_v43 = vadd.f32 %v1635_v47, %v511_v7  ;;  %vm544_vm10 = vweird.f32 %v1707_v15 }
 0x262   :  { %v617_v55 = vmul.f32 %v609_v25, %v1585_v8  ;;  %v587_v56 = vmul.f32 %v579_v30, %v1645_v3  ;;  %v1712_v5 = vadd.f32 1.0, %v439_v35  ;;  %v487_v30 = vand.u32 2147483647, %v1510_v11  ;;  %vm1805_vm14 = vmor %vm543_vm5, %vm544_vm10 }
 0x263   :  { %v527_v9 = vadd.f32 %v1166_v10, %v526_v58  ;;  %vm413_vm1 = vcmp.ge.f32.partialorder %v1546_v37, 0.0 }
 0x264   :  { %v625_v2 = vadd.f32 0.2548296, %v617_v55  ;;  %v595_v33 = vadd.f32 1.4214138, %v587_v56  ;;  %1171 = vrcp.f32 %v1712_v5  ;;  %v540_v56 = vsub.f32 1.0, %v539_v27 }
 0x265   :  { %v531_v25 = vsel %vm530_vm0, %v1166_v10, %v527_v9  ;;  %v568_v10 = vmul.f32 1.0614054, %v1717_v13  ;;  %v562_v58 = vand.u32 2147483647, %v1712_v5  ;;  %vm558_vm3 = vweird.f32 %v1712_v5 }
 0x266   :  { %v633_v52 = vmul.f32 %v625_v2, %v1585_v8  ;;  %v603_v40 = vmul.f32 %v595_v33, %v1645_v3  ;;  %v489_v8 = vand.u32 2147483648, %v1510_v11  ;;  %v1727_v44 = vsel %vm1694_vm12, %v535_v48, %v531_v25 }
 0x267   :  { %v573_v60 = vmul.f32 1.0614054, %v1727_v44  ;;  %v564_v11 = vand.u32 2147483648, %v1712_v5  ;;  %v647_v48 = vsub.f32 0.0, %v1699_v59  ;;  %vm488_vm4 = vcmp.eq.f32.partialorder %v487_v30, 8.507059e+37 }
 0x268   :  { %v673_v34 = vmul.f32 %v1614_v31, %v633_v52  ;;  %v611_v32 = vadd.f32 -0.28449672, %v603_v40  ;;  %v486_v31 = vsel %vm1734_vm2, %v1575_v0, %v482_v36  ;;  %v490_v2 = vor.u32 1.1754944e-38, %v489_v8 }
 0x269   :  { %v581_v54 = vadd.f32 -1.4531521, %v573_v60  ;;  %v576_v9 = vadd.f32 -1.4531521, %v568_v10  ;;  %v541_v40 = vmul.f32 %v1707_v15, %v540_v56  ;;  %v565_v25 = vor.u32 1.1754944e-38, %v564_v11 }
 0x26a   :  { %v681_v49 = vsub.f32 1.0, %v673_v34  ;;  %v619_v55 = vmul.f32 %v611_v32, %v1645_v3  ;;  %v1754_v7 = vsel %vm488_vm4, %v490_v2, %v486_v31  ;;  %v1172_v36 = vpop.eup %1171  ;;  %vm1761_vm7 = vcmp.eq.f32.partialorder %v562_v58, 8.507059e+37 }
 0x26b   :  { %v589_v35 = vmul.f32 %v581_v54, %v1727_v44  ;;  %v554_v30 = vmul.f32 %v1172_v36, %v1712_v5  ;;  %v584_v32 = vmul.f32 %v576_v9, %v1717_v13  ;;  %vm559_vm8 = vweird.f32 %v1172_v36 }
 0x26c   :  { %v689_v33 = vmul.f32 %v681_v49, %v1527_v23  ;;  %v627_v0 = vadd.f32 0.2548296, %v619_v55  ;;  %v570_v23 = vmul.f32 1.0614054, %v1754_v7  ;;  %v517_v31 = vand.u32 2147483647, %v1563_v57  ;;  %vm1792_vm12 = vmor %vm558_vm3, %vm559_vm8 }
 0x26d   :  { %v597_v8 = vadd.f32 1.4214138, %v589_v35  ;;  %v555_v49 = vsub.f32 1.0, %v554_v30  ;;  %v592_v55 = vadd.f32 1.4214138, %v584_v32  ;;  %v516_v56 = vsel %vm1768_vm9, %v1635_v47, %v1744_v43  ;;  %v1114_v35 = vld [vmem:[%s1891_s8 + $0x40] sm:$0xff] }
 0x26e   :  { %v635_v52 = vmul.f32 %v627_v0, %v1645_v3  ;;  %v697_v27 = vadd.f32 1.0, %v689_v33  ;;  %v578_v60 = vadd.f32 -1.4531521, %v570_v23  ;;  %v519_v54 = vand.u32 2147483648, %v1563_v57  ;;  %874 = vmatpush.bf16.msrb.mxu0 %v1114_v35  ;;  %1129 = vmatpush.bf16.msrb.mxu1 %v1114_v35 }
 0x26f   :  { %v605_v10 = vmul.f32 %v597_v8, %v1727_v44  ;;  %v542_v58 = vadd.f32 %v1707_v15, %v541_v40  ;;  %v556_v33 = vmul.f32 %v1172_v36, %v555_v49  ;;  %v600_v0 = vmul.f32 %v592_v55, %v1717_v13 }
 0x270   :  { %v675_v29 = vmul.f32 %v1168_v4, %v635_v52  ;;  %v586_v11 = vmul.f32 %v578_v60, %v1754_v7  ;;  %v705_v9 = vmul.f32 %v697_v27, %v1523_v20  ;;  %v520_v52 = vor.u32 1.1754944e-38, %v519_v54 }
 0x271   :  { %v613_v2 = vadd.f32 -0.28449672, %v605_v10  ;;  %v557_v57 = vadd.f32 %v1172_v36, %v556_v33  ;;  %v608_v23 = vadd.f32 -0.28449672, %v600_v0  ;;  %vm518_vm13 = vcmp.eq.f32.partialorder %v517_v31, 8.507059e+37 }
 0x272   :  { %v683_v4 = vsub.f32 1.0, %v675_v29  ;;  %v594_v43 = vadd.f32 1.4214138, %v586_v11  ;;  %v547_v8 = vand.u32 2147483647, %v1659_v63  ;;  %v1799_v30 = vsel %vm518_vm13, %v520_v52, %v516_v56 }
 0x273   :  { %v561_v32 = vsel %vm1792_vm12, %v1172_v36, %v557_v57  ;;  %v616_v29 = vmul.f32 %v608_v23, %v1717_v13  ;;  %v546_v60 = vsel %vm1805_vm14, %v1707_v15, %v542_v58  ;;  %v549_v3 = vand.u32 2147483648, %v1659_v63 }
 0x274   :  { %v691_v47 = vmul.f32 %v683_v4, %v1590_v39  ;;  %v621_v39 = vmul.f32 %v613_v2, %v1727_v44  ;;  %v602_v27 = vmul.f32 %v594_v43, %v1754_v7  ;;  %v1819_v10 = vsel %vm1761_vm7, %v565_v25, %v561_v32 }
 0x275   :  { %v572_v55 = vmul.f32 1.0614054, %v1799_v30  ;;  %v575_v56 = vmul.f32 1.0614054, %v1819_v10  ;;  %v655_v36 = vmul.f32 %v647_v48, %v1699_v59  ;;  %v624_v4 = vadd.f32 0.2548296, %v616_v29 }
 0x276   :  { %v699_v20 = vadd.f32 1.0, %v691_v47  ;;  %v610_v49 = vadd.f32 -0.28449672, %v602_v27  ;;  %v550_v11 = vor.u32 1.1754944e-38, %v549_v3  ;;  %vm548_vm15 = vcmp.eq.f32.partialorder %v547_v8, 8.507059e+37 }
 0x277   :  { %v629_v54 = vadd.f32 0.2548296, %v621_v39  ;;  %v583_v34 = vadd.f32 -1.4531521, %v575_v56  ;;  %v632_v25 = vmul.f32 %v624_v4, %v1717_v13  ;;  %1173 = vpow2.f32 %v1686_v17 }
 0x278   :  { %v707_v31 = vmul.f32 %v699_v20, %v1556_v50  ;;  %v618_v15 = vmul.f32 %v610_v49, %v1754_v7  ;;  %v580_v50 = vadd.f32 -1.4531521, %v572_v55  ;;  %v1828_v58 = vsel %vm548_vm15, %v550_v11, %v546_v60 }
 0x279   :  { %v574_v33 = vmul.f32 1.0614054, %v1828_v58  ;;  %vm410_vm0 = vcmp.ge.f32.partialorder %v1479_v53, 0.0  ;;  %v664_v48 = vmul.f32 1.442695, %v1669_v28  ;;  %v591_v0 = vmul.f32 %v583_v34, %v1819_v10 }
 0x27a   :  { %v713_v63 = vpack.c.bf16 %v707_v31, %v705_v9  ;;  %v626_v2 = vadd.f32 0.2548296, %v618_v15  ;;  %v588_v59 = vmul.f32 %v580_v50, %v1799_v30  ;;  %v672_v35 = vmul.f32 %v1582_v6, %v632_v25 }
 0x27b   :  { %v654_v13 = vmul.f32 %v646_v61, %v1627_v45  ;;  %v582_v9 = vadd.f32 -1.4531521, %v574_v33  ;;  %v637_v43 = vmul.f32 %v629_v54, %v1727_v44  ;;  %v599_v52 = vadd.f32 1.4214138, %v591_v0 }
 0x27c   :  { %875 = vmatmul.bf16.vlgmr.msrb.gmra.mxu0 %v713_v63  ;;  %v634_v17 = vmul.f32 %v626_v2, %v1754_v7  ;;  %v596_v47 = vadd.f32 1.4214138, %v588_v59  ;;  %v670_v57 = vmul.f32 1.442695, %v655_v36  ;;  %v680_v40 = vsub.f32 1.0, %v672_v35 }
 0x27d   :  { %v416_v28 = vsel %vm408_vm11, 1.0, %v1208_v21  ;;  %v590_v6 = vmul.f32 %v582_v9, %v1828_v58  ;;  %v418_v45 = vsel %vm410_vm0, 1.0, %v1208_v21  ;;  %v607_v61 = vmul.f32 %v599_v52, %v1819_v10  ;;  %v1174_v7 = vpop.eup %1173 }
 0x27e   :  { %v674_v23 = vmul.f32 %v1622_v38, %v634_v17  ;;  %v604_v8 = vmul.f32 %v596_v47, %v1799_v30  ;;  %v688_v44 = vmul.f32 %v680_v40, %v416_v28  ;;  %1175 = vpow2.f32 %v664_v48 }
 0x27f   :  { %v598_v39 = vadd.f32 1.4214138, %v590_v6  ;;  %v677_v42 = vmul.f32 %v1174_v7, %v637_v43  ;;  %v668_v5 = vmul.f32 1.442695, %v654_v13  ;;  %v615_v32 = vadd.f32 -0.28449672, %v607_v61 }
 0x280   :  { %v682_v20 = vsub.f32 1.0, %v674_v23  ;;  %v612_v27 = vadd.f32 -0.28449672, %v604_v8  ;;  %1177 = vpow2.f32 %v670_v57  ;;  %v696_v29 = vadd.f32 1.0, %v688_v44 }
 0x281   :  { %v606_v60 = vmul.f32 %v598_v39, %v1828_v58  ;;  %v392_v53 = vmul.f32 0.5, %v1466_v41  ;;  %v623_v31 = vmul.f32 %v615_v32, %v1819_v10  ;;  %v394_v49 = vmul.f32 0.5, %v1476_v51 }
 0x282   :  { %v690_v38 = vmul.f32 %v682_v20, %v418_v45  ;;  %v620_v3 = vmul.f32 %v612_v27, %v1799_v30  ;;  %v685_v4 = vsub.f32 1.0, %v677_v42  ;;  %1179 = vpow2.f32 %v668_v5 }
 0x283   :  { %v614_v56 = vadd.f32 -0.28449672, %v606_v60  ;;  %v631_v11 = vadd.f32 0.2548296, %v623_v31  ;;  %v704_v63 = vmul.f32 %v696_v29, %v392_v53  ;;  %vm412_vm2 = vcmp.ge.f32.partialorder %v1513_v12, 0.0 }
 0x284   :  { %v698_v55 = vadd.f32 1.0, %v690_v38  ;;  %v628_v36 = vadd.f32 0.2548296, %v620_v3  ;;  %v1176_v15 = vpop.eup %1175  ;;  %v421_v25 = vsel %vm413_vm1, 1.0, %v1208_v21  ;;  %vm415_vm3 = vcmp.ge.f32.partialorder %v1662_v16, 0.0 }
 0x285   :  { %v622_v54 = vmul.f32 %v614_v56, %v1828_v58  ;;  %v639_v51 = vmul.f32 %v631_v11, %v1819_v10  ;;  %v693_v59 = vmul.f32 %v685_v4, %v421_v25  ;;  %vm414_vm4 = vcmp.ge.f32.partialorder %v1606_v24, 0.0 }
 0x286   :  { %v706_v50 = vmul.f32 %v698_v55, %v394_v49  ;;  %v636_v34 = vmul.f32 %v628_v36, %v1799_v30  ;;  %v1178_v41 = vpop.eup %1177  ;;  %v420_v30 = vsel %vm412_vm2, 1.0, %v1208_v21  ;;  %v423_v12 = vsel %vm415_vm3, 1.0, %v1208_v21 }
 0x287   :  { %v630_v33 = vadd.f32 0.2548296, %v622_v54  ;;  %v679_v48 = vmul.f32 %v1178_v41, %v639_v51  ;;  %v701_v47 = vadd.f32 1.0, %v693_v59  ;;  %v397_v16 = vmul.f32 0.5, %v1521_v19  ;;  %v1138_v19 = vld [vmem:[%s1892_s9] ss:$0 sm:$0xff] }
 0x288   :  { %v712_v2 = vpack.c.bf16 %v706_v50, %v704_v63  ;;  %v676_v37 = vmul.f32 %v1176_v15, %v636_v34  ;;  %v1180_v13 = vpop.eup %1179  ;;  %v422_v57 = vsel %vm414_vm4, 1.0, %v1208_v21  ;;  %v396_v24 = vmul.f32 0.5, %v1495_v1  ;;  %s1209_s9 = smov [#allocation2]  }
 0x289   :  { %v638_v0 = vmul.f32 %v630_v33, %v1828_v58  ;;  %v687_v17 = vsub.f32 1.0, %v679_v48  ;;  %v399_v58 = vmul.f32 0.5, %v1630_v46  ;;  %v709_v6 = vmul.f32 %v701_v47, %v397_v16  ;;  %s898_s19 = sshll.u32 %s1209_s9, 4  ;;  %s899_s19 = int_to_ptr.vmem [resolvable:$true] %s898_s19 }
 0x28a   :  { %856 = vmatmul.bf16.vlgmr.msra.gmra.mxu3 %v712_v2  ;;  %v684_v35 = vsub.f32 1.0, %v676_v37  ;;  %v398_v45 = vmul.f32 0.5, %v1573_v62 }
 0x28b   :  { %v678_v10 = vmul.f32 %v1180_v13, %v638_v0  ;;  %v695_v43 = vmul.f32 %v687_v17, %v423_v12 }
 0x28c   :  { %v692_v9 = vmul.f32 %v684_v35, %v420_v30 }
 0x28d   :  { %v686_v52 = vsub.f32 1.0, %v678_v10  ;;  %v703_v40 = vadd.f32 1.0, %v695_v43 }
 0x28e   :  { %v700_v23 = vadd.f32 1.0, %v692_v9 }
 0x28f   :  { %v694_v28 = vmul.f32 %v686_v52, %v422_v57  ;;  %v711_v8 = vmul.f32 %v703_v40, %v399_v58 }
 0x290   :  { %v708_v7 = vmul.f32 %v700_v23, %v396_v24 }
 0x291   :  { %v702_v61 = vadd.f32 1.0, %v694_v28  ;;  %v715_v44 = vpack.c.bf16 %v711_v8, %v709_v6 }
 0x293   :  { %v710_v20 = vmul.f32 %v702_v61, %v398_v45  ;;  %880 = vmatmul.bf16.vlgmr.msrb.gmra.mxu1 %v715_v44 }
 0x295   :  { %v714_v39 = vpack.c.bf16 %v710_v20, %v708_v7 }
 0x29a   :  { %861 = vmatmul.bf16.gmra.mxu3 %v714_v39 }
 0x2f9   :  { %v876_v46 = vpop.f32.mrf.mxu0 }
 0x301   :  { %v878_v32 = vpop.f32.mrf.mxu0 }
 0x30d   :  { %v857_v21 = vpop.f32.mrf.mxu3 }
 0x30e   :  { %v858_v27 = vadd.f32 %v1138_v19, %v857_v21 }
 0x310   :  { %v877_v42 = vadd.f32 %v876_v46, %v858_v27  ;;  %v881_v3 = vpop.f32.mrf.mxu1 }
 0x312   :  { %v886_v5 = vadd.f32 %v877_v42, %v1303_v14 }
 0x314   :  { %890 = vst [vmem:[#allocation2] sm:$0xff] %v886_v5 }
 0x315   :  { %v859_v1 = vpop.f32.mrf.mxu3 }
 0x316   :  { %v860_v62 = vadd.f32 %v1138_v19, %v859_v1 }
 0x318   :  { %v879_v38 = vadd.f32 %v878_v32, %v860_v62  ;;  %v883_v14 = vpop.f32.mrf.mxu1 }
 0x31a   :  { %v887_v29 = vadd.f32 %v879_v38, %v1309_v18 }
 0x31c   :  { %891 = vst [vmem:[#allocation2 + $0x8] sm:$0xff] %v887_v29 }
 0x31d   :  { %v862_v60 = vpop.f32.mrf.mxu3 }
 0x31e   :  { %v863_v53 = vadd.f32 %v1138_v19, %v862_v60 }
 0x320   :  { %v882_v31 = vadd.f32 %v881_v3, %v863_v53 }
 0x322   :  { %v888_v49 = vadd.f32 %v882_v31, %v1315_v22 }
 0x324   :  { %892 = vst [vmem:[#allocation2 + $0x10] sm:$0xff] %v888_v49 }
 0x325   :  { %v864_v55 = vpop.f32.mrf.mxu3 }
 0x326   :  { %v865_v56 = vadd.f32 %v1138_v19, %v864_v55 }
 0x328   :  { %v884_v36 = vadd.f32 %v883_v14, %v865_v56 }
 0x32a   :  { %v889_v18 = vadd.f32 %v884_v36, %v1321_v26 }
 0x32c   :  { %893 = vst [vmem:[#allocation2 + $0x18] sm:$0xff] %v889_v18 }
 0x32d   :  { %906 = dma.vmem_to_hbm [thread:$0]  %s899_s19, 512, %s901_s21, [#allocation3], %s1210_s22, %s1210_s22, %s1211_s23  }
 0x32e   :  { %1205 = dma.done.wait [#allocation3], 512  }
 0x32f   :  { %1206 = vsyncadd [#allocation3], 4294966784 }
 0x330   :  { %911 = vsyncpa [#allocation3], 1 }

</bundles_post_ra>
